<compile_context>
chip_gen: v6e
topology: v6e:2x2x1
jax: 0.10.0
libtpu: 0.0.40
codegen_flags: <defaults>
</compile_context>

<pallas_src>
import jax
import jax.numpy as jnp
import numpy as np
from jax import lax
from jax.experimental import pallas as pl
from jax.experimental.pallas import tpu as pltpu


def _round_up(x, m):
    return (x + m - 1) // m * m


def _im2col_input(x_nhwc):
    """XLA-side im2col of the *raw network input* for Conv2d(k=4, s=2, p=1).

    (N, H, W, C) -> (N, H//2, W//2, 16*C); tap order (kh, kw, c), kh-major.
    Only the small input tensor goes through this; all other layers build
    their patches in-kernel from VMEM-resident activations.
    """
    n, h, w, c = x_nhwc.shape
    ho, wo = h // 2, w // 2
    xp = jnp.pad(x_nhwc, ((0, 0), (1, 1), (1, 1), (0, 0)))
    taps = []
    for kh in range(4):
        for kw in range(4):
            taps.append(xp[:, kh:kh + 2 * ho - 1:2, kw:kw + 2 * wo - 1:2, :])
    return jnp.concatenate(taps, axis=-1)


def _prep_weight(w, scale, cin_pad, cout_pad):
    """(4,4,Cin,Cout) conv weight -> (16*cin_pad, cout_pad) bf16 matmul weight.

    The eval-mode BatchNorm scale is folded over Cout; padded Cin rows are zero
    so channel-padded activations can be consumed without slicing.  K ordering
    is (kh, kw, cin), kh-major, matching the in-kernel patch assembly.
    """
    kh, kw, cin, cout = w.shape
    assert (kh, kw) == (4, 4)
    wf = w.astype(jnp.float32) * scale.reshape(1, 1, 1, cout)
    wf = jnp.pad(wf, ((0, 0), (0, 0), (0, cin_pad - cin), (0, cout_pad - cout)))
    return wf.reshape(16 * cin_pad, cout_pad).astype(jnp.bfloat16)


def _fold_bn(gamma, beta, mean, var, eps=1e-5):
    # TODO(synk): eval-mode BatchNorm only (running statistics); the
    # training-mode batch-statistics path is not implemented.
    scale = gamma / jnp.sqrt(var + eps)
    bias = beta - mean * scale
    return scale, bias


def patch_image_discriminator(x_nchw, params):
    """Forward pass.  Returns (h, None) with h = conv stack output .squeeze()."""
    n, c, h, w = x_nchw.shape
    assert h % 16 == 0 and w % 16 == 0, "spatial dims must be multiples of 16"
    ndf = params["w1"].shape[-1]

    # Per-layer output spatial sizes and lane-padded channel counts.
    oh1, ow1 = h // 2, w // 2
    oh2, ow2 = h // 4, w // 4
    oh3, ow3 = h // 8, w // 8
    oh4, ow4 = h // 16, w // 16
    cp1 = _round_up(ndf, 128)
    cp2 = _round_up(2 * ndf, 128)
    cp3 = _round_up(4 * ndf, 128)
    cp4 = 128                       # final Cout = 1, lane-padded
    k1 = 16 * c

    x = jnp.transpose(x_nchw, (0, 2, 3, 1)).astype(jnp.bfloat16)   # NHWC bf16
    patches = _im2col_input(x)                                     # (N, oh1, ow1, 16c)

    s2, bb2 = _fold_bn(params["g2"], params["b2"], params["m2"], params["v2"])
    s3, bb3 = _fold_bn(params["g3"], params["b3"], params["m3"], params["v3"])
    w1p = _prep_weight(params["w1"], jnp.ones((ndf,), jnp.float32), c, cp1)
    w2p = _prep_weight(params["w2"], s2, cp1, cp2)
    w3p = _prep_weight(params["w3"], s3, cp2, cp3)
    w4p = _prep_weight(params["w4"], jnp.ones((1,), jnp.float32), cp3, cp4)
    b2p = jnp.pad(bb2, (0, cp2 - 2 * ndf)).reshape(1, cp2).astype(jnp.float32)
    b3p = jnp.pad(bb3, (0, cp3 - 4 * ndf)).reshape(1, cp3).astype(jnp.float32)

    # ---------------- in-kernel helpers (close over the static Python ints) --

    def parity_selectors(wout):
        # (wout//2, wout) 0/1 matrices selecting even / odd columns of a row.
        r = lax.broadcasted_iota(jnp.int32, (wout // 2, wout), 0)
        cc = lax.broadcasted_iota(jnp.int32, (wout // 2, wout), 1)
        even = (cc == 2 * r).astype(jnp.float32)
        odd = (cc == 2 * r + 1).astype(jnp.float32)
        return even, odd

    def emit_paired(dst_ref, ho, acc, ev_sel, od_sel, wout):
        # acc: (wout, coutp) f32 conv-output row -> width-paired bf16 row.
        even = jnp.dot(ev_sel, acc, preferred_element_type=jnp.float32)
        odd = jnp.dot(od_sel, acc, preferred_element_type=jnp.float32)
        paired = jnp.concatenate([even, odd], axis=-1).astype(dst_ref.dtype)
        dst_ref[ho + 1, 1:wout // 2 + 1, :] = paired

    def paired_patch(rows, wout, cpin):
        # rows: (4, wout+2, 2*cpin) = four consecutive padded input rows in the
        # width-paired layout.  Returns the (wout, 16*cpin) im2col block for one
        # output row; tap order (kh, kw, c), kh-major (matches _prep_weight).
        taps = []
        for kh in range(4):
            r = rows[kh]
            taps.append(r[0:wout, cpin:2 * cpin])          # kw = 0
            taps.append(r[1:wout + 1, 0:cpin])             # kw = 1
            taps.append(r[1:wout + 1, cpin:2 * cpin])      # kw = 2
            taps.append(r[2:wout + 2, 0:cpin])             # kw = 3
        return jnp.concatenate(taps, axis=-1)

    def conv_from_paired(src_ref, w_ref, bias, hout, wout, cpin, leaky, emit):
        # TODO(synk): processing a block of output rows per iteration (instead
        # of one) would raise MXU utilization; kept per-row for simplicity.
        wmat = w_ref[...]

        def body(ho, carry):
            rows = src_ref[pl.ds(2 * ho, 4), :, :]
            acc = jnp.dot(paired_patch(rows, wout, cpin), wmat,
                          preferred_element_type=jnp.float32)
            if bias is not None:
                acc = acc + bias
            if leaky:
                acc = jnp.where(acc > 0, acc, 0.2 * acc)
            emit(ho, acc)
            return carry

        lax.fori_loop(0, hout, body, 0)

    # ---------------- the fused kernel --------------------------------------

    def kernel(p_ref, w1_ref, w2_ref, b2_ref, w3_ref, b3_ref, w4_ref,
               o_ref, a2_ref, a3_ref, a4_ref):
        # Re-zero scratch every step: only the 1-pixel padding border needs it
        # (interiors are fully overwritten below), but a full VMEM memset is
        # cheap and stays correct if the "parallel" batch axis is split across
        # TensorCores (each core starts at a non-zero program_id).
        a2_ref[...] = jnp.zeros_like(a2_ref)
        a3_ref[...] = jnp.zeros_like(a3_ref)
        a4_ref[...] = jnp.zeros_like(a4_ref)

        # --- layer 1: Conv(c -> ndf) + LeakyReLU, patches prefetched from HBM.
        ev1, od1 = parity_selectors(ow1)
        wmat1 = w1_ref[...]

        def l1_body(ho, carry):
            pr = p_ref[0, ho, :, :]                          # (ow1, 16*c) bf16
            acc = jnp.dot(pr, wmat1, preferred_element_type=jnp.float32)
            acc = jnp.where(acc > 0, acc, 0.2 * acc)
            emit_paired(a2_ref, ho, acc, ev1, od1, ow1)
            return carry

        lax.fori_loop(0, oh1, l1_body, 0)

        # --- layer 2: Conv(ndf -> 2ndf) + BN (scale folded in w2) + LeakyReLU.
        ev2, od2 = parity_selectors(ow2)
        conv_from_paired(
            a2_ref, w2_ref, b2_ref[...], oh2, ow2, cp1, True,
            lambda ho, acc: emit_paired(a3_ref, ho, acc, ev2, od2, ow2))

        # --- layer 3: Conv(2ndf -> 4ndf) + BN + LeakyReLU.
        ev3, od3 = parity_selectors(ow3)
        conv_from_paired(
            a3_ref, w3_ref, b3_ref[...], oh3, ow3, cp2, True,
            lambda ho, acc: emit_paired(a4_ref, ho, acc, ev3, od3, ow3))

        # --- layer 4: Conv(4ndf -> 1), no activation; lane-padded f32 output.
        def emit_out(ho, acc):
            o_ref[0, ho, :, :] = acc

        conv_from_paired(a4_ref, w4_ref, None, oh4, ow4, cp3, False, emit_out)

    # ---------------- pallas_call plumbing ----------------------------------

    # VMEM budget from the actual per-step footprint (+ slack), capped for v7x.
    weight_bytes = 2 * (k1 * cp1 + 16 * cp1 * cp2 + 16 * cp2 * cp3 + 16 * cp3 * cp4)
    scratch_bytes = 2 * ((oh1 + 2) * (ow1 // 2 + 2) * 2 * cp1
                         + (oh2 + 2) * (ow2 // 2 + 2) * 2 * cp2
                         + (oh3 + 2) * (ow3 // 2 + 2) * 2 * cp3)
    step_io_bytes = 2 * (oh1 * ow1 * k1 * 2) + 2 * (oh4 * ow4 * cp4 * 4)
    # NOTE: constant-index weights/biases are DMA'ed only once but still get
    # the default double buffer (pl.Buffered(1) would halve that; left at the
    # default since the extra couple of MiB is well inside the budget).
    est = step_io_bytes + 2 * weight_bytes + 2 * 4 * (cp2 + cp3) + scratch_bytes
    vmem_limit = int(min(64 * 2 ** 20, est + 16 * 2 ** 20))

    # TODO(synk): for N == 1 on v7x, a spatial row-strip grid split would be
    # needed to occupy both TensorCores; with N >= 2 the batch grid suffices.
    out = pl.pallas_call(
        kernel,
        out_shape=jax.ShapeDtypeStruct((n, oh4, ow4, cp4), jnp.float32),
        grid_spec=pltpu.PrefetchScalarGridSpec(
            num_scalar_prefetch=0,
            grid=(n,),
            in_specs=[
                pl.BlockSpec((1, oh1, ow1, k1), lambda i: (i, 0, 0, 0)),
                pl.BlockSpec((k1, cp1), lambda i: (0, 0)),
                pl.BlockSpec((16 * cp1, cp2), lambda i: (0, 0)),
                pl.BlockSpec((1, cp2), lambda i: (0, 0)),
                pl.BlockSpec((16 * cp2, cp3), lambda i: (0, 0)),
                pl.BlockSpec((1, cp3), lambda i: (0, 0)),
                pl.BlockSpec((16 * cp3, cp4), lambda i: (0, 0)),
            ],
            out_specs=pl.BlockSpec((1, oh4, ow4, cp4), lambda i: (i, 0, 0, 0)),
            scratch_shapes=[
                pltpu.VMEM((oh1 + 2, ow1 // 2 + 2, 2 * cp1), jnp.bfloat16),
                pltpu.VMEM((oh2 + 2, ow2 // 2 + 2, 2 * cp2), jnp.bfloat16),
                pltpu.VMEM((oh3 + 2, ow3 // 2 + 2, 2 * cp3), jnp.bfloat16),
            ],
        ),
        compiler_params=pltpu.CompilerParams(
            dimension_semantics=("parallel",),
            vmem_limit_bytes=vmem_limit,
        ),
    )(patches, w1p, w2p, b2p, w3p, b3p, w4p)

    h_out = out[..., 0:1]                       # (N, oh4, ow4, 1)
    h_out = jnp.transpose(h_out, (0, 3, 1, 2))  # NCHW (N, 1, H/16, W/16)
    return jnp.squeeze(h_out), None             # matches torch .squeeze()


# ---------------- pure-JAX f32 reference (for the self-check) ---------------

def _reference_forward(x_nchw, params, eps=1e-5):
    x = jnp.transpose(x_nchw, (0, 2, 3, 1)).astype(jnp.float32)

    def conv(v, wgt):
        return lax.conv_general_dilated(
            v, wgt.astype(jnp.float32), (2, 2), [(1, 1), (1, 1)],
            dimension_numbers=("NHWC", "HWIO", "NHWC"))

    def lrelu(v):
        return jnp.where(v > 0, v, 0.2 * v)

    def bn(v, g, b, m, var):
        return (v - m) / jnp.sqrt(var + eps) * g + b

    x = lrelu(conv(x, params["w1"]))
    x = lrelu(bn(conv(x, params["w2"]), params["g2"], params["b2"],
                 params["m2"], params["v2"]))
    x = lrelu(bn(conv(x, params["w3"]), params["g3"], params["b3"],
                 params["m3"], params["v3"]))
    x = conv(x, params["w4"])
    return jnp.squeeze(jnp.transpose(x, (0, 3, 1, 2)))


if __name__ == "__main__":
    key = jax.random.PRNGKey(0)
    n_channels, ndf = 3, 8
    N, H, W = 2, 32, 32

    ks = jax.random.split(key, 13)
    params = {
        # conv weights stored as (KH, KW, Cin, Cout)  [PyTorch: (Cout,Cin,KH,KW)]
        "w1": 0.05 * jax.random.normal(ks[0], (4, 4, n_channels, ndf), jnp.float32),
        "w2": 0.05 * jax.random.normal(ks[1], (4, 4, ndf, ndf * 2), jnp.float32),
        "w3": 0.05 * jax.random.normal(ks[2], (4, 4, ndf * 2, ndf * 4), jnp.float32),
        "w4": 0.05 * jax.random.normal(ks[3], (4, 4, ndf * 4, 1), jnp.float32),
        # BatchNorm2d(ndf*2): gamma, beta, running_mean, running_var
        "g2": 1.0 + 0.1 * jax.random.normal(ks[4], (ndf * 2,), jnp.float32),
        "b2": 0.1 * jax.random.normal(ks[5], (ndf * 2,), jnp.float32),
        "m2": 0.1 * jax.random.normal(ks[6], (ndf * 2,), jnp.float32),
        "v2": 0.5 + jax.random.uniform(ks[7], (ndf * 2,), jnp.float32),
        # BatchNorm2d(ndf*4)
        "g3": 1.0 + 0.1 * jax.random.normal(ks[8], (ndf * 4,), jnp.float32),
        "b3": 0.1 * jax.random.normal(ks[9], (ndf * 4,), jnp.float32),
        "m3": 0.1 * jax.random.normal(ks[10], (ndf * 4,), jnp.float32),
        "v3": 0.5 + jax.random.uniform(ks[11], (ndf * 4,), jnp.float32),
    }

    x = jax.random.normal(ks[12], (N, n_channels, H, W), jnp.float32)

    h_out, aux = jax.jit(patch_image_discriminator)(x, params)
    h_out = jax.block_until_ready(h_out)
    assert aux is None
    assert h_out.shape == (N, H // 16, W // 16), h_out.shape

    ref = _reference_forward(x, params)
    np.testing.assert_allclose(np.asarray(h_out, dtype=np.float32),
                               np.asarray(ref, dtype=np.float32),
                               rtol=0.1, atol=2e-2)
    print("KERNEL_OK")
</pallas_src>

<mosaic_0001>
module attributes {stable_mosaic.version = 11 : i64} {
  func.func @kernel(%arg0: i32, %arg1: memref<1x16x16x48xbf16, #tpu.memory_space<vmem>>, %arg2: memref<48x128xbf16, #tpu.memory_space<vmem>>, %arg3: memref<2048x128xbf16, #tpu.memory_space<vmem>>, %arg4: memref<1x128xf32, #tpu.memory_space<vmem>>, %arg5: memref<2048x128xbf16, #tpu.memory_space<vmem>>, %arg6: memref<1x128xf32, #tpu.memory_space<vmem>>, %arg7: memref<2048x128xbf16, #tpu.memory_space<vmem>>, %arg8: memref<1x2x2x128xf32, #tpu.memory_space<vmem>>, %arg9: memref<18x10x256xbf16, #tpu.memory_space<vmem>>, %arg10: memref<10x6x256xbf16, #tpu.memory_space<vmem>>, %arg11: memref<6x4x256xbf16, #tpu.memory_space<vmem>>) attributes {dimension_semantics = [#tpu.dimension_semantics<parallel>], iteration_bounds = array<i64: 2>, scalar_prefetch = 0 : i64, scratch_operands = 3 : i64, tpu.core_type = #tpu.core_type<tc>, window_params = [{transform_indices = @transform_0, window_bounds = array<i64: 1, 16, 16, 48>}, {pipeline_mode = #tpu.pipeline_mode<synchronous>, transform_indices = @transform_1, window_bounds = array<i64: 48, 128>}, {pipeline_mode = #tpu.pipeline_mode<synchronous>, transform_indices = @transform_2, window_bounds = array<i64: 2048, 128>}, {pipeline_mode = #tpu.pipeline_mode<synchronous>, transform_indices = @transform_3, window_bounds = array<i64: 1, 128>}, {pipeline_mode = #tpu.pipeline_mode<synchronous>, transform_indices = @transform_4, window_bounds = array<i64: 2048, 128>}, {pipeline_mode = #tpu.pipeline_mode<synchronous>, transform_indices = @transform_5, window_bounds = array<i64: 1, 128>}, {pipeline_mode = #tpu.pipeline_mode<synchronous>, transform_indices = @transform_6, window_bounds = array<i64: 2048, 128>}, {transform_indices = @transform_7, window_bounds = array<i64: 1, 2, 2, 128>}]} {
    %cst = arith.constant 0.000000e+00 : bf16
    %0 = vector.broadcast %cst : bf16 to vector<18x10x256xbf16>
    %c0 = arith.constant 0 : index
    %c0_0 = arith.constant 0 : index
    %c0_1 = arith.constant 0 : index
    %1 = vector.load %arg9[%c0, %c0_0, %c0_1] : memref<18x10x256xbf16, #tpu.memory_space<vmem>>, vector<18x10x256xbf16>
    tpu.vector_store %arg9[%c0, %c0_0, %c0_1], %0 {strides = array<i32>} : memref<18x10x256xbf16, #tpu.memory_space<vmem>>, vector<18x10x256xbf16>,
    %cst_2 = arith.constant 0.000000e+00 : bf16
    %2 = vector.broadcast %cst_2 : bf16 to vector<10x6x256xbf16>
    %c0_3 = arith.constant 0 : index
    %c0_4 = arith.constant 0 : index
    %c0_5 = arith.constant 0 : index
    %3 = vector.load %arg10[%c0_3, %c0_4, %c0_5] : memref<10x6x256xbf16, #tpu.memory_space<vmem>>, vector<10x6x256xbf16>
    tpu.vector_store %arg10[%c0_3, %c0_4, %c0_5], %2 {strides = array<i32>} : memref<10x6x256xbf16, #tpu.memory_space<vmem>>, vector<10x6x256xbf16>,
    %cst_6 = arith.constant 0.000000e+00 : bf16
    %4 = vector.broadcast %cst_6 : bf16 to vector<6x4x256xbf16>
    %c0_7 = arith.constant 0 : index
    %c0_8 = arith.constant 0 : index
    %c0_9 = arith.constant 0 : index
    %5 = vector.load %arg11[%c0_7, %c0_8, %c0_9] : memref<6x4x256xbf16, #tpu.memory_space<vmem>>, vector<6x4x256xbf16>
    tpu.vector_store %arg11[%c0_7, %c0_8, %c0_9], %4 {strides = array<i32>} : memref<6x4x256xbf16, #tpu.memory_space<vmem>>, vector<6x4x256xbf16>,
    %6 = tpu.iota {dimensions = array<i32: 0>} : vector<8x16xi32>
    %7 = tpu.iota {dimensions = array<i32: 1>} : vector<8x16xi32>
    %c2_i32 = arith.constant 2 : i32
    %8 = vector.broadcast %c2_i32 : i32 to vector<8x16xi32>
    %9 = arith.muli %8, %6 : vector<8x16xi32>
    %10 = arith.cmpi eq, %7, %9 : vector<8x16xi32>
    %11 = arith.extui %10 : vector<8x16xi1> to vector<8x16xi32>
    %12 = arith.sitofp %11 : vector<8x16xi32> to vector<8x16xf32>
    %c2_i32_10 = arith.constant 2 : i32
    %13 = vector.broadcast %c2_i32_10 : i32 to vector<8x16xi32>
    %14 = arith.muli %13, %6 : vector<8x16xi32>
    %c1_i32 = arith.constant 1 : i32
    %15 = vector.broadcast %c1_i32 : i32 to vector<8x16xi32>
    %16 = arith.addi %14, %15 : vector<8x16xi32>
    %17 = arith.cmpi eq, %7, %16 : vector<8x16xi32>
    %18 = arith.extui %17 : vector<8x16xi1> to vector<8x16xi32>
    %19 = arith.sitofp %18 : vector<8x16xi32> to vector<8x16xf32>
    %c0_11 = arith.constant 0 : index
    %c0_12 = arith.constant 0 : index
    %20 = vector.load %arg2[%c0_11, %c0_12] : memref<48x128xbf16, #tpu.memory_space<vmem>>, vector<48x128xbf16>
    %c0_i32 = arith.constant 0 : i32
    %c16_i32 = arith.constant 16 : i32
    %21 = arith.addi %c0_i32, %c16_i32 : i32
    %c1_i32_13 = arith.constant 1 : i32
    scf.for %arg12 = %c0_i32 to %21 step %c1_i32_13  : i32 {
      %c0_41 = arith.constant 0 : index
      %58 = arith.index_cast %arg12 : i32 to index
      %c0_42 = arith.constant 0 : index
      %c0_43 = arith.constant 0 : index
      %59 = vector.load %arg1[%c0_41, %58, %c0_42, %c0_43] : memref<1x16x16x48xbf16, #tpu.memory_space<vmem>>, vector<1x1x16x48xbf16>
      %60 = vector.shape_cast %59 : vector<1x1x16x48xbf16> to vector<16x48xbf16>
      %cst_44 = arith.constant dense<0.000000e+00> : vector<16x128xf32>
      %61 = tpu.matmul %60, %20, %cst_44 {dimension_numbers = #tpu.dot_dimension_numbers<[1], [0], [0], [1], [0, 0, 1, 1], [], []>} : vector<16x48xbf16>, vector<48x128xbf16>, vector<16x128xf32> -> vector<16x128xf32>
      %cst_45 = arith.constant 0.000000e+00 : f32
      %62 = vector.broadcast %cst_45 : f32 to vector<16x128xf32>
      %63 = arith.cmpf ogt, %61, %62 : vector<16x128xf32>
      %cst_46 = arith.constant 2.000000e-01 : f32
      %64 = vector.broadcast %cst_46 : f32 to vector<16x128xf32>
      %65 = arith.mulf %64, %61 : vector<16x128xf32>
      %66 = arith.select %63, %61, %65 : vector<16x128xi1>, vector<16x128xf32>
      %cst_47 = arith.constant dense<0.000000e+00> : vector<8x128xf32>
      %67 = tpu.matmul %12, %66, %cst_47 {dimension_numbers = #tpu.dot_dimension_numbers<[1], [0], [0], [1], [0, 0, 1, 1], [], []>} : vector<8x16xf32>, vector<16x128xf32>, vector<8x128xf32> -> vector<8x128xf32>
      %cst_48 = arith.constant dense<0.000000e+00> : vector<8x128xf32>
      %68 = tpu.matmul %19, %66, %cst_48 {dimension_numbers = #tpu.dot_dimension_numbers<[1], [0], [0], [1], [0, 0, 1, 1], [], []>} : vector<8x16xf32>, vector<16x128xf32>, vector<8x128xf32> -> vector<8x128xf32>
      %69 = tpu.concatenate %67, %68 in 1 : vector<8x128xf32>, vector<8x128xf32> -> vector<8x256xf32>
      %70 = arith.truncf %69 : vector<8x256xf32> to vector<8x256xbf16>
      %c1_i32_49 = arith.constant 1 : i32
      %71 = arith.addi %arg12, %c1_i32_49 : i32
      %72 = arith.index_cast %71 : i32 to index
      %c1 = arith.constant 1 : index
      %c0_50 = arith.constant 0 : index
      %73 = vector.load %arg9[%72, %c1, %c0_50] : memref<18x10x256xbf16, #tpu.memory_space<vmem>>, vector<1x8x256xbf16>
      %74 = vector.shape_cast %73 : vector<1x8x256xbf16> to vector<8x256xbf16>
      %75 = vector.shape_cast %70 : vector<8x256xbf16> to vector<1x8x256xbf16>
      tpu.vector_store %arg9[%72, %c1, %c0_50], %75 {strides = array<i32>} : memref<18x10x256xbf16, #tpu.memory_space<vmem>>, vector<1x8x256xbf16>,
    }
    %c16_i32_14 = arith.constant 16 : i32
    %22 = tpu.iota {dimensions = array<i32: 0>} : vector<4x8xi32>
    %23 = tpu.iota {dimensions = array<i32: 1>} : vector<4x8xi32>
    %c2_i32_15 = arith.constant 2 : i32
    %24 = vector.broadcast %c2_i32_15 : i32 to vector<4x8xi32>
    %25 = arith.muli %24, %22 : vector<4x8xi32>
    %26 = arith.cmpi eq, %23, %25 : vector<4x8xi32>
    %27 = arith.extui %26 : vector<4x8xi1> to vector<4x8xi32>
    %28 = arith.sitofp %27 : vector<4x8xi32> to vector<4x8xf32>
    %c2_i32_16 = arith.constant 2 : i32
    %29 = vector.broadcast %c2_i32_16 : i32 to vector<4x8xi32>
    %30 = arith.muli %29, %22 : vector<4x8xi32>
    %c1_i32_17 = arith.constant 1 : i32
    %31 = vector.broadcast %c1_i32_17 : i32 to vector<4x8xi32>
    %32 = arith.addi %30, %31 : vector<4x8xi32>
    %33 = arith.cmpi eq, %23, %32 : vector<4x8xi32>
    %34 = arith.extui %33 : vector<4x8xi1> to vector<4x8xi32>
    %35 = arith.sitofp %34 : vector<4x8xi32> to vector<4x8xf32>
    %c0_18 = arith.constant 0 : index
    %c0_19 = arith.constant 0 : index
    %36 = vector.load %arg4[%c0_18, %c0_19] : memref<1x128xf32, #tpu.memory_space<vmem>>, vector<1x128xf32>
    %c0_20 = arith.constant 0 : index
    %c0_21 = arith.constant 0 : index
    %37 = vector.load %arg3[%c0_20, %c0_21] : memref<2048x128xbf16, #tpu.memory_space<vmem>>, vector<2048x128xbf16>
    %c0_i32_22 = arith.constant 0 : i32
    %c8_i32 = arith.constant 8 : i32
    %38 = arith.addi %c0_i32_22, %c8_i32 : i32
    %c1_i32_23 = arith.constant 1 : i32
    scf.for %arg12 = %c0_i32_22 to %38 step %c1_i32_23  : i32 {
      %c2_i32_41 = arith.constant 2 : i32
      %58 = arith.muli %c2_i32_41, %arg12 : i32
      %59 = arith.index_cast %58 : i32 to index
      %c0_42 = arith.constant 0 : index
      %c0_43 = arith.constant 0 : index
      %60 = vector.load %arg9[%59, %c0_42, %c0_43] : memref<18x10x256xbf16, #tpu.memory_space<vmem>>, vector<4x10x256xbf16>
      %61 = vector.extract_strided_slice %60 {offsets = [0, 0, 0], sizes = [1, 10, 256], strides = [1, 1, 1]} : vector<4x10x256xbf16> to vector<1x10x256xbf16>
      %62 = vector.shape_cast %61 : vector<1x10x256xbf16> to vector<10x256xbf16>
      %63 = vector.extract_strided_slice %62 {offsets = [0, 128], sizes = [8, 128], strides = [1, 1]} : vector<10x256xbf16> to vector<8x128xbf16>
      %64 = vector.extract_strided_slice %62 {offsets = [1, 0], sizes = [8, 128], strides = [1, 1]} : vector<10x256xbf16> to vector<8x128xbf16>
      %65 = vector.extract_strided_slice %62 {offsets = [1, 128], sizes = [8, 128], strides = [1, 1]} : vector<10x256xbf16> to vector<8x128xbf16>
      %66 = vector.extract_strided_slice %62 {offsets = [2, 0], sizes = [8, 128], strides = [1, 1]} : vector<10x256xbf16> to vector<8x128xbf16>
      %67 = vector.extract_strided_slice %60 {offsets = [1, 0, 0], sizes = [1, 10, 256], strides = [1, 1, 1]} : vector<4x10x256xbf16> to vector<1x10x256xbf16>
      %68 = vector.shape_cast %67 : vector<1x10x256xbf16> to vector<10x256xbf16>
      %69 = vector.extract_strided_slice %68 {offsets = [0, 128], sizes = [8, 128], strides = [1, 1]} : vector<10x256xbf16> to vector<8x128xbf16>
      %70 = vector.extract_strided_slice %68 {offsets = [1, 0], sizes = [8, 128], strides = [1, 1]} : vector<10x256xbf16> to vector<8x128xbf16>
      %71 = vector.extract_strided_slice %68 {offsets = [1, 128], sizes = [8, 128], strides = [1, 1]} : vector<10x256xbf16> to vector<8x128xbf16>
      %72 = vector.extract_strided_slice %68 {offsets = [2, 0], sizes = [8, 128], strides = [1, 1]} : vector<10x256xbf16> to vector<8x128xbf16>
      %73 = vector.extract_strided_slice %60 {offsets = [2, 0, 0], sizes = [1, 10, 256], strides = [1, 1, 1]} : vector<4x10x256xbf16> to vector<1x10x256xbf16>
      %74 = vector.shape_cast %73 : vector<1x10x256xbf16> to vector<10x256xbf16>
      %75 = vector.extract_strided_slice %74 {offsets = [0, 128], sizes = [8, 128], strides = [1, 1]} : vector<10x256xbf16> to vector<8x128xbf16>
      %76 = vector.extract_strided_slice %74 {offsets = [1, 0], sizes = [8, 128], strides = [1, 1]} : vector<10x256xbf16> to vector<8x128xbf16>
      %77 = vector.extract_strided_slice %74 {offsets = [1, 128], sizes = [8, 128], strides = [1, 1]} : vector<10x256xbf16> to vector<8x128xbf16>
      %78 = vector.extract_strided_slice %74 {offsets = [2, 0], sizes = [8, 128], strides = [1, 1]} : vector<10x256xbf16> to vector<8x128xbf16>
      %79 = vector.extract_strided_slice %60 {offsets = [3, 0, 0], sizes = [1, 10, 256], strides = [1, 1, 1]} : vector<4x10x256xbf16> to vector<1x10x256xbf16>
      %80 = vector.shape_cast %79 : vector<1x10x256xbf16> to vector<10x256xbf16>
      %81 = vector.extract_strided_slice %80 {offsets = [0, 128], sizes = [8, 128], strides = [1, 1]} : vector<10x256xbf16> to vector<8x128xbf16>
      %82 = vector.extract_strided_slice %80 {offsets = [1, 0], sizes = [8, 128], strides = [1, 1]} : vector<10x256xbf16> to vector<8x128xbf16>
      %83 = vector.extract_strided_slice %80 {offsets = [1, 128], sizes = [8, 128], strides = [1, 1]} : vector<10x256xbf16> to vector<8x128xbf16>
      %84 = vector.extract_strided_slice %80 {offsets = [2, 0], sizes = [8, 128], strides = [1, 1]} : vector<10x256xbf16> to vector<8x128xbf16>
      %85 = tpu.concatenate %63, %64, %65, %66, %69, %70, %71, %72, %75, %76, %77, %78, %81, %82, %83, %84 in 1 : vector<8x128xbf16>, vector<8x128xbf16>, vector<8x128xbf16>, vector<8x128xbf16>, vector<8x128xbf16>, vector<8x128xbf16>, vector<8x128xbf16>, vector<8x128xbf16>, vector<8x128xbf16>, vector<8x128xbf16>, vector<8x128xbf16>, vector<8x128xbf16>, vector<8x128xbf16>, vector<8x128xbf16>, vector<8x128xbf16>, vector<8x128xbf16> -> vector<8x2048xbf16>
      %cst_44 = arith.constant dense<0.000000e+00> : vector<8x128xf32>
      %86 = tpu.matmul %85, %37, %cst_44 {dimension_numbers = #tpu.dot_dimension_numbers<[1], [0], [0], [1], [0, 0, 1, 1], [], []>} : vector<8x2048xbf16>, vector<2048x128xbf16>, vector<8x128xf32> -> vector<8x128xf32>
      %87 = vector.broadcast %36 : vector<1x128xf32> to vector<8x128xf32>
      %88 = arith.addf %86, %87 : vector<8x128xf32>
      %cst_45 = arith.constant 0.000000e+00 : f32
      %89 = vector.broadcast %cst_45 : f32 to vector<8x128xf32>
      %90 = arith.cmpf ogt, %88, %89 : vector<8x128xf32>
      %cst_46 = arith.constant 2.000000e-01 : f32
      %91 = vector.broadcast %cst_46 : f32 to vector<8x128xf32>
      %92 = arith.mulf %91, %88 : vector<8x128xf32>
      %93 = arith.select %90, %88, %92 : vector<8x128xi1>, vector<8x128xf32>
      %cst_47 = arith.constant dense<0.000000e+00> : vector<4x128xf32>
      %94 = tpu.matmul %28, %93, %cst_47 {dimension_numbers = #tpu.dot_dimension_numbers<[1], [0], [0], [1], [0, 0, 1, 1], [], []>} : vector<4x8xf32>, vector<8x128xf32>, vector<4x128xf32> -> vector<4x128xf32>
      %cst_48 = arith.constant dense<0.000000e+00> : vector<4x128xf32>
      %95 = tpu.matmul %35, %93, %cst_48 {dimension_numbers = #tpu.dot_dimension_numbers<[1], [0], [0], [1], [0, 0, 1, 1], [], []>} : vector<4x8xf32>, vector<8x128xf32>, vector<4x128xf32> -> vector<4x128xf32>
      %96 = tpu.concatenate %94, %95 in 1 : vector<4x128xf32>, vector<4x128xf32> -> vector<4x256xf32>
      %97 = arith.truncf %96 : vector<4x256xf32> to vector<4x256xbf16>
      %c1_i32_49 = arith.constant 1 : i32
      %98 = arith.addi %arg12, %c1_i32_49 : i32
      %99 = arith.index_cast %98 : i32 to index
      %c1 = arith.constant 1 : index
      %c0_50 = arith.constant 0 : index
      %100 = vector.load %arg10[%99, %c1, %c0_50] : memref<10x6x256xbf16, #tpu.memory_space<vmem>>, vector<1x4x256xbf16>
      %101 = vector.shape_cast %100 : vector<1x4x256xbf16> to vector<4x256xbf16>
      %102 = vector.shape_cast %97 : vector<4x256xbf16> to vector<1x4x256xbf16>
      tpu.vector_store %arg10[%99, %c1, %c0_50], %102 {strides = array<i32>} : memref<10x6x256xbf16, #tpu.memory_space<vmem>>, vector<1x4x256xbf16>,
    }
    %c8_i32_24 = arith.constant 8 : i32
    %39 = tpu.iota {dimensions = array<i32: 0>} : vector<2x4xi32>
    %40 = tpu.iota {dimensions = array<i32: 1>} : vector<2x4xi32>
    %c2_i32_25 = arith.constant 2 : i32
    %41 = vector.broadcast %c2_i32_25 : i32 to vector<2x4xi32>
    %42 = arith.muli %41, %39 : vector<2x4xi32>
    %43 = arith.cmpi eq, %40, %42 : vector<2x4xi32>
    %44 = arith.extui %43 : vector<2x4xi1> to vector<2x4xi32>
    %45 = arith.sitofp %44 : vector<2x4xi32> to vector<2x4xf32>
    %c2_i32_26 = arith.constant 2 : i32
    %46 = vector.broadcast %c2_i32_26 : i32 to vector<2x4xi32>
    %47 = arith.muli %46, %39 : vector<2x4xi32>
    %c1_i32_27 = arith.constant 1 : i32
    %48 = vector.broadcast %c1_i32_27 : i32 to vector<2x4xi32>
    %49 = arith.addi %47, %48 : vector<2x4xi32>
    %50 = arith.cmpi eq, %40, %49 : vector<2x4xi32>
    %51 = arith.extui %50 : vector<2x4xi1> to vector<2x4xi32>
    %52 = arith.sitofp %51 : vector<2x4xi32> to vector<2x4xf32>
    %c0_28 = arith.constant 0 : index
    %c0_29 = arith.constant 0 : index
    %53 = vector.load %arg6[%c0_28, %c0_29] : memref<1x128xf32, #tpu.memory_space<vmem>>, vector<1x128xf32>
    %c0_30 = arith.constant 0 : index
    %c0_31 = arith.constant 0 : index
    %54 = vector.load %arg5[%c0_30, %c0_31] : memref<2048x128xbf16, #tpu.memory_space<vmem>>, vector<2048x128xbf16>
    %c0_i32_32 = arith.constant 0 : i32
    %c4_i32 = arith.constant 4 : i32
    %55 = arith.addi %c0_i32_32, %c4_i32 : i32
    %c1_i32_33 = arith.constant 1 : i32
    scf.for %arg12 = %c0_i32_32 to %55 step %c1_i32_33  : i32 {
      %c2_i32_41 = arith.constant 2 : i32
      %58 = arith.muli %c2_i32_41, %arg12 : i32
      %59 = arith.index_cast %58 : i32 to index
      %c0_42 = arith.constant 0 : index
      %c0_43 = arith.constant 0 : index
      %60 = vector.load %arg10[%59, %c0_42, %c0_43] : memref<10x6x256xbf16, #tpu.memory_space<vmem>>, vector<4x6x256xbf16>
      %61 = vector.extract_strided_slice %60 {offsets = [0, 0, 0], sizes = [1, 6, 256], strides = [1, 1, 1]} : vector<4x6x256xbf16> to vector<1x6x256xbf16>
      %62 = vector.shape_cast %61 : vector<1x6x256xbf16> to vector<6x256xbf16>
      %63 = vector.extract_strided_slice %62 {offsets = [0, 128], sizes = [4, 128], strides = [1, 1]} : vector<6x256xbf16> to vector<4x128xbf16>
      %64 = vector.extract_strided_slice %62 {offsets = [1, 0], sizes = [4, 128], strides = [1, 1]} : vector<6x256xbf16> to vector<4x128xbf16>
      %65 = vector.extract_strided_slice %62 {offsets = [1, 128], sizes = [4, 128], strides = [1, 1]} : vector<6x256xbf16> to vector<4x128xbf16>
      %66 = vector.extract_strided_slice %62 {offsets = [2, 0], sizes = [4, 128], strides = [1, 1]} : vector<6x256xbf16> to vector<4x128xbf16>
      %67 = vector.extract_strided_slice %60 {offsets = [1, 0, 0], sizes = [1, 6, 256], strides = [1, 1, 1]} : vector<4x6x256xbf16> to vector<1x6x256xbf16>
      %68 = vector.shape_cast %67 : vector<1x6x256xbf16> to vector<6x256xbf16>
      %69 = vector.extract_strided_slice %68 {offsets = [0, 128], sizes = [4, 128], strides = [1, 1]} : vector<6x256xbf16> to vector<4x128xbf16>
      %70 = vector.extract_strided_slice %68 {offsets = [1, 0], sizes = [4, 128], strides = [1, 1]} : vector<6x256xbf16> to vector<4x128xbf16>
      %71 = vector.extract_strided_slice %68 {offsets = [1, 128], sizes = [4, 128], strides = [1, 1]} : vector<6x256xbf16> to vector<4x128xbf16>
      %72 = vector.extract_strided_slice %68 {offsets = [2, 0], sizes = [4, 128], strides = [1, 1]} : vector<6x256xbf16> to vector<4x128xbf16>
      %73 = vector.extract_strided_slice %60 {offsets = [2, 0, 0], sizes = [1, 6, 256], strides = [1, 1, 1]} : vector<4x6x256xbf16> to vector<1x6x256xbf16>
      %74 = vector.shape_cast %73 : vector<1x6x256xbf16> to vector<6x256xbf16>
      %75 = vector.extract_strided_slice %74 {offsets = [0, 128], sizes = [4, 128], strides = [1, 1]} : vector<6x256xbf16> to vector<4x128xbf16>
      %76 = vector.extract_strided_slice %74 {offsets = [1, 0], sizes = [4, 128], strides = [1, 1]} : vector<6x256xbf16> to vector<4x128xbf16>
      %77 = vector.extract_strided_slice %74 {offsets = [1, 128], sizes = [4, 128], strides = [1, 1]} : vector<6x256xbf16> to vector<4x128xbf16>
      %78 = vector.extract_strided_slice %74 {offsets = [2, 0], sizes = [4, 128], strides = [1, 1]} : vector<6x256xbf16> to vector<4x128xbf16>
      %79 = vector.extract_strided_slice %60 {offsets = [3, 0, 0], sizes = [1, 6, 256], strides = [1, 1, 1]} : vector<4x6x256xbf16> to vector<1x6x256xbf16>
      %80 = vector.shape_cast %79 : vector<1x6x256xbf16> to vector<6x256xbf16>
      %81 = vector.extract_strided_slice %80 {offsets = [0, 128], sizes = [4, 128], strides = [1, 1]} : vector<6x256xbf16> to vector<4x128xbf16>
      %82 = vector.extract_strided_slice %80 {offsets = [1, 0], sizes = [4, 128], strides = [1, 1]} : vector<6x256xbf16> to vector<4x128xbf16>
      %83 = vector.extract_strided_slice %80 {offsets = [1, 128], sizes = [4, 128], strides = [1, 1]} : vector<6x256xbf16> to vector<4x128xbf16>
      %84 = vector.extract_strided_slice %80 {offsets = [2, 0], sizes = [4, 128], strides = [1, 1]} : vector<6x256xbf16> to vector<4x128xbf16>
      %85 = tpu.concatenate %63, %64, %65, %66, %69, %70, %71, %72, %75, %76, %77, %78, %81, %82, %83, %84 in 1 : vector<4x128xbf16>, vector<4x128xbf16>, vector<4x128xbf16>, vector<4x128xbf16>, vector<4x128xbf16>, vector<4x128xbf16>, vector<4x128xbf16>, vector<4x128xbf16>, vector<4x128xbf16>, vector<4x128xbf16>, vector<4x128xbf16>, vector<4x128xbf16>, vector<4x128xbf16>, vector<4x128xbf16>, vector<4x128xbf16>, vector<4x128xbf16> -> vector<4x2048xbf16>
      %cst_44 = arith.constant dense<0.000000e+00> : vector<4x128xf32>
      %86 = tpu.matmul %85, %54, %cst_44 {dimension_numbers = #tpu.dot_dimension_numbers<[1], [0], [0], [1], [0, 0, 1, 1], [], []>} : vector<4x2048xbf16>, vector<2048x128xbf16>, vector<4x128xf32> -> vector<4x128xf32>
      %87 = vector.broadcast %53 : vector<1x128xf32> to vector<4x128xf32>
      %88 = arith.addf %86, %87 : vector<4x128xf32>
      %cst_45 = arith.constant 0.000000e+00 : f32
      %89 = vector.broadcast %cst_45 : f32 to vector<4x128xf32>
      %90 = arith.cmpf ogt, %88, %89 : vector<4x128xf32>
      %cst_46 = arith.constant 2.000000e-01 : f32
      %91 = vector.broadcast %cst_46 : f32 to vector<4x128xf32>
      %92 = arith.mulf %91, %88 : vector<4x128xf32>
      %93 = arith.select %90, %88, %92 : vector<4x128xi1>, vector<4x128xf32>
      %cst_47 = arith.constant dense<0.000000e+00> : vector<2x128xf32>
      %94 = tpu.matmul %45, %93, %cst_47 {dimension_numbers = #tpu.dot_dimension_numbers<[1], [0], [0], [1], [0, 0, 1, 1], [], []>} : vector<2x4xf32>, vector<4x128xf32>, vector<2x128xf32> -> vector<2x128xf32>
      %cst_48 = arith.constant dense<0.000000e+00> : vector<2x128xf32>
      %95 = tpu.matmul %52, %93, %cst_48 {dimension_numbers = #tpu.dot_dimension_numbers<[1], [0], [0], [1], [0, 0, 1, 1], [], []>} : vector<2x4xf32>, vector<4x128xf32>, vector<2x128xf32> -> vector<2x128xf32>
      %96 = tpu.concatenate %94, %95 in 1 : vector<2x128xf32>, vector<2x128xf32> -> vector<2x256xf32>
      %97 = arith.truncf %96 : vector<2x256xf32> to vector<2x256xbf16>
      %c1_i32_49 = arith.constant 1 : i32
      %98 = arith.addi %arg12, %c1_i32_49 : i32
      %99 = arith.index_cast %98 : i32 to index
      %c1 = arith.constant 1 : index
      %c0_50 = arith.constant 0 : index
      %100 = vector.load %arg11[%99, %c1, %c0_50] : memref<6x4x256xbf16, #tpu.memory_space<vmem>>, vector<1x2x256xbf16>
      %101 = vector.shape_cast %100 : vector<1x2x256xbf16> to vector<2x256xbf16>
      %102 = vector.shape_cast %97 : vector<2x256xbf16> to vector<1x2x256xbf16>
      tpu.vector_store %arg11[%99, %c1, %c0_50], %102 {strides = array<i32>} : memref<6x4x256xbf16, #tpu.memory_space<vmem>>, vector<1x2x256xbf16>,
    }
    %c4_i32_34 = arith.constant 4 : i32
    %c0_35 = arith.constant 0 : index
    %c0_36 = arith.constant 0 : index
    %56 = vector.load %arg7[%c0_35, %c0_36] : memref<2048x128xbf16, #tpu.memory_space<vmem>>, vector<2048x128xbf16>
    %c0_i32_37 = arith.constant 0 : i32
    %c2_i32_38 = arith.constant 2 : i32
    %57 = arith.addi %c0_i32_37, %c2_i32_38 : i32
    %c1_i32_39 = arith.constant 1 : i32
    scf.for %arg12 = %c0_i32_37 to %57 step %c1_i32_39  : i32 {
      %c2_i32_41 = arith.constant 2 : i32
      %58 = arith.muli %c2_i32_41, %arg12 : i32
      %59 = arith.index_cast %58 : i32 to index
      %c0_42 = arith.constant 0 : index
      %c0_43 = arith.constant 0 : index
      %60 = vector.load %arg11[%59, %c0_42, %c0_43] : memref<6x4x256xbf16, #tpu.memory_space<vmem>>, vector<4x4x256xbf16>
      %61 = vector.extract_strided_slice %60 {offsets = [0, 0, 0], sizes = [1, 4, 256], strides = [1, 1, 1]} : vector<4x4x256xbf16> to vector<1x4x256xbf16>
      %62 = vector.shape_cast %61 : vector<1x4x256xbf16> to vector<4x256xbf16>
      %63 = vector.extract_strided_slice %62 {offsets = [0, 128], sizes = [2, 128], strides = [1, 1]} : vector<4x256xbf16> to vector<2x128xbf16>
      %64 = vector.extract_strided_slice %62 {offsets = [1, 0], sizes = [2, 128], strides = [1, 1]} : vector<4x256xbf16> to vector<2x128xbf16>
      %65 = vector.extract_strided_slice %62 {offsets = [1, 128], sizes = [2, 128], strides = [1, 1]} : vector<4x256xbf16> to vector<2x128xbf16>
      %66 = vector.extract_strided_slice %62 {offsets = [2, 0], sizes = [2, 128], strides = [1, 1]} : vector<4x256xbf16> to vector<2x128xbf16>
      %67 = vector.extract_strided_slice %60 {offsets = [1, 0, 0], sizes = [1, 4, 256], strides = [1, 1, 1]} : vector<4x4x256xbf16> to vector<1x4x256xbf16>
      %68 = vector.shape_cast %67 : vector<1x4x256xbf16> to vector<4x256xbf16>
      %69 = vector.extract_strided_slice %68 {offsets = [0, 128], sizes = [2, 128], strides = [1, 1]} : vector<4x256xbf16> to vector<2x128xbf16>
      %70 = vector.extract_strided_slice %68 {offsets = [1, 0], sizes = [2, 128], strides = [1, 1]} : vector<4x256xbf16> to vector<2x128xbf16>
      %71 = vector.extract_strided_slice %68 {offsets = [1, 128], sizes = [2, 128], strides = [1, 1]} : vector<4x256xbf16> to vector<2x128xbf16>
      %72 = vector.extract_strided_slice %68 {offsets = [2, 0], sizes = [2, 128], strides = [1, 1]} : vector<4x256xbf16> to vector<2x128xbf16>
      %73 = vector.extract_strided_slice %60 {offsets = [2, 0, 0], sizes = [1, 4, 256], strides = [1, 1, 1]} : vector<4x4x256xbf16> to vector<1x4x256xbf16>
      %74 = vector.shape_cast %73 : vector<1x4x256xbf16> to vector<4x256xbf16>
      %75 = vector.extract_strided_slice %74 {offsets = [0, 128], sizes = [2, 128], strides = [1, 1]} : vector<4x256xbf16> to vector<2x128xbf16>
      %76 = vector.extract_strided_slice %74 {offsets = [1, 0], sizes = [2, 128], strides = [1, 1]} : vector<4x256xbf16> to vector<2x128xbf16>
      %77 = vector.extract_strided_slice %74 {offsets = [1, 128], sizes = [2, 128], strides = [1, 1]} : vector<4x256xbf16> to vector<2x128xbf16>
      %78 = vector.extract_strided_slice %74 {offsets = [2, 0], sizes = [2, 128], strides = [1, 1]} : vector<4x256xbf16> to vector<2x128xbf16>
      %79 = vector.extract_strided_slice %60 {offsets = [3, 0, 0], sizes = [1, 4, 256], strides = [1, 1, 1]} : vector<4x4x256xbf16> to vector<1x4x256xbf16>
      %80 = vector.shape_cast %79 : vector<1x4x256xbf16> to vector<4x256xbf16>
      %81 = vector.extract_strided_slice %80 {offsets = [0, 128], sizes = [2, 128], strides = [1, 1]} : vector<4x256xbf16> to vector<2x128xbf16>
      %82 = vector.extract_strided_slice %80 {offsets = [1, 0], sizes = [2, 128], strides = [1, 1]} : vector<4x256xbf16> to vector<2x128xbf16>
      %83 = vector.extract_strided_slice %80 {offsets = [1, 128], sizes = [2, 128], strides = [1, 1]} : vector<4x256xbf16> to vector<2x128xbf16>
      %84 = vector.extract_strided_slice %80 {offsets = [2, 0], sizes = [2, 128], strides = [1, 1]} : vector<4x256xbf16> to vector<2x128xbf16>
      %85 = tpu.concatenate %63, %64, %65, %66, %69, %70, %71, %72, %75, %76, %77, %78, %81, %82, %83, %84 in 1 : vector<2x128xbf16>, vector<2x128xbf16>, vector<2x128xbf16>, vector<2x128xbf16>, vector<2x128xbf16>, vector<2x128xbf16>, vector<2x128xbf16>, vector<2x128xbf16>, vector<2x128xbf16>, vector<2x128xbf16>, vector<2x128xbf16>, vector<2x128xbf16>, vector<2x128xbf16>, vector<2x128xbf16>, vector<2x128xbf16>, vector<2x128xbf16> -> vector<2x2048xbf16>
      %cst_44 = arith.constant dense<0.000000e+00> : vector<2x128xf32>
      %86 = tpu.matmul %85, %56, %cst_44 {dimension_numbers = #tpu.dot_dimension_numbers<[1], [0], [0], [1], [0, 0, 1, 1], [], []>} : vector<2x2048xbf16>, vector<2048x128xbf16>, vector<2x128xf32> -> vector<2x128xf32>
      %c0_45 = arith.constant 0 : index
      %87 = arith.index_cast %arg12 : i32 to index
      %c0_46 = arith.constant 0 : index
      %c0_47 = arith.constant 0 : index
      %88 = vector.load %arg8[%c0_45, %87, %c0_46, %c0_47] : memref<1x2x2x128xf32, #tpu.memory_space<vmem>>, vector<1x1x2x128xf32>
      %89 = vector.shape_cast %88 : vector<1x1x2x128xf32> to vector<2x128xf32>
      %90 = vector.shape_cast %86 : vector<2x128xf32> to vector<1x1x2x128xf32>
      tpu.vector_store %arg8[%c0_45, %87, %c0_46, %c0_47], %90 {strides = array<i32>} : memref<1x2x2x128xf32, #tpu.memory_space<vmem>>, vector<1x1x2x128xf32>,
    }
    %c2_i32_40 = arith.constant 2 : i32
    return
  }
  func.func @transform_0(%arg0: i32) -> (i32, i32, i32, i32) {
    %c0_i32 = arith.constant 0 : i32
    %c0_i32_0 = arith.constant 0 : i32
    %c0_i32_1 = arith.constant 0 : i32
    %c0_i32_2 = arith.constant 0 : i32
    return %arg0, %c0_i32, %c0_i32_0, %c0_i32_1 : i32, i32, i32, i32
  }
  func.func @transform_1(%arg0: i32) -> (i32, i32) {
    %c0_i32 = arith.constant 0 : i32
    %c0_i32_0 = arith.constant 0 : i32
    %c0_i32_1 = arith.constant 0 : i32
    return %c0_i32, %c0_i32_0 : i32, i32
  }
  func.func @transform_2(%arg0: i32) -> (i32, i32) {
    %c0_i32 = arith.constant 0 : i32
    %c0_i32_0 = arith.constant 0 : i32
    %c0_i32_1 = arith.constant 0 : i32
    return %c0_i32, %c0_i32_0 : i32, i32
  }
  func.func @transform_3(%arg0: i32) -> (i32, i32) {
    %c0_i32 = arith.constant 0 : i32
    %c0_i32_0 = arith.constant 0 : i32
    %c0_i32_1 = arith.constant 0 : i32
    return %c0_i32, %c0_i32_0 : i32, i32
  }
  func.func @transform_4(%arg0: i32) -> (i32, i32) {
    %c0_i32 = arith.constant 0 : i32
    %c0_i32_0 = arith.constant 0 : i32
    %c0_i32_1 = arith.constant 0 : i32
    return %c0_i32, %c0_i32_0 : i32, i32
  }
  func.func @transform_5(%arg0: i32) -> (i32, i32) {
    %c0_i32 = arith.constant 0 : i32
    %c0_i32_0 = arith.constant 0 : i32
    %c0_i32_1 = arith.constant 0 : i32
    return %c0_i32, %c0_i32_0 : i32, i32
  }
  func.func @transform_6(%arg0: i32) -> (i32, i32) {
    %c0_i32 = arith.constant 0 : i32
    %c0_i32_0 = arith.constant 0 : i32
    %c0_i32_1 = arith.constant 0 : i32
    return %c0_i32, %c0_i32_0 : i32, i32
  }
  func.func @transform_7(%arg0: i32) -> (i32, i32, i32, i32) {
    %c0_i32 = arith.constant 0 : i32
    %c0_i32_0 = arith.constant 0 : i32
    %c0_i32_1 = arith.constant 0 : i32
    %c0_i32_2 = arith.constant 0 : i32
    return %arg0, %c0_i32, %c0_i32_0, %c0_i32_1 : i32, i32, i32, i32
  }
}

</mosaic_0001>

<bundles_post_ra>
// kernel: patch_image_discriminator.1
= control target key start
LH: loop header
LB: loop body
LE: loop exit
PB: predicated region body
PF: predicated region fallthrough
CT: control target
= control target key end

     0   :  { %s6719_s24 = smov 0   ;;  %s11571_s0 = inlined_call_operand.vmem [shape: bf16[2,16,16,48], index: 0, kind: input, shape index: {}]   ;;  %s11572_s1 = inlined_call_operand.vmem [shape: bf16[48,128], index: 1, kind: input, shape index: {}]   ;;  %s11573_s2 = inlined_call_operand.vmem [shape: bf16[2048,128], index: 2, kind: input, shape index: {}]   ;;  %s11574_s3 = inlined_call_operand.vmem [shape: f32[1,128], index: 3, kind: input, shape index: {}]   ;;  %s11575_s4 = inlined_call_operand.vmem [shape: bf16[2048,128], index: 4, kind: input, shape index: {}]   ;;  %s11576_s5 = inlined_call_operand.vmem [shape: f32[1,128], index: 5, kind: input, shape index: {}]   ;;  %s11577_s6 = inlined_call_operand.vmem [shape: bf16[2048,128], index: 6, kind: input, shape index: {}]   ;;  %s11578_s7 = inlined_call_operand.vmem [shape: f32[2,2,2,128], index: 7, kind: output, shape index: {}]  }
   0x1 LB: > { %s5498_s25 = sadd.s32 4294967295, %s6652_s24   ;;  %p5502_p0 = scmp.ge.s32.totalorder %s6652_s24, 1  ;;  %s6652_s24 = sphi %s6719_s24, %s17_s24  }
   0x2   : > { %p237_p1 = scmp.lt.s32.totalorder %s6652_s24, 3 }
   0x4   : > { %p238_p2 = pnand %p5502_p0, %p237_p1 }
   0x6   : > { %241 = sbr.rel (%p238_p2) target bundleno = 1887 (0x75f), region = 48 }
   0xb   : > { %p6729_p3 = scmp.lt.s32.totalorder %s5498_s25, 1  ;;  %v332_v0 = vlaneseq  ;;  %v6736_v1 = vld [vmem:[%s11572_s1] sm:$0xf]  ;;  %v6670_v2 = vmov 0   ;;  %v6741_v3 = vld [vmem:[%s11572_s1 + $0x4] sm:$0xf] }
   0xc   : > { %280 = vst [vmem:[#allocation2] sm:$0xff] %v6670_v2  ;;  %281 = vst [vmem:[#allocation2 + $0x8] sm:$0x11] %v6670_v2  ;;  %v6746_v4 = vld [vmem:[%s11572_s1 + $0x8] sm:$0xf]  ;;  %v6671_v12 = vmov 0.0  }
   0xd   : > { %282 = vst [vmem:[#allocation2 + $0x10] sm:$0xff] %v6670_v2  ;;  %283 = vst [vmem:[#allocation2 + $0x18] sm:$0x11] %v6670_v2  ;;  %v6751_v5 = vld [vmem:[%s11572_s1 + $0xc] sm:$0xf]  ;;  %s12920_s25 = smov (!%p6729_p3, %s5498_s25), 1 }
   0xe   : > { %284 = vst [vmem:[#allocation2 + $0x20] sm:$0xff] %v6670_v2  ;;  %285 = vst [vmem:[#allocation2 + $0x28] sm:$0x11] %v6670_v2  ;;  %v6757_v6 = vshrl.u32 %v332_v0, 7  ;;  %v335_v7 = vand.u32 127, %v332_v0  ;;  %s5959_s16 = sshll.u32 %s12920_s25, 7 }
   0xf   : > { %286 = vst [vmem:[#allocation2 + $0x30] sm:$0xff] %v6670_v2  ;;  %287 = vst [vmem:[#allocation2 + $0x38] sm:$0x11] %v6670_v2  ;;  %v6762_v8 = vld [vmem:[%s11572_s1 + $0x10] sm:$0xf]  ;;  %s5960_s17 = sshll.u32 %s12920_s25, 2  ;;  %s6773_s20 = scalar_lea.vmem %s11571_s0, %s5959_s16 }
  0x10   : > { %288 = vst [vmem:[#allocation2 + $0x40] sm:$0xff] %v6670_v2  ;;  %289 = vst [vmem:[#allocation2 + $0x48] sm:$0x11] %v6670_v2  ;;  %v6767_v9 = vld [vmem:[%s11572_s1 + $0x14] sm:$0xf]  ;;  %v336_v10 = vmul.u32 2, %v6757_v6  ;;  %s6778_s23 = scalar_lea.vmem %s11578_s7, %s5960_s17 }
  0x11   : > { %290 = vst [vmem:[#allocation2 + $0x50] sm:$0xff] %v6670_v2  ;;  %291 = vst [vmem:[#allocation2 + $0x58] sm:$0x11] %v6670_v2  ;;  %s6784_s25 = smov 0  }
  0x12   : > { %292 = vst [vmem:[#allocation2 + $0x60] sm:$0xff] %v6670_v2  ;;  %293 = vst [vmem:[#allocation2 + $0x68] sm:$0x11] %v6670_v2  ;;  %vm337_vm0 = vcmp.eq.s32.totalorder %v335_v7, %v336_v10  ;;  %v340_v11 = vadd.s32 1, %v336_v10 }
  0x13   : > { %294 = vst [vmem:[#allocation2 + $0x70] sm:$0xff] %v6670_v2  ;;  %295 = vst [vmem:[#allocation2 + $0x78] sm:$0x11] %v6670_v2  ;;  %v6780_v13 = vsel %vm337_vm0, 1.0, %v6671_v12 }
  0x14   : > { %296 = vst [vmem:[#allocation2 + $0x80] sm:$0xff] %v6670_v2  ;;  %297 = vst [vmem:[#allocation2 + $0x88] sm:$0x11] %v6670_v2  ;;  %vm341_vm1 = vcmp.eq.s32.totalorder %v335_v7, %v340_v11 }
  0x15   : > { %298 = vst [vmem:[#allocation2 + $0x90] sm:$0xff] %v6670_v2  ;;  %299 = vst [vmem:[#allocation2 + $0x98] sm:$0x11] %v6670_v2  ;;  %v6782_v14 = vsel %vm341_vm1, 1.0, %v6671_v12 }
  0x16   : > { %300 = vst [vmem:[#allocation2 + $0xa0] sm:$0xff] %v6670_v2  ;;  %301 = vst [vmem:[#allocation2 + $0xa8] sm:$0x11] %v6670_v2 }
  0x17   : > { %302 = vst [vmem:[#allocation2 + $0xb0] sm:$0xff] %v6670_v2  ;;  %303 = vst [vmem:[#allocation2 + $0xb8] sm:$0x11] %v6670_v2 }
  0x18   : > { %304 = vst [vmem:[#allocation2 + $0xc0] sm:$0xff] %v6670_v2  ;;  %305 = vst [vmem:[#allocation2 + $0xc8] sm:$0x11] %v6670_v2 }
  0x19   : > { %306 = vst [vmem:[#allocation2 + $0xd0] sm:$0xff] %v6670_v2  ;;  %307 = vst [vmem:[#allocation2 + $0xd8] sm:$0x11] %v6670_v2 }
  0x1a   : > { %308 = vst [vmem:[#allocation2 + $0xe0] sm:$0xff] %v6670_v2  ;;  %309 = vst [vmem:[#allocation2 + $0xe8] sm:$0x11] %v6670_v2 }
  0x1b   : > { %310 = vst [vmem:[#allocation2 + $0xf0] sm:$0xff] %v6670_v2  ;;  %311 = vst [vmem:[#allocation2 + $0xf8] sm:$0x11] %v6670_v2 }
  0x1c   : > { %312 = vst [vmem:[#allocation2 + $0x100] sm:$0xff] %v6670_v2  ;;  %313 = vst [vmem:[#allocation2 + $0x108] sm:$0x11] %v6670_v2 }
  0x1d   : > { %314 = vst [vmem:[#allocation2 + $0x110] sm:$0xff] %v6670_v2  ;;  %315 = vst [vmem:[#allocation2 + $0x118] sm:$0x11] %v6670_v2 }
  0x1e   : > { %316 = vst [vmem:[#allocation3] sm:$0x77] %v6670_v2  ;;  %317 = vst [vmem:[#allocation3 + $0x8] sm:$0x77] %v6670_v2 }
  0x1f   : > { %318 = vst [vmem:[#allocation3 + $0x10] sm:$0x77] %v6670_v2  ;;  %319 = vst [vmem:[#allocation3 + $0x18] sm:$0x77] %v6670_v2 }
  0x20   : > { %320 = vst [vmem:[#allocation3 + $0x20] sm:$0x77] %v6670_v2  ;;  %321 = vst [vmem:[#allocation3 + $0x28] sm:$0x77] %v6670_v2 }
  0x21   : > { %322 = vst [vmem:[#allocation3 + $0x30] sm:$0x77] %v6670_v2  ;;  %323 = vst [vmem:[#allocation3 + $0x38] sm:$0x77] %v6670_v2 }
  0x22   : > { %324 = vst [vmem:[#allocation3 + $0x40] sm:$0x77] %v6670_v2  ;;  %325 = vst [vmem:[#allocation3 + $0x48] sm:$0x77] %v6670_v2 }
  0x23   : > { %326 = vst [vmem:[#allocation4] sm:$0xf] %v6670_v2  ;;  %327 = vst [vmem:[#allocation4 + $0x4] sm:$0xf] %v6670_v2 }
  0x24   : > { %328 = vst [vmem:[#allocation4 + $0x8] sm:$0xf] %v6670_v2  ;;  %329 = vst [vmem:[#allocation4 + $0xc] sm:$0xf] %v6670_v2 }
  0x25   : > { %330 = vst [vmem:[#allocation4 + $0x10] sm:$0xf] %v6670_v2  ;;  %331 = vst [vmem:[#allocation4 + $0x14] sm:$0xf] %v6670_v2 }
  0x26   : > { %11583 = vst [vmem:[#allocation5_spill] sm:$0xff] %v6757_v6  ;;  %11584 = vst [vmem:[#allocation6_spill] sm:$0xff] %v6780_v13 }
  0x27   : > { %11585 = vst [vmem:[#allocation7_spill] sm:$0xff] %v6782_v14 }
  0x28 LB: >> { %v5514_v15 = vcombine.low %v6762_v8, %v6767_v9  ;;  %v6672_v16 = vmov 0.0   ;;  %v5513_v17 = vcombine.low %v6746_v4, %v6751_v5  ;;  %vm6673_vm2 = vmmov 0   ;;  %s5961_s26 = sshll.u32 %s6656_s25, 3  ;;  %s5519_s28 = sshll.u32 %s6656_s25, 4  ;;  %s6656_s25 = sphi %s6784_s25, %s355_s25  }
  0x29   : >> { %6516 = vmatprep.subr.bf16.mxu0 %v6672_v16  ;;  %6526 = vmatprep.subr.mxu1 %v6672_v16  ;;  %s358_s27 = scalar_lea.vmem %s6773_s20, %s5961_s26  ;;  %v5512_v18 = vcombine.low %v6736_v1, %v6741_v3  ;;  %vm384_vm3 = vcmask 392192   ;;  %vm435_vm6 = vcmask 130048   ;;  %vm603_vm7 = vcmask 1043456   ;;  %s5438_s29 = scalar_lea.vmem [#allocation2], %s5519_s28 }
  0x2a   : >> { %6517 = vmatpush3.bf16.msra.mxu0 %v5514_v15  ;;  %6522 = vmatprep.mubr.msk.bf16.mxu0 %vm6673_vm2, %v6672_v16  ;;  %v6609_v19 = vld [vmem:[%s358_s27] sm:$0xff]   ;;  %vm604_vm8 = vsmask.f32 7938  ;;  %vm606_vm9 = vcmask 1047556   ;;  %vm607_vm10 = vsmask.f32 7954 }
  0x2b   : >> { %6518 = vmatprep.subr.bf16.mxu0 %v6672_v16  ;;  %6530 = vmatprep.mubr.msk.f32.mxu1 %vm6673_vm2, %v6672_v16  ;;  %vm613_vm11 = vcmask 1040384   ;;  %vm614_vm12 = vsmask.f32 256  ;;  %vm6804_vm13 = vmand %vm603_vm7, %vm604_vm8  ;;  %vm616_vm14 = vcmask 1044484   ;;  %vm617_vm15 = vsmask.f32 4352 }
  0x2c   : >> { %vm608_vm0 = vmand %vm606_vm9, %vm607_vm10  ;;  %v5520_v37 = vld [vmem:[%s5438_s29 + $0x10] sm:$0xff]  ;;  %v5522_v38 = vld [vmem:[%s5438_s29 + $0x18] sm:$0x11]  ;;  %s355_s25 = sadd.s32 1, %s6656_s25  }
  0x2d   : >> { %vm615_vm1 = vmand %vm613_vm11, %vm614_vm12  ;;  %p352_p4 = scmp.ge.s32.totalorder %s355_s25, 16  }
  0x2e   : >> { %6519 = vmatpush3.bf16.msra.mxu0 %v5513_v17  ;;  %v6816_v43 = vld [vmem:[%s11574_s3] ss:$0 sm:$0xff] (%p352_p4)  ;;  %v6826_v45 = vld [vmem:[%s11573_s2 + $0x4] sm:$0xf] (%p352_p4)  ;;  %v6831_v46 = vld [vmem:[%s11573_s2 + $0x8] sm:$0xf] (%p352_p4) }
  0x2f   : >> { %6520 = vmatprep.subr.bf16.mxu0 %v6672_v16  ;;  %11588 = vst [vmem:[#allocation8_spill] sm:$0xff] (%p352_p4), %v6816_v43  ;;  %v6821_v44 = vld [vmem:[%s11573_s2] sm:$0xf] (%p352_p4)  ;;  %11590 = vst [vmem:[#allocation10_spill] sm:$0xff] (%p352_p4), %v6826_v45  ;;  %v6836_v47 = vld [vmem:[%s11573_s2 + $0xc] sm:$0xf] (%p352_p4) }
  0x30   : > { %11589 = vst [vmem:[#allocation9_spill] sm:$0xff] (%p352_p4), %v6821_v44  ;;  %v6841_v48 = vld [vmem:[%s11573_s2 + $0x10] sm:$0xf] (%p352_p4)  ;;  %v6846_v49 = vld [vmem:[%s11573_s2 + $0x14] sm:$0xf] (%p352_p4)  ;;  %s8098_s17 = smov (%p352_p4), 0  }
  0x31   : > { %v6851_v50 = vld [vmem:[%s11573_s2 + $0x18] sm:$0xf] (%p352_p4)  ;;  %v6856_v51 = vld [vmem:[%s11573_s2 + $0x1c] sm:$0xf] (%p352_p4)  ;;  %v6861_v52 = vld [vmem:[%s11573_s2 + $0x20] sm:$0xf] (%p352_p4) }
  0x32   : >> { %6521 = vmatpush3.bf16.msra.mxu0 %v5512_v18  ;;  %v6866_v53 = vld [vmem:[%s11573_s2 + $0x24] sm:$0xf] (%p352_p4)  ;;  %v6871_v54 = vld [vmem:[%s11573_s2 + $0x28] sm:$0xf] (%p352_p4)  ;;  %v6876_v55 = vld [vmem:[%s11573_s2 + $0x2c] sm:$0xf] (%p352_p4) }
  0x33   : > { %v6881_v56 = vld [vmem:[%s11573_s2 + $0x30] sm:$0xf] (%p352_p4)  ;;  %v6886_v57 = vld [vmem:[%s11573_s2 + $0x34] sm:$0xf] (%p352_p4)  ;;  %v6891_v58 = vld [vmem:[%s11573_s2 + $0x38] sm:$0xf] (%p352_p4) }
  0x34   : > { %v6896_v59 = vld [vmem:[%s11573_s2 + $0x3c] sm:$0xf] (%p352_p4)  ;;  %v6901_v60 = vld [vmem:[%s11573_s2 + $0x40] sm:$0xf] (%p352_p4)  ;;  %v6906_v61 = vld [vmem:[%s11573_s2 + $0x44] sm:$0xf] (%p352_p4) }
  0x35   : >> { %6523 = vmatmul.mubr.msk.bf16.vlgmr.msra.gmra.mxu0 %vm384_vm3, %v6609_v19  ;;  %vm609_vm3 = vmor %vm608_vm0, %vm6804_vm13  ;;  %v6911_v62 = vld [vmem:[%s11573_s2 + $0x48] sm:$0xf] (%p352_p4)  ;;  %v6916_v63 = vld [vmem:[%s11573_s2 + $0x4c] sm:$0xf] (%p352_p4) }
  0x36   : > { %v6921_v0 = vld [vmem:[%s11573_s2 + $0x50] sm:$0xf] (%p352_p4)  ;;  %v6926_v1 = vld [vmem:[%s11573_s2 + $0x54] sm:$0xf] (%p352_p4)  ;;  %v6931_v2 = vld [vmem:[%s11573_s2 + $0x58] sm:$0xf] (%p352_p4) }
  0x37   : > { %11591 = vst [vmem:[#allocation11_spill] sm:$0xff] (%p352_p4), %v6921_v0  ;;  %11592 = vst [vmem:[#allocation12_spill] sm:$0xff] (%p352_p4), %v6926_v1  ;;  %v6936_v3 = vld [vmem:[%s11573_s2 + $0x5c] sm:$0xf] (%p352_p4)  ;;  %v6941_v4 = vld [vmem:[%s11573_s2 + $0x60] sm:$0xf] (%p352_p4) }
  0x38   : > { %11593 = vst [vmem:[#allocation13_spill] sm:$0xff] (%p352_p4), %v6931_v2  ;;  %11594 = vst [vmem:[#allocation14_spill] sm:$0xff] (%p352_p4), %v6936_v3  ;;  %v6946_v5 = vld [vmem:[%s11573_s2 + $0x64] sm:$0xf] (%p352_p4)  ;;  %v6951_v7 = vld [vmem:[%s11573_s2 + $0x68] sm:$0xf] (%p352_p4) }
  0x39   : > { %11595 = vst [vmem:[#allocation15_spill] sm:$0xff] (%p352_p4), %v6941_v4  ;;  %11596 = vst [vmem:[#allocation16_spill] sm:$0xff] (%p352_p4), %v6946_v5  ;;  %v6956_v8 = vld [vmem:[%s11573_s2 + $0x6c] sm:$0xf] (%p352_p4)  ;;  %v6961_v9 = vld [vmem:[%s11573_s2 + $0x70] sm:$0xf] (%p352_p4) }
  0x3a   : > { %11597 = vst [vmem:[#allocation17_spill] sm:$0xff] (%p352_p4), %v6951_v7  ;;  %11598 = vst [vmem:[#allocation18_spill] sm:$0xff] (%p352_p4), %v6956_v8  ;;  %v6966_v10 = vld [vmem:[%s11573_s2 + $0x74] sm:$0xf] (%p352_p4)  ;;  %v6971_v11 = vld [vmem:[%s11573_s2 + $0x78] sm:$0xf] (%p352_p4) }
  0x3b   : > { %11599 = vst [vmem:[#allocation19_spill] sm:$0xff] (%p352_p4), %v6961_v9  ;;  %11600 = vst [vmem:[#allocation20_spill] sm:$0xff] (%p352_p4), %v6966_v10  ;;  %v6976_v12 = vld [vmem:[%s11573_s2 + $0x7c] sm:$0xf] (%p352_p4)  ;;  %v6981_v15 = vld [vmem:[%s11573_s2 + $0x80] sm:$0xf] (%p352_p4) }
  0x3c   : > { %11601 = vst [vmem:[#allocation21_spill] sm:$0xff] (%p352_p4), %v6971_v11  ;;  %11602 = vst [vmem:[#allocation22_spill] sm:$0xff] (%p352_p4), %v6976_v12  ;;  %v6991_v17 = vld [vmem:[%s11573_s2 + $0x88] sm:$0xf] (%p352_p4)  ;;  %v6996_v18 = vld [vmem:[%s11573_s2 + $0x8c] sm:$0xf] (%p352_p4) }
  0x3d   : > { %11603 = vst [vmem:[#allocation23_spill] sm:$0xff] (%p352_p4), %v6981_v15  ;;  %11605 = vst [vmem:[#allocation25_spill] sm:$0xff] (%p352_p4), %v6991_v17  ;;  %v7001_v19 = vld [vmem:[%s11573_s2 + $0x90] sm:$0xf] (%p352_p4)  ;;  %v7061_v31 = vld [vmem:[%s11573_s2 + $0xc0] sm:$0xf] (%p352_p4) }
  0x3e   : > { %11606 = vst [vmem:[#allocation26_spill] sm:$0xff] (%p352_p4), %v6996_v18  ;;  %11607 = vst [vmem:[#allocation27_spill] sm:$0xff] (%p352_p4), %v7001_v19  ;;  %v7121_v6 = vld [vmem:[%s11573_s2 + $0xf0] sm:$0xf] (%p352_p4)  ;;  %v7136_v43 = vld [vmem:[%s11573_s2 + $0xfc] sm:$0xf] (%p352_p4) }
  0x3f   : > { %11613 = vst [vmem:[#allocation33_spill] sm:$0xff] (%p352_p4), %v7061_v31  ;;  %11615 = vst [vmem:[#allocation35_spill] sm:$0xff] (%p352_p4), %v7121_v6  ;;  %v7141_v15 = vld [vmem:[%s11573_s2 + $0x100] sm:$0xf] (%p352_p4)  ;;  %v7151_v44 = vld [vmem:[%s11573_s2 + $0x108] sm:$0xf] (%p352_p4) }
  0x40   : > { %11618 = vst [vmem:[#allocation38_spill] sm:$0xff] (%p352_p4), %v7141_v15  ;;  %11620 = vst [vmem:[#allocation40_spill] sm:$0xff] (%p352_p4), %v7151_v44  ;;  %v7156_v45 = vld [vmem:[%s11573_s2 + $0x10c] sm:$0xf] (%p352_p4)  ;;  %v7161_v31 = vld [vmem:[%s11573_s2 + $0x110] sm:$0xf] (%p352_p4) }
  0x41   : > { %11621 = vst [vmem:[#allocation41_spill] sm:$0xff] (%p352_p4), %v7156_v45  ;;  %11622 = vst [vmem:[#allocation42_spill] sm:$0xff] (%p352_p4), %v7161_v31  ;;  %v7166_v15 = vld [vmem:[%s11573_s2 + $0x114] sm:$0xf] (%p352_p4)  ;;  %v7176_v44 = vld [vmem:[%s11573_s2 + $0x11c] sm:$0xf] (%p352_p4) }
  0x42   : > { %11623 = vst [vmem:[#allocation43_spill] sm:$0xff] (%p352_p4), %v7166_v15  ;;  %11625 = vst [vmem:[#allocation45_spill] sm:$0xff] (%p352_p4), %v7176_v44  ;;  %v7181_v45 = vld [vmem:[%s11573_s2 + $0x120] sm:$0xf] (%p352_p4)  ;;  %v7186_v31 = vld [vmem:[%s11573_s2 + $0x124] sm:$0xf] (%p352_p4) }
  0x43   : > { %11626 = vst [vmem:[#allocation46_spill] sm:$0xff] (%p352_p4), %v7181_v45  ;;  %11627 = vst [vmem:[#allocation47_spill] sm:$0xff] (%p352_p4), %v7186_v31  ;;  %v7191_v15 = vld [vmem:[%s11573_s2 + $0x128] sm:$0xf] (%p352_p4)  ;;  %v7201_v44 = vld [vmem:[%s11573_s2 + $0x130] sm:$0xf] (%p352_p4) }
  0x44   : > { %11628 = vst [vmem:[#allocation48_spill] sm:$0xff] (%p352_p4), %v7191_v15  ;;  %11630 = vst [vmem:[#allocation50_spill] sm:$0xff] (%p352_p4), %v7201_v44  ;;  %v7206_v45 = vld [vmem:[%s11573_s2 + $0x134] sm:$0xf] (%p352_p4)  ;;  %v7211_v31 = vld [vmem:[%s11573_s2 + $0x138] sm:$0xf] (%p352_p4) }
  0x45   : > { %11631 = vst [vmem:[#allocation51_spill] sm:$0xff] (%p352_p4), %v7206_v45  ;;  %11632 = vst [vmem:[#allocation52_spill] sm:$0xff] (%p352_p4), %v7211_v31  ;;  %v7216_v15 = vld [vmem:[%s11573_s2 + $0x13c] sm:$0xf] (%p352_p4)  ;;  %v7226_v44 = vld [vmem:[%s11573_s2 + $0x144] sm:$0xf] (%p352_p4) }
  0x46   : > { %11633 = vst [vmem:[#allocation53_spill] sm:$0xff] (%p352_p4), %v7216_v15  ;;  %11635 = vst [vmem:[#allocation55_spill] sm:$0xff] (%p352_p4), %v7226_v44  ;;  %v7231_v45 = vld [vmem:[%s11573_s2 + $0x148] sm:$0xf] (%p352_p4)  ;;  %v7236_v31 = vld [vmem:[%s11573_s2 + $0x14c] sm:$0xf] (%p352_p4) }
  0x47   : > { %11636 = vst [vmem:[#allocation56_spill] sm:$0xff] (%p352_p4), %v7231_v45  ;;  %11637 = vst [vmem:[#allocation57_spill] sm:$0xff] (%p352_p4), %v7236_v31  ;;  %v7241_v15 = vld [vmem:[%s11573_s2 + $0x150] sm:$0xf] (%p352_p4)  ;;  %v7251_v44 = vld [vmem:[%s11573_s2 + $0x158] sm:$0xf] (%p352_p4) }
  0x48   : > { %11638 = vst [vmem:[#allocation58_spill] sm:$0xff] (%p352_p4), %v7241_v15  ;;  %11640 = vst [vmem:[#allocation60_spill] sm:$0xff] (%p352_p4), %v7251_v44  ;;  %v7256_v45 = vld [vmem:[%s11573_s2 + $0x15c] sm:$0xf] (%p352_p4)  ;;  %v7261_v31 = vld [vmem:[%s11573_s2 + $0x160] sm:$0xf] (%p352_p4) }
  0x49   : > { %11641 = vst [vmem:[#allocation61_spill] sm:$0xff] (%p352_p4), %v7256_v45  ;;  %11642 = vst [vmem:[#allocation62_spill] sm:$0xff] (%p352_p4), %v7261_v31  ;;  %v7266_v15 = vld [vmem:[%s11573_s2 + $0x164] sm:$0xf] (%p352_p4)  ;;  %v7276_v44 = vld [vmem:[%s11573_s2 + $0x16c] sm:$0xf] (%p352_p4) }
  0x4a   : > { %11643 = vst [vmem:[#allocation63_spill] sm:$0xff] (%p352_p4), %v7266_v15  ;;  %11645 = vst [vmem:[#allocation65_spill] sm:$0xff] (%p352_p4), %v7276_v44  ;;  %v7281_v45 = vld [vmem:[%s11573_s2 + $0x170] sm:$0xf] (%p352_p4)  ;;  %v7286_v31 = vld [vmem:[%s11573_s2 + $0x174] sm:$0xf] (%p352_p4) }
  0x4b   : > { %11646 = vst [vmem:[#allocation66_spill] sm:$0xff] (%p352_p4), %v7281_v45  ;;  %11647 = vst [vmem:[#allocation67_spill] sm:$0xff] (%p352_p4), %v7286_v31  ;;  %v7291_v15 = vld [vmem:[%s11573_s2 + $0x178] sm:$0xf] (%p352_p4)  ;;  %v7301_v44 = vld [vmem:[%s11573_s2 + $0x180] sm:$0xf] (%p352_p4) }
  0x4c   : > { %11648 = vst [vmem:[#allocation68_spill] sm:$0xff] (%p352_p4), %v7291_v15  ;;  %11650 = vst [vmem:[#allocation70_spill] sm:$0xff] (%p352_p4), %v7301_v44  ;;  %v7306_v45 = vld [vmem:[%s11573_s2 + $0x184] sm:$0xf] (%p352_p4)  ;;  %v7311_v31 = vld [vmem:[%s11573_s2 + $0x188] sm:$0xf] (%p352_p4) }
  0x4d   : > { %11651 = vst [vmem:[#allocation71_spill] sm:$0xff] (%p352_p4), %v7306_v45  ;;  %11652 = vst [vmem:[#allocation72_spill] sm:$0xff] (%p352_p4), %v7311_v31  ;;  %v7316_v15 = vld [vmem:[%s11573_s2 + $0x18c] sm:$0xf] (%p352_p4)  ;;  %v7326_v44 = vld [vmem:[%s11573_s2 + $0x194] sm:$0xf] (%p352_p4) }
  0x4e   : > { %11653 = vst [vmem:[#allocation73_spill] sm:$0xff] (%p352_p4), %v7316_v15  ;;  %11655 = vst [vmem:[#allocation75_spill] sm:$0xff] (%p352_p4), %v7326_v44  ;;  %v7331_v45 = vld [vmem:[%s11573_s2 + $0x198] sm:$0xf] (%p352_p4)  ;;  %v7336_v31 = vld [vmem:[%s11573_s2 + $0x19c] sm:$0xf] (%p352_p4) }
  0x4f   : > { %11656 = vst [vmem:[#allocation76_spill] sm:$0xff] (%p352_p4), %v7331_v45  ;;  %11657 = vst [vmem:[#allocation77_spill] sm:$0xff] (%p352_p4), %v7336_v31  ;;  %v7341_v15 = vld [vmem:[%s11573_s2 + $0x1a0] sm:$0xf] (%p352_p4)  ;;  %v7351_v44 = vld [vmem:[%s11573_s2 + $0x1a8] sm:$0xf] (%p352_p4) }
  0x50   : > { %11658 = vst [vmem:[#allocation78_spill] sm:$0xff] (%p352_p4), %v7341_v15  ;;  %11660 = vst [vmem:[#allocation80_spill] sm:$0xff] (%p352_p4), %v7351_v44  ;;  %v7356_v45 = vld [vmem:[%s11573_s2 + $0x1ac] sm:$0xf] (%p352_p4)  ;;  %v7361_v31 = vld [vmem:[%s11573_s2 + $0x1b0] sm:$0xf] (%p352_p4) }
  0x51   : > { %11661 = vst [vmem:[#allocation81_spill] sm:$0xff] (%p352_p4), %v7356_v45  ;;  %11662 = vst [vmem:[#allocation82_spill] sm:$0xff] (%p352_p4), %v7361_v31  ;;  %v7366_v15 = vld [vmem:[%s11573_s2 + $0x1b4] sm:$0xf] (%p352_p4)  ;;  %v7376_v44 = vld [vmem:[%s11573_s2 + $0x1bc] sm:$0xf] (%p352_p4) }
  0x52   : > { %11663 = vst [vmem:[#allocation83_spill] sm:$0xff] (%p352_p4), %v7366_v15  ;;  %11665 = vst [vmem:[#allocation85_spill] sm:$0xff] (%p352_p4), %v7376_v44  ;;  %v7381_v45 = vld [vmem:[%s11573_s2 + $0x1c0] sm:$0xf] (%p352_p4)  ;;  %v7386_v31 = vld [vmem:[%s11573_s2 + $0x1c4] sm:$0xf] (%p352_p4) }
  0x53   : > { %11666 = vst [vmem:[#allocation86_spill] sm:$0xff] (%p352_p4), %v7381_v45  ;;  %11667 = vst [vmem:[#allocation87_spill] sm:$0xff] (%p352_p4), %v7386_v31  ;;  %v7391_v15 = vld [vmem:[%s11573_s2 + $0x1c8] sm:$0xf] (%p352_p4)  ;;  %v7401_v44 = vld [vmem:[%s11573_s2 + $0x1d0] sm:$0xf] (%p352_p4) }
  0x54   : > { %11668 = vst [vmem:[#allocation88_spill] sm:$0xff] (%p352_p4), %v7391_v15  ;;  %11670 = vst [vmem:[#allocation90_spill] sm:$0xff] (%p352_p4), %v7401_v44  ;;  %v7406_v45 = vld [vmem:[%s11573_s2 + $0x1d4] sm:$0xf] (%p352_p4)  ;;  %v7411_v31 = vld [vmem:[%s11573_s2 + $0x1d8] sm:$0xf] (%p352_p4) }
  0x55   : > { %11671 = vst [vmem:[#allocation91_spill] sm:$0xff] (%p352_p4), %v7406_v45  ;;  %11672 = vst [vmem:[#allocation92_spill] sm:$0xff] (%p352_p4), %v7411_v31  ;;  %v7416_v15 = vld [vmem:[%s11573_s2 + $0x1dc] sm:$0xf] (%p352_p4)  ;;  %v7426_v44 = vld [vmem:[%s11573_s2 + $0x1e4] sm:$0xf] (%p352_p4) }
  0x56   : > { %11673 = vst [vmem:[#allocation93_spill] sm:$0xff] (%p352_p4), %v7416_v15  ;;  %11675 = vst [vmem:[#allocation95_spill] sm:$0xff] (%p352_p4), %v7426_v44  ;;  %v7431_v45 = vld [vmem:[%s11573_s2 + $0x1e8] sm:$0xf] (%p352_p4)  ;;  %v7436_v31 = vld [vmem:[%s11573_s2 + $0x1ec] sm:$0xf] (%p352_p4) }
  0x57   : > { %11676 = vst [vmem:[#allocation96_spill] sm:$0xff] (%p352_p4), %v7431_v45  ;;  %11677 = vst [vmem:[#allocation97_spill] sm:$0xff] (%p352_p4), %v7436_v31  ;;  %v7441_v15 = vld [vmem:[%s11573_s2 + $0x1f0] sm:$0xf] (%p352_p4)  ;;  %v7451_v44 = vld [vmem:[%s11573_s2 + $0x1f8] sm:$0xf] (%p352_p4) }
  0x58   : > { %11678 = vst [vmem:[#allocation98_spill] sm:$0xff] (%p352_p4), %v7441_v15  ;;  %11680 = vst [vmem:[#allocation100_spill] sm:$0xff] (%p352_p4), %v7451_v44  ;;  %v7456_v45 = vld [vmem:[%s11573_s2 + $0x1fc] sm:$0xf] (%p352_p4)  ;;  %v7461_v31 = vld [vmem:[%s11573_s2 + $0x200] sm:$0xf] (%p352_p4) }
  0x59   : > { %11681 = vst [vmem:[#allocation101_spill] sm:$0xff] (%p352_p4), %v7456_v45  ;;  %11682 = vst [vmem:[#allocation102_spill] sm:$0xff] (%p352_p4), %v7461_v31  ;;  %v7466_v15 = vld [vmem:[%s11573_s2 + $0x204] sm:$0xf] (%p352_p4)  ;;  %v7476_v44 = vld [vmem:[%s11573_s2 + $0x20c] sm:$0xf] (%p352_p4) }
  0x5a   : > { %11683 = vst [vmem:[#allocation103_spill] sm:$0xff] (%p352_p4), %v7466_v15  ;;  %11685 = vst [vmem:[#allocation105_spill] sm:$0xff] (%p352_p4), %v7476_v44  ;;  %v7481_v45 = vld [vmem:[%s11573_s2 + $0x210] sm:$0xf] (%p352_p4)  ;;  %v7486_v31 = vld [vmem:[%s11573_s2 + $0x214] sm:$0xf] (%p352_p4) }
  0x5b   : > { %11686 = vst [vmem:[#allocation106_spill] sm:$0xff] (%p352_p4), %v7481_v45  ;;  %11687 = vst [vmem:[#allocation107_spill] sm:$0xff] (%p352_p4), %v7486_v31  ;;  %v7491_v15 = vld [vmem:[%s11573_s2 + $0x218] sm:$0xf] (%p352_p4)  ;;  %v7501_v44 = vld [vmem:[%s11573_s2 + $0x220] sm:$0xf] (%p352_p4) }
  0x5c   : > { %11688 = vst [vmem:[#allocation108_spill] sm:$0xff] (%p352_p4), %v7491_v15  ;;  %11690 = vst [vmem:[#allocation110_spill] sm:$0xff] (%p352_p4), %v7501_v44  ;;  %v7506_v45 = vld [vmem:[%s11573_s2 + $0x224] sm:$0xf] (%p352_p4)  ;;  %v7511_v31 = vld [vmem:[%s11573_s2 + $0x228] sm:$0xf] (%p352_p4) }
  0x5d   : > { %11691 = vst [vmem:[#allocation111_spill] sm:$0xff] (%p352_p4), %v7506_v45  ;;  %11692 = vst [vmem:[#allocation112_spill] sm:$0xff] (%p352_p4), %v7511_v31  ;;  %v7516_v15 = vld [vmem:[%s11573_s2 + $0x22c] sm:$0xf] (%p352_p4)  ;;  %v7526_v44 = vld [vmem:[%s11573_s2 + $0x234] sm:$0xf] (%p352_p4) }
  0x5e   : > { %11693 = vst [vmem:[#allocation113_spill] sm:$0xff] (%p352_p4), %v7516_v15  ;;  %11695 = vst [vmem:[#allocation115_spill] sm:$0xff] (%p352_p4), %v7526_v44  ;;  %v7531_v45 = vld [vmem:[%s11573_s2 + $0x238] sm:$0xf] (%p352_p4)  ;;  %v7536_v31 = vld [vmem:[%s11573_s2 + $0x23c] sm:$0xf] (%p352_p4) }
  0x5f   : > { %11696 = vst [vmem:[#allocation116_spill] sm:$0xff] (%p352_p4), %v7531_v45  ;;  %11697 = vst [vmem:[#allocation117_spill] sm:$0xff] (%p352_p4), %v7536_v31  ;;  %v7541_v15 = vld [vmem:[%s11573_s2 + $0x240] sm:$0xf] (%p352_p4)  ;;  %v7551_v44 = vld [vmem:[%s11573_s2 + $0x248] sm:$0xf] (%p352_p4) }
  0x60   : > { %11698 = vst [vmem:[#allocation118_spill] sm:$0xff] (%p352_p4), %v7541_v15  ;;  %11700 = vst [vmem:[#allocation120_spill] sm:$0xff] (%p352_p4), %v7551_v44  ;;  %v7556_v45 = vld [vmem:[%s11573_s2 + $0x24c] sm:$0xf] (%p352_p4)  ;;  %v7561_v31 = vld [vmem:[%s11573_s2 + $0x250] sm:$0xf] (%p352_p4) }
  0x61   : > { %11701 = vst [vmem:[#allocation121_spill] sm:$0xff] (%p352_p4), %v7556_v45  ;;  %11702 = vst [vmem:[#allocation122_spill] sm:$0xff] (%p352_p4), %v7561_v31  ;;  %v7566_v15 = vld [vmem:[%s11573_s2 + $0x254] sm:$0xf] (%p352_p4)  ;;  %v7576_v44 = vld [vmem:[%s11573_s2 + $0x25c] sm:$0xf] (%p352_p4) }
  0x62   : > { %11703 = vst [vmem:[#allocation123_spill] sm:$0xff] (%p352_p4), %v7566_v15  ;;  %11705 = vst [vmem:[#allocation125_spill] sm:$0xff] (%p352_p4), %v7576_v44  ;;  %v7581_v45 = vld [vmem:[%s11573_s2 + $0x260] sm:$0xf] (%p352_p4)  ;;  %v7586_v31 = vld [vmem:[%s11573_s2 + $0x264] sm:$0xf] (%p352_p4) }
  0x63   : > { %11706 = vst [vmem:[#allocation126_spill] sm:$0xff] (%p352_p4), %v7581_v45  ;;  %11707 = vst [vmem:[#allocation127_spill] sm:$0xff] (%p352_p4), %v7586_v31  ;;  %v7591_v15 = vld [vmem:[%s11573_s2 + $0x268] sm:$0xf] (%p352_p4)  ;;  %v7601_v44 = vld [vmem:[%s11573_s2 + $0x270] sm:$0xf] (%p352_p4) }
  0x64   : > { %11708 = vst [vmem:[#allocation128_spill] sm:$0xff] (%p352_p4), %v7591_v15  ;;  %11710 = vst [vmem:[#allocation130_spill] sm:$0xff] (%p352_p4), %v7601_v44  ;;  %v7606_v45 = vld [vmem:[%s11573_s2 + $0x274] sm:$0xf] (%p352_p4)  ;;  %v7611_v31 = vld [vmem:[%s11573_s2 + $0x278] sm:$0xf] (%p352_p4) }
  0x65   : > { %11711 = vst [vmem:[#allocation131_spill] sm:$0xff] (%p352_p4), %v7606_v45  ;;  %11712 = vst [vmem:[#allocation132_spill] sm:$0xff] (%p352_p4), %v7611_v31  ;;  %v7616_v15 = vld [vmem:[%s11573_s2 + $0x27c] sm:$0xf] (%p352_p4)  ;;  %v7626_v44 = vld [vmem:[%s11573_s2 + $0x284] sm:$0xf] (%p352_p4) }
  0x66   : > { %11713 = vst [vmem:[#allocation133_spill] sm:$0xff] (%p352_p4), %v7616_v15  ;;  %11715 = vst [vmem:[#allocation135_spill] sm:$0xff] (%p352_p4), %v7626_v44  ;;  %v7631_v45 = vld [vmem:[%s11573_s2 + $0x288] sm:$0xf] (%p352_p4)  ;;  %v7636_v31 = vld [vmem:[%s11573_s2 + $0x28c] sm:$0xf] (%p352_p4) }
  0x67   : > { %11716 = vst [vmem:[#allocation136_spill] sm:$0xff] (%p352_p4), %v7631_v45  ;;  %11717 = vst [vmem:[#allocation137_spill] sm:$0xff] (%p352_p4), %v7636_v31  ;;  %v7641_v15 = vld [vmem:[%s11573_s2 + $0x290] sm:$0xf] (%p352_p4)  ;;  %v7651_v44 = vld [vmem:[%s11573_s2 + $0x298] sm:$0xf] (%p352_p4) }
  0x68   : > { %11718 = vst [vmem:[#allocation138_spill] sm:$0xff] (%p352_p4), %v7641_v15  ;;  %11720 = vst [vmem:[#allocation140_spill] sm:$0xff] (%p352_p4), %v7651_v44  ;;  %v7656_v45 = vld [vmem:[%s11573_s2 + $0x29c] sm:$0xf] (%p352_p4)  ;;  %v7661_v31 = vld [vmem:[%s11573_s2 + $0x2a0] sm:$0xf] (%p352_p4) }
  0x69   : > { %11721 = vst [vmem:[#allocation141_spill] sm:$0xff] (%p352_p4), %v7656_v45  ;;  %11722 = vst [vmem:[#allocation142_spill] sm:$0xff] (%p352_p4), %v7661_v31  ;;  %v7666_v15 = vld [vmem:[%s11573_s2 + $0x2a4] sm:$0xf] (%p352_p4)  ;;  %v7676_v44 = vld [vmem:[%s11573_s2 + $0x2ac] sm:$0xf] (%p352_p4) }
  0x6a   : > { %11723 = vst [vmem:[#allocation143_spill] sm:$0xff] (%p352_p4), %v7666_v15  ;;  %11725 = vst [vmem:[#allocation145_spill] sm:$0xff] (%p352_p4), %v7676_v44  ;;  %v7681_v45 = vld [vmem:[%s11573_s2 + $0x2b0] sm:$0xf] (%p352_p4)  ;;  %v7686_v31 = vld [vmem:[%s11573_s2 + $0x2b4] sm:$0xf] (%p352_p4) }
  0x6b   : > { %11726 = vst [vmem:[#allocation146_spill] sm:$0xff] (%p352_p4), %v7681_v45  ;;  %11727 = vst [vmem:[#allocation147_spill] sm:$0xff] (%p352_p4), %v7686_v31  ;;  %v7691_v15 = vld [vmem:[%s11573_s2 + $0x2b8] sm:$0xf] (%p352_p4)  ;;  %v7701_v44 = vld [vmem:[%s11573_s2 + $0x2c0] sm:$0xf] (%p352_p4) }
  0x6c   : > { %11728 = vst [vmem:[#allocation148_spill] sm:$0xff] (%p352_p4), %v7691_v15  ;;  %11730 = vst [vmem:[#allocation150_spill] sm:$0xff] (%p352_p4), %v7701_v44  ;;  %v7706_v45 = vld [vmem:[%s11573_s2 + $0x2c4] sm:$0xf] (%p352_p4)  ;;  %v7711_v31 = vld [vmem:[%s11573_s2 + $0x2c8] sm:$0xf] (%p352_p4) }
  0x6d   : > { %11731 = vst [vmem:[#allocation151_spill] sm:$0xff] (%p352_p4), %v7706_v45  ;;  %11732 = vst [vmem:[#allocation152_spill] sm:$0xff] (%p352_p4), %v7711_v31  ;;  %v7716_v15 = vld [vmem:[%s11573_s2 + $0x2cc] sm:$0xf] (%p352_p4)  ;;  %v7726_v44 = vld [vmem:[%s11573_s2 + $0x2d4] sm:$0xf] (%p352_p4) }
  0x6e   : > { %11733 = vst [vmem:[#allocation153_spill] sm:$0xff] (%p352_p4), %v7716_v15  ;;  %11735 = vst [vmem:[#allocation155_spill] sm:$0xff] (%p352_p4), %v7726_v44  ;;  %v7731_v45 = vld [vmem:[%s11573_s2 + $0x2d8] sm:$0xf] (%p352_p4)  ;;  %v7736_v31 = vld [vmem:[%s11573_s2 + $0x2dc] sm:$0xf] (%p352_p4) }
  0x6f   : > { %11736 = vst [vmem:[#allocation156_spill] sm:$0xff] (%p352_p4), %v7731_v45  ;;  %11737 = vst [vmem:[#allocation157_spill] sm:$0xff] (%p352_p4), %v7736_v31  ;;  %v7741_v15 = vld [vmem:[%s11573_s2 + $0x2e0] sm:$0xf] (%p352_p4)  ;;  %v7751_v44 = vld [vmem:[%s11573_s2 + $0x2e8] sm:$0xf] (%p352_p4) }
  0x70   : > { %11738 = vst [vmem:[#allocation158_spill] sm:$0xff] (%p352_p4), %v7741_v15  ;;  %11740 = vst [vmem:[#allocation160_spill] sm:$0xff] (%p352_p4), %v7751_v44  ;;  %v7756_v45 = vld [vmem:[%s11573_s2 + $0x2ec] sm:$0xf] (%p352_p4)  ;;  %v7761_v31 = vld [vmem:[%s11573_s2 + $0x2f0] sm:$0xf] (%p352_p4) }
  0x71   : > { %11741 = vst [vmem:[#allocation161_spill] sm:$0xff] (%p352_p4), %v7756_v45  ;;  %11742 = vst [vmem:[#allocation162_spill] sm:$0xff] (%p352_p4), %v7761_v31  ;;  %v7766_v15 = vld [vmem:[%s11573_s2 + $0x2f4] sm:$0xf] (%p352_p4)  ;;  %v7776_v44 = vld [vmem:[%s11573_s2 + $0x2fc] sm:$0xf] (%p352_p4) }
  0x72   : > { %11743 = vst [vmem:[#allocation163_spill] sm:$0xff] (%p352_p4), %v7766_v15  ;;  %11745 = vst [vmem:[#allocation165_spill] sm:$0xff] (%p352_p4), %v7776_v44  ;;  %v7781_v45 = vld [vmem:[%s11573_s2 + $0x300] sm:$0xf] (%p352_p4)  ;;  %v7786_v31 = vld [vmem:[%s11573_s2 + $0x304] sm:$0xf] (%p352_p4) }
  0x73   : > { %11746 = vst [vmem:[#allocation166_spill] sm:$0xff] (%p352_p4), %v7781_v45  ;;  %11747 = vst [vmem:[#allocation167_spill] sm:$0xff] (%p352_p4), %v7786_v31  ;;  %v7791_v15 = vld [vmem:[%s11573_s2 + $0x308] sm:$0xf] (%p352_p4)  ;;  %v7801_v44 = vld [vmem:[%s11573_s2 + $0x310] sm:$0xf] (%p352_p4) }
  0x74   : > { %11748 = vst [vmem:[#allocation168_spill] sm:$0xff] (%p352_p4), %v7791_v15  ;;  %11750 = vst [vmem:[#allocation170_spill] sm:$0xff] (%p352_p4), %v7801_v44  ;;  %v7806_v45 = vld [vmem:[%s11573_s2 + $0x314] sm:$0xf] (%p352_p4)  ;;  %v7811_v31 = vld [vmem:[%s11573_s2 + $0x318] sm:$0xf] (%p352_p4) }
  0x75   : > { %11751 = vst [vmem:[#allocation171_spill] sm:$0xff] (%p352_p4), %v7806_v45  ;;  %11752 = vst [vmem:[#allocation172_spill] sm:$0xff] (%p352_p4), %v7811_v31  ;;  %v7816_v15 = vld [vmem:[%s11573_s2 + $0x31c] sm:$0xf] (%p352_p4)  ;;  %v7826_v44 = vld [vmem:[%s11573_s2 + $0x324] sm:$0xf] (%p352_p4) }
  0x76   : > { %11753 = vst [vmem:[#allocation173_spill] sm:$0xff] (%p352_p4), %v7816_v15  ;;  %11755 = vst [vmem:[#allocation175_spill] sm:$0xff] (%p352_p4), %v7826_v44  ;;  %v7831_v45 = vld [vmem:[%s11573_s2 + $0x328] sm:$0xf] (%p352_p4)  ;;  %v7836_v31 = vld [vmem:[%s11573_s2 + $0x32c] sm:$0xf] (%p352_p4) }
  0x77   : > { %11756 = vst [vmem:[#allocation176_spill] sm:$0xff] (%p352_p4), %v7831_v45  ;;  %11757 = vst [vmem:[#allocation177_spill] sm:$0xff] (%p352_p4), %v7836_v31  ;;  %v7841_v15 = vld [vmem:[%s11573_s2 + $0x330] sm:$0xf] (%p352_p4)  ;;  %v7851_v44 = vld [vmem:[%s11573_s2 + $0x338] sm:$0xf] (%p352_p4) }
  0x78   : > { %11758 = vst [vmem:[#allocation178_spill] sm:$0xff] (%p352_p4), %v7841_v15  ;;  %11760 = vst [vmem:[#allocation180_spill] sm:$0xff] (%p352_p4), %v7851_v44  ;;  %v7856_v45 = vld [vmem:[%s11573_s2 + $0x33c] sm:$0xf] (%p352_p4)  ;;  %v7861_v31 = vld [vmem:[%s11573_s2 + $0x340] sm:$0xf] (%p352_p4) }
  0x79   : > { %11761 = vst [vmem:[#allocation181_spill] sm:$0xff] (%p352_p4), %v7856_v45  ;;  %11762 = vst [vmem:[#allocation182_spill] sm:$0xff] (%p352_p4), %v7861_v31  ;;  %v7866_v15 = vld [vmem:[%s11573_s2 + $0x344] sm:$0xf] (%p352_p4)  ;;  %v7876_v44 = vld [vmem:[%s11573_s2 + $0x34c] sm:$0xf] (%p352_p4) }
  0x7a   : > { %11763 = vst [vmem:[#allocation183_spill] sm:$0xff] (%p352_p4), %v7866_v15  ;;  %11765 = vst [vmem:[#allocation185_spill] sm:$0xff] (%p352_p4), %v7876_v44  ;;  %v7881_v45 = vld [vmem:[%s11573_s2 + $0x350] sm:$0xf] (%p352_p4)  ;;  %v7886_v31 = vld [vmem:[%s11573_s2 + $0x354] sm:$0xf] (%p352_p4) }
  0x7b   : > { %11766 = vst [vmem:[#allocation186_spill] sm:$0xff] (%p352_p4), %v7881_v45  ;;  %11767 = vst [vmem:[#allocation187_spill] sm:$0xff] (%p352_p4), %v7886_v31  ;;  %v7891_v15 = vld [vmem:[%s11573_s2 + $0x358] sm:$0xf] (%p352_p4)  ;;  %v7901_v44 = vld [vmem:[%s11573_s2 + $0x360] sm:$0xf] (%p352_p4) }
  0x7c   : > { %11768 = vst [vmem:[#allocation188_spill] sm:$0xff] (%p352_p4), %v7891_v15  ;;  %11770 = vst [vmem:[#allocation190_spill] sm:$0xff] (%p352_p4), %v7901_v44  ;;  %v7906_v45 = vld [vmem:[%s11573_s2 + $0x364] sm:$0xf] (%p352_p4)  ;;  %v7911_v31 = vld [vmem:[%s11573_s2 + $0x368] sm:$0xf] (%p352_p4) }
  0x7d   : > { %11771 = vst [vmem:[#allocation191_spill] sm:$0xff] (%p352_p4), %v7906_v45  ;;  %11772 = vst [vmem:[#allocation192_spill] sm:$0xff] (%p352_p4), %v7911_v31  ;;  %v7916_v15 = vld [vmem:[%s11573_s2 + $0x36c] sm:$0xf] (%p352_p4)  ;;  %v7926_v44 = vld [vmem:[%s11573_s2 + $0x374] sm:$0xf] (%p352_p4) }
  0x7e   : > { %11773 = vst [vmem:[#allocation193_spill] sm:$0xff] (%p352_p4), %v7916_v15  ;;  %11775 = vst [vmem:[#allocation195_spill] sm:$0xff] (%p352_p4), %v7926_v44  ;;  %v7931_v45 = vld [vmem:[%s11573_s2 + $0x378] sm:$0xf] (%p352_p4)  ;;  %v7936_v31 = vld [vmem:[%s11573_s2 + $0x37c] sm:$0xf] (%p352_p4) }
  0x7f   : > { %11776 = vst [vmem:[#allocation196_spill] sm:$0xff] (%p352_p4), %v7931_v45  ;;  %11777 = vst [vmem:[#allocation197_spill] sm:$0xff] (%p352_p4), %v7936_v31  ;;  %v7941_v15 = vld [vmem:[%s11573_s2 + $0x380] sm:$0xf] (%p352_p4)  ;;  %v7951_v44 = vld [vmem:[%s11573_s2 + $0x388] sm:$0xf] (%p352_p4) }
  0x80   : > { %11778 = vst [vmem:[#allocation198_spill] sm:$0xff] (%p352_p4), %v7941_v15  ;;  %11780 = vst [vmem:[#allocation200_spill] sm:$0xff] (%p352_p4), %v7951_v44  ;;  %v7956_v45 = vld [vmem:[%s11573_s2 + $0x38c] sm:$0xf] (%p352_p4)  ;;  %v7961_v31 = vld [vmem:[%s11573_s2 + $0x390] sm:$0xf] (%p352_p4) }
  0x81   : > { %11781 = vst [vmem:[#allocation201_spill] sm:$0xff] (%p352_p4), %v7956_v45  ;;  %11782 = vst [vmem:[#allocation202_spill] sm:$0xff] (%p352_p4), %v7961_v31  ;;  %v7966_v15 = vld [vmem:[%s11573_s2 + $0x394] sm:$0xf] (%p352_p4)  ;;  %v7976_v44 = vld [vmem:[%s11573_s2 + $0x39c] sm:$0xf] (%p352_p4) }
  0x82   : > { %11783 = vst [vmem:[#allocation203_spill] sm:$0xff] (%p352_p4), %v7966_v15  ;;  %11785 = vst [vmem:[#allocation205_spill] sm:$0xff] (%p352_p4), %v7976_v44  ;;  %v7981_v45 = vld [vmem:[%s11573_s2 + $0x3a0] sm:$0xf] (%p352_p4)  ;;  %v7986_v31 = vld [vmem:[%s11573_s2 + $0x3a4] sm:$0xf] (%p352_p4) }
  0x83   : > { %11786 = vst [vmem:[#allocation206_spill] sm:$0xff] (%p352_p4), %v7981_v45  ;;  %11787 = vst [vmem:[#allocation207_spill] sm:$0xff] (%p352_p4), %v7986_v31  ;;  %v7991_v15 = vld [vmem:[%s11573_s2 + $0x3a8] sm:$0xf] (%p352_p4)  ;;  %v8001_v44 = vld [vmem:[%s11573_s2 + $0x3b0] sm:$0xf] (%p352_p4) }
  0x84   : > { %11788 = vst [vmem:[#allocation208_spill] sm:$0xff] (%p352_p4), %v7991_v15  ;;  %11790 = vst [vmem:[#allocation210_spill] sm:$0xff] (%p352_p4), %v8001_v44  ;;  %v8006_v45 = vld [vmem:[%s11573_s2 + $0x3b4] sm:$0xf] (%p352_p4)  ;;  %v8011_v31 = vld [vmem:[%s11573_s2 + $0x3b8] sm:$0xf] (%p352_p4) }
  0x85   : > { %11791 = vst [vmem:[#allocation211_spill] sm:$0xff] (%p352_p4), %v8006_v45  ;;  %11792 = vst [vmem:[#allocation212_spill] sm:$0xff] (%p352_p4), %v8011_v31  ;;  %v8016_v15 = vld [vmem:[%s11573_s2 + $0x3bc] sm:$0xf] (%p352_p4)  ;;  %v8026_v44 = vld [vmem:[%s11573_s2 + $0x3c4] sm:$0xf] (%p352_p4) }
  0x86   : > { %11793 = vst [vmem:[#allocation213_spill] sm:$0xff] (%p352_p4), %v8016_v15  ;;  %11795 = vst [vmem:[#allocation215_spill] sm:$0xff] (%p352_p4), %v8026_v44  ;;  %v8031_v45 = vld [vmem:[%s11573_s2 + $0x3c8] sm:$0xf] (%p352_p4)  ;;  %v8036_v31 = vld [vmem:[%s11573_s2 + $0x3cc] sm:$0xf] (%p352_p4) }
  0x87   : > { %11796 = vst [vmem:[#allocation216_spill] sm:$0xff] (%p352_p4), %v8031_v45  ;;  %11797 = vst [vmem:[#allocation217_spill] sm:$0xff] (%p352_p4), %v8036_v31  ;;  %v8041_v15 = vld [vmem:[%s11573_s2 + $0x3d0] sm:$0xf] (%p352_p4)  ;;  %v8051_v44 = vld [vmem:[%s11573_s2 + $0x3d8] sm:$0xf] (%p352_p4) }
  0x88   : > { %11798 = vst [vmem:[#allocation218_spill] sm:$0xff] (%p352_p4), %v8041_v15  ;;  %11800 = vst [vmem:[#allocation220_spill] sm:$0xff] (%p352_p4), %v8051_v44  ;;  %v8056_v45 = vld [vmem:[%s11573_s2 + $0x3dc] sm:$0xf] (%p352_p4)  ;;  %v8061_v31 = vld [vmem:[%s11573_s2 + $0x3e0] sm:$0xf] (%p352_p4) }
  0x89   : > { %11801 = vst [vmem:[#allocation221_spill] sm:$0xff] (%p352_p4), %v8056_v45  ;;  %11802 = vst [vmem:[#allocation222_spill] sm:$0xff] (%p352_p4), %v8061_v31  ;;  %v8066_v15 = vld [vmem:[%s11573_s2 + $0x3e4] sm:$0xf] (%p352_p4)  ;;  %v8076_v44 = vld [vmem:[%s11573_s2 + $0x3ec] sm:$0xf] (%p352_p4) }
  0x8a   : > { %11803 = vst [vmem:[#allocation223_spill] sm:$0xff] (%p352_p4), %v8066_v15  ;;  %11805 = vst [vmem:[#allocation225_spill] sm:$0xff] (%p352_p4), %v8076_v44  ;;  %v8081_v45 = vld [vmem:[%s11573_s2 + $0x3f0] sm:$0xf] (%p352_p4)  ;;  %v8086_v31 = vld [vmem:[%s11573_s2 + $0x3f4] sm:$0xf] (%p352_p4) }
  0x8b   : > { %11806 = vst [vmem:[#allocation226_spill] sm:$0xff] (%p352_p4), %v8081_v45  ;;  %11807 = vst [vmem:[#allocation227_spill] sm:$0xff] (%p352_p4), %v8086_v31  ;;  %v8091_v15 = vld [vmem:[%s11573_s2 + $0x3f8] sm:$0xf] (%p352_p4) }
  0x8c   : > { %11808 = vst [vmem:[#allocation228_spill] sm:$0xff] (%p352_p4), %v8091_v15 }
  0xf5   : >> { %v422_v20 = vpop.f32.mrf.mxu0 }
  0xf6   : >> { %v431_v23 = vmul.f32 0.2, %v422_v20  ;;  %vm429_vm5 = vcmp.gt.f32.partialorder %v422_v20, 0.0 }
  0xf7   : >> { %v6524_v21 = vpop.f32.mrf.mxu0 }
  0xf8   : >> { %v433_v27 = vsel %vm429_vm5, %v422_v20, %v431_v23  ;;  %v7006_v20 = vld [vmem:[%s11573_s2 + $0x94] sm:$0xf] (%p352_p4)  ;;  %v7011_v21 = vld [vmem:[%s11573_s2 + $0x98] sm:$0xf] (%p352_p4)  ;;  %v7021_v23 = vld [vmem:[%s11573_s2 + $0xa0] sm:$0xf] (%p352_p4) }
  0xf9   : >> { %v425_v22 = vpop.f32.mrf.mxu0  ;;  %11608 = vst [vmem:[#allocation28_spill] sm:$0xff] (%p352_p4), %v7006_v20  ;;  %11609 = vst [vmem:[#allocation29_spill] sm:$0xff] (%p352_p4), %v7011_v21 }
  0xfa   : >> { %v432_v24 = vmul.f32 0.2, %v425_v22  ;;  %vm430_vm4 = vcmp.gt.f32.partialorder %v425_v22, 0.0  ;;  %11611 = vst [vmem:[#allocation31_spill] sm:$0xff] (%p352_p4), %v7021_v23 }
  0xfb   : >> { %v6525_v25 = vpop.f32.mrf.mxu0 }
  0xfc   : >> { %v434_v26 = vsel %vm430_vm4, %v425_v22, %v432_v24  ;;  %v7016_v22 = vld [vmem:[%s11573_s2 + $0x9c] sm:$0xf] (%p352_p4)  ;;  %v7026_v24 = vld [vmem:[%s11573_s2 + $0xa4] sm:$0xf] (%p352_p4)  ;;  %v7031_v25 = vld [vmem:[%s11573_s2 + $0xa8] sm:$0xf] (%p352_p4) }
  0xfd   : >> { %6527 = vmatpush3.msra.mxu1 %v434_v26  ;;  %11610 = vst [vmem:[#allocation30_spill] sm:$0xff] (%p352_p4), %v7016_v22  ;;  %11612 = vst [vmem:[#allocation32_spill] sm:$0xff] (%p352_p4), %v7026_v24 }
  0xfe   : >> { %6528 = vmatprep.subr.mxu1 %v6672_v16 }
  0xff   : >> { %6529 = vmatpush3.msra.mxu1 %v433_v27 }
 0x100   : >> { %6531 = vmatmul.mubr.msk.f32.vlgmr.msra.gmra.mxu1 %vm435_vm6, %v6780_v13  ;;  %6533 = vmatprep.subr.mxu1 %v6672_v16  ;;  %v7131_v13 = vld [vmem:[%s11573_s2 + $0xf8] sm:$0xf] (%p352_p4) }
 0x101   : >> { %6534 = vmatpush3.msra.mxu1 %v434_v26  ;;  %6537 = vmatprep.mubr.msk.f32.mxu1 %vm6673_vm2, %v6672_v16  ;;  %vm618_vm2 = vmand %vm616_vm14, %vm617_vm15  ;;  %v7036_v26 = vld [vmem:[%s11573_s2 + $0xac] sm:$0xf] (%p352_p4)  ;;  %11617 = vst [vmem:[#allocation37_spill] sm:$0xff] (%p352_p4), %v7131_v13 }
 0x102   : >> { %6535 = vmatprep.subr.mxu1 %v6672_v16  ;;  %vm619_vm4 = vmor %vm618_vm2, %vm615_vm1  ;;  %v6986_v16 = vld [vmem:[%s11573_s2 + $0x84] sm:$0xf] (%p352_p4) }
 0x103   : >> { %6536 = vmatpush3.msra.mxu1 %v433_v27  ;;  %11604 = vst [vmem:[#allocation24_spill] sm:$0xff] (%p352_p4), %v6986_v16  ;;  %v7041_v27 = vld [vmem:[%s11573_s2 + $0xb0] sm:$0xf] (%p352_p4)  ;;  %v7146_v16 = vld [vmem:[%s11573_s2 + $0x104] sm:$0xf] (%p352_p4) }
 0x104   : >> { %6538 = vmatmul.mubr.msk.f32.vlgmr.msra.gmra.mxu1 %vm435_vm6, %v6782_v14  ;;  %v7126_v14 = vld [vmem:[%s11573_s2 + $0xf4] sm:$0xf] (%p352_p4)  ;;  %11619 = vst [vmem:[#allocation39_spill] sm:$0xff] (%p352_p4), %v7146_v16  ;;  %v7171_v16 = vld [vmem:[%s11573_s2 + $0x118] sm:$0xf] (%p352_p4) }
 0x105   : > { %11616 = vst [vmem:[#allocation36_spill] sm:$0xff] (%p352_p4), %v7126_v14  ;;  %11624 = vst [vmem:[#allocation44_spill] sm:$0xff] (%p352_p4), %v7171_v16  ;;  %v7196_v16 = vld [vmem:[%s11573_s2 + $0x12c] sm:$0xf] (%p352_p4) }
 0x106   : > { %11629 = vst [vmem:[#allocation49_spill] sm:$0xff] (%p352_p4), %v7196_v16  ;;  %v7221_v16 = vld [vmem:[%s11573_s2 + $0x140] sm:$0xf] (%p352_p4) }
 0x107   : > { %11634 = vst [vmem:[#allocation54_spill] sm:$0xff] (%p352_p4), %v7221_v16  ;;  %v7246_v16 = vld [vmem:[%s11573_s2 + $0x154] sm:$0xf] (%p352_p4) }
 0x108   : > { %11639 = vst [vmem:[#allocation59_spill] sm:$0xff] (%p352_p4), %v7246_v16  ;;  %v7271_v16 = vld [vmem:[%s11573_s2 + $0x168] sm:$0xf] (%p352_p4) }
 0x109   : > { %11644 = vst [vmem:[#allocation64_spill] sm:$0xff] (%p352_p4), %v7271_v16  ;;  %v7296_v16 = vld [vmem:[%s11573_s2 + $0x17c] sm:$0xf] (%p352_p4) }
 0x10a   : > { %11649 = vst [vmem:[#allocation69_spill] sm:$0xff] (%p352_p4), %v7296_v16  ;;  %v7321_v16 = vld [vmem:[%s11573_s2 + $0x190] sm:$0xf] (%p352_p4) }
 0x10b   : > { %11654 = vst [vmem:[#allocation74_spill] sm:$0xff] (%p352_p4), %v7321_v16  ;;  %v7346_v16 = vld [vmem:[%s11573_s2 + $0x1a4] sm:$0xf] (%p352_p4) }
 0x10c   : > { %11659 = vst [vmem:[#allocation79_spill] sm:$0xff] (%p352_p4), %v7346_v16  ;;  %v7371_v16 = vld [vmem:[%s11573_s2 + $0x1b8] sm:$0xf] (%p352_p4) }
 0x10d   : > { %11664 = vst [vmem:[#allocation84_spill] sm:$0xff] (%p352_p4), %v7371_v16  ;;  %v7396_v16 = vld [vmem:[%s11573_s2 + $0x1cc] sm:$0xf] (%p352_p4) }
 0x10e   : > { %11669 = vst [vmem:[#allocation89_spill] sm:$0xff] (%p352_p4), %v7396_v16  ;;  %v7421_v16 = vld [vmem:[%s11573_s2 + $0x1e0] sm:$0xf] (%p352_p4) }
 0x10f   : > { %11674 = vst [vmem:[#allocation94_spill] sm:$0xff] (%p352_p4), %v7421_v16  ;;  %v7446_v16 = vld [vmem:[%s11573_s2 + $0x1f4] sm:$0xf] (%p352_p4) }
 0x110   : > { %11679 = vst [vmem:[#allocation99_spill] sm:$0xff] (%p352_p4), %v7446_v16  ;;  %v7471_v16 = vld [vmem:[%s11573_s2 + $0x208] sm:$0xf] (%p352_p4) }
 0x111   : > { %11684 = vst [vmem:[#allocation104_spill] sm:$0xff] (%p352_p4), %v7471_v16  ;;  %v7496_v16 = vld [vmem:[%s11573_s2 + $0x21c] sm:$0xf] (%p352_p4) }
 0x112   : > { %11689 = vst [vmem:[#allocation109_spill] sm:$0xff] (%p352_p4), %v7496_v16  ;;  %v7521_v16 = vld [vmem:[%s11573_s2 + $0x230] sm:$0xf] (%p352_p4) }
 0x113   : > { %11694 = vst [vmem:[#allocation114_spill] sm:$0xff] (%p352_p4), %v7521_v16  ;;  %v7546_v16 = vld [vmem:[%s11573_s2 + $0x244] sm:$0xf] (%p352_p4) }
 0x114   : > { %11699 = vst [vmem:[#allocation119_spill] sm:$0xff] (%p352_p4), %v7546_v16  ;;  %v7571_v16 = vld [vmem:[%s11573_s2 + $0x258] sm:$0xf] (%p352_p4) }
 0x115   : > { %11704 = vst [vmem:[#allocation124_spill] sm:$0xff] (%p352_p4), %v7571_v16  ;;  %v7596_v16 = vld [vmem:[%s11573_s2 + $0x26c] sm:$0xf] (%p352_p4) }
 0x116   : > { %11709 = vst [vmem:[#allocation129_spill] sm:$0xff] (%p352_p4), %v7596_v16  ;;  %v7621_v16 = vld [vmem:[%s11573_s2 + $0x280] sm:$0xf] (%p352_p4) }
 0x117   : > { %11714 = vst [vmem:[#allocation134_spill] sm:$0xff] (%p352_p4), %v7621_v16  ;;  %v7646_v16 = vld [vmem:[%s11573_s2 + $0x294] sm:$0xf] (%p352_p4) }
 0x118   : > { %11719 = vst [vmem:[#allocation139_spill] sm:$0xff] (%p352_p4), %v7646_v16  ;;  %v7671_v16 = vld [vmem:[%s11573_s2 + $0x2a8] sm:$0xf] (%p352_p4) }
 0x119   : > { %11724 = vst [vmem:[#allocation144_spill] sm:$0xff] (%p352_p4), %v7671_v16  ;;  %v7696_v16 = vld [vmem:[%s11573_s2 + $0x2bc] sm:$0xf] (%p352_p4) }
 0x11a   : > { %11729 = vst [vmem:[#allocation149_spill] sm:$0xff] (%p352_p4), %v7696_v16  ;;  %v7721_v16 = vld [vmem:[%s11573_s2 + $0x2d0] sm:$0xf] (%p352_p4) }
 0x11b   : > { %11734 = vst [vmem:[#allocation154_spill] sm:$0xff] (%p352_p4), %v7721_v16  ;;  %v7746_v16 = vld [vmem:[%s11573_s2 + $0x2e4] sm:$0xf] (%p352_p4) }
 0x11c   : > { %11739 = vst [vmem:[#allocation159_spill] sm:$0xff] (%p352_p4), %v7746_v16  ;;  %v7771_v16 = vld [vmem:[%s11573_s2 + $0x2f8] sm:$0xf] (%p352_p4) }
 0x11d   : > { %11744 = vst [vmem:[#allocation164_spill] sm:$0xff] (%p352_p4), %v7771_v16  ;;  %v7796_v16 = vld [vmem:[%s11573_s2 + $0x30c] sm:$0xf] (%p352_p4) }
 0x11e   : > { %11749 = vst [vmem:[#allocation169_spill] sm:$0xff] (%p352_p4), %v7796_v16  ;;  %v7821_v16 = vld [vmem:[%s11573_s2 + $0x320] sm:$0xf] (%p352_p4) }
 0x11f   : > { %11754 = vst [vmem:[#allocation174_spill] sm:$0xff] (%p352_p4), %v7821_v16  ;;  %v7846_v16 = vld [vmem:[%s11573_s2 + $0x334] sm:$0xf] (%p352_p4) }
 0x120   : > { %11759 = vst [vmem:[#allocation179_spill] sm:$0xff] (%p352_p4), %v7846_v16  ;;  %v7871_v16 = vld [vmem:[%s11573_s2 + $0x348] sm:$0xf] (%p352_p4) }
 0x121   : > { %11764 = vst [vmem:[#allocation184_spill] sm:$0xff] (%p352_p4), %v7871_v16  ;;  %v7896_v16 = vld [vmem:[%s11573_s2 + $0x35c] sm:$0xf] (%p352_p4) }
 0x122   : > { %11769 = vst [vmem:[#allocation189_spill] sm:$0xff] (%p352_p4), %v7896_v16  ;;  %v7921_v16 = vld [vmem:[%s11573_s2 + $0x370] sm:$0xf] (%p352_p4) }
 0x123   : > { %11774 = vst [vmem:[#allocation194_spill] sm:$0xff] (%p352_p4), %v7921_v16  ;;  %v7946_v16 = vld [vmem:[%s11573_s2 + $0x384] sm:$0xf] (%p352_p4) }
 0x124   : > { %11779 = vst [vmem:[#allocation199_spill] sm:$0xff] (%p352_p4), %v7946_v16  ;;  %v7971_v16 = vld [vmem:[%s11573_s2 + $0x398] sm:$0xf] (%p352_p4) }
 0x125   : > { %11784 = vst [vmem:[#allocation204_spill] sm:$0xff] (%p352_p4), %v7971_v16  ;;  %v7996_v16 = vld [vmem:[%s11573_s2 + $0x3ac] sm:$0xf] (%p352_p4) }
 0x126   : > { %11789 = vst [vmem:[#allocation209_spill] sm:$0xff] (%p352_p4), %v7996_v16  ;;  %v8021_v16 = vld [vmem:[%s11573_s2 + $0x3c0] sm:$0xf] (%p352_p4) }
 0x127   : > { %11794 = vst [vmem:[#allocation214_spill] sm:$0xff] (%p352_p4), %v8021_v16  ;;  %v8046_v16 = vld [vmem:[%s11573_s2 + $0x3d4] sm:$0xf] (%p352_p4) }
 0x128   : > { %11799 = vst [vmem:[#allocation219_spill] sm:$0xff] (%p352_p4), %v8046_v16  ;;  %v8071_v16 = vld [vmem:[%s11573_s2 + $0x3e8] sm:$0xf] (%p352_p4) }
 0x129   : > { %11804 = vst [vmem:[#allocation224_spill] sm:$0xff] (%p352_p4), %v8071_v16  ;;  %v8096_v16 = vld [vmem:[%s11573_s2 + $0x3fc] sm:$0xf] (%p352_p4) }
 0x12a   : > { %11809 = vst [vmem:[#allocation229_spill] sm:$0xff] (%p352_p4), %v8096_v16 }
 0x1c0   : >> { %v505_v28 = vpop.f32.mrf.mxu1 }
 0x1c2   : >> { %v6532_v29 = vpop.f32.mrf.mxu1 }
 0x1c3   : > { %v7051_v29 = vld [vmem:[%s11573_s2 + $0xb8] sm:$0xf] (%p352_p4) }
 0x1c4   : >> { %v578_v30 = vpop.f32.mrf.mxu1 }
 0x1c5   : >> { %v5962_v32 = vpack.c.bf16 %v578_v30, %v505_v28  ;;  %v7046_v28 = vld [vmem:[%s11573_s2 + $0xb4] sm:$0xf] (%p352_p4)  ;;  %v7056_v30 = vld [vmem:[%s11573_s2 + $0xbc] sm:$0xf] (%p352_p4) }
 0x1c6   : >> { %v6539_v33 = vpop.f32.mrf.mxu1 }
 0x1c7   : >> { %v591_v34 = vshrl.u32 %v5962_v32, 16  ;;  %v594_v36 = vshll.u32 %v5962_v32, 16  ;;  %v7066_v32 = vld [vmem:[%s11573_s2 + $0xc4] sm:$0xf] (%p352_p4)  ;;  %v7071_v33 = vld [vmem:[%s11573_s2 + $0xc8] sm:$0xf] (%p352_p4) }
 0x1c8   : > { %11614 = vst [vmem:[#allocation34_spill] sm:$0xff] (%p352_p4), %v7066_v32 }
 0x1c9   : >> { %v593_v35 = vrot.slane %v591_v34, 7  ;;  %v7076_v34 = vld [vmem:[%s11573_s2 + $0xcc] sm:$0xf] (%p352_p4) }
 0x1ca   : > { %354 = sbr.rel (!%p352_p4) target bundleno = 40 (0x28), region = 114 }
 0x1cb   : >> { %v596_v39 = vor.u32 %v594_v36, %v593_v35  ;;  %v597_v40 = vrot.slane %v593_v35, 4  ;;  %v7081_v35 = vld [vmem:[%s11573_s2 + $0xd0] sm:$0xf] (%p352_p4)  ;;  %v7086_v36 = vld [vmem:[%s11573_s2 + $0xd4] sm:$0xf] (%p352_p4) }
 0x1cd   : >> { %v611_v41 = vsel %vm609_vm3, %v596_v39, %v5520_v37  ;;  %v621_v42 = vsel %vm619_vm4, %v597_v40, %v5522_v38  ;;  %v7091_v37 = vld [vmem:[%s11573_s2 + $0xd8] sm:$0xf] (%p352_p4)  ;;  %v7096_v38 = vld [vmem:[%s11573_s2 + $0xdc] sm:$0xf] (%p352_p4)  ;;  %v7101_v39 = vld [vmem:[%s11573_s2 + $0xe0] sm:$0xf] (%p352_p4) }
 0x1ce   : >> { %5521 = vst [vmem:[%s5438_s29 + $0x10] sm:$0xff] %v611_v41  ;;  %5523 = vst [vmem:[%s5438_s29 + $0x18] sm:$0x11] %v621_v42  ;;  %v7106_v40 = vld [vmem:[%s11573_s2 + $0xe4] sm:$0xf] (%p352_p4) }
 0x1cf   : > { %v7111_v41 = vld [vmem:[%s11573_s2 + $0xe8] sm:$0xf]  ;;  %v7116_v42 = vld [vmem:[%s11573_s2 + $0xec] sm:$0xf] }
 0x1d0 LB: >> { %v11810_v12 = vld [vmem:[#allocation22_spill] sm:$0xff]  ;;  %v11811_v11 = vld [vmem:[#allocation21_spill] sm:$0xff]  ;;  %v5547_v31 = vcombine.low %v6891_v58, %v6896_v59  ;;  %v5563_v15 = vcombine.low %v7051_v29, %v7056_v30  ;;  %v11813_v10 = vld [vmem:[#allocation20_spill] sm:$0xff]  ;;  %s5964_s18 = sshll.u32 %s6660_s17, 5  ;;  %vm6675_vm5 = vmmov 0   ;;  %vm2107_vm8 = vcmask 64512   ;;  %s6660_s17 = sphi %s8098_s17, %s885_s17  }
 0x1d1   : >> { %v5555_v44 = vcombine.low %v11811_v11, %v11810_v12  ;;  %v11812_v13 = vld [vmem:[#allocation37_spill] sm:$0xff]  ;;  %v11814_v9 = vld [vmem:[#allocation19_spill] sm:$0xff]  ;;  %v11815_v14 = vld [vmem:[#allocation36_spill] sm:$0xff]  ;;  %v5546_v11 = vcombine.low %v6881_v56, %v6886_v57  ;;  %v5562_v12 = vcombine.low %v7041_v27, %v7046_v28  ;;  %s8124_s19 = scalar_lea.vmem [#allocation2], %s5964_s18  ;;  %vm2273_vm9 = vcmask 1042432   ;;  %s5671_s20 = sshll.u32 %s6660_s17, 3 }
 0x1d2   : >> { %v5571_v45 = vcombine.low %v11812_v13, %v7136_v43  ;;  %v5554_v16 = vcombine.low %v11814_v9, %v11813_v10  ;;  %v11816_v6 = vld [vmem:[#allocation35_spill] sm:$0xff]  ;;  %v11817_v8 = vld [vmem:[#allocation18_spill] sm:$0xff]  ;;  %v11818_v7 = vld [vmem:[#allocation17_spill] sm:$0xff]  ;;  %v5569_v9 = vcombine.low %v7111_v41, %v7116_v42  ;;  %vm2274_vm10 = vsmask.f32 2306  ;;  %s5443_s21 = scalar_lea.vmem [#allocation3], %s5671_s20 }
 0x1d3   : >> { %v5570_v32 = vcombine.low %v11816_v6, %v11815_v14  ;;  %5980 = vmatprep.subr.bf16.mxu0 %v5555_v44  ;;  %v5553_v13 = vcombine.low %v11818_v7, %v11817_v8  ;;  %v11819_v5 = vld [vmem:[#allocation16_spill] sm:$0xff]  ;;  %v11820_v4 = vld [vmem:[#allocation15_spill] sm:$0xff]  ;;  %v11823_v3 = vld [vmem:[#allocation14_spill] sm:$0xff]  ;;  %vm2276_vm11 = vcmask 1046532   ;;  %vm2277_vm12 = vsmask.f32 6418 }
 0x1d4   : >> { %6002 = vmatprep.subr.bf16.mxu1 %v5571_v45  ;;  %5981 = vmatpush3.bf16.msra.mxu0 %v5547_v31  ;;  %v5552_v31 = vcombine.low %v11820_v4, %v11819_v5  ;;  %v11821_v24 = vld [vmem:[#allocation32_spill] sm:$0xff]  ;;  %v11822_v23 = vld [vmem:[#allocation31_spill] sm:$0xff]  ;;  %v11824_v2 = vld [vmem:[#allocation13_spill] sm:$0xff]  ;;  %v5567_v4 = vcombine.low %v7091_v37, %v7096_v38  ;;  %s885_s17 = sadd.s32 1, %s6660_s17  }
 0x1d5   : >> { %6003 = vmatpush3.bf16.msra.mxu1 %v5563_v15  ;;  %5982 = vmatprep.subr.bf16.mxu0 %v5554_v16  ;;  %v8127_v44 = vld [vmem:[%s8124_s19] sm:$0xff]  ;;  %v891_v45 = vld [vmem:[%s8124_s19 + $0x8] sm:$0x11]  ;;  %v5545_v15 = vcombine.low %v6871_v54, %v6876_v55  ;;  %v5561_v16 = vcombine.low %v7031_v25, %v7036_v26  ;;  %v11827_v1 = vld [vmem:[#allocation12_spill] sm:$0xff]  ;;  %p882_p5 = scmp.ge.s32.totalorder %s885_s17, 8  }
 0x1d6   : >> { %6004 = vmatprep.subr.bf16.mxu1 %v5570_v32  ;;  %v5568_v32 = vcombine.low %v7101_v39, %v7106_v40  ;;  %v5528_v6 = vcombine.low %v8127_v44, %v891_v45  ;;  %v11825_v22 = vld [vmem:[#allocation30_spill] sm:$0xff]  ;;  %v11826_v21 = vld [vmem:[#allocation29_spill] sm:$0xff]  ;;  %v11828_v0 = vld [vmem:[#allocation11_spill] sm:$0xff]  ;;  %s9698_s11 = smov (%p882_p5), 0  }
 0x1d7   : >> { %v11829_v20 = vld [vmem:[#allocation28_spill] sm:$0xff]  ;;  %v11830_v19 = vld [vmem:[#allocation27_spill] sm:$0xff]  ;;  %v11831_v18 = vld [vmem:[#allocation26_spill] sm:$0xff] }
 0x1d8   : >> { %5983 = vmatpush3.bf16.msra.mxu0 %v5546_v11  ;;  %v5544_v11 = vcombine.low %v6861_v52, %v6866_v53  ;;  %v907_v7 = vshrl.u32 %v5528_v6, 16  ;;  %v909_v8 = vshll.u32 %v5528_v6, 16  ;;  %v11832_v17 = vld [vmem:[#allocation25_spill] sm:$0xff]  ;;  %v11837_v14 = vld [vmem:[#allocation24_spill] sm:$0xff]  ;;  %vm2275_vm13 = vmand %vm2273_vm9, %vm2274_vm10 }
 0x1d9   : >> { %6005 = vmatpush3.bf16.msra.mxu1 %v5562_v12  ;;  %5984 = vmatprep.subr.bf16.mxu0 %v5553_v13  ;;  %v5560_v12 = vcombine.low %v11822_v23, %v11821_v24  ;;  %v924_v13 = vrot.slane %v5528_v6, 1  ;;  %v5559_v6 = vcombine.low %v11826_v21, %v11825_v22  ;;  %v11842_v21 = vld [vmem:[#allocation100_spill] sm:$0xff]  ;;  %vm2278_vm14 = vmand %vm2276_vm11, %vm2277_vm12  ;;  %v8436_v43 = vld [vmem:[%s11575_s4 + $0xc] sm:$0xf] (%p882_p5) }
 0x1da   : >> { %6006 = vmatprep.subr.bf16.mxu1 %v5569_v9  ;;  %v5551_v9 = vcombine.low %v11824_v2, %v11823_v3  ;;  %v911_v5 = vrot.slane %v909_v8, 1  ;;  %v5529_v8 = vcombine.high %v8127_v44, %v891_v45  ;;  %v5565_v45 = vcombine.low %v7071_v33, %v7076_v34  ;;  %vm2279_vm15 = vmor %vm2278_vm14, %vm2275_vm13  ;;  %v8471_v52 = vld [vmem:[%s11575_s4 + $0x28] sm:$0xf] (%p882_p5)  ;;  %v8476_v53 = vld [vmem:[%s11575_s4 + $0x2c] sm:$0xf] (%p882_p5) }
 0x1db   : >> { %1856 = vmatprep.mubr.bf16.mxu1 %v924_v13  ;;  %v8481_v54 = vld [vmem:[%s11575_s4 + $0x30] sm:$0xf] (%p882_p5)  ;;  %v8486_v55 = vld [vmem:[%s11575_s4 + $0x34] sm:$0xf] (%p882_p5)  ;;  %v8491_v56 = vld [vmem:[%s11575_s4 + $0x38] sm:$0xf] (%p882_p5) }
 0x1dc   : >> { %5985 = vmatpush3.bf16.msra.mxu0 %v5545_v15  ;;  %v5543_v15 = vcombine.low %v6851_v50, %v6856_v51  ;;  %v917_v2 = vshrl.u32 %v5529_v8, 16  ;;  %v8461_v50 = vld [vmem:[%s11575_s4 + $0x20] sm:$0xf] (%p882_p5)  ;;  %v8466_v51 = vld [vmem:[%s11575_s4 + $0x24] sm:$0xf] (%p882_p5) }
 0x1dd   : >> { %6007 = vmatpush3.bf16.msra.mxu1 %v5561_v16  ;;  %5986 = vmatprep.subr.bf16.mxu0 %v5552_v31  ;;  %v912_v16 = vor.u32 %v911_v5, %v907_v7  ;;  %v5550_v31 = vcombine.low %v11828_v0, %v11827_v1  ;;  %v5542_v5 = vcombine.low %v6841_v48, %v6846_v49  ;;  %v8451_v48 = vld [vmem:[%s11575_s4 + $0x18] sm:$0xf] (%p882_p5)  ;;  %v8456_v49 = vld [vmem:[%s11575_s4 + $0x1c] sm:$0xf] (%p882_p5)  ;;  %v8501_v58 = vld [vmem:[%s11575_s4 + $0x40] sm:$0xf] (%p882_p5) }
 0x1de   : >> { %6008 = vmatprep.subr.bf16.mxu1 %v5568_v32  ;;  %v5566_v32 = vcombine.low %v7081_v35, %v7086_v36  ;;  %v5549_v7 = vcombine.low %v6911_v62, %v6916_v63  ;;  %v8496_v57 = vld [vmem:[%s11575_s4 + $0x3c] sm:$0xf] (%p882_p5)  ;;  %v8506_v59 = vld [vmem:[%s11575_s4 + $0x44] sm:$0xf] (%p882_p5)  ;;  %v8521_v62 = vld [vmem:[%s11575_s4 + $0x50] sm:$0xf] (%p882_p5) }
 0x1df   : >> { %1816 = vmatprep.mubr.bf16.mxu0 %v912_v16  ;;  %v5548_v16 = vcombine.low %v6901_v60, %v6906_v61  ;;  %v8511_v60 = vld [vmem:[%s11575_s4 + $0x48] sm:$0xf] (%p882_p5)  ;;  %v8516_v61 = vld [vmem:[%s11575_s4 + $0x4c] sm:$0xf] (%p882_p5)  ;;  %v8526_v63 = vld [vmem:[%s11575_s4 + $0x54] sm:$0xf] (%p882_p5) }
 0x1e0   : >> { %5987 = vmatpush3.bf16.msra.mxu0 %v5544_v11  ;;  %v8157_v11 = vld [vmem:[%s8124_s19 + $0x10] sm:$0xff]  ;;  %v8531_v25 = vld [vmem:[%s11575_s4 + $0x58] sm:$0xf] (%p882_p5)  ;;  %v8536_v26 = vld [vmem:[%s11575_s4 + $0x5c] sm:$0xf] (%p882_p5) }
 0x1e1   : >> { %6009 = vmatpush3.bf16.msra.mxu1 %v5560_v12  ;;  %5988 = vmatprep.subr.bf16.mxu0 %v5551_v9  ;;  %v8160_v12 = vld [vmem:[%s8124_s19 + $0x18] sm:$0x11]  ;;  %v919_v9 = vshll.u32 %v5529_v8, 16  ;;  %v5527_v8 = vcombine.high %v8127_v44, %v8127_v44  ;;  %v11854_v44 = vld [vmem:[#allocation82_spill] sm:$0xff]  ;;  %v8541_v27 = vld [vmem:[%s11575_s4 + $0x60] sm:$0xf] (%p882_p5) }
 0x1e2   : >> { %6010 = vmatprep.subr.bf16.mxu1 %v5567_v4  ;;  %v5558_v4 = vcombine.low %v11830_v19, %v11829_v20  ;;  %v5531_v13 = vcombine.low %v8157_v11, %v8160_v12  ;;  %v11838_v19 = vld [vmem:[#allocation23_spill] sm:$0xff]  ;;  %v8546_v28 = vld [vmem:[%s11575_s4 + $0x64] sm:$0xf] (%p882_p5)  ;;  %v8551_v29 = vld [vmem:[%s11575_s4 + $0x68] sm:$0xf] (%p882_p5) }
 0x1e3   : >> { %v921_v3 = vrot.slane %v919_v9, 1  ;;  %v5556_v20 = vcombine.low %v11838_v19, %v11837_v14  ;;  %v11845_v14 = vld [vmem:[#allocation85_spill] sm:$0xff]  ;;  %v11846_v19 = vld [vmem:[#allocation84_spill] sm:$0xff]  ;;  %v8556_v30 = vld [vmem:[%s11575_s4 + $0x6c] sm:$0xf] (%p882_p5) }
 0x1e4   : >> { %5989 = vmatpush3.bf16.msra.mxu0 %v5543_v15  ;;  %v5541_v15 = vcombine.low %v6831_v46, %v6836_v47  ;;  %v937_v1 = vshll.u32 %v5531_v13, 16  ;;  %v952_v23 = vrot.slane %v5531_v13, 1  ;;  %v8441_v46 = vld [vmem:[%s11575_s4 + $0x10] sm:$0xf] (%p882_p5)  ;;  %v8446_v47 = vld [vmem:[%s11575_s4 + $0x14] sm:$0xf] (%p882_p5) }
 0x1e5   : >> { %6011 = vmatpush3.bf16.msra.mxu1 %v5559_v6  ;;  %5990 = vmatprep.subr.bf16.mxu0 %v5550_v31  ;;  %v5557_v6 = vcombine.low %v11832_v17, %v11831_v18  ;;  %v11833_v31 = vld [vmem:[#allocation34_spill] sm:$0xff]  ;;  %v11841_v18 = vld [vmem:[#allocation101_spill] sm:$0xff]  ;;  %v922_v9 = vor.u32 %v921_v3, %v917_v2  ;;  %v11851_v2 = vld [vmem:[#allocation51_spill] sm:$0xff] }
 0x1e6   : >> { %6012 = vmatprep.subr.bf16.mxu1 %v5566_v32  ;;  %v11834_v32 = vld [vmem:[#allocation33_spill] sm:$0xff]  ;;  %v5603_v22 = vcombine.low %v11842_v21, %v11841_v18  ;;  %v11849_v18 = vld [vmem:[#allocation99_spill] sm:$0xff]  ;;  %v11850_v21 = vld [vmem:[#allocation98_spill] sm:$0xff] }
 0x1e7   : >> { %v5564_v0 = vcombine.low %v11834_v32, %v11833_v31  ;;  %v935_v31 = vshrl.u32 %v5531_v13, 16  ;;  %v939_v32 = vrot.slane %v937_v1, 1  ;;  %v5602_v1 = vcombine.low %v11850_v21, %v11849_v18  ;;  %v11852_v3 = vld [vmem:[#allocation50_spill] sm:$0xff]  ;;  %v11859_v13 = vld [vmem:[#allocation49_spill] sm:$0xff]  ;;  %v11865_v18 = vld [vmem:[#allocation95_spill] sm:$0xff] }
 0x1e8   : >> { %5991 = vmatpush3.bf16.msra.mxu0 %v5542_v5  ;;  %v11835_v5 = vld [vmem:[#allocation10_spill] sm:$0xff]  ;;  %v8561_v33 = vld [vmem:[%s11575_s4 + $0x70] sm:$0xf] (%p882_p5)  ;;  %v8566_v34 = vld [vmem:[%s11575_s4 + $0x74] sm:$0xf] (%p882_p5) }
 0x1e9   : >> { %6013 = vmatpush3.bf16.msra.mxu1 %v5558_v4  ;;  %5992 = vmatprep.subr.bf16.mxu0 %v5549_v7  ;;  %v11836_v4 = vld [vmem:[#allocation9_spill] sm:$0xff]  ;;  %v11866_v21 = vld [vmem:[#allocation94_spill] sm:$0xff]  ;;  %12038 = vst [vmem:[#allocation12_spill] sm:$0xff] (%p882_p5), %v8561_v33  ;;  %v8571_v35 = vld [vmem:[%s11575_s4 + $0x78] sm:$0xf] (%p882_p5) }
 0x1ea   : >> { %6014 = vmatprep.subr.bf16.mxu1 %v5565_v45  ;;  %v5540_v10 = vcombine.low %v11836_v4, %v11835_v5  ;;  %v11839_v7 = vld [vmem:[#allocation69_spill] sm:$0xff]  ;;  %v11840_v45 = vld [vmem:[#allocation68_spill] sm:$0xff]  ;;  %v11848_v4 = vld [vmem:[#allocation66_spill] sm:$0xff] }
 0x1eb   : >> { %v5587_v17 = vcombine.low %v11840_v45, %v11839_v7  ;;  %v940_v45 = vor.u32 %v939_v32, %v935_v31  ;;  %v11860_v31 = vld [vmem:[#allocation48_spill] sm:$0xff]  ;;  %v8581_v37 = vld [vmem:[%s11575_s4 + $0x80] sm:$0xf] (%p882_p5)  ;;  %v8586_v38 = vld [vmem:[%s11575_s4 + $0x84] sm:$0xf] (%p882_p5) }
 0x1ec   : >> { %5993 = vmatpush3.bf16.msra.mxu0 %v5541_v15  ;;  %v11843_v15 = vld [vmem:[#allocation53_spill] sm:$0xff]  ;;  %v5577_v32 = vcombine.low %v11860_v31, %v11859_v13  ;;  %v8576_v36 = vld [vmem:[%s11575_s4 + $0x7c] sm:$0xf] (%p882_p5)  ;;  %12039 = vst [vmem:[#allocation13_spill] sm:$0xff] (%p882_p5), %v8581_v37  ;;  %12040 = vst [vmem:[#allocation14_spill] sm:$0xff] (%p882_p5), %v8586_v38 }
 0x1ed   : >> { %6015 = vmatpush3.bf16.msra.mxu1 %v5557_v6  ;;  %5994 = vmatprep.subr.bf16.mxu0 %v5548_v16  ;;  %v11844_v6 = vld [vmem:[#allocation52_spill] sm:$0xff]  ;;  %v11847_v16 = vld [vmem:[#allocation67_spill] sm:$0xff]  ;;  %v11877_v31 = vld [vmem:[#allocation77_spill] sm:$0xff] }
 0x1ee   : >> { %6016 = vmatprep.subr.bf16.mxu1 %v5564_v0  ;;  %v5579_v5 = vcombine.low %v11844_v6, %v11843_v15  ;;  %v5595_v0 = vcombine.low %v11846_v19, %v11845_v14  ;;  %v5586_v7 = vcombine.low %v11848_v4, %v11847_v16  ;;  %v11857_v14 = vld [vmem:[#allocation97_spill] sm:$0xff]  ;;  %v11858_v19 = vld [vmem:[#allocation96_spill] sm:$0xff]  ;;  %v11864_v4 = vld [vmem:[#allocation62_spill] sm:$0xff] }
 0x1ef   : >> { %v5601_v16 = vcombine.low %v11858_v19, %v11857_v14  ;;  %v11875_v19 = vld [vmem:[#allocation45_spill] sm:$0xff]  ;;  %v8591_v39 = vld [vmem:[%s11575_s4 + $0x88] sm:$0xf] (%p882_p5)  ;;  %v8596_v40 = vld [vmem:[%s11575_s4 + $0x8c] sm:$0xf] (%p882_p5) }
 0x1f0   : >> { %5995 = vmatpush3.bf16.msra.mxu0 %v5540_v10  ;;  %v5578_v10 = vcombine.low %v11852_v3, %v11851_v2  ;;  %v11869_v3 = vld [vmem:[#allocation79_spill] sm:$0xff]  ;;  %v8741_v37 = vld [vmem:[%s11575_s4 + $0x100] sm:$0xf] (%p882_p5)  ;;  %v8746_v38 = vld [vmem:[%s11575_s4 + $0x104] sm:$0xf] (%p882_p5) }
 0x1f1   : >> { %6017 = vmatpush3.bf16.msra.mxu1 %v5556_v20  ;;  %6024 = vmatprep.subr.bf16.mxu0 %v5587_v17  ;;  %v11853_v20 = vld [vmem:[#allocation83_spill] sm:$0xff]  ;;  %v11855_v17 = vld [vmem:[#allocation65_spill] sm:$0xff] }
 0x1f2   : >> { %6046 = vmatprep.subr.bf16.mxu1 %v5603_v22  ;;  %v5594_v15 = vcombine.low %v11854_v44, %v11853_v20  ;;  %v11856_v22 = vld [vmem:[#allocation64_spill] sm:$0xff]  ;;  %v11871_v44 = vld [vmem:[#allocation61_spill] sm:$0xff]  ;;  %v8601_v41 = vld [vmem:[%s11575_s4 + $0x90] sm:$0xf] (%p882_p5) }
 0x1f3   : >> { %1817 = vmatmul.mubr.bf16.vlgmr.msra.gmra.mxu0 %v5527_v8  ;;  %v5585_v6 = vcombine.low %v11856_v22, %v11855_v17  ;;  %v11861_v8 = vld [vmem:[#allocation81_spill] sm:$0xff]  ;;  %v8606_v42 = vld [vmem:[%s11575_s4 + $0x94] sm:$0xf] (%p882_p5) }
 0x1f4   : >> { %1857 = vmatmul.mubr.bf16.vlgmr.msra.gmra.mxu1 %v922_v9  ;;  %6025 = vmatpush3.bf16.msra.mxu0 %v5579_v5  ;;  %v11862_v9 = vld [vmem:[#allocation80_spill] sm:$0xff]  ;;  %v11873_v22 = vld [vmem:[#allocation93_spill] sm:$0xff] }
 0x1f5   : >> { %6047 = vmatpush3.bf16.msra.mxu1 %v5595_v0  ;;  %6026 = vmatprep.subr.bf16.mxu0 %v5586_v7  ;;  %v5593_v5 = vcombine.low %v11862_v9, %v11861_v8  ;;  %v11863_v0 = vld [vmem:[#allocation63_spill] sm:$0xff] }
 0x1f6   : >> { %6048 = vmatprep.subr.bf16.mxu1 %v5602_v1  ;;  %1896 = vmatprep.mubr.bf16.mxu0 %v940_v45  ;;  %v5584_v7 = vcombine.low %v11864_v4, %v11863_v0  ;;  %v5600_v1 = vcombine.low %v11866_v21, %v11865_v18  ;;  %v11867_v45 = vld [vmem:[#allocation47_spill] sm:$0xff]  ;;  %v5532_v21 = vcombine.high %v8157_v11, %v8160_v12 }
 0x1f7   : >> { %1936 = vmatprep.mubr.bf16.mxu1 %v952_v23  ;;  %v11868_v23 = vld [vmem:[#allocation46_spill] sm:$0xff]  ;;  %v11879_v9 = vld [vmem:[#allocation59_spill] sm:$0xff] }
 0x1f8   : >> { %6027 = vmatpush3.bf16.msra.mxu0 %v5578_v10  ;;  %v5576_v2 = vcombine.low %v11868_v23, %v11867_v45  ;;  %v11870_v10 = vld [vmem:[#allocation78_spill] sm:$0xff]  ;;  %v11881_v4 = vld [vmem:[#allocation91_spill] sm:$0xff] }
 0x1f9   : >> { %6049 = vmatpush3.bf16.msra.mxu1 %v5594_v15  ;;  %6028 = vmatprep.subr.bf16.mxu0 %v5585_v6  ;;  %v5592_v20 = vcombine.low %v11870_v10, %v11869_v3  ;;  %v11872_v15 = vld [vmem:[#allocation60_spill] sm:$0xff]  ;;  %v8236_v45 = vld [vmem:[%s8124_s19 + $0x28] sm:$0x11]  ;;  %v11883_v23 = vld [vmem:[#allocation43_spill] sm:$0xff] }
 0x1fa   : >> { %6050 = vmatprep.subr.bf16.mxu1 %v5601_v16  ;;  %v5583_v17 = vcombine.low %v11872_v15, %v11871_v44  ;;  %v11874_v6 = vld [vmem:[#allocation92_spill] sm:$0xff]  ;;  %v11885_v10 = vld [vmem:[#allocation75_spill] sm:$0xff]  ;;  %v11887_v15 = vld [vmem:[#allocation57_spill] sm:$0xff] }
 0x1fb   : >> { %v5599_v14 = vcombine.low %v11874_v6, %v11873_v22  ;;  %v11876_v16 = vld [vmem:[#allocation44_spill] sm:$0xff]  ;;  %v11889_v6 = vld [vmem:[#allocation89_spill] sm:$0xff] }
 0x1fc   : >> { %6029 = vmatpush3.bf16.msra.mxu0 %v5577_v32  ;;  %v5575_v13 = vcombine.low %v11876_v16, %v11875_v19  ;;  %v11878_v32 = vld [vmem:[#allocation76_spill] sm:$0xff]  ;;  %v947_v16 = vshll.u32 %v5532_v21, 16 }
 0x1fd   : >> { %6051 = vmatpush3.bf16.msra.mxu1 %v5593_v5  ;;  %6030 = vmatprep.subr.bf16.mxu0 %v5584_v7  ;;  %v5591_v8 = vcombine.low %v11878_v32, %v11877_v31  ;;  %v11880_v5 = vld [vmem:[#allocation58_spill] sm:$0xff]  ;;  %v11892_v31 = vld [vmem:[#allocation40_spill] sm:$0xff] }
 0x1fe   : >> { %6052 = vmatprep.subr.bf16.mxu1 %v5600_v1  ;;  %v5582_v0 = vcombine.low %v11880_v5, %v11879_v9  ;;  %v11882_v7 = vld [vmem:[#allocation90_spill] sm:$0xff]  ;;  %v8233_v1 = vld [vmem:[%s8124_s19 + $0x20] sm:$0xff]  ;;  %v11894_v9 = vld [vmem:[#allocation72_spill] sm:$0xff] }
 0x1ff   : >> { %v5598_v18 = vcombine.low %v11882_v7, %v11881_v4  ;;  %v5534_v19 = vcombine.low %v8233_v1, %v8236_v45  ;;  %v11896_v4 = vld [vmem:[#allocation54_spill] sm:$0xff] }
 0x200   : >> { %6031 = vmatpush3.bf16.msra.mxu0 %v5576_v2  ;;  %v11884_v2 = vld [vmem:[#allocation42_spill] sm:$0xff] }
 0x201   : >> { %6053 = vmatpush3.bf16.msra.mxu1 %v5592_v20  ;;  %6032 = vmatprep.subr.bf16.mxu0 %v5583_v17  ;;  %v5574_v3 = vcombine.low %v11884_v2, %v11883_v23  ;;  %v11886_v20 = vld [vmem:[#allocation74_spill] sm:$0xff]  ;;  %v11888_v17 = vld [vmem:[#allocation56_spill] sm:$0xff] }
 0x202   : >> { %6054 = vmatprep.subr.bf16.mxu1 %v5599_v14  ;;  %v5590_v44 = vcombine.low %v11886_v20, %v11885_v10  ;;  %v5581_v22 = vcombine.low %v11888_v17, %v11887_v15  ;;  %v11890_v14 = vld [vmem:[#allocation88_spill] sm:$0xff]  ;;  %v11898_v23 = vld [vmem:[#allocation86_spill] sm:$0xff]  ;;  %v965_v10 = vshll.u32 %v5534_v19, 16  ;;  %v945_v20 = vshrl.u32 %v5532_v21, 16 }
 0x203   : >> { %v5597_v12 = vcombine.low %v11890_v14, %v11889_v6  ;;  %v949_v15 = vrot.slane %v947_v16, 1  ;;  %v11901_v6 = vld [vmem:[#allocation71_spill] sm:$0xff]  ;;  %v11902_v14 = vld [vmem:[#allocation70_spill] sm:$0xff]  ;;  %v5530_v21 = vcombine.high %v8157_v11, %v8157_v11 }
 0x204   : >> { %6033 = vmatpush3.bf16.msra.mxu0 %v5575_v13  ;;  %v11891_v13 = vld [vmem:[#allocation41_spill] sm:$0xff]  ;;  %v11915_v11 = vld [vmem:[#allocation115_spill] sm:$0xff] }
 0x205   : >> { %6055 = vmatpush3.bf16.msra.mxu1 %v5591_v8  ;;  %6034 = vmatprep.subr.bf16.mxu0 %v5582_v0  ;;  %v5573_v32 = vcombine.low %v11892_v31, %v11891_v13  ;;  %v11893_v8 = vld [vmem:[#allocation73_spill] sm:$0xff]  ;;  %v11895_v0 = vld [vmem:[#allocation55_spill] sm:$0xff]  ;;  %v5588_v13 = vcombine.low %v11902_v14, %v11901_v6  ;;  %v950_v16 = vor.u32 %v949_v15, %v945_v20  ;;  %v11912_v6 = vld [vmem:[#allocation130_spill] sm:$0xff] }
 0x206   : >> { %6056 = vmatprep.subr.bf16.mxu1 %v5598_v18  ;;  %v5589_v5 = vcombine.low %v11894_v9, %v11893_v8  ;;  %v5580_v7 = vcombine.low %v11896_v4, %v11895_v0  ;;  %v11897_v18 = vld [vmem:[#allocation87_spill] sm:$0xff]  ;;  %v11905_v8 = vld [vmem:[#allocation165_spill] sm:$0xff]  ;;  %v11906_v9 = vld [vmem:[#allocation164_spill] sm:$0xff]  ;;  %v963_v4 = vshrl.u32 %v5534_v19, 16 }
 0x207   : >> { %v5596_v2 = vcombine.low %v11898_v23, %v11897_v18  ;;  %v5635_v0 = vcombine.low %v11906_v9, %v11905_v8  ;;  %v967_v18 = vrot.slane %v965_v10, 1  ;;  %v980_v9 = vrot.slane %v5534_v19, 1  ;;  %v11916_v20 = vld [vmem:[#allocation114_spill] sm:$0xff]  ;;  %v11923_v19 = vld [vmem:[#allocation113_spill] sm:$0xff] }
 0x208   : >> { %6035 = vmatpush3.bf16.msra.mxu0 %v5574_v3  ;;  %v11899_v3 = vld [vmem:[#allocation39_spill] sm:$0xff]  ;;  %v5610_v15 = vcombine.low %v11916_v20, %v11915_v11 }
 0x209   : >> { %6057 = vmatpush3.bf16.msra.mxu1 %v5590_v44  ;;  %6036 = vmatprep.subr.bf16.mxu0 %v5581_v22  ;;  %v11900_v44 = vld [vmem:[#allocation38_spill] sm:$0xff]  ;;  %v11903_v22 = vld [vmem:[#allocation133_spill] sm:$0xff]  ;;  %v968_v8 = vor.u32 %v967_v18, %v963_v4  ;;  %v11924_v4 = vld [vmem:[#allocation112_spill] sm:$0xff]  ;;  %12065 = vst [vmem:[#allocation39_spill] sm:$0xff] (%p882_p5), %v8746_v38 }
 0x20a   : >> { %6058 = vmatprep.subr.bf16.mxu1 %v5597_v12  ;;  %v5572_v17 = vcombine.low %v11900_v44, %v11899_v3  ;;  %v11904_v12 = vld [vmem:[#allocation132_spill] sm:$0xff]  ;;  %v11909_v3 = vld [vmem:[#allocation149_spill] sm:$0xff]  ;;  %v11911_v44 = vld [vmem:[#allocation131_spill] sm:$0xff]  ;;  %v5609_v18 = vcombine.low %v11924_v4, %v11923_v19  ;;  %12064 = vst [vmem:[#allocation38_spill] sm:$0xff] (%p882_p5), %v8741_v37 }
 0x20b   : >> { %v5619_v31 = vcombine.low %v11904_v12, %v11903_v22  ;;  %v5618_v14 = vcombine.low %v11912_v6, %v11911_v44  ;;  %v11913_v22 = vld [vmem:[#allocation163_spill] sm:$0xff]  ;;  %v11914_v12 = vld [vmem:[#allocation162_spill] sm:$0xff]  ;;  %v11941_v4 = vld [vmem:[#allocation141_spill] sm:$0xff] }
 0x20c   : >> { %6037 = vmatpush3.bf16.msra.mxu0 %v5573_v32  ;;  %v11907_v32 = vld [vmem:[#allocation117_spill] sm:$0xff]  ;;  %v5634_v10 = vcombine.low %v11914_v12, %v11913_v22  ;;  %v11928_v6 = vld [vmem:[#allocation126_spill] sm:$0xff]  ;;  %v11929_v22 = vld [vmem:[#allocation159_spill] sm:$0xff] }
 0x20d   : >> { %6059 = vmatpush3.bf16.msra.mxu1 %v5589_v5  ;;  %6038 = vmatprep.subr.bf16.mxu0 %v5580_v7  ;;  %v11908_v5 = vld [vmem:[#allocation116_spill] sm:$0xff]  ;;  %v11930_v12 = vld [vmem:[#allocation158_spill] sm:$0xff]  ;;  %v11933_v20 = vld [vmem:[#allocation143_spill] sm:$0xff] }
 0x20e   : >> { %6060 = vmatprep.subr.bf16.mxu1 %v5596_v2  ;;  %v5611_v23 = vcombine.low %v11908_v5, %v11907_v32  ;;  %v11910_v7 = vld [vmem:[#allocation148_spill] sm:$0xff]  ;;  %v8766_v37 = vld [vmem:[%s11575_s4 + $0x114] sm:$0xf] (%p882_p5) }
 0x20f   : >> { %v5627_v2 = vcombine.low %v11910_v7, %v11909_v3  ;;  %v11921_v3 = vld [vmem:[#allocation161_spill] sm:$0xff]  ;;  %v11922_v7 = vld [vmem:[#allocation160_spill] sm:$0xff]  ;;  %12069 = vst [vmem:[#allocation43_spill] sm:$0xff] (%p882_p5), %v8766_v37  ;;  %v8791_v37 = vld [vmem:[%s11575_s4 + $0x128] sm:$0xf] (%p882_p5) }
 0x210   : >> { %6039 = vmatpush3.bf16.msra.mxu0 %v5572_v17  ;;  %v11917_v17 = vld [vmem:[#allocation147_spill] sm:$0xff]  ;;  %v5633_v44 = vcombine.low %v11922_v7, %v11921_v3  ;;  %v11939_v7 = vld [vmem:[#allocation109_spill] sm:$0xff]  ;;  %v8771_v38 = vld [vmem:[%s11575_s4 + $0x118] sm:$0xf] (%p882_p5)  ;;  %12074 = vst [vmem:[#allocation48_spill] sm:$0xff] (%p882_p5), %v8791_v37 }
 0x211   : >> { %6061 = vmatpush3.bf16.msra.mxu1 %v5588_v13  ;;  %6068 = vmatprep.subr.bf16.mxu0 %v5619_v31  ;;  %v11918_v13 = vld [vmem:[#allocation146_spill] sm:$0xff]  ;;  %v11919_v31 = vld [vmem:[#allocation129_spill] sm:$0xff]  ;;  %12070 = vst [vmem:[#allocation44_spill] sm:$0xff] (%p882_p5), %v8771_v38  ;;  %v8816_v37 = vld [vmem:[%s11575_s4 + $0x13c] sm:$0xf] (%p882_p5) }
 0x212   : >> { %6090 = vmatprep.subr.bf16.mxu1 %v5635_v0  ;;  %v5626_v32 = vcombine.low %v11918_v13, %v11917_v17  ;;  %v11920_v0 = vld [vmem:[#allocation128_spill] sm:$0xff]  ;;  %v11935_v13 = vld [vmem:[#allocation125_spill] sm:$0xff]  ;;  %v8796_v38 = vld [vmem:[%s11575_s4 + $0x12c] sm:$0xf] (%p882_p5)  ;;  %12079 = vst [vmem:[#allocation53_spill] sm:$0xff] (%p882_p5), %v8816_v37 }
 0x213   : >> { %1897 = vmatmul.mubr.bf16.vlgmr.msra.gmra.mxu0 %v5530_v21  ;;  %v5617_v5 = vcombine.low %v11920_v0, %v11919_v31  ;;  %v11925_v21 = vld [vmem:[#allocation145_spill] sm:$0xff]  ;;  %12075 = vst [vmem:[#allocation49_spill] sm:$0xff] (%p882_p5), %v8796_v38  ;;  %v8841_v37 = vld [vmem:[%s11575_s4 + $0x150] sm:$0xf] (%p882_p5) }
 0x214   : >> { %1937 = vmatmul.mubr.bf16.vlgmr.msra.gmra.mxu1 %v950_v16  ;;  %6069 = vmatpush3.bf16.msra.mxu0 %v5611_v23  ;;  %v11926_v16 = vld [vmem:[#allocation144_spill] sm:$0xff]  ;;  %v11937_v0 = vld [vmem:[#allocation157_spill] sm:$0xff]  ;;  %12084 = vst [vmem:[#allocation58_spill] sm:$0xff] (%p882_p5), %v8841_v37 }
 0x215   : >> { %6091 = vmatpush3.bf16.msra.mxu1 %v5627_v2  ;;  %6070 = vmatprep.subr.bf16.mxu0 %v5618_v14  ;;  %v5625_v23 = vcombine.low %v11926_v16, %v11925_v21  ;;  %v11927_v2 = vld [vmem:[#allocation127_spill] sm:$0xff]  ;;  %v8821_v38 = vld [vmem:[%s11575_s4 + $0x140] sm:$0xf] (%p882_p5)  ;;  %v8866_v37 = vld [vmem:[%s11575_s4 + $0x164] sm:$0xf] (%p882_p5) }
 0x216   : >> { %6092 = vmatprep.subr.bf16.mxu1 %v5634_v10  ;;  %1976 = vmatprep.mubr.bf16.mxu0 %v968_v8  ;;  %v5616_v14 = vcombine.low %v11928_v6, %v11927_v2  ;;  %v5632_v10 = vcombine.low %v11930_v12, %v11929_v22  ;;  %v11931_v8 = vld [vmem:[#allocation111_spill] sm:$0xff]  ;;  %v5535_v12 = vcombine.high %v8233_v1, %v8236_v45 }
 0x217   : >> { %2016 = vmatprep.mubr.bf16.mxu1 %v980_v9  ;;  %v11932_v9 = vld [vmem:[#allocation110_spill] sm:$0xff]  ;;  %v11943_v16 = vld [vmem:[#allocation123_spill] sm:$0xff]  ;;  %12080 = vst [vmem:[#allocation54_spill] sm:$0xff] (%p882_p5), %v8821_v38  ;;  %12089 = vst [vmem:[#allocation63_spill] sm:$0xff] (%p882_p5), %v8866_v37 }
 0x218   : >> { %6071 = vmatpush3.bf16.msra.mxu0 %v5610_v15  ;;  %v5608_v11 = vcombine.low %v11932_v9, %v11931_v8  ;;  %v11934_v15 = vld [vmem:[#allocation142_spill] sm:$0xff]  ;;  %v11945_v6 = vld [vmem:[#allocation155_spill] sm:$0xff]  ;;  %v8312_v8 = vld [vmem:[%s8124_s19 + $0x38] sm:$0x11] }
 0x219   : >> { %6093 = vmatpush3.bf16.msra.mxu1 %v5626_v32  ;;  %6072 = vmatprep.subr.bf16.mxu0 %v5617_v5  ;;  %v5624_v17 = vcombine.low %v11934_v15, %v11933_v20  ;;  %v11936_v32 = vld [vmem:[#allocation124_spill] sm:$0xff]  ;;  %v11947_v9 = vld [vmem:[#allocation107_spill] sm:$0xff] }
 0x21a   : >> { %6094 = vmatprep.subr.bf16.mxu1 %v5633_v44  ;;  %v5615_v31 = vcombine.low %v11936_v32, %v11935_v13  ;;  %v11938_v5 = vld [vmem:[#allocation156_spill] sm:$0xff]  ;;  %v11949_v15 = vld [vmem:[#allocation139_spill] sm:$0xff]  ;;  %v11951_v32 = vld [vmem:[#allocation121_spill] sm:$0xff] }
 0x21b   : >> { %v5631_v3 = vcombine.low %v11938_v5, %v11937_v0  ;;  %v11940_v44 = vld [vmem:[#allocation108_spill] sm:$0xff]  ;;  %v11953_v5 = vld [vmem:[#allocation153_spill] sm:$0xff]  ;;  %v8846_v38 = vld [vmem:[%s11575_s4 + $0x154] sm:$0xf] (%p882_p5) }
 0x21c   : >> { %6073 = vmatpush3.bf16.msra.mxu0 %v5609_v18  ;;  %v5607_v19 = vcombine.low %v11940_v44, %v11939_v7  ;;  %v11942_v18 = vld [vmem:[#allocation140_spill] sm:$0xff]  ;;  %v975_v44 = vshll.u32 %v5535_v12, 16  ;;  %12085 = vst [vmem:[#allocation59_spill] sm:$0xff] (%p882_p5), %v8846_v38  ;;  %v8871_v38 = vld [vmem:[%s11575_s4 + $0x168] sm:$0xf] (%p882_p5) }
 0x21d   : >> { %6095 = vmatpush3.bf16.msra.mxu1 %v5625_v23  ;;  %6074 = vmatprep.subr.bf16.mxu0 %v5616_v14  ;;  %v5623_v21 = vcombine.low %v11942_v18, %v11941_v4  ;;  %v11944_v23 = vld [vmem:[#allocation122_spill] sm:$0xff]  ;;  %v11956_v4 = vld [vmem:[#allocation104_spill] sm:$0xff]  ;;  %12090 = vst [vmem:[#allocation64_spill] sm:$0xff] (%p882_p5), %v8871_v38 }
 0x21e   : >> { %6096 = vmatprep.subr.bf16.mxu1 %v5632_v10  ;;  %v5614_v2 = vcombine.low %v11944_v23, %v11943_v16  ;;  %v11946_v14 = vld [vmem:[#allocation154_spill] sm:$0xff]  ;;  %v8309_v10 = vld [vmem:[%s8124_s19 + $0x30] sm:$0xff]  ;;  %v11958_v16 = vld [vmem:[#allocation136_spill] sm:$0xff] }
 0x21f   : >> { %v5630_v22 = vcombine.low %v11946_v14, %v11945_v6  ;;  %v5537_v7 = vcombine.low %v8309_v10, %v8312_v8  ;;  %v11960_v6 = vld [vmem:[#allocation118_spill] sm:$0xff]  ;;  %v8891_v37 = vld [vmem:[%s11575_s4 + $0x178] sm:$0xf] (%p882_p5)  ;;  %v8896_v38 = vld [vmem:[%s11575_s4 + $0x17c] sm:$0xf] (%p882_p5) }
 0x220   : >> { %6075 = vmatpush3.bf16.msra.mxu0 %v5608_v11  ;;  %v11948_v11 = vld [vmem:[#allocation106_spill] sm:$0xff]  ;;  %12094 = vst [vmem:[#allocation68_spill] sm:$0xff] (%p882_p5), %v8891_v37  ;;  %12095 = vst [vmem:[#allocation69_spill] sm:$0xff] (%p882_p5), %v8896_v38  ;;  %v8921_v38 = vld [vmem:[%s11575_s4 + $0x190] sm:$0xf] (%p882_p5) }
 0x221   : >> { %6097 = vmatpush3.bf16.msra.mxu1 %v5624_v17  ;;  %6076 = vmatprep.subr.bf16.mxu0 %v5615_v31  ;;  %v5606_v20 = vcombine.low %v11948_v11, %v11947_v9  ;;  %v11950_v17 = vld [vmem:[#allocation138_spill] sm:$0xff]  ;;  %v11952_v31 = vld [vmem:[#allocation120_spill] sm:$0xff]  ;;  %12100 = vst [vmem:[#allocation74_spill] sm:$0xff] (%p882_p5), %v8921_v38  ;;  %v8946_v38 = vld [vmem:[%s11575_s4 + $0x1a4] sm:$0xf] (%p882_p5) }
 0x222   : >> { %6098 = vmatprep.subr.bf16.mxu1 %v5631_v3  ;;  %v5622_v13 = vcombine.low %v11950_v17, %v11949_v15  ;;  %v5613_v0 = vcombine.low %v11952_v31, %v11951_v32  ;;  %v11954_v3 = vld [vmem:[#allocation152_spill] sm:$0xff]  ;;  %v11962_v9 = vld [vmem:[#allocation150_spill] sm:$0xff]  ;;  %v993_v15 = vshll.u32 %v5537_v7, 16  ;;  %v973_v17 = vshrl.u32 %v5535_v12, 16  ;;  %12105 = vst [vmem:[#allocation79_spill] sm:$0xff] (%p882_p5), %v8946_v38 }
 0x223   : >> { %v5629_v45 = vcombine.low %v11954_v3, %v11953_v5  ;;  %v977_v32 = vrot.slane %v975_v44, 1  ;;  %v11965_v5 = vld [vmem:[#allocation135_spill] sm:$0xff]  ;;  %v11966_v3 = vld [vmem:[#allocation134_spill] sm:$0xff]  ;;  %v5533_v12 = vcombine.high %v8233_v1, %v8233_v1  ;;  %v8971_v38 = vld [vmem:[%s11575_s4 + $0x1b8] sm:$0xf] (%p882_p5) }
 0x224   : >> { %6077 = vmatpush3.bf16.msra.mxu0 %v5607_v19  ;;  %v11955_v19 = vld [vmem:[#allocation105_spill] sm:$0xff]  ;;  %v11979_v1 = vld [vmem:[#allocation179_spill] sm:$0xff]  ;;  %v8916_v37 = vld [vmem:[%s11575_s4 + $0x18c] sm:$0xf] (%p882_p5)  ;;  %12110 = vst [vmem:[#allocation84_spill] sm:$0xff] (%p882_p5), %v8971_v38 }
 0x225   : >> { %6099 = vmatpush3.bf16.msra.mxu1 %v5623_v21  ;;  %6078 = vmatprep.subr.bf16.mxu0 %v5614_v2  ;;  %v5605_v18 = vcombine.low %v11956_v4, %v11955_v19  ;;  %v11957_v21 = vld [vmem:[#allocation137_spill] sm:$0xff]  ;;  %v11959_v2 = vld [vmem:[#allocation119_spill] sm:$0xff]  ;;  %v5620_v19 = vcombine.low %v11966_v3, %v11965_v5  ;;  %v978_v44 = vor.u32 %v977_v32, %v973_v17  ;;  %v11976_v5 = vld [vmem:[#allocation194_spill] sm:$0xff] }
 0x226   : >> { %6100 = vmatprep.subr.bf16.mxu1 %v5630_v22  ;;  %v5621_v23 = vcombine.low %v11958_v16, %v11957_v21  ;;  %v5612_v14 = vcombine.low %v11960_v6, %v11959_v2  ;;  %v11961_v22 = vld [vmem:[#allocation151_spill] sm:$0xff]  ;;  %v11969_v21 = vld [vmem:[#allocation229_spill] sm:$0xff]  ;;  %v11970_v16 = vld [vmem:[#allocation228_spill] sm:$0xff]  ;;  %v991_v6 = vshrl.u32 %v5537_v7, 16  ;;  %12099 = vst [vmem:[#allocation73_spill] sm:$0xff] (%p882_p5), %v8916_v37 }
 0x227   : >> { %v5628_v11 = vcombine.low %v11962_v9, %v11961_v22  ;;  %v5667_v2 = vcombine.low %v11970_v16, %v11969_v21  ;;  %v995_v22 = vrot.slane %v993_v15, 1  ;;  %v1008_v16 = vrot.slane %v5537_v7, 1  ;;  %v11980_v17 = vld [vmem:[#allocation178_spill] sm:$0xff]  ;;  %v11987_v7 = vld [vmem:[#allocation177_spill] sm:$0xff] }
 0x228   : >> { %6079 = vmatpush3.bf16.msra.mxu0 %v5606_v20  ;;  %v11963_v20 = vld [vmem:[#allocation103_spill] sm:$0xff]  ;;  %v5642_v32 = vcombine.low %v11980_v17, %v11979_v1  ;;  %v8941_v37 = vld [vmem:[%s11575_s4 + $0x1a0] sm:$0xf] (%p882_p5)  ;;  %v8996_v38 = vld [vmem:[%s11575_s4 + $0x1cc] sm:$0xf] (%p882_p5) }
 0x229   : >> { %6101 = vmatpush3.bf16.msra.mxu1 %v5622_v13  ;;  %6080 = vmatprep.subr.bf16.mxu0 %v5613_v0  ;;  %v11964_v13 = vld [vmem:[#allocation102_spill] sm:$0xff]  ;;  %v11967_v0 = vld [vmem:[#allocation197_spill] sm:$0xff]  ;;  %v996_v21 = vor.u32 %v995_v22, %v991_v6  ;;  %v11988_v6 = vld [vmem:[#allocation176_spill] sm:$0xff]  ;;  %12104 = vst [vmem:[#allocation78_spill] sm:$0xff] (%p882_p5), %v8941_v37 }
 0x22a   : >> { %6102 = vmatprep.subr.bf16.mxu1 %v5629_v45  ;;  %v5604_v31 = vcombine.low %v11964_v13, %v11963_v20  ;;  %v11968_v45 = vld [vmem:[#allocation196_spill] sm:$0xff]  ;;  %v11973_v20 = vld [vmem:[#allocation213_spill] sm:$0xff]  ;;  %v11975_v13 = vld [vmem:[#allocation195_spill] sm:$0xff]  ;;  %v5641_v22 = vcombine.low %v11988_v6, %v11987_v7  ;;  %12115 = vst [vmem:[#allocation89_spill] sm:$0xff] (%p882_p5), %v8996_v38 }
 0x22b   : >> { %v5651_v4 = vcombine.low %v11968_v45, %v11967_v0  ;;  %v5650_v3 = vcombine.low %v11976_v5, %v11975_v13  ;;  %v11977_v0 = vld [vmem:[#allocation227_spill] sm:$0xff]  ;;  %v11978_v45 = vld [vmem:[#allocation226_spill] sm:$0xff]  ;;  %v12005_v6 = vld [vmem:[#allocation205_spill] sm:$0xff] }
 0x22c   : >> { %6081 = vmatpush3.bf16.msra.mxu0 %v5605_v18  ;;  %v11971_v18 = vld [vmem:[#allocation181_spill] sm:$0xff]  ;;  %v5666_v15 = vcombine.low %v11978_v45, %v11977_v0  ;;  %v11992_v5 = vld [vmem:[#allocation190_spill] sm:$0xff]  ;;  %v11993_v0 = vld [vmem:[#allocation223_spill] sm:$0xff] }
 0x22d   : >> { %6103 = vmatpush3.bf16.msra.mxu1 %v5621_v23  ;;  %6082 = vmatprep.subr.bf16.mxu0 %v5612_v14  ;;  %v11972_v23 = vld [vmem:[#allocation180_spill] sm:$0xff]  ;;  %v11994_v45 = vld [vmem:[#allocation222_spill] sm:$0xff]  ;;  %v11997_v17 = vld [vmem:[#allocation207_spill] sm:$0xff] }
 0x22e   : >> { %6104 = vmatprep.subr.bf16.mxu1 %v5628_v11  ;;  %v5643_v9 = vcombine.low %v11972_v23, %v11971_v18  ;;  %v11974_v14 = vld [vmem:[#allocation212_spill] sm:$0xff]  ;;  %v8966_v37 = vld [vmem:[%s11575_s4 + $0x1b4] sm:$0xf] (%p882_p5)  ;;  %v9021_v38 = vld [vmem:[%s11575_s4 + $0x1e0] sm:$0xf] (%p882_p5) }
 0x22f   : >> { %v5659_v11 = vcombine.low %v11974_v14, %v11973_v20  ;;  %v11985_v20 = vld [vmem:[#allocation225_spill] sm:$0xff]  ;;  %v11986_v14 = vld [vmem:[#allocation224_spill] sm:$0xff]  ;;  %12109 = vst [vmem:[#allocation83_spill] sm:$0xff] (%p882_p5), %v8966_v37  ;;  %v8991_v37 = vld [vmem:[%s11575_s4 + $0x1c8] sm:$0xf] (%p882_p5) }
 0x230   : >> { %6083 = vmatpush3.bf16.msra.mxu0 %v5604_v31  ;;  %v11981_v31 = vld [vmem:[#allocation211_spill] sm:$0xff]  ;;  %v5665_v13 = vcombine.low %v11986_v14, %v11985_v20  ;;  %v12003_v14 = vld [vmem:[#allocation173_spill] sm:$0xff]  ;;  %12114 = vst [vmem:[#allocation88_spill] sm:$0xff] (%p882_p5), %v8991_v37  ;;  %v9016_v37 = vld [vmem:[%s11575_s4 + $0x1dc] sm:$0xf] (%p882_p5) }
 0x231   : >> { %6105 = vmatpush3.bf16.msra.mxu1 %v5620_v19  ;;  %6112 = vmatprep.subr.bf16.mxu0 %v5651_v4  ;;  %v11982_v19 = vld [vmem:[#allocation210_spill] sm:$0xff]  ;;  %v11983_v4 = vld [vmem:[#allocation193_spill] sm:$0xff]  ;;  %12119 = vst [vmem:[#allocation93_spill] sm:$0xff] (%p882_p5), %v9016_v37  ;;  %12120 = vst [vmem:[#allocation94_spill] sm:$0xff] (%p882_p5), %v9021_v38 }
 0x232   : >> { %6134 = vmatprep.subr.bf16.mxu1 %v5667_v2  ;;  %v5658_v18 = vcombine.low %v11982_v19, %v11981_v31  ;;  %v11984_v2 = vld [vmem:[#allocation192_spill] sm:$0xff]  ;;  %v11999_v19 = vld [vmem:[#allocation189_spill] sm:$0xff]  ;;  %v9041_v37 = vld [vmem:[%s11575_s4 + $0x1f0] sm:$0xf] (%p882_p5) }
 0x233   : >> { %1977 = vmatmul.mubr.bf16.vlgmr.msra.gmra.mxu0 %v5533_v12  ;;  %v5649_v23 = vcombine.low %v11984_v2, %v11983_v4  ;;  %v11989_v12 = vld [vmem:[#allocation209_spill] sm:$0xff]  ;;  %12124 = vst [vmem:[#allocation98_spill] sm:$0xff] (%p882_p5), %v9041_v37  ;;  %v9046_v38 = vld [vmem:[%s11575_s4 + $0x1f4] sm:$0xf] (%p882_p5) }
 0x234   : >> { %2017 = vmatmul.mubr.bf16.vlgmr.msra.gmra.mxu1 %v978_v44  ;;  %6113 = vmatpush3.bf16.msra.mxu0 %v5643_v9  ;;  %v11990_v44 = vld [vmem:[#allocation208_spill] sm:$0xff]  ;;  %v12001_v2 = vld [vmem:[#allocation221_spill] sm:$0xff]  ;;  %12125 = vst [vmem:[#allocation99_spill] sm:$0xff] (%p882_p5), %v9046_v38  ;;  %v9071_v38 = vld [vmem:[%s11575_s4 + $0x208] sm:$0xf] (%p882_p5) }
 0x235   : >> { %6135 = vmatpush3.bf16.msra.mxu1 %v5659_v11  ;;  %6114 = vmatprep.subr.bf16.mxu0 %v5650_v3  ;;  %v5657_v9 = vcombine.low %v11990_v44, %v11989_v12  ;;  %v11991_v11 = vld [vmem:[#allocation191_spill] sm:$0xff]  ;;  %v9066_v37 = vld [vmem:[%s11575_s4 + $0x204] sm:$0xf] (%p882_p5)  ;;  %12130 = vst [vmem:[#allocation104_spill] sm:$0xff] (%p882_p5), %v9071_v38  ;;  %v9096_v38 = vld [vmem:[%s11575_s4 + $0x21c] sm:$0xf] (%p882_p5) }
 0x236   : >> { %6136 = vmatprep.subr.bf16.mxu1 %v5666_v15  ;;  %2056 = vmatprep.mubr.bf16.mxu0 %v996_v21  ;;  %v5648_v3 = vcombine.low %v11992_v5, %v11991_v11  ;;  %v5664_v15 = vcombine.low %v11994_v45, %v11993_v0  ;;  %v11995_v21 = vld [vmem:[#allocation175_spill] sm:$0xff]  ;;  %v5538_v45 = vcombine.high %v8309_v10, %v8312_v8  ;;  %v12019_v8 = vld [vmem:[#allocation169_spill] sm:$0xff] }
 0x237   : >> { %2096 = vmatprep.mubr.bf16.mxu1 %v1008_v16  ;;  %v11996_v16 = vld [vmem:[#allocation174_spill] sm:$0xff]  ;;  %v12007_v44 = vld [vmem:[#allocation187_spill] sm:$0xff]  ;;  %12129 = vst [vmem:[#allocation103_spill] sm:$0xff] (%p882_p5), %v9066_v37  ;;  %v9091_v37 = vld [vmem:[%s11575_s4 + $0x218] sm:$0xf] (%p882_p5) }
 0x238   : >> { %6115 = vmatpush3.bf16.msra.mxu0 %v5642_v32  ;;  %v5640_v1 = vcombine.low %v11996_v16, %v11995_v21  ;;  %v11998_v32 = vld [vmem:[#allocation206_spill] sm:$0xff]  ;;  %v12009_v5 = vld [vmem:[#allocation219_spill] sm:$0xff]  ;;  %12134 = vst [vmem:[#allocation108_spill] sm:$0xff] (%p882_p5), %v9091_v37  ;;  %12135 = vst [vmem:[#allocation109_spill] sm:$0xff] (%p882_p5), %v9096_v38 }
 0x239   : >> { %6137 = vmatpush3.bf16.msra.mxu1 %v5658_v18  ;;  %6116 = vmatprep.subr.bf16.mxu0 %v5649_v23  ;;  %v5656_v31 = vcombine.low %v11998_v32, %v11997_v17  ;;  %v12000_v18 = vld [vmem:[#allocation188_spill] sm:$0xff]  ;;  %v12012_v21 = vld [vmem:[#allocation170_spill] sm:$0xff]  ;;  %v9121_v38 = vld [vmem:[%s11575_s4 + $0x230] sm:$0xf] (%p882_p5) }
 0x23a   : >> { %6138 = vmatprep.subr.bf16.mxu1 %v5665_v13  ;;  %v5647_v4 = vcombine.low %v12000_v18, %v11999_v19  ;;  %v12002_v23 = vld [vmem:[#allocation220_spill] sm:$0xff]  ;;  %v12014_v17 = vld [vmem:[#allocation202_spill] sm:$0xff]  ;;  %12140 = vst [vmem:[#allocation114_spill] sm:$0xff] (%p882_p5), %v9121_v38  ;;  %v9146_v38 = vld [vmem:[%s11575_s4 + $0x244] sm:$0xf] (%p882_p5) }
 0x23b   : >> { %v5663_v20 = vcombine.low %v12002_v23, %v12001_v2  ;;  %v12004_v13 = vld [vmem:[#allocation172_spill] sm:$0xff]  ;;  %v9116_v37 = vld [vmem:[%s11575_s4 + $0x22c] sm:$0xf] (%p882_p5)  ;;  %12145 = vst [vmem:[#allocation119_spill] sm:$0xff] (%p882_p5), %v9146_v38 }
 0x23c   : >> { %6117 = vmatpush3.bf16.msra.mxu0 %v5641_v22  ;;  %v5639_v7 = vcombine.low %v12004_v13, %v12003_v14  ;;  %v12006_v22 = vld [vmem:[#allocation204_spill] sm:$0xff]  ;;  %12139 = vst [vmem:[#allocation113_spill] sm:$0xff] (%p882_p5), %v9116_v37  ;;  %v9141_v37 = vld [vmem:[%s11575_s4 + $0x240] sm:$0xf] (%p882_p5) }
 0x23d   : >> { %6139 = vmatpush3.bf16.msra.mxu1 %v5657_v9  ;;  %6118 = vmatprep.subr.bf16.mxu0 %v5648_v3  ;;  %v5655_v12 = vcombine.low %v12006_v22, %v12005_v6  ;;  %v12008_v9 = vld [vmem:[#allocation186_spill] sm:$0xff]  ;;  %v12016_v19 = vld [vmem:[#allocation184_spill] sm:$0xff]  ;;  %12144 = vst [vmem:[#allocation118_spill] sm:$0xff] (%p882_p5), %v9141_v37  ;;  %v9166_v37 = vld [vmem:[%s11575_s4 + $0x254] sm:$0xf] (%p882_p5) }
 0x23e   : >> { %6140 = vmatprep.subr.bf16.mxu1 %v5664_v15  ;;  %v5646_v11 = vcombine.low %v12008_v9, %v12007_v44  ;;  %v12010_v3 = vld [vmem:[#allocation218_spill] sm:$0xff]  ;;  %v12011_v15 = vld [vmem:[#allocation171_spill] sm:$0xff]  ;;  %v12018_v2 = vld [vmem:[#allocation216_spill] sm:$0xff]  ;;  %12149 = vst [vmem:[#allocation123_spill] sm:$0xff] (%p882_p5), %v9166_v37 }
 0x23f   : >> { %v5662_v0 = vcombine.low %v12010_v3, %v12009_v5  ;;  %v5638_v16 = vcombine.low %v12012_v21, %v12011_v15  ;;  %v12020_v14 = vld [vmem:[#allocation168_spill] sm:$0xff]  ;;  %v12024_v44 = vld [vmem:[#allocation182_spill] sm:$0xff]  ;;  %v12027_v21 = vld [vmem:[#allocation167_spill] sm:$0xff] }
 0x240   : >> { %6119 = vmatpush3.bf16.msra.mxu0 %v5640_v1  ;;  %v12013_v1 = vld [vmem:[#allocation203_spill] sm:$0xff]  ;;  %v5637_v13 = vcombine.low %v12020_v14, %v12019_v8  ;;  %v12022_v6 = vld [vmem:[#allocation200_spill] sm:$0xff]  ;;  %v12026_v5 = vld [vmem:[#allocation214_spill] sm:$0xff] }
 0x241   : >> { %6141 = vmatpush3.bf16.msra.mxu1 %v5656_v31  ;;  %6120 = vmatprep.subr.bf16.mxu0 %v5647_v4  ;;  %v5654_v32 = vcombine.low %v12014_v17, %v12013_v1  ;;  %v12015_v31 = vld [vmem:[#allocation185_spill] sm:$0xff]  ;;  %v12029_v17 = vld [vmem:[#allocation199_spill] sm:$0xff]  ;;  %v9171_v38 = vld [vmem:[%s11575_s4 + $0x258] sm:$0xf] (%p882_p5) }
 0x242   : >> { %6142 = vmatprep.subr.bf16.mxu1 %v5663_v20  ;;  %v5645_v18 = vcombine.low %v12016_v19, %v12015_v31  ;;  %v12017_v4 = vld [vmem:[#allocation217_spill] sm:$0xff]  ;;  %v1003_v20 = vshll.u32 %v5538_v45, 16  ;;  %v5536_v19 = vcombine.high %v8309_v10, %v8309_v10  ;;  %v12031_v10 = vld [vmem:[#allocation8_spill] sm:$0xff]  ;;  %12150 = vst [vmem:[#allocation124_spill] sm:$0xff] (%p882_p5), %v9171_v38  ;;  %v9191_v37 = vld [vmem:[%s11575_s4 + $0x268] sm:$0xf] (%p882_p5) }
 0x243   : >> { %v5661_v23 = vcombine.low %v12018_v2, %v12017_v4  ;;  %12154 = vst [vmem:[#allocation128_spill] sm:$0xff] (%p882_p5), %v9191_v37  ;;  %v9196_v38 = vld [vmem:[%s11575_s4 + $0x26c] sm:$0xf] (%p882_p5)  ;;  %v9216_v37 = vld [vmem:[%s11575_s4 + $0x27c] sm:$0xf] (%p882_p5) }
 0x244   : >> { %6121 = vmatpush3.bf16.msra.mxu0 %v5639_v7  ;;  %v12021_v7 = vld [vmem:[#allocation201_spill] sm:$0xff]  ;;  %v1005_v15 = vrot.slane %v1003_v20, 1  ;;  %12155 = vst [vmem:[#allocation129_spill] sm:$0xff] (%p882_p5), %v9196_v38  ;;  %12159 = vst [vmem:[#allocation133_spill] sm:$0xff] (%p882_p5), %v9216_v37  ;;  %v9241_v37 = vld [vmem:[%s11575_s4 + $0x290] sm:$0xf] (%p882_p5) }
 0x245   : >> { %6143 = vmatpush3.bf16.msra.mxu1 %v5655_v12  ;;  %6122 = vmatprep.subr.bf16.mxu0 %v5646_v11  ;;  %v5653_v22 = vcombine.low %v12022_v6, %v12021_v7  ;;  %v12023_v12 = vld [vmem:[#allocation183_spill] sm:$0xff]  ;;  %v9221_v38 = vld [vmem:[%s11575_s4 + $0x280] sm:$0xf] (%p882_p5)  ;;  %12164 = vst [vmem:[#allocation138_spill] sm:$0xff] (%p882_p5), %v9241_v37  ;;  %v9266_v37 = vld [vmem:[%s11575_s4 + $0x2a4] sm:$0xf] (%p882_p5) }
 0x246   : >> { %6144 = vmatprep.subr.bf16.mxu1 %v5662_v0  ;;  %v5644_v9 = vcombine.low %v12024_v44, %v12023_v12  ;;  %v12025_v11 = vld [vmem:[#allocation215_spill] sm:$0xff]  ;;  %v1001_v0 = vshrl.u32 %v5538_v45, 16  ;;  %v6674_v45 = vmov 0.0   ;;  %12160 = vst [vmem:[#allocation134_spill] sm:$0xff] (%p882_p5), %v9221_v38  ;;  %12169 = vst [vmem:[#allocation143_spill] sm:$0xff] (%p882_p5), %v9266_v37 }
 0x247   : >> { %v5660_v3 = vcombine.low %v12026_v5, %v12025_v11  ;;  %v9246_v38 = vld [vmem:[%s11575_s4 + $0x294] sm:$0xf] (%p882_p5)  ;;  %v9291_v37 = vld [vmem:[%s11575_s4 + $0x2b8] sm:$0xf] (%p882_p5) }
 0x248   : >> { %6123 = vmatpush3.bf16.msra.mxu0 %v5638_v16  ;;  %v12028_v16 = vld [vmem:[#allocation166_spill] sm:$0xff]  ;;  %12165 = vst [vmem:[#allocation139_spill] sm:$0xff] (%p882_p5), %v9246_v38  ;;  %12174 = vst [vmem:[#allocation148_spill] sm:$0xff] (%p882_p5), %v9291_v37 }
 0x249   : >> { %6145 = vmatpush3.bf16.msra.mxu1 %v5654_v32  ;;  %6124 = vmatprep.subr.bf16.mxu0 %v5645_v18  ;;  %v5636_v1 = vcombine.low %v12028_v16, %v12027_v21  ;;  %v12030_v32 = vld [vmem:[#allocation198_spill] sm:$0xff]  ;;  %v1006_v18 = vor.u32 %v1005_v15, %v1001_v0 }
 0x24a   : >> { %6146 = vmatprep.subr.bf16.mxu1 %v5661_v23  ;;  %v5652_v31 = vcombine.low %v12030_v32, %v12029_v17  ;;  %v9271_v38 = vld [vmem:[%s11575_s4 + $0x2a8] sm:$0xf] (%p882_p5)  ;;  %v9316_v37 = vld [vmem:[%s11575_s4 + $0x2cc] sm:$0xf] (%p882_p5) }
 0x24b   : > { %12170 = vst [vmem:[#allocation144_spill] sm:$0xff] (%p882_p5), %v9271_v38  ;;  %v9296_v38 = vld [vmem:[%s11575_s4 + $0x2bc] sm:$0xf] (%p882_p5)  ;;  %12179 = vst [vmem:[#allocation153_spill] sm:$0xff] (%p882_p5), %v9316_v37  ;;  %v9341_v37 = vld [vmem:[%s11575_s4 + $0x2e0] sm:$0xf] (%p882_p5) }
 0x24c   : >> { %6125 = vmatpush3.bf16.msra.mxu0 %v5637_v13  ;;  %12175 = vst [vmem:[#allocation149_spill] sm:$0xff] (%p882_p5), %v9296_v38  ;;  %v9321_v38 = vld [vmem:[%s11575_s4 + $0x2d0] sm:$0xf] (%p882_p5)  ;;  %12184 = vst [vmem:[#allocation158_spill] sm:$0xff] (%p882_p5), %v9341_v37  ;;  %v9366_v37 = vld [vmem:[%s11575_s4 + $0x2f4] sm:$0xf] (%p882_p5) }
 0x24d   : >> { %6147 = vmatpush3.bf16.msra.mxu1 %v5653_v22  ;;  %6126 = vmatprep.subr.bf16.mxu0 %v5644_v9  ;;  %12180 = vst [vmem:[#allocation154_spill] sm:$0xff] (%p882_p5), %v9321_v38  ;;  %v9346_v38 = vld [vmem:[%s11575_s4 + $0x2e4] sm:$0xf] (%p882_p5)  ;;  %12189 = vst [vmem:[#allocation163_spill] sm:$0xff] (%p882_p5), %v9366_v37  ;;  %v9391_v37 = vld [vmem:[%s11575_s4 + $0x308] sm:$0xf] (%p882_p5) }
 0x24e   : >> { %6148 = vmatprep.subr.bf16.mxu1 %v5660_v3  ;;  %12185 = vst [vmem:[#allocation159_spill] sm:$0xff] (%p882_p5), %v9346_v38  ;;  %v9371_v38 = vld [vmem:[%s11575_s4 + $0x2f8] sm:$0xf] (%p882_p5)  ;;  %12194 = vst [vmem:[#allocation168_spill] sm:$0xff] (%p882_p5), %v9391_v37  ;;  %v9416_v37 = vld [vmem:[%s11575_s4 + $0x31c] sm:$0xf] (%p882_p5) }
 0x24f   : > { %12190 = vst [vmem:[#allocation164_spill] sm:$0xff] (%p882_p5), %v9371_v38  ;;  %v9396_v38 = vld [vmem:[%s11575_s4 + $0x30c] sm:$0xf] (%p882_p5)  ;;  %12199 = vst [vmem:[#allocation173_spill] sm:$0xff] (%p882_p5), %v9416_v37  ;;  %v9441_v37 = vld [vmem:[%s11575_s4 + $0x330] sm:$0xf] (%p882_p5) }
 0x250   : >> { %6127 = vmatpush3.bf16.msra.mxu0 %v5636_v1  ;;  %12195 = vst [vmem:[#allocation169_spill] sm:$0xff] (%p882_p5), %v9396_v38  ;;  %v9421_v38 = vld [vmem:[%s11575_s4 + $0x320] sm:$0xf] (%p882_p5)  ;;  %12204 = vst [vmem:[#allocation178_spill] sm:$0xff] (%p882_p5), %v9441_v37  ;;  %v9466_v37 = vld [vmem:[%s11575_s4 + $0x344] sm:$0xf] (%p882_p5) }
 0x251   : >> { %6149 = vmatpush3.bf16.msra.mxu1 %v5652_v31  ;;  %6540 = vmatprep.subr.mxu0 %v6674_v45  ;;  %12200 = vst [vmem:[#allocation174_spill] sm:$0xff] (%p882_p5), %v9421_v38  ;;  %v9446_v38 = vld [vmem:[%s11575_s4 + $0x334] sm:$0xf] (%p882_p5)  ;;  %12209 = vst [vmem:[#allocation183_spill] sm:$0xff] (%p882_p5), %v9466_v37  ;;  %v9491_v37 = vld [vmem:[%s11575_s4 + $0x358] sm:$0xf] (%p882_p5) }
 0x252   : >> { %6545 = vmatprep.subr.mxu1 %v6674_v45  ;;  %12205 = vst [vmem:[#allocation179_spill] sm:$0xff] (%p882_p5), %v9446_v38  ;;  %v9471_v38 = vld [vmem:[%s11575_s4 + $0x348] sm:$0xf] (%p882_p5)  ;;  %12214 = vst [vmem:[#allocation188_spill] sm:$0xff] (%p882_p5), %v9491_v37  ;;  %v9516_v37 = vld [vmem:[%s11575_s4 + $0x36c] sm:$0xf] (%p882_p5) }
 0x253   : >> { %2057 = vmatmul.mubr.bf16.vlgmr.msra.gmra.mxu0 %v5536_v19  ;;  %12210 = vst [vmem:[#allocation184_spill] sm:$0xff] (%p882_p5), %v9471_v38  ;;  %v9496_v38 = vld [vmem:[%s11575_s4 + $0x35c] sm:$0xf] (%p882_p5)  ;;  %12219 = vst [vmem:[#allocation193_spill] sm:$0xff] (%p882_p5), %v9516_v37  ;;  %v9541_v37 = vld [vmem:[%s11575_s4 + $0x380] sm:$0xf] (%p882_p5) }
 0x254   : >> { %2097 = vmatmul.mubr.bf16.vlgmr.msra.gmra.mxu1 %v1006_v18  ;;  %6542 = vmatprep.mubr.msk.f32.mxu0 %vm6675_vm5, %v6674_v45  ;;  %12215 = vst [vmem:[#allocation189_spill] sm:$0xff] (%p882_p5), %v9496_v38  ;;  %v9521_v38 = vld [vmem:[%s11575_s4 + $0x370] sm:$0xf] (%p882_p5)  ;;  %12224 = vst [vmem:[#allocation198_spill] sm:$0xff] (%p882_p5), %v9541_v37  ;;  %v9566_v37 = vld [vmem:[%s11575_s4 + $0x394] sm:$0xf] (%p882_p5) }
 0x255   : >> { %6547 = vmatprep.mubr.msk.f32.mxu1 %vm6675_vm5, %v6674_v45  ;;  %12220 = vst [vmem:[#allocation194_spill] sm:$0xff] (%p882_p5), %v9521_v38  ;;  %v9546_v38 = vld [vmem:[%s11575_s4 + $0x384] sm:$0xf] (%p882_p5)  ;;  %12229 = vst [vmem:[#allocation203_spill] sm:$0xff] (%p882_p5), %v9566_v37  ;;  %v9591_v37 = vld [vmem:[%s11575_s4 + $0x3a8] sm:$0xf] (%p882_p5) }
 0x256   : > { %12225 = vst [vmem:[#allocation199_spill] sm:$0xff] (%p882_p5), %v9546_v38  ;;  %v9571_v38 = vld [vmem:[%s11575_s4 + $0x398] sm:$0xf] (%p882_p5)  ;;  %12234 = vst [vmem:[#allocation208_spill] sm:$0xff] (%p882_p5), %v9591_v37  ;;  %v9616_v37 = vld [vmem:[%s11575_s4 + $0x3bc] sm:$0xf] (%p882_p5) }
 0x257   : > { %12230 = vst [vmem:[#allocation204_spill] sm:$0xff] (%p882_p5), %v9571_v38  ;;  %v9596_v38 = vld [vmem:[%s11575_s4 + $0x3ac] sm:$0xf] (%p882_p5)  ;;  %12239 = vst [vmem:[#allocation213_spill] sm:$0xff] (%p882_p5), %v9616_v37  ;;  %v9641_v37 = vld [vmem:[%s11575_s4 + $0x3d0] sm:$0xf] (%p882_p5) }
 0x258   : > { %12235 = vst [vmem:[#allocation209_spill] sm:$0xff] (%p882_p5), %v9596_v38  ;;  %v9621_v38 = vld [vmem:[%s11575_s4 + $0x3c0] sm:$0xf] (%p882_p5)  ;;  %12244 = vst [vmem:[#allocation218_spill] sm:$0xff] (%p882_p5), %v9641_v37  ;;  %v9666_v37 = vld [vmem:[%s11575_s4 + $0x3e4] sm:$0xf] (%p882_p5) }
 0x259   : > { %12240 = vst [vmem:[#allocation214_spill] sm:$0xff] (%p882_p5), %v9621_v38  ;;  %v9646_v38 = vld [vmem:[%s11575_s4 + $0x3d4] sm:$0xf] (%p882_p5)  ;;  %12249 = vst [vmem:[#allocation223_spill] sm:$0xff] (%p882_p5), %v9666_v37  ;;  %v9691_v37 = vld [vmem:[%s11575_s4 + $0x3f8] sm:$0xf] (%p882_p5) }
 0x25a   : > { %12245 = vst [vmem:[#allocation219_spill] sm:$0xff] (%p882_p5), %v9646_v38  ;;  %v9671_v38 = vld [vmem:[%s11575_s4 + $0x3e8] sm:$0xf] (%p882_p5)  ;;  %12254 = vst [vmem:[#allocation228_spill] sm:$0xff] (%p882_p5), %v9691_v37 }
 0x25b   : > { %12250 = vst [vmem:[#allocation224_spill] sm:$0xff] (%p882_p5), %v9671_v38  ;;  %v9696_v38 = vld [vmem:[%s11575_s4 + $0x3fc] sm:$0xf] (%p882_p5) }
 0x25c   : > { %12255 = vst [vmem:[#allocation229_spill] sm:$0xff] (%p882_p5), %v9696_v38 }
 0x2b3   : >> { %v5996_v4 = vpop.f32.mrf.mxu0 }
 0x2b4   : >> { %v6018_v2 = vpop.f32.mrf.mxu1 }
 0x2b5   : >> { %v5997_v23 = vpop.f32.mrf.mxu0 }
 0x2b6   : >> { %v6019_v20 = vpop.f32.mrf.mxu1  ;;  %v5998_v8 = vadd.f32 %v5997_v23, %v5996_v4 }
 0x2b7   : >> { %v6020_v14 = vadd.f32 %v6019_v20, %v6018_v2  ;;  %v5999_v13 = vpop.f32.mrf.mxu0 }
 0x2b8   : >> { %v6021_v7 = vpop.f32.mrf.mxu1  ;;  %v1819_v6 = vadd.f32 %v5998_v8, %v12031_v10 }
 0x2b9   : >> { %v6000_v22 = vpop.f32.mrf.mxu0 }
 0x2ba   : >> { %v6022_v12 = vpop.f32.mrf.mxu1  ;;  %v1859_v44 = vadd.f32 %v6020_v14, %v1819_v6 }
 0x2d3   : >> { %v6040_v9 = vpop.f32.mrf.mxu0 }
 0x2d4   : >> { %v6062_v11 = vpop.f32.mrf.mxu1 }
 0x2d5   : >> { %v6041_v5 = vpop.f32.mrf.mxu0 }
 0x2d6   : >> { %v6063_v3 = vpop.f32.mrf.mxu1  ;;  %v6042_v2 = vadd.f32 %v6041_v5, %v6040_v9  ;;  %v12032_v5 = vld [vmem:[#allocation6_spill] sm:$0xff] }
 0x2d7   : >> { %v6043_v0 = vpop.f32.mrf.mxu0  ;;  %v6064_v20 = vadd.f32 %v6063_v3, %v6062_v11  ;;  %v12033_v3 = vld [vmem:[#allocation7_spill] sm:$0xff] }
 0x2d8   : >> { %v6065_v15 = vpop.f32.mrf.mxu1  ;;  %v1899_v23 = vadd.f32 %v6042_v2, %v1859_v44 }
 0x2d9   : >> { %v6044_v21 = vpop.f32.mrf.mxu0 }
 0x2da   : >> { %v6066_v16 = vpop.f32.mrf.mxu1  ;;  %v1939_v14 = vadd.f32 %v6064_v20, %v1899_v23  ;;  %v5672_v20 = vld [vmem:[%s5443_s21 + $0x8] sm:$0x77] }
 0x2f3   : >> { %v6084_v1 = vpop.f32.mrf.mxu0 }
 0x2f4   : >> { %v6106_v17 = vpop.f32.mrf.mxu1 }
 0x2f5   : >> { %v6085_v32 = vpop.f32.mrf.mxu0 }
 0x2f6   : >> { %v6107_v31 = vpop.f32.mrf.mxu1  ;;  %v6086_v8 = vadd.f32 %v6085_v32, %v6084_v1 }
 0x2f7   : >> { %v6087_v19 = vpop.f32.mrf.mxu0  ;;  %v6108_v7 = vadd.f32 %v6107_v31, %v6106_v17 }
 0x2f8   : >> { %v6109_v18 = vpop.f32.mrf.mxu1  ;;  %v1979_v13 = vadd.f32 %v6086_v8, %v1939_v14 }
 0x2f9   : >> { %v6088_v45 = vpop.f32.mrf.mxu0 }
 0x2fa   : >> { %v6110_v4 = vpop.f32.mrf.mxu1  ;;  %v2019_v0 = vadd.f32 %v6108_v7, %v1979_v13  ;;  %v8416_v13 = vld [vmem:[%s11576_s5] ss:$0 sm:$0xff] (%p882_p5) }
 0x2fb   : > { %12034 = vst [vmem:[#allocation8_spill] sm:$0xff] (%p882_p5), %v8416_v13  ;;  %v8421_v7 = vld [vmem:[%s11575_s4] sm:$0xf] (%p882_p5)  ;;  %v8736_v13 = vld [vmem:[%s11575_s4 + $0xfc] sm:$0xf] (%p882_p5) }
 0x2fc   : > { %12035 = vst [vmem:[#allocation9_spill] sm:$0xff] (%p882_p5), %v8421_v7  ;;  %12063 = vst [vmem:[#allocation37_spill] sm:$0xff] (%p882_p5), %v8736_v13  ;;  %v8751_v7 = vld [vmem:[%s11575_s4 + $0x108] sm:$0xf] (%p882_p5) }
 0x2fd   : > { %12066 = vst [vmem:[#allocation40_spill] sm:$0xff] (%p882_p5), %v8751_v7  ;;  %v8776_v7 = vld [vmem:[%s11575_s4 + $0x11c] sm:$0xf] (%p882_p5) }
 0x2fe   : > { %12071 = vst [vmem:[#allocation45_spill] sm:$0xff] (%p882_p5), %v8776_v7  ;;  %v8801_v7 = vld [vmem:[%s11575_s4 + $0x130] sm:$0xf] (%p882_p5) }
 0x2ff   : > { %12076 = vst [vmem:[#allocation50_spill] sm:$0xff] (%p882_p5), %v8801_v7  ;;  %v8826_v7 = vld [vmem:[%s11575_s4 + $0x144] sm:$0xf] (%p882_p5) }
 0x300   : > { %12081 = vst [vmem:[#allocation55_spill] sm:$0xff] (%p882_p5), %v8826_v7  ;;  %v8851_v7 = vld [vmem:[%s11575_s4 + $0x158] sm:$0xf] (%p882_p5) }
 0x301   : > { %12086 = vst [vmem:[#allocation60_spill] sm:$0xff] (%p882_p5), %v8851_v7  ;;  %v8876_v7 = vld [vmem:[%s11575_s4 + $0x16c] sm:$0xf] (%p882_p5) }
 0x302   : > { %12091 = vst [vmem:[#allocation65_spill] sm:$0xff] (%p882_p5), %v8876_v7  ;;  %v8901_v7 = vld [vmem:[%s11575_s4 + $0x180] sm:$0xf] (%p882_p5) }
 0x303   : > { %12096 = vst [vmem:[#allocation70_spill] sm:$0xff] (%p882_p5), %v8901_v7  ;;  %v8926_v7 = vld [vmem:[%s11575_s4 + $0x194] sm:$0xf] (%p882_p5) }
 0x304   : > { %12101 = vst [vmem:[#allocation75_spill] sm:$0xff] (%p882_p5), %v8926_v7  ;;  %v8951_v7 = vld [vmem:[%s11575_s4 + $0x1a8] sm:$0xf] (%p882_p5) }
 0x305   : > { %12106 = vst [vmem:[#allocation80_spill] sm:$0xff] (%p882_p5), %v8951_v7  ;;  %v8976_v7 = vld [vmem:[%s11575_s4 + $0x1bc] sm:$0xf] (%p882_p5) }
 0x306   : > { %12111 = vst [vmem:[#allocation85_spill] sm:$0xff] (%p882_p5), %v8976_v7  ;;  %v9001_v7 = vld [vmem:[%s11575_s4 + $0x1d0] sm:$0xf] (%p882_p5) }
 0x307   : > { %12116 = vst [vmem:[#allocation90_spill] sm:$0xff] (%p882_p5), %v9001_v7  ;;  %v9026_v7 = vld [vmem:[%s11575_s4 + $0x1e4] sm:$0xf] (%p882_p5) }
 0x308   : > { %12121 = vst [vmem:[#allocation95_spill] sm:$0xff] (%p882_p5), %v9026_v7  ;;  %v9051_v7 = vld [vmem:[%s11575_s4 + $0x1f8] sm:$0xf] (%p882_p5) }
 0x309   : > { %12126 = vst [vmem:[#allocation100_spill] sm:$0xff] (%p882_p5), %v9051_v7  ;;  %v9076_v7 = vld [vmem:[%s11575_s4 + $0x20c] sm:$0xf] (%p882_p5) }
 0x30a   : > { %12131 = vst [vmem:[#allocation105_spill] sm:$0xff] (%p882_p5), %v9076_v7  ;;  %v9101_v7 = vld [vmem:[%s11575_s4 + $0x220] sm:$0xf] (%p882_p5) }
 0x30b   : > { %12136 = vst [vmem:[#allocation110_spill] sm:$0xff] (%p882_p5), %v9101_v7  ;;  %v9126_v7 = vld [vmem:[%s11575_s4 + $0x234] sm:$0xf] (%p882_p5) }
 0x30c   : > { %12141 = vst [vmem:[#allocation115_spill] sm:$0xff] (%p882_p5), %v9126_v7  ;;  %v9151_v7 = vld [vmem:[%s11575_s4 + $0x248] sm:$0xf] (%p882_p5) }
 0x30d   : > { %12146 = vst [vmem:[#allocation120_spill] sm:$0xff] (%p882_p5), %v9151_v7  ;;  %v9176_v7 = vld [vmem:[%s11575_s4 + $0x25c] sm:$0xf] (%p882_p5) }
 0x30e   : > { %12151 = vst [vmem:[#allocation125_spill] sm:$0xff] (%p882_p5), %v9176_v7  ;;  %v9201_v7 = vld [vmem:[%s11575_s4 + $0x270] sm:$0xf] (%p882_p5) }
 0x30f   : > { %12156 = vst [vmem:[#allocation130_spill] sm:$0xff] (%p882_p5), %v9201_v7  ;;  %v9226_v7 = vld [vmem:[%s11575_s4 + $0x284] sm:$0xf] (%p882_p5) }
 0x310   : > { %12161 = vst [vmem:[#allocation135_spill] sm:$0xff] (%p882_p5), %v9226_v7  ;;  %v9251_v7 = vld [vmem:[%s11575_s4 + $0x298] sm:$0xf] (%p882_p5) }
 0x311   : > { %12166 = vst [vmem:[#allocation140_spill] sm:$0xff] (%p882_p5), %v9251_v7  ;;  %v9276_v7 = vld [vmem:[%s11575_s4 + $0x2ac] sm:$0xf] (%p882_p5) }
 0x312   : > { %12171 = vst [vmem:[#allocation145_spill] sm:$0xff] (%p882_p5), %v9276_v7  ;;  %v9301_v7 = vld [vmem:[%s11575_s4 + $0x2c0] sm:$0xf] (%p882_p5) }
 0x313   : >> { %v6128_v10 = vpop.f32.mrf.mxu0  ;;  %12176 = vst [vmem:[#allocation150_spill] sm:$0xff] (%p882_p5), %v9301_v7  ;;  %v9326_v7 = vld [vmem:[%s11575_s4 + $0x2d4] sm:$0xf] (%p882_p5) }
 0x314   : >> { %v6150_v6 = vpop.f32.mrf.mxu1  ;;  %12181 = vst [vmem:[#allocation155_spill] sm:$0xff] (%p882_p5), %v9326_v7  ;;  %v9351_v7 = vld [vmem:[%s11575_s4 + $0x2e8] sm:$0xf] (%p882_p5) }
 0x315   : >> { %v6129_v22 = vpop.f32.mrf.mxu0  ;;  %12186 = vst [vmem:[#allocation160_spill] sm:$0xff] (%p882_p5), %v9351_v7  ;;  %v9376_v7 = vld [vmem:[%s11575_s4 + $0x2fc] sm:$0xf] (%p882_p5) }
 0x316   : >> { %v6151_v12 = vpop.f32.mrf.mxu1  ;;  %v6130_v15 = vadd.f32 %v6129_v22, %v6128_v10  ;;  %v8426_v10 = vld [vmem:[%s11575_s4 + $0x4] sm:$0xf] (%p882_p5)  ;;  %v8611_v22 = vld [vmem:[%s11575_s4 + $0x98] sm:$0xf] (%p882_p5)  ;;  %12191 = vst [vmem:[#allocation165_spill] sm:$0xff] (%p882_p5), %v9376_v7 }
 0x317   : >> { %v6131_v21 = vpop.f32.mrf.mxu0  ;;  %v6152_v19 = vadd.f32 %v6151_v12, %v6150_v6  ;;  %12036 = vst [vmem:[#allocation10_spill] sm:$0xff] (%p882_p5), %v8426_v10  ;;  %v8431_v6 = vld [vmem:[%s11575_s4 + $0x8] sm:$0xf] (%p882_p5)  ;;  %12041 = vst [vmem:[#allocation15_spill] sm:$0xff] (%p882_p5), %v8611_v22  ;;  %v8616_v12 = vld [vmem:[%s11575_s4 + $0x9c] sm:$0xf] (%p882_p5) }
 0x318   : >> { %v6153_v16 = vpop.f32.mrf.mxu1  ;;  %v2059_v24 = vadd.f32 %v6130_v15, %v2019_v0  ;;  %12037 = vst [vmem:[#allocation11_spill] sm:$0xff] (%p882_p5), %v8431_v6  ;;  %12042 = vst [vmem:[#allocation16_spill] sm:$0xff] (%p882_p5), %v8616_v12  ;;  %v8621_v0 = vld [vmem:[%s11575_s4 + $0xa0] sm:$0xf] (%p882_p5)  ;;  %v8626_v15 = vld [vmem:[%s11575_s4 + $0xa4] sm:$0xf] (%p882_p5) }
 0x319   : >> { %v6132_v18 = vpop.f32.mrf.mxu0  ;;  %12043 = vst [vmem:[#allocation17_spill] sm:$0xff] (%p882_p5), %v8621_v0  ;;  %12044 = vst [vmem:[#allocation18_spill] sm:$0xff] (%p882_p5), %v8626_v15  ;;  %v8631_v21 = vld [vmem:[%s11575_s4 + $0xa8] sm:$0xf] (%p882_p5)  ;;  %v8636_v16 = vld [vmem:[%s11575_s4 + $0xac] sm:$0xf] (%p882_p5) }
 0x31a   : >> { %v6154_v45 = vpop.f32.mrf.mxu1  ;;  %v2099_v9 = vadd.f32 %v6152_v19, %v2059_v24  ;;  %12045 = vst [vmem:[#allocation19_spill] sm:$0xff] (%p882_p5), %v8631_v21  ;;  %12046 = vst [vmem:[#allocation20_spill] sm:$0xff] (%p882_p5), %v8636_v16  ;;  %v8641_v19 = vld [vmem:[%s11575_s4 + $0xb0] sm:$0xf] (%p882_p5)  ;;  %v8646_v18 = vld [vmem:[%s11575_s4 + $0xb4] sm:$0xf] (%p882_p5) }
 0x31b   : > { %12047 = vst [vmem:[#allocation21_spill] sm:$0xff] (%p882_p5), %v8641_v19  ;;  %12048 = vst [vmem:[#allocation22_spill] sm:$0xff] (%p882_p5), %v8646_v18  ;;  %v8651_v45 = vld [vmem:[%s11575_s4 + $0xb8] sm:$0xf] (%p882_p5)  ;;  %v8756_v10 = vld [vmem:[%s11575_s4 + $0x10c] sm:$0xf] (%p882_p5) }
 0x31c   : >> { %v2105_v44 = vmul.f32 0.2, %v2099_v9  ;;  %vm2104_vm6 = vcmp.gt.f32.partialorder %v2099_v9, 0.0  ;;  %12067 = vst [vmem:[#allocation41_spill] sm:$0xff] (%p882_p5), %v8756_v10  ;;  %v8781_v10 = vld [vmem:[%s11575_s4 + $0x120] sm:$0xf] (%p882_p5) }
 0x31d   : > { %12072 = vst [vmem:[#allocation46_spill] sm:$0xff] (%p882_p5), %v8781_v10  ;;  %v8806_v10 = vld [vmem:[%s11575_s4 + $0x134] sm:$0xf] (%p882_p5)  ;;  %v9401_v7 = vld [vmem:[%s11575_s4 + $0x310] sm:$0xf] (%p882_p5) }
 0x31e   : >> { %v2106_v11 = vsel %vm2104_vm6, %v2099_v9, %v2105_v44  ;;  %v8656_v9 = vld [vmem:[%s11575_s4 + $0xbc] sm:$0xf] (%p882_p5)  ;;  %v8661_v44 = vld [vmem:[%s11575_s4 + $0xc0] sm:$0xf] (%p882_p5)  ;;  %12077 = vst [vmem:[#allocation51_spill] sm:$0xff] (%p882_p5), %v8806_v10  ;;  %12196 = vst [vmem:[#allocation170_spill] sm:$0xff] (%p882_p5), %v9401_v7 }
 0x31f   : >> { %6541 = vmatpush3.msra.mxu0 %v2106_v11  ;;  %6546 = vmatpush3.msra.mxu1 %v2106_v11  ;;  %12049 = vst [vmem:[#allocation23_spill] sm:$0xff] (%p882_p5), %v8656_v9  ;;  %12050 = vst [vmem:[#allocation24_spill] sm:$0xff] (%p882_p5), %v8661_v44  ;;  %v8666_v11 = vld [vmem:[%s11575_s4 + $0xc4] sm:$0xf] (%p882_p5)  ;;  %v8761_v44 = vld [vmem:[%s11575_s4 + $0x110] sm:$0xf] (%p882_p5) }
 0x320   : >> { %6543 = vmatmul.mubr.msk.f32.vlgmr.msra.gmra.mxu0 %vm2107_vm8, %v12032_v5  ;;  %6548 = vmatmul.mubr.msk.f32.vlgmr.msra.gmra.mxu1 %vm2107_vm8, %v12033_v3  ;;  %12051 = vst [vmem:[#allocation25_spill] sm:$0xff] (%p882_p5), %v8666_v11  ;;  %v8671_v5 = vld [vmem:[%s11575_s4 + $0xc8] sm:$0xf] (%p882_p5)  ;;  %v8676_v3 = vld [vmem:[%s11575_s4 + $0xcc] sm:$0xf] (%p882_p5)  ;;  %12068 = vst [vmem:[#allocation42_spill] sm:$0xff] (%p882_p5), %v8761_v44 }
 0x321   : > { %12052 = vst [vmem:[#allocation26_spill] sm:$0xff] (%p882_p5), %v8671_v5  ;;  %12053 = vst [vmem:[#allocation27_spill] sm:$0xff] (%p882_p5), %v8676_v3  ;;  %v8786_v44 = vld [vmem:[%s11575_s4 + $0x124] sm:$0xf] (%p882_p5)  ;;  %v8831_v10 = vld [vmem:[%s11575_s4 + $0x148] sm:$0xf] (%p882_p5) }
 0x322   : > { %12073 = vst [vmem:[#allocation47_spill] sm:$0xff] (%p882_p5), %v8786_v44  ;;  %v8811_v44 = vld [vmem:[%s11575_s4 + $0x138] sm:$0xf] (%p882_p5)  ;;  %12082 = vst [vmem:[#allocation56_spill] sm:$0xff] (%p882_p5), %v8831_v10  ;;  %v8856_v10 = vld [vmem:[%s11575_s4 + $0x15c] sm:$0xf] (%p882_p5) }
 0x323   : > { %12078 = vst [vmem:[#allocation52_spill] sm:$0xff] (%p882_p5), %v8811_v44  ;;  %v8836_v44 = vld [vmem:[%s11575_s4 + $0x14c] sm:$0xf] (%p882_p5)  ;;  %12087 = vst [vmem:[#allocation61_spill] sm:$0xff] (%p882_p5), %v8856_v10  ;;  %v8881_v10 = vld [vmem:[%s11575_s4 + $0x170] sm:$0xf] (%p882_p5) }
 0x324   : > { %12083 = vst [vmem:[#allocation57_spill] sm:$0xff] (%p882_p5), %v8836_v44  ;;  %v8861_v44 = vld [vmem:[%s11575_s4 + $0x160] sm:$0xf] (%p882_p5)  ;;  %12092 = vst [vmem:[#allocation66_spill] sm:$0xff] (%p882_p5), %v8881_v10  ;;  %v8906_v10 = vld [vmem:[%s11575_s4 + $0x184] sm:$0xf] (%p882_p5) }
 0x325   : > { %12088 = vst [vmem:[#allocation62_spill] sm:$0xff] (%p882_p5), %v8861_v44  ;;  %v8886_v44 = vld [vmem:[%s11575_s4 + $0x174] sm:$0xf] (%p882_p5)  ;;  %12097 = vst [vmem:[#allocation71_spill] sm:$0xff] (%p882_p5), %v8906_v10  ;;  %v8931_v10 = vld [vmem:[%s11575_s4 + $0x198] sm:$0xf] (%p882_p5) }
 0x326   : > { %12093 = vst [vmem:[#allocation67_spill] sm:$0xff] (%p882_p5), %v8886_v44  ;;  %v8911_v44 = vld [vmem:[%s11575_s4 + $0x188] sm:$0xf] (%p882_p5)  ;;  %12102 = vst [vmem:[#allocation76_spill] sm:$0xff] (%p882_p5), %v8931_v10  ;;  %v8956_v10 = vld [vmem:[%s11575_s4 + $0x1ac] sm:$0xf] (%p882_p5) }
 0x327   : > { %12098 = vst [vmem:[#allocation72_spill] sm:$0xff] (%p882_p5), %v8911_v44  ;;  %v8936_v44 = vld [vmem:[%s11575_s4 + $0x19c] sm:$0xf] (%p882_p5)  ;;  %12107 = vst [vmem:[#allocation81_spill] sm:$0xff] (%p882_p5), %v8956_v10  ;;  %v8981_v10 = vld [vmem:[%s11575_s4 + $0x1c0] sm:$0xf] (%p882_p5) }
 0x328   : > { %12103 = vst [vmem:[#allocation77_spill] sm:$0xff] (%p882_p5), %v8936_v44  ;;  %v8961_v44 = vld [vmem:[%s11575_s4 + $0x1b0] sm:$0xf] (%p882_p5)  ;;  %12112 = vst [vmem:[#allocation86_spill] sm:$0xff] (%p882_p5), %v8981_v10  ;;  %v9006_v10 = vld [vmem:[%s11575_s4 + $0x1d4] sm:$0xf] (%p882_p5) }
 0x329   : > { %12108 = vst [vmem:[#allocation82_spill] sm:$0xff] (%p882_p5), %v8961_v44  ;;  %v8986_v44 = vld [vmem:[%s11575_s4 + $0x1c4] sm:$0xf] (%p882_p5)  ;;  %12117 = vst [vmem:[#allocation91_spill] sm:$0xff] (%p882_p5), %v9006_v10  ;;  %v9031_v10 = vld [vmem:[%s11575_s4 + $0x1e8] sm:$0xf] (%p882_p5) }
 0x32a   : > { %12113 = vst [vmem:[#allocation87_spill] sm:$0xff] (%p882_p5), %v8986_v44  ;;  %v9011_v44 = vld [vmem:[%s11575_s4 + $0x1d8] sm:$0xf] (%p882_p5)  ;;  %12122 = vst [vmem:[#allocation96_spill] sm:$0xff] (%p882_p5), %v9031_v10  ;;  %v9056_v10 = vld [vmem:[%s11575_s4 + $0x1fc] sm:$0xf] (%p882_p5) }
 0x32b   : > { %12118 = vst [vmem:[#allocation92_spill] sm:$0xff] (%p882_p5), %v9011_v44  ;;  %v9036_v44 = vld [vmem:[%s11575_s4 + $0x1ec] sm:$0xf] (%p882_p5)  ;;  %12127 = vst [vmem:[#allocation101_spill] sm:$0xff] (%p882_p5), %v9056_v10  ;;  %v9081_v10 = vld [vmem:[%s11575_s4 + $0x210] sm:$0xf] (%p882_p5) }
 0x32c   : > { %12123 = vst [vmem:[#allocation97_spill] sm:$0xff] (%p882_p5), %v9036_v44  ;;  %v9061_v44 = vld [vmem:[%s11575_s4 + $0x200] sm:$0xf] (%p882_p5)  ;;  %12132 = vst [vmem:[#allocation106_spill] sm:$0xff] (%p882_p5), %v9081_v10  ;;  %v9106_v10 = vld [vmem:[%s11575_s4 + $0x224] sm:$0xf] (%p882_p5) }
 0x32d   : > { %12128 = vst [vmem:[#allocation102_spill] sm:$0xff] (%p882_p5), %v9061_v44  ;;  %v9086_v44 = vld [vmem:[%s11575_s4 + $0x214] sm:$0xf] (%p882_p5)  ;;  %12137 = vst [vmem:[#allocation111_spill] sm:$0xff] (%p882_p5), %v9106_v10  ;;  %v9131_v10 = vld [vmem:[%s11575_s4 + $0x238] sm:$0xf] (%p882_p5) }
 0x32e   : > { %12133 = vst [vmem:[#allocation107_spill] sm:$0xff] (%p882_p5), %v9086_v44  ;;  %v9111_v44 = vld [vmem:[%s11575_s4 + $0x228] sm:$0xf] (%p882_p5)  ;;  %12142 = vst [vmem:[#allocation116_spill] sm:$0xff] (%p882_p5), %v9131_v10  ;;  %v9156_v10 = vld [vmem:[%s11575_s4 + $0x24c] sm:$0xf] (%p882_p5) }
 0x32f   : > { %12138 = vst [vmem:[#allocation112_spill] sm:$0xff] (%p882_p5), %v9111_v44  ;;  %v9136_v44 = vld [vmem:[%s11575_s4 + $0x23c] sm:$0xf] (%p882_p5)  ;;  %12147 = vst [vmem:[#allocation121_spill] sm:$0xff] (%p882_p5), %v9156_v10  ;;  %v9181_v10 = vld [vmem:[%s11575_s4 + $0x260] sm:$0xf] (%p882_p5) }
 0x330   : > { %12143 = vst [vmem:[#allocation117_spill] sm:$0xff] (%p882_p5), %v9136_v44  ;;  %v9161_v44 = vld [vmem:[%s11575_s4 + $0x250] sm:$0xf] (%p882_p5)  ;;  %12152 = vst [vmem:[#allocation126_spill] sm:$0xff] (%p882_p5), %v9181_v10  ;;  %v9206_v10 = vld [vmem:[%s11575_s4 + $0x274] sm:$0xf] (%p882_p5) }
 0x331   : > { %12148 = vst [vmem:[#allocation122_spill] sm:$0xff] (%p882_p5), %v9161_v44  ;;  %v9186_v44 = vld [vmem:[%s11575_s4 + $0x264] sm:$0xf] (%p882_p5)  ;;  %12157 = vst [vmem:[#allocation131_spill] sm:$0xff] (%p882_p5), %v9206_v10  ;;  %v9231_v10 = vld [vmem:[%s11575_s4 + $0x288] sm:$0xf] (%p882_p5) }
 0x332   : > { %12153 = vst [vmem:[#allocation127_spill] sm:$0xff] (%p882_p5), %v9186_v44  ;;  %v9211_v44 = vld [vmem:[%s11575_s4 + $0x278] sm:$0xf] (%p882_p5)  ;;  %12162 = vst [vmem:[#allocation136_spill] sm:$0xff] (%p882_p5), %v9231_v10  ;;  %v9256_v10 = vld [vmem:[%s11575_s4 + $0x29c] sm:$0xf] (%p882_p5) }
 0x333   : > { %12158 = vst [vmem:[#allocation132_spill] sm:$0xff] (%p882_p5), %v9211_v44  ;;  %v9236_v44 = vld [vmem:[%s11575_s4 + $0x28c] sm:$0xf] (%p882_p5)  ;;  %12167 = vst [vmem:[#allocation141_spill] sm:$0xff] (%p882_p5), %v9256_v10  ;;  %v9281_v10 = vld [vmem:[%s11575_s4 + $0x2b0] sm:$0xf] (%p882_p5) }
 0x334   : > { %12163 = vst [vmem:[#allocation137_spill] sm:$0xff] (%p882_p5), %v9236_v44  ;;  %v9261_v44 = vld [vmem:[%s11575_s4 + $0x2a0] sm:$0xf] (%p882_p5)  ;;  %12172 = vst [vmem:[#allocation146_spill] sm:$0xff] (%p882_p5), %v9281_v10  ;;  %v9306_v10 = vld [vmem:[%s11575_s4 + $0x2c4] sm:$0xf] (%p882_p5) }
 0x335   : > { %12168 = vst [vmem:[#allocation142_spill] sm:$0xff] (%p882_p5), %v9261_v44  ;;  %v9286_v44 = vld [vmem:[%s11575_s4 + $0x2b4] sm:$0xf] (%p882_p5)  ;;  %12177 = vst [vmem:[#allocation151_spill] sm:$0xff] (%p882_p5), %v9306_v10  ;;  %v9331_v10 = vld [vmem:[%s11575_s4 + $0x2d8] sm:$0xf] (%p882_p5) }
 0x336   : > { %12173 = vst [vmem:[#allocation147_spill] sm:$0xff] (%p882_p5), %v9286_v44  ;;  %v9311_v44 = vld [vmem:[%s11575_s4 + $0x2c8] sm:$0xf] (%p882_p5)  ;;  %12182 = vst [vmem:[#allocation156_spill] sm:$0xff] (%p882_p5), %v9331_v10  ;;  %v9356_v10 = vld [vmem:[%s11575_s4 + $0x2ec] sm:$0xf] (%p882_p5) }
 0x337   : > { %12178 = vst [vmem:[#allocation152_spill] sm:$0xff] (%p882_p5), %v9311_v44  ;;  %v9336_v44 = vld [vmem:[%s11575_s4 + $0x2dc] sm:$0xf] (%p882_p5)  ;;  %12187 = vst [vmem:[#allocation161_spill] sm:$0xff] (%p882_p5), %v9356_v10  ;;  %v9381_v10 = vld [vmem:[%s11575_s4 + $0x300] sm:$0xf] (%p882_p5) }
 0x338   : > { %12183 = vst [vmem:[#allocation157_spill] sm:$0xff] (%p882_p5), %v9336_v44  ;;  %v9361_v44 = vld [vmem:[%s11575_s4 + $0x2f0] sm:$0xf] (%p882_p5)  ;;  %12192 = vst [vmem:[#allocation166_spill] sm:$0xff] (%p882_p5), %v9381_v10  ;;  %v9406_v10 = vld [vmem:[%s11575_s4 + $0x314] sm:$0xf] (%p882_p5) }
 0x339   : > { %12188 = vst [vmem:[#allocation162_spill] sm:$0xff] (%p882_p5), %v9361_v44  ;;  %v9386_v44 = vld [vmem:[%s11575_s4 + $0x304] sm:$0xf] (%p882_p5)  ;;  %12197 = vst [vmem:[#allocation171_spill] sm:$0xff] (%p882_p5), %v9406_v10  ;;  %v9431_v10 = vld [vmem:[%s11575_s4 + $0x328] sm:$0xf] (%p882_p5) }
 0x33a   : > { %12193 = vst [vmem:[#allocation167_spill] sm:$0xff] (%p882_p5), %v9386_v44  ;;  %v9411_v44 = vld [vmem:[%s11575_s4 + $0x318] sm:$0xf] (%p882_p5)  ;;  %v9426_v7 = vld [vmem:[%s11575_s4 + $0x324] sm:$0xf] (%p882_p5)  ;;  %12202 = vst [vmem:[#allocation176_spill] sm:$0xff] (%p882_p5), %v9431_v10 }
 0x33b   : > { %12198 = vst [vmem:[#allocation172_spill] sm:$0xff] (%p882_p5), %v9411_v44  ;;  %12201 = vst [vmem:[#allocation175_spill] sm:$0xff] (%p882_p5), %v9426_v7  ;;  %v9436_v44 = vld [vmem:[%s11575_s4 + $0x32c] sm:$0xf] (%p882_p5)  ;;  %v9451_v7 = vld [vmem:[%s11575_s4 + $0x338] sm:$0xf] (%p882_p5) }
 0x33c   : > { %12203 = vst [vmem:[#allocation177_spill] sm:$0xff] (%p882_p5), %v9436_v44  ;;  %12206 = vst [vmem:[#allocation180_spill] sm:$0xff] (%p882_p5), %v9451_v7  ;;  %v9456_v10 = vld [vmem:[%s11575_s4 + $0x33c] sm:$0xf] (%p882_p5)  ;;  %v9461_v44 = vld [vmem:[%s11575_s4 + $0x340] sm:$0xf] (%p882_p5) }
 0x33d   : > { %12207 = vst [vmem:[#allocation181_spill] sm:$0xff] (%p882_p5), %v9456_v10  ;;  %12208 = vst [vmem:[#allocation182_spill] sm:$0xff] (%p882_p5), %v9461_v44  ;;  %v9476_v7 = vld [vmem:[%s11575_s4 + $0x34c] sm:$0xf] (%p882_p5)  ;;  %v9481_v10 = vld [vmem:[%s11575_s4 + $0x350] sm:$0xf] (%p882_p5) }
 0x33e   : > { %12211 = vst [vmem:[#allocation185_spill] sm:$0xff] (%p882_p5), %v9476_v7  ;;  %12212 = vst [vmem:[#allocation186_spill] sm:$0xff] (%p882_p5), %v9481_v10  ;;  %v9486_v44 = vld [vmem:[%s11575_s4 + $0x354] sm:$0xf] (%p882_p5)  ;;  %v9501_v7 = vld [vmem:[%s11575_s4 + $0x360] sm:$0xf] (%p882_p5) }
 0x33f   : > { %12213 = vst [vmem:[#allocation187_spill] sm:$0xff] (%p882_p5), %v9486_v44  ;;  %12216 = vst [vmem:[#allocation190_spill] sm:$0xff] (%p882_p5), %v9501_v7  ;;  %v9506_v10 = vld [vmem:[%s11575_s4 + $0x364] sm:$0xf] (%p882_p5)  ;;  %v9511_v44 = vld [vmem:[%s11575_s4 + $0x368] sm:$0xf] (%p882_p5) }
 0x340   : > { %12217 = vst [vmem:[#allocation191_spill] sm:$0xff] (%p882_p5), %v9506_v10  ;;  %12218 = vst [vmem:[#allocation192_spill] sm:$0xff] (%p882_p5), %v9511_v44  ;;  %v9526_v7 = vld [vmem:[%s11575_s4 + $0x374] sm:$0xf] (%p882_p5)  ;;  %v9531_v10 = vld [vmem:[%s11575_s4 + $0x378] sm:$0xf] (%p882_p5) }
 0x341   : > { %12221 = vst [vmem:[#allocation195_spill] sm:$0xff] (%p882_p5), %v9526_v7  ;;  %12222 = vst [vmem:[#allocation196_spill] sm:$0xff] (%p882_p5), %v9531_v10  ;;  %v9536_v44 = vld [vmem:[%s11575_s4 + $0x37c] sm:$0xf] (%p882_p5)  ;;  %v9551_v7 = vld [vmem:[%s11575_s4 + $0x388] sm:$0xf] (%p882_p5) }
 0x342   : > { %12223 = vst [vmem:[#allocation197_spill] sm:$0xff] (%p882_p5), %v9536_v44  ;;  %12226 = vst [vmem:[#allocation200_spill] sm:$0xff] (%p882_p5), %v9551_v7  ;;  %v9556_v10 = vld [vmem:[%s11575_s4 + $0x38c] sm:$0xf] (%p882_p5)  ;;  %v9561_v44 = vld [vmem:[%s11575_s4 + $0x390] sm:$0xf] (%p882_p5) }
 0x343   : > { %12227 = vst [vmem:[#allocation201_spill] sm:$0xff] (%p882_p5), %v9556_v10  ;;  %12228 = vst [vmem:[#allocation202_spill] sm:$0xff] (%p882_p5), %v9561_v44  ;;  %v9576_v7 = vld [vmem:[%s11575_s4 + $0x39c] sm:$0xf] (%p882_p5)  ;;  %v9581_v10 = vld [vmem:[%s11575_s4 + $0x3a0] sm:$0xf] (%p882_p5) }
 0x344   : > { %12231 = vst [vmem:[#allocation205_spill] sm:$0xff] (%p882_p5), %v9576_v7  ;;  %12232 = vst [vmem:[#allocation206_spill] sm:$0xff] (%p882_p5), %v9581_v10  ;;  %v9586_v44 = vld [vmem:[%s11575_s4 + $0x3a4] sm:$0xf] (%p882_p5)  ;;  %v9601_v7 = vld [vmem:[%s11575_s4 + $0x3b0] sm:$0xf] (%p882_p5) }
 0x345   : > { %12233 = vst [vmem:[#allocation207_spill] sm:$0xff] (%p882_p5), %v9586_v44  ;;  %12236 = vst [vmem:[#allocation210_spill] sm:$0xff] (%p882_p5), %v9601_v7  ;;  %v9606_v10 = vld [vmem:[%s11575_s4 + $0x3b4] sm:$0xf] (%p882_p5)  ;;  %v9611_v44 = vld [vmem:[%s11575_s4 + $0x3b8] sm:$0xf] (%p882_p5) }
 0x346   : > { %12237 = vst [vmem:[#allocation211_spill] sm:$0xff] (%p882_p5), %v9606_v10  ;;  %12238 = vst [vmem:[#allocation212_spill] sm:$0xff] (%p882_p5), %v9611_v44  ;;  %v9626_v7 = vld [vmem:[%s11575_s4 + $0x3c4] sm:$0xf] (%p882_p5)  ;;  %v9631_v10 = vld [vmem:[%s11575_s4 + $0x3c8] sm:$0xf] (%p882_p5) }
 0x347   : > { %12241 = vst [vmem:[#allocation215_spill] sm:$0xff] (%p882_p5), %v9626_v7  ;;  %12242 = vst [vmem:[#allocation216_spill] sm:$0xff] (%p882_p5), %v9631_v10  ;;  %v9636_v44 = vld [vmem:[%s11575_s4 + $0x3cc] sm:$0xf] (%p882_p5)  ;;  %v9651_v7 = vld [vmem:[%s11575_s4 + $0x3d8] sm:$0xf] (%p882_p5) }
 0x348   : > { %12243 = vst [vmem:[#allocation217_spill] sm:$0xff] (%p882_p5), %v9636_v44  ;;  %12246 = vst [vmem:[#allocation220_spill] sm:$0xff] (%p882_p5), %v9651_v7  ;;  %v9656_v10 = vld [vmem:[%s11575_s4 + $0x3dc] sm:$0xf] (%p882_p5)  ;;  %v9661_v44 = vld [vmem:[%s11575_s4 + $0x3e0] sm:$0xf] (%p882_p5) }
 0x349   : > { %12247 = vst [vmem:[#allocation221_spill] sm:$0xff] (%p882_p5), %v9656_v10  ;;  %12248 = vst [vmem:[#allocation222_spill] sm:$0xff] (%p882_p5), %v9661_v44  ;;  %v9676_v7 = vld [vmem:[%s11575_s4 + $0x3ec] sm:$0xf] (%p882_p5)  ;;  %v9681_v10 = vld [vmem:[%s11575_s4 + $0x3f0] sm:$0xf] (%p882_p5) }
 0x34a   : > { %12251 = vst [vmem:[#allocation225_spill] sm:$0xff] (%p882_p5), %v9676_v7  ;;  %12252 = vst [vmem:[#allocation226_spill] sm:$0xff] (%p882_p5), %v9681_v10  ;;  %v9686_v44 = vld [vmem:[%s11575_s4 + $0x3f4] sm:$0xf] (%p882_p5) }
 0x34b   : > { %12253 = vst [vmem:[#allocation227_spill] sm:$0xff] (%p882_p5), %v9686_v44 }
 0x3e0   : >> { %v2177_v1 = vpop.f32.mrf.mxu0  ;;  %v2250_v17 = vpop.f32.mrf.mxu1 }
 0x3e1   : >> { %v5965_v32 = vpack.c.bf16 %v2250_v17, %v2177_v1  ;;  %v8681_v1 = vld [vmem:[%s11575_s4 + $0xd0] sm:$0xf] (%p882_p5)  ;;  %v8686_v17 = vld [vmem:[%s11575_s4 + $0xd4] sm:$0xf] (%p882_p5) }
 0x3e2   : >> { %v6544_v24 = vpop.f32.mrf.mxu0  ;;  %v6549_v31 = vpop.f32.mrf.mxu1  ;;  %12054 = vst [vmem:[#allocation28_spill] sm:$0xff] (%p882_p5), %v8681_v1  ;;  %12055 = vst [vmem:[#allocation29_spill] sm:$0xff] (%p882_p5), %v8686_v17 }
 0x3e3   : >> { %v2263_v4 = vshrl.u32 %v5965_v32, 16  ;;  %v2266_v23 = vshll.u32 %v5965_v32, 16  ;;  %v8691_v32 = vld [vmem:[%s11575_s4 + $0xd8] sm:$0xf] (%p882_p5)  ;;  %v8696_v24 = vld [vmem:[%s11575_s4 + $0xdc] sm:$0xf] (%p882_p5) }
 0x3e4   : > { %12056 = vst [vmem:[#allocation30_spill] sm:$0xff] (%p882_p5), %v8696_v24  ;;  %v8701_v31 = vld [vmem:[%s11575_s4 + $0xe0] sm:$0xf] (%p882_p5) }
 0x3e5   : >> { %v2265_v2 = vrot.slane %v2263_v4, 7  ;;  %v8706_v4 = vld [vmem:[%s11575_s4 + $0xe4] sm:$0xf] (%p882_p5) }
 0x3e6   : > { %884 = sbr.rel (!%p882_p5) target bundleno = 464 (0x1d0), region = 125  ;;  %12057 = vst [vmem:[#allocation31_spill] sm:$0xff] (%p882_p5), %v8706_v4 }
 0x3e7   : >> { %v2268_v8 = vor.u32 %v2266_v23, %v2265_v2  ;;  %v8711_v2 = vld [vmem:[%s11575_s4 + $0xe8] sm:$0xf] (%p882_p5)  ;;  %v8716_v23 = vld [vmem:[%s11575_s4 + $0xec] sm:$0xf] (%p882_p5) }
 0x3e8   : > { %12058 = vst [vmem:[#allocation32_spill] sm:$0xff] (%p882_p5), %v8711_v2  ;;  %12059 = vst [vmem:[#allocation33_spill] sm:$0xff] (%p882_p5), %v8716_v23 }
 0x3e9   : >> { %v2281_v14 = vsel %vm2279_vm15, %v2268_v8, %v5672_v20  ;;  %v8721_v20 = vld [vmem:[%s11575_s4 + $0xf0] sm:$0xf] (%p882_p5)  ;;  %v8726_v8 = vld [vmem:[%s11575_s4 + $0xf4] sm:$0xf] (%p882_p5) }
 0x3ea   : >> { %5673 = vst [vmem:[%s5443_s21 + $0x8] sm:$0x77] %v2281_v14  ;;  %12060 = vst [vmem:[#allocation34_spill] sm:$0xff] (%p882_p5), %v8721_v20  ;;  %v8731_v14 = vld [vmem:[%s11575_s4 + $0xf8] sm:$0xf] (%p882_p5) }
 0x3eb   : > { %12061 = vst [vmem:[#allocation35_spill] sm:$0xff] %v8726_v8  ;;  %12062 = vst [vmem:[#allocation36_spill] sm:$0xff] %v8731_v14 }
 0x3ec LB: >> { %v5701_v7 = vcombine.low %v8571_v35, %v8576_v36  ;;  %v12256_v13 = vld [vmem:[#allocation37_spill] sm:$0xff]  ;;  %v5693_v44 = vcombine.low %v8491_v56, %v8496_v57  ;;  %v12258_v9 = vld [vmem:[#allocation23_spill] sm:$0xff]  ;;  %v12259_v33 = vld [vmem:[#allocation12_spill] sm:$0xff]  ;;  %s5967_s12 = sshll.u32 %s6664_s11, 4  ;;  %vm6677_vm0 = vmmov 0   ;;  %vm3747_vm2 = vcmask 31744   ;;  %s6664_s11 = sphi %s9698_s11, %s2545_s11  }
 0x3ed   : >> { %v5709_v37 = vcombine.low %v8651_v45, %v12258_v9  ;;  %v5700_v38 = vcombine.low %v12259_v33, %v8566_v34  ;;  %v12262_v18 = vld [vmem:[#allocation22_spill] sm:$0xff]  ;;  %v12263_v19 = vld [vmem:[#allocation21_spill] sm:$0xff]  ;;  %v5699_v9 = vcombine.low %v8551_v29, %v8556_v30  ;;  %s9724_s13 = scalar_lea.vmem [#allocation3], %s5967_s12  ;;  %v12266_v16 = vld [vmem:[#allocation20_spill] sm:$0xff]  ;;  %vm3922_vm3 = vcmask 1041408   ;;  %s5819_s14 = sshll.u32 %s6664_s11, 2 }
 0x3ee   : >> { %6160 = vmatprep.subr.bf16.mxu0 %v5701_v7  ;;  %v12267_v21 = vld [vmem:[#allocation19_spill] sm:$0xff]  ;;  %v12269_v15 = vld [vmem:[#allocation18_spill] sm:$0xff]  ;;  %v12270_v0 = vld [vmem:[#allocation17_spill] sm:$0xff]  ;;  %vm3923_vm4 = vsmask.f32 1282  ;;  %vm3925_vm5 = vcmask 1043458  }
 0x3ef   : >> { %6161 = vmatpush3.bf16.msra.mxu0 %v5693_v44  ;;  %v12264_v23 = vld [vmem:[#allocation33_spill] sm:$0xff]  ;;  %v12265_v2 = vld [vmem:[#allocation32_spill] sm:$0xff]  ;;  %v12268_v4 = vld [vmem:[#allocation31_spill] sm:$0xff]  ;;  %vm3926_vm6 = vsmask.f32 3338  ;;  %s5448_s15 = scalar_lea.vmem [#allocation4], %s5819_s14 }
 0x3f0   : >> { %6162 = vmatprep.subr.bf16.mxu0 %v5700_v38  ;;  %v5715_v33 = vcombine.low %v12265_v2, %v12264_v23  ;;  %v5698_v38 = vcombine.low %v8541_v27, %v8546_v28  ;;  %v5714_v44 = vcombine.low %v8701_v31, %v12268_v4  ;;  %v5690_v2 = vcombine.low %v8461_v50, %v8466_v51  ;;  %v12271_v24 = vld [vmem:[#allocation30_spill] sm:$0xff]  ;;  %v12272_v12 = vld [vmem:[#allocation16_spill] sm:$0xff]  ;;  %v12273_v22 = vld [vmem:[#allocation15_spill] sm:$0xff]  ;;  %s2545_s11 = sadd.s32 1, %s6664_s11  }
 0x3f1   : >> { %v12261_v20 = vld [vmem:[#allocation34_spill] sm:$0xff]  ;;  %v2550_v7 = vld [vmem:[%s9724_s13] sm:$0x77]  ;;  %v12275_v1 = vld [vmem:[#allocation28_spill] sm:$0xff]  ;;  %p2542_p6 = scmp.ge.s32.totalorder %s2545_s11, 4  }
 0x3f2   : >> { %v12257_v14 = vld [vmem:[#allocation36_spill] sm:$0xff]  ;;  %v12260_v8 = vld [vmem:[#allocation35_spill] sm:$0xff]  ;;  %v12274_v17 = vld [vmem:[#allocation29_spill] sm:$0xff]  ;;  %s11274_s26 = smov (%p2542_p6), 0  }
 0x3f3   : >> { %v5717_v10 = vcombine.low %v12257_v14, %v12256_v13  ;;  %v5716_v11 = vcombine.low %v12261_v20, %v12260_v8  ;;  %v5692_v13 = vcombine.low %v8481_v54, %v8486_v55  ;;  %v5708_v14 = vcombine.low %v12263_v19, %v12262_v18  ;;  %v12276_v3 = vld [vmem:[#allocation27_spill] sm:$0xff]  ;;  %v12277_v5 = vld [vmem:[#allocation26_spill] sm:$0xff]  ;;  %v12287_v18 = vld [vmem:[#allocation101_spill] sm:$0xff] }
 0x3f4   : >> { %v12278_v6 = vld [vmem:[#allocation11_spill] sm:$0xff]  ;;  %v12288_v19 = vld [vmem:[#allocation100_spill] sm:$0xff]  ;;  %vm3924_vm8 = vmand %vm3922_vm3, %vm3923_vm4 }
 0x3f5   : >> { %6182 = vmatprep.subr.bf16.mxu1 %v5717_v10  ;;  %6163 = vmatpush3.bf16.msra.mxu0 %v5692_v13  ;;  %v5691_v10 = vcombine.low %v8471_v52, %v8476_v53  ;;  %v5706_v13 = vcombine.low %v12270_v0, %v12269_v15  ;;  %v5749_v20 = vcombine.low %v12288_v19, %v12287_v18  ;;  %vm3927_vm9 = vmand %vm3925_vm5, %vm3926_vm6  ;;  %v10042_v50 = vld [vmem:[%s11577_s6 + $0x24] sm:$0xf] (%p2542_p6)  ;;  %v10047_v51 = vld [vmem:[%s11577_s6 + $0x28] sm:$0xf] (%p2542_p6) }
 0x3f6   : >> { %6183 = vmatpush3.bf16.msra.mxu1 %v5709_v37  ;;  %v5707_v37 = vcombine.low %v12267_v21, %v12266_v16  ;;  %6164 = vmatprep.subr.bf16.mxu0 %v5699_v9  ;;  %v5713_v9 = vcombine.low %v8691_v32, %v12271_v24  ;;  %vm3928_vm10 = vmor %vm3927_vm9, %vm3924_vm8  ;;  %v10052_v52 = vld [vmem:[%s11577_s6 + $0x2c] sm:$0xf] (%p2542_p6)  ;;  %v10057_v53 = vld [vmem:[%s11577_s6 + $0x30] sm:$0xf] (%p2542_p6) }
 0x3f7   : >> { %6184 = vmatprep.subr.bf16.mxu1 %v5716_v11  ;;  %v5678_v11 = vcombine.low %v2550_v7, %v2550_v7  ;;  %v10062_v54 = vld [vmem:[%s11577_s6 + $0x34] sm:$0xf] (%p2542_p6)  ;;  %v10067_v55 = vld [vmem:[%s11577_s6 + $0x38] sm:$0xf] (%p2542_p6)  ;;  %v10072_v56 = vld [vmem:[%s11577_s6 + $0x3c] sm:$0xf] (%p2542_p6) }
 0x3f8   : > { %v10077_v57 = vld [vmem:[%s11577_s6 + $0x40] sm:$0xf] (%p2542_p6)  ;;  %v10122_v27 = vld [vmem:[%s11577_s6 + $0x64] sm:$0xf] (%p2542_p6)  ;;  %v10127_v28 = vld [vmem:[%s11577_s6 + $0x68] sm:$0xf] (%p2542_p6) }
 0x3f9   : >> { %6165 = vmatpush3.bf16.msra.mxu0 %v5691_v10  ;;  %v2563_v8 = vshll.u32 %v5678_v11, 16  ;;  %v2576_v16 = vrot.slane %v5678_v11, 1  ;;  %v5689_v10 = vcombine.low %v8451_v48, %v8456_v49  ;;  %v10032_v48 = vld [vmem:[%s11577_s6 + $0x1c] sm:$0xf] (%p2542_p6)  ;;  %v10037_v49 = vld [vmem:[%s11577_s6 + $0x20] sm:$0xf] (%p2542_p6) }
 0x3fa   : >> { %6185 = vmatpush3.bf16.msra.mxu1 %v5708_v14  ;;  %v2561_v14 = vshrl.u32 %v5678_v11, 16  ;;  %6166 = vmatprep.subr.bf16.mxu0 %v5698_v38  ;;  %v5696_v38 = vcombine.low %v8521_v62, %v8526_v63  ;;  %v10102_v62 = vld [vmem:[%s11577_s6 + $0x54] sm:$0xf] (%p2542_p6)  ;;  %v10107_v63 = vld [vmem:[%s11577_s6 + $0x58] sm:$0xf] (%p2542_p6) }
 0x3fb   : >> { %6186 = vmatprep.subr.bf16.mxu1 %v5715_v33  ;;  %v5697_v33 = vcombine.low %v8531_v25, %v8536_v26  ;;  %v2565_v4 = vrot.slane %v2563_v8, 1  ;;  %3496 = vmatprep.mubr.bf16.mxu1 %v2576_v16  ;;  %v5677_v8 = vcombine.high %v2550_v7, %v2550_v7  ;;  %v9752_v16 = vld [vmem:[%s9724_s13 + $0x8] sm:$0x77]  ;;  %v10112_v25 = vld [vmem:[%s11577_s6 + $0x5c] sm:$0xf] (%p2542_p6) }
 0x3fc   : >> { %v5680_v7 = vcombine.low %v9752_v16, %v9752_v16  ;;  %v10117_v26 = vld [vmem:[%s11577_s6 + $0x60] sm:$0xf] (%p2542_p6)  ;;  %v10132_v29 = vld [vmem:[%s11577_s6 + $0x6c] sm:$0xf] (%p2542_p6)  ;;  %v10137_v30 = vld [vmem:[%s11577_s6 + $0x70] sm:$0xf] (%p2542_p6) }
 0x3fd   : >> { %6167 = vmatpush3.bf16.msra.mxu0 %v5690_v2  ;;  %v2566_v11 = vor.u32 %v2565_v4, %v2561_v14  ;;  %v5688_v2 = vcombine.low %v8441_v46, %v8446_v47  ;;  %v5704_v4 = vcombine.low %v8601_v41, %v8606_v42  ;;  %v5711_v14 = vcombine.low %v12277_v5, %v12276_v3  ;;  %v10022_v46 = vld [vmem:[%s11577_s6 + $0x14] sm:$0xf] (%p2542_p6)  ;;  %v10027_v47 = vld [vmem:[%s11577_s6 + $0x18] sm:$0xf] (%p2542_p6)  ;;  %v10152_v36 = vld [vmem:[%s11577_s6 + $0x7c] sm:$0xf] (%p2542_p6) }
 0x3fe   : >> { %6187 = vmatpush3.bf16.msra.mxu1 %v5707_v37  ;;  %v5705_v37 = vcombine.low %v12273_v22, %v12272_v12  ;;  %6168 = vmatprep.subr.bf16.mxu0 %v5697_v33  ;;  %v2571_v33 = vshll.u32 %v5677_v8, 16  ;;  %v2587_v0 = vshll.u32 %v5680_v7, 16  ;;  %v12284_v12 = vld [vmem:[#allocation13_spill] sm:$0xff]  ;;  %v2600_v18 = vrot.slane %v5680_v7, 1  ;;  %v10142_v34 = vld [vmem:[%s11577_s6 + $0x74] sm:$0xf] (%p2542_p6) }
 0x3ff   : >> { %6188 = vmatprep.subr.bf16.mxu1 %v5714_v44  ;;  %v5712_v44 = vcombine.low %v12275_v1, %v12274_v17  ;;  %3456 = vmatprep.mubr.bf16.mxu0 %v2566_v11  ;;  %v12279_v11 = vld [vmem:[#allocation25_spill] sm:$0xff]  ;;  %v2569_v1 = vshrl.u32 %v5677_v8, 16  ;;  %v10147_v35 = vld [vmem:[%s11577_s6 + $0x78] sm:$0xf] (%p2542_p6)  ;;  %v10167_v41 = vld [vmem:[%s11577_s6 + $0x88] sm:$0xf] (%p2542_p6) }
 0x400   : >> { %v2573_v3 = vrot.slane %v2571_v33, 1  ;;  %v12289_v33 = vld [vmem:[#allocation53_spill] sm:$0xff]  ;;  %v10172_v42 = vld [vmem:[%s11577_s6 + $0x8c] sm:$0xf] (%p2542_p6)  ;;  %v10177_v45 = vld [vmem:[%s11577_s6 + $0x90] sm:$0xf] (%p2542_p6) }
 0x401   : >> { %6169 = vmatpush3.bf16.msra.mxu0 %v5689_v10  ;;  %v5703_v10 = vcombine.low %v8591_v39, %v8596_v40  ;;  %v10157_v39 = vld [vmem:[%s11577_s6 + $0x80] sm:$0xf] (%p2542_p6)  ;;  %v10162_v40 = vld [vmem:[%s11577_s6 + $0x84] sm:$0xf] (%p2542_p6)  ;;  %v10182_v32 = vld [vmem:[%s11577_s6 + $0x94] sm:$0xf] (%p2542_p6) }
 0x402   : >> { %6189 = vmatpush3.bf16.msra.mxu1 %v5706_v13  ;;  %6170 = vmatprep.subr.bf16.mxu0 %v5696_v38  ;;  %v5695_v13 = vcombine.low %v8511_v60, %v8516_v61  ;;  %v12280_v38 = vld [vmem:[#allocation24_spill] sm:$0xff]  ;;  %v2574_v21 = vor.u32 %v2573_v3, %v2569_v1  ;;  %v12299_v3 = vld [vmem:[#allocation83_spill] sm:$0xff]  ;;  %v12300_v1 = vld [vmem:[#allocation82_spill] sm:$0xff]  ;;  %12484 = vst [vmem:[#allocation233_spill] sm:$0xff] (%p2542_p6), %v10157_v39 }
 0x403   : >> { %6190 = vmatprep.subr.bf16.mxu1 %v5713_v9  ;;  %v5687_v9 = vcombine.low %v12278_v6, %v8436_v43  ;;  %v12283_v6 = vld [vmem:[#allocation14_spill] sm:$0xff]  ;;  %v10017_v43 = vld [vmem:[%s11577_s6 + $0x10] sm:$0xf] (%p2542_p6)  ;;  %12485 = vst [vmem:[#allocation234_spill] sm:$0xff] (%p2542_p6), %v10162_v40  ;;  %v10187_v31 = vld [vmem:[%s11577_s6 + $0x98] sm:$0xf] (%p2542_p6) }
 0x404   : >> { %v5702_v15 = vcombine.low %v12284_v12, %v12283_v6  ;;  %v12293_v6 = vld [vmem:[#allocation67_spill] sm:$0xff]  ;;  %v12294_v12 = vld [vmem:[#allocation66_spill] sm:$0xff]  ;;  %v10317_v39 = vld [vmem:[%s11577_s6 + $0x100] sm:$0xf] (%p2542_p6) }
 0x405   : >> { %6171 = vmatpush3.bf16.msra.mxu0 %v5688_v2  ;;  %v12281_v2 = vld [vmem:[#allocation10_spill] sm:$0xff]  ;;  %v10097_v61 = vld [vmem:[%s11577_s6 + $0x50] sm:$0xf] (%p2542_p6)  ;;  %12508 = vst [vmem:[#allocation257_spill] sm:$0xff] (%p2542_p6), %v10317_v39  ;;  %v10322_v40 = vld [vmem:[%s11577_s6 + $0x104] sm:$0xf] (%p2542_p6) }
 0x406   : >> { %6191 = vmatpush3.bf16.msra.mxu1 %v5705_v37  ;;  %6172 = vmatprep.subr.bf16.mxu0 %v5695_v13  ;;  %v5694_v37 = vcombine.low %v8501_v58, %v8506_v59  ;;  %v12285_v13 = vld [vmem:[#allocation69_spill] sm:$0xff]  ;;  %v10087_v59 = vld [vmem:[%s11577_s6 + $0x48] sm:$0xf] (%p2542_p6)  ;;  %v10092_v60 = vld [vmem:[%s11577_s6 + $0x4c] sm:$0xf] (%p2542_p6)  ;;  %12509 = vst [vmem:[#allocation258_spill] sm:$0xff] (%p2542_p6), %v10322_v40 }
 0x407   : >> { %6192 = vmatprep.subr.bf16.mxu1 %v5712_v44  ;;  %v5710_v44 = vcombine.low %v12280_v38, %v12279_v11  ;;  %v2585_v11 = vshrl.u32 %v5680_v7, 16  ;;  %v2589_v38 = vrot.slane %v2587_v0, 1  ;;  %v12297_v0 = vld [vmem:[#allocation51_spill] sm:$0xff]  ;;  %v12307_v7 = vld [vmem:[#allocation81_spill] sm:$0xff]  ;;  %v10347_v40 = vld [vmem:[%s11577_s6 + $0x118] sm:$0xf] (%p2542_p6) }
 0x408   : > { %v10082_v58 = vld [vmem:[%s11577_s6 + $0x44] sm:$0xf] (%p2542_p6)  ;;  %v10342_v39 = vld [vmem:[%s11577_s6 + $0x114] sm:$0xf] (%p2542_p6)  ;;  %12514 = vst [vmem:[#allocation263_spill] sm:$0xff] (%p2542_p6), %v10347_v40 }
 0x409   : >> { %6173 = vmatpush3.bf16.msra.mxu0 %v5687_v9  ;;  %v12290_v9 = vld [vmem:[#allocation52_spill] sm:$0xff]  ;;  %v2590_v19 = vor.u32 %v2589_v38, %v2585_v11  ;;  %12513 = vst [vmem:[#allocation262_spill] sm:$0xff] (%p2542_p6), %v10342_v39  ;;  %v10367_v39 = vld [vmem:[%s11577_s6 + $0x128] sm:$0xf] (%p2542_p6)  ;;  %v10372_v40 = vld [vmem:[%s11577_s6 + $0x12c] sm:$0xf] (%p2542_p6) }
 0x40a   : >> { %6193 = vmatpush3.bf16.msra.mxu1 %v5704_v4  ;;  %v12282_v4 = vld [vmem:[#allocation9_spill] sm:$0xff]  ;;  %6174 = vmatprep.subr.bf16.mxu0 %v5694_v37  ;;  %v5732_v37 = vcombine.low %v12294_v12, %v12293_v6  ;;  %v12308_v11 = vld [vmem:[#allocation80_spill] sm:$0xff]  ;;  %v12310_v12 = vld [vmem:[#allocation62_spill] sm:$0xff]  ;;  %12518 = vst [vmem:[#allocation267_spill] sm:$0xff] (%p2542_p6), %v10367_v39 }
 0x40b   : >> { %6194 = vmatprep.subr.bf16.mxu1 %v5711_v14  ;;  %v5686_v5 = vcombine.low %v12282_v4, %v12281_v2  ;;  %v12286_v14 = vld [vmem:[#allocation68_spill] sm:$0xff]  ;;  %v12291_v2 = vld [vmem:[#allocation85_spill] sm:$0xff]  ;;  %v5739_v38 = vcombine.low %v12308_v11, %v12307_v7  ;;  %v12325_v11 = vld [vmem:[#allocation59_spill] sm:$0xff]  ;;  %12519 = vst [vmem:[#allocation268_spill] sm:$0xff] (%p2542_p6), %v10372_v40 }
 0x40c   : >> { %v5733_v17 = vcombine.low %v12286_v14, %v12285_v13  ;;  %v12292_v4 = vld [vmem:[#allocation84_spill] sm:$0xff]  ;;  %v12296_v13 = vld [vmem:[#allocation98_spill] sm:$0xff]  ;;  %v10397_v40 = vld [vmem:[%s11577_s6 + $0x140] sm:$0xf] (%p2542_p6) }
 0x40d   : >> { %6175 = vmatpush3.bf16.msra.mxu0 %v5686_v5  ;;  %v5741_v22 = vcombine.low %v12292_v4, %v12291_v2  ;;  %v12303_v2 = vld [vmem:[#allocation97_spill] sm:$0xff]  ;;  %v12304_v4 = vld [vmem:[#allocation96_spill] sm:$0xff]  ;;  %12524 = vst [vmem:[#allocation273_spill] sm:$0xff] (%p2542_p6), %v10397_v40  ;;  %v10422_v40 = vld [vmem:[%s11577_s6 + $0x154] sm:$0xf] (%p2542_p6) }
 0x40e   : >> { %6195 = vmatpush3.bf16.msra.mxu1 %v5703_v10  ;;  %v5725_v10 = vcombine.low %v12290_v9, %v12289_v33  ;;  %6204 = vmatprep.subr.bf16.mxu0 %v5733_v17  ;;  %v5740_v33 = vcombine.low %v12300_v1, %v12299_v3  ;;  %v12301_v17 = vld [vmem:[#allocation65_spill] sm:$0xff]  ;;  %v5747_v6 = vcombine.low %v12304_v4, %v12303_v2  ;;  %v10392_v39 = vld [vmem:[%s11577_s6 + $0x13c] sm:$0xf] (%p2542_p6) }
 0x40f   : >> { %6196 = vmatprep.subr.bf16.mxu1 %v5710_v44  ;;  %v12295_v44 = vld [vmem:[#allocation99_spill] sm:$0xff]  ;;  %v12317_v1 = vld [vmem:[#allocation61_spill] sm:$0xff]  ;;  %12523 = vst [vmem:[#allocation272_spill] sm:$0xff] (%p2542_p6), %v10392_v39  ;;  %12529 = vst [vmem:[#allocation278_spill] sm:$0xff] (%p2542_p6), %v10422_v40 }
 0x410   : >> { %v5748_v14 = vcombine.low %v12296_v13, %v12295_v44  ;;  %3457 = vmatmul.mubr.bf16.vlgmr.msra.gmra.mxu0 %v5677_v8  ;;  %v12311_v44 = vld [vmem:[#allocation95_spill] sm:$0xff]  ;;  %v12312_v13 = vld [vmem:[#allocation94_spill] sm:$0xff]  ;;  %v12321_v4 = vld [vmem:[#allocation45_spill] sm:$0xff] }
 0x411   : >> { %6205 = vmatpush3.bf16.msra.mxu0 %v5725_v10  ;;  %3536 = vmatprep.mubr.bf16.mxu0 %v2590_v19  ;;  %v12309_v10 = vld [vmem:[#allocation63_spill] sm:$0xff]  ;;  %v10447_v40 = vld [vmem:[%s11577_s6 + $0x168] sm:$0xf] (%p2542_p6) }
 0x412   : >> { %6197 = vmatpush3.bf16.msra.mxu1 %v5702_v15  ;;  %v12298_v15 = vld [vmem:[#allocation50_spill] sm:$0xff]  ;;  %6206 = vmatprep.subr.bf16.mxu0 %v5732_v37  ;;  %v5730_v37 = vcombine.low %v12310_v12, %v12309_v10  ;;  %v12313_v19 = vld [vmem:[#allocation47_spill] sm:$0xff]  ;;  %12534 = vst [vmem:[#allocation283_spill] sm:$0xff] (%p2542_p6), %v10447_v40  ;;  %v10472_v40 = vld [vmem:[%s11577_s6 + $0x17c] sm:$0xf] (%p2542_p6) }
 0x413   : >> { %6226 = vmatprep.subr.bf16.mxu1 %v5749_v20  ;;  %v5724_v5 = vcombine.low %v12298_v15, %v12297_v0  ;;  %v12302_v20 = vld [vmem:[#allocation64_spill] sm:$0xff]  ;;  %v12315_v15 = vld [vmem:[#allocation79_spill] sm:$0xff]  ;;  %12539 = vst [vmem:[#allocation288_spill] sm:$0xff] (%p2542_p6), %v10472_v40 }
 0x414   : >> { %v5731_v9 = vcombine.low %v12302_v20, %v12301_v17  ;;  %v12319_v20 = vld [vmem:[#allocation93_spill] sm:$0xff]  ;;  %v12327_v12 = vld [vmem:[#allocation91_spill] sm:$0xff] }
 0x415   : >> { %3497 = vmatmul.mubr.bf16.vlgmr.msra.gmra.mxu1 %v2574_v21  ;;  %6207 = vmatpush3.bf16.msra.mxu0 %v5724_v5  ;;  %v12305_v21 = vld [vmem:[#allocation49_spill] sm:$0xff]  ;;  %v12316_v5 = vld [vmem:[#allocation78_spill] sm:$0xff]  ;;  %v10417_v39 = vld [vmem:[%s11577_s6 + $0x150] sm:$0xf] (%p2542_p6) }
 0x416   : >> { %6227 = vmatpush3.bf16.msra.mxu1 %v5741_v22  ;;  %3576 = vmatprep.mubr.bf16.mxu1 %v2600_v18  ;;  %v12306_v22 = vld [vmem:[#allocation48_spill] sm:$0xff]  ;;  %v12314_v18 = vld [vmem:[#allocation46_spill] sm:$0xff]  ;;  %v5738_v3 = vcombine.low %v12316_v5, %v12315_v15  ;;  %v12331_v15 = vld [vmem:[#allocation75_spill] sm:$0xff]  ;;  %12528 = vst [vmem:[#allocation277_spill] sm:$0xff] (%p2542_p6), %v10417_v39 }
 0x417   : >> { %6228 = vmatprep.subr.bf16.mxu1 %v5748_v14  ;;  %v5723_v8 = vcombine.low %v12306_v22, %v12305_v21  ;;  %6208 = vmatprep.subr.bf16.mxu0 %v5731_v9  ;;  %v5746_v14 = vcombine.low %v12312_v13, %v12311_v44  ;;  %v5722_v0 = vcombine.low %v12314_v18, %v12313_v19  ;;  %v12320_v9 = vld [vmem:[#allocation92_spill] sm:$0xff]  ;;  %v12323_v22 = vld [vmem:[#allocation77_spill] sm:$0xff]  ;;  %v12329_v19 = vld [vmem:[#allocation43_spill] sm:$0xff] }
 0x418   : >> { %v5745_v2 = vcombine.low %v12320_v9, %v12319_v20  ;;  %v5679_v13 = vcombine.high %v9752_v16, %v9752_v16  ;;  %v12330_v18 = vld [vmem:[#allocation42_spill] sm:$0xff]  ;;  %v12335_v20 = vld [vmem:[#allocation89_spill] sm:$0xff]  ;;  %v12336_v9 = vld [vmem:[#allocation88_spill] sm:$0xff] }
 0x419   : >> { %6209 = vmatpush3.bf16.msra.mxu0 %v5723_v8  ;;  %v12324_v8 = vld [vmem:[#allocation76_spill] sm:$0xff]  ;;  %v12332_v5 = vld [vmem:[#allocation74_spill] sm:$0xff]  ;;  %v10442_v39 = vld [vmem:[%s11577_s6 + $0x164] sm:$0xf] (%p2542_p6) }
 0x41a   : >> { %6229 = vmatpush3.bf16.msra.mxu1 %v5740_v33  ;;  %6210 = vmatprep.subr.bf16.mxu0 %v5730_v37  ;;  %v12318_v33 = vld [vmem:[#allocation60_spill] sm:$0xff]  ;;  %v5737_v7 = vcombine.low %v12324_v8, %v12323_v22  ;;  %v12328_v37 = vld [vmem:[#allocation90_spill] sm:$0xff]  ;;  %v12339_v8 = vld [vmem:[#allocation73_spill] sm:$0xff]  ;;  %12533 = vst [vmem:[#allocation282_spill] sm:$0xff] (%p2542_p6), %v10442_v39 }
 0x41b   : >> { %6230 = vmatprep.subr.bf16.mxu1 %v5747_v6  ;;  %v5729_v17 = vcombine.low %v12318_v33, %v12317_v1  ;;  %v12322_v6 = vld [vmem:[#allocation44_spill] sm:$0xff]  ;;  %v5744_v44 = vcombine.low %v12328_v37, %v12327_v12  ;;  %v12333_v1 = vld [vmem:[#allocation57_spill] sm:$0xff]  ;;  %v12343_v37 = vld [vmem:[#allocation87_spill] sm:$0xff] }
 0x41c   : >> { %v5721_v21 = vcombine.low %v12322_v6, %v12321_v4  ;;  %v12334_v33 = vld [vmem:[#allocation56_spill] sm:$0xff]  ;;  %v2595_v4 = vshll.u32 %v5679_v13, 16  ;;  %v12337_v6 = vld [vmem:[#allocation41_spill] sm:$0xff]  ;;  %v10497_v40 = vld [vmem:[%s11577_s6 + $0x190] sm:$0xf] (%p2542_p6) }
 0x41d   : >> { %6211 = vmatpush3.bf16.msra.mxu0 %v5722_v0  ;;  %v5720_v0 = vcombine.low %v12330_v18, %v12329_v19  ;;  %v10467_v39 = vld [vmem:[%s11577_s6 + $0x178] sm:$0xf] (%p2542_p6)  ;;  %12544 = vst [vmem:[#allocation293_spill] sm:$0xff] (%p2542_p6), %v10497_v40  ;;  %v10522_v40 = vld [vmem:[%s11577_s6 + $0x1a4] sm:$0xf] (%p2542_p6) }
 0x41e   : >> { %6231 = vmatpush3.bf16.msra.mxu1 %v5739_v38  ;;  %6212 = vmatprep.subr.bf16.mxu0 %v5729_v17  ;;  %v12326_v38 = vld [vmem:[#allocation58_spill] sm:$0xff]  ;;  %v5727_v17 = vcombine.low %v12334_v33, %v12333_v1  ;;  %v12347_v33 = vld [vmem:[#allocation71_spill] sm:$0xff]  ;;  %12538 = vst [vmem:[#allocation287_spill] sm:$0xff] (%p2542_p6), %v10467_v39  ;;  %12549 = vst [vmem:[#allocation298_spill] sm:$0xff] (%p2542_p6), %v10522_v40 }
 0x41f   : >> { %6232 = vmatprep.subr.bf16.mxu1 %v5746_v14  ;;  %v5728_v10 = vcombine.low %v12326_v38, %v12325_v11  ;;  %v9823_v14 = vld [vmem:[%s9724_s13 + $0x10] sm:$0x77]  ;;  %v10492_v39 = vld [vmem:[%s11577_s6 + $0x18c] sm:$0xf] (%p2542_p6)  ;;  %v10547_v40 = vld [vmem:[%s11577_s6 + $0x1b8] sm:$0xf] (%p2542_p6) }
 0x420   : >> { %v5682_v16 = vcombine.low %v9823_v14, %v9823_v14  ;;  %v12341_v38 = vld [vmem:[#allocation55_spill] sm:$0xff]  ;;  %12543 = vst [vmem:[#allocation292_spill] sm:$0xff] (%p2542_p6), %v10492_v39  ;;  %v10517_v39 = vld [vmem:[%s11577_s6 + $0x1a0] sm:$0xf] (%p2542_p6)  ;;  %12554 = vst [vmem:[#allocation303_spill] sm:$0xff] (%p2542_p6), %v10547_v40 }
 0x421   : >> { %6213 = vmatpush3.bf16.msra.mxu0 %v5721_v21  ;;  %v12338_v21 = vld [vmem:[#allocation40_spill] sm:$0xff]  ;;  %12548 = vst [vmem:[#allocation297_spill] sm:$0xff] (%p2542_p6), %v10517_v39  ;;  %v10542_v39 = vld [vmem:[%s11577_s6 + $0x1b4] sm:$0xf] (%p2542_p6)  ;;  %v10572_v40 = vld [vmem:[%s11577_s6 + $0x1cc] sm:$0xf] (%p2542_p6) }
 0x422   : >> { %6233 = vmatpush3.bf16.msra.mxu1 %v5738_v3  ;;  %v5736_v3 = vcombine.low %v12332_v5, %v12331_v15  ;;  %6214 = vmatprep.subr.bf16.mxu0 %v5728_v10  ;;  %v5719_v22 = vcombine.low %v12338_v21, %v12337_v6  ;;  %v12342_v10 = vld [vmem:[#allocation54_spill] sm:$0xff]  ;;  %v2611_v18 = vshll.u32 %v5682_v16, 16  ;;  %v2593_v15 = vshrl.u32 %v5679_v13, 16  ;;  %v12351_v21 = vld [vmem:[#allocation165_spill] sm:$0xff]  ;;  %12553 = vst [vmem:[#allocation302_spill] sm:$0xff] (%p2542_p6), %v10542_v39 }
 0x423   : >> { %6234 = vmatprep.subr.bf16.mxu1 %v5745_v2  ;;  %v5743_v2 = vcombine.low %v12336_v9, %v12335_v20  ;;  %v5726_v12 = vcombine.low %v12342_v10, %v12341_v38  ;;  %v2597_v5 = vrot.slane %v2595_v4, 1  ;;  %v12348_v20 = vld [vmem:[#allocation70_spill] sm:$0xff]  ;;  %v2609_v38 = vshrl.u32 %v5682_v16, 16  ;;  %v12353_v4 = vld [vmem:[#allocation117_spill] sm:$0xff]  ;;  %12559 = vst [vmem:[#allocation308_spill] sm:$0xff] (%p2542_p6), %v10572_v40 }
 0x424   : >> { %v5734_v9 = vcombine.low %v12348_v20, %v12347_v33  ;;  %v2613_v10 = vrot.slane %v2611_v18, 1  ;;  %v12359_v20 = vld [vmem:[#allocation163_spill] sm:$0xff]  ;;  %v10567_v39 = vld [vmem:[%s11577_s6 + $0x1c8] sm:$0xf] (%p2542_p6)  ;;  %v10597_v40 = vld [vmem:[%s11577_s6 + $0x1e0] sm:$0xf] (%p2542_p6) }
 0x425   : >> { %6215 = vmatpush3.bf16.msra.mxu0 %v5720_v0  ;;  %v12345_v0 = vld [vmem:[#allocation39_spill] sm:$0xff]  ;;  %12558 = vst [vmem:[#allocation307_spill] sm:$0xff] (%p2542_p6), %v10567_v39  ;;  %v10592_v39 = vld [vmem:[%s11577_s6 + $0x1dc] sm:$0xf] (%p2542_p6)  ;;  %12564 = vst [vmem:[#allocation313_spill] sm:$0xff] (%p2542_p6), %v10597_v40 }
 0x426   : >> { %6235 = vmatpush3.bf16.msra.mxu1 %v5737_v7  ;;  %v12340_v7 = vld [vmem:[#allocation72_spill] sm:$0xff]  ;;  %6216 = vmatprep.subr.bf16.mxu0 %v5727_v17  ;;  %v12349_v17 = vld [vmem:[#allocation133_spill] sm:$0xff]  ;;  %v12361_v18 = vld [vmem:[#allocation115_spill] sm:$0xff]  ;;  %12563 = vst [vmem:[#allocation312_spill] sm:$0xff] (%p2542_p6), %v10592_v39 }
 0x427   : >> { %6236 = vmatprep.subr.bf16.mxu1 %v5744_v44  ;;  %v5735_v11 = vcombine.low %v12340_v7, %v12339_v8  ;;  %v12344_v44 = vld [vmem:[#allocation86_spill] sm:$0xff]  ;;  %v12352_v8 = vld [vmem:[#allocation164_spill] sm:$0xff]  ;;  %v10617_v39 = vld [vmem:[%s11577_s6 + $0x1f0] sm:$0xf] (%p2542_p6) }
 0x428   : >> { %v5742_v19 = vcombine.low %v12344_v44, %v12343_v37  ;;  %v5781_v7 = vcombine.low %v12352_v8, %v12351_v21  ;;  %v2598_v37 = vor.u32 %v2597_v5, %v2593_v15  ;;  %v12355_v44 = vld [vmem:[#allocation149_spill] sm:$0xff]  ;;  %v2614_v21 = vor.u32 %v2613_v10, %v2609_v38  ;;  %v12362_v15 = vld [vmem:[#allocation114_spill] sm:$0xff]  ;;  %12568 = vst [vmem:[#allocation317_spill] sm:$0xff] (%p2542_p6), %v10617_v39  ;;  %v10622_v40 = vld [vmem:[%s11577_s6 + $0x1f4] sm:$0xf] (%p2542_p6) }
 0x429   : >> { %6217 = vmatpush3.bf16.msra.mxu0 %v5719_v22  ;;  %v12354_v22 = vld [vmem:[#allocation116_spill] sm:$0xff]  ;;  %v2624_v8 = vrot.slane %v5682_v16, 1  ;;  %v5756_v5 = vcombine.low %v12362_v15, %v12361_v18  ;;  %v12371_v10 = vld [vmem:[#allocation145_spill] sm:$0xff]  ;;  %v12379_v15 = vld [vmem:[#allocation143_spill] sm:$0xff]  ;;  %12569 = vst [vmem:[#allocation318_spill] sm:$0xff] (%p2542_p6), %v10622_v40 }
 0x42a   : >> { %6237 = vmatpush3.bf16.msra.mxu1 %v5736_v3  ;;  %v12346_v3 = vld [vmem:[#allocation38_spill] sm:$0xff]  ;;  %6218 = vmatprep.subr.bf16.mxu0 %v5726_v12  ;;  %v12357_v12 = vld [vmem:[#allocation131_spill] sm:$0xff]  ;;  %v12370_v16 = vld [vmem:[#allocation112_spill] sm:$0xff] }
 0x42b   : >> { %6238 = vmatprep.subr.bf16.mxu1 %v5743_v2  ;;  %v5718_v1 = vcombine.low %v12346_v3, %v12345_v0  ;;  %v12350_v2 = vld [vmem:[#allocation132_spill] sm:$0xff]  ;;  %v10642_v39 = vld [vmem:[%s11577_s6 + $0x204] sm:$0xf] (%p2542_p6)  ;;  %v10647_v40 = vld [vmem:[%s11577_s6 + $0x208] sm:$0xf] (%p2542_p6) }
 0x42c   : >> { %v5765_v6 = vcombine.low %v12350_v2, %v12349_v17  ;;  %v12356_v0 = vld [vmem:[#allocation148_spill] sm:$0xff]  ;;  %v12360_v17 = vld [vmem:[#allocation162_spill] sm:$0xff]  ;;  %12573 = vst [vmem:[#allocation322_spill] sm:$0xff] (%p2542_p6), %v10642_v39  ;;  %12574 = vst [vmem:[#allocation323_spill] sm:$0xff] (%p2542_p6), %v10647_v40 }
 0x42d   : >> { %6219 = vmatpush3.bf16.msra.mxu0 %v5718_v1  ;;  %v5773_v3 = vcombine.low %v12356_v0, %v12355_v44  ;;  %v5780_v2 = vcombine.low %v12360_v17, %v12359_v20  ;;  %v12363_v1 = vld [vmem:[#allocation147_spill] sm:$0xff]  ;;  %v12367_v44 = vld [vmem:[#allocation161_spill] sm:$0xff]  ;;  %v12368_v0 = vld [vmem:[#allocation160_spill] sm:$0xff] }
 0x42e   : >> { %6239 = vmatpush3.bf16.msra.mxu1 %v5735_v11  ;;  %v5757_v11 = vcombine.low %v12354_v22, %v12353_v4  ;;  %6248 = vmatprep.subr.bf16.mxu0 %v5765_v6  ;;  %v12365_v6 = vld [vmem:[#allocation129_spill] sm:$0xff]  ;;  %v12375_v20 = vld [vmem:[#allocation159_spill] sm:$0xff]  ;;  %v12376_v17 = vld [vmem:[#allocation158_spill] sm:$0xff] }
 0x42f   : >> { %6240 = vmatprep.subr.bf16.mxu1 %v5742_v19  ;;  %v12358_v19 = vld [vmem:[#allocation130_spill] sm:$0xff]  ;;  %v10667_v39 = vld [vmem:[%s11577_s6 + $0x218] sm:$0xf] (%p2542_p6)  ;;  %v10672_v40 = vld [vmem:[%s11577_s6 + $0x21c] sm:$0xf] (%p2542_p6) }
 0x430   : >> { %v5764_v33 = vcombine.low %v12358_v19, %v12357_v12  ;;  %3537 = vmatmul.mubr.bf16.vlgmr.msra.gmra.mxu0 %v5679_v13  ;;  %v5779_v12 = vcombine.low %v12368_v0, %v12367_v44  ;;  %v12369_v13 = vld [vmem:[#allocation113_spill] sm:$0xff]  ;;  %v12374_v19 = vld [vmem:[#allocation126_spill] sm:$0xff]  ;;  %12578 = vst [vmem:[#allocation327_spill] sm:$0xff] (%p2542_p6), %v10667_v39  ;;  %12579 = vst [vmem:[#allocation328_spill] sm:$0xff] (%p2542_p6), %v10672_v40 }
 0x431   : >> { %6249 = vmatpush3.bf16.msra.mxu0 %v5757_v11  ;;  %3616 = vmatprep.mubr.bf16.mxu0 %v2614_v21  ;;  %v5755_v38 = vcombine.low %v12370_v16, %v12369_v13  ;;  %v12377_v21 = vld [vmem:[#allocation111_spill] sm:$0xff]  ;;  %v12385_v0 = vld [vmem:[#allocation109_spill] sm:$0xff]  ;;  %v10692_v39 = vld [vmem:[%s11577_s6 + $0x22c] sm:$0xf] (%p2542_p6) }
 0x432   : >> { %6241 = vmatpush3.bf16.msra.mxu1 %v5734_v9  ;;  %v12364_v9 = vld [vmem:[#allocation146_spill] sm:$0xff]  ;;  %6250 = vmatprep.subr.bf16.mxu0 %v5764_v33  ;;  %v12387_v16 = vld [vmem:[#allocation141_spill] sm:$0xff]  ;;  %12583 = vst [vmem:[#allocation332_spill] sm:$0xff] (%p2542_p6), %v10692_v39  ;;  %v10697_v40 = vld [vmem:[%s11577_s6 + $0x230] sm:$0xf] (%p2542_p6) }
 0x433   : >> { %6270 = vmatprep.subr.bf16.mxu1 %v5781_v7  ;;  %v5772_v4 = vcombine.low %v12364_v9, %v12363_v1  ;;  %v12366_v7 = vld [vmem:[#allocation128_spill] sm:$0xff]  ;;  %v12381_v9 = vld [vmem:[#allocation125_spill] sm:$0xff]  ;;  %12584 = vst [vmem:[#allocation333_spill] sm:$0xff] (%p2542_p6), %v10697_v40 }
 0x434   : >> { %v5763_v22 = vcombine.low %v12366_v7, %v12365_v6  ;;  %v12383_v7 = vld [vmem:[#allocation157_spill] sm:$0xff] }
 0x435   : >> { %3577 = vmatmul.mubr.bf16.vlgmr.msra.gmra.mxu1 %v2598_v37  ;;  %6251 = vmatpush3.bf16.msra.mxu0 %v5756_v5  ;;  %v12372_v37 = vld [vmem:[#allocation144_spill] sm:$0xff]  ;;  %v12380_v5 = vld [vmem:[#allocation142_spill] sm:$0xff]  ;;  %v10717_v39 = vld [vmem:[%s11577_s6 + $0x240] sm:$0xf] (%p2542_p6) }
 0x436   : >> { %6271 = vmatpush3.bf16.msra.mxu1 %v5773_v3  ;;  %3656 = vmatprep.mubr.bf16.mxu1 %v2624_v8  ;;  %v5771_v11 = vcombine.low %v12372_v37, %v12371_v10  ;;  %v12373_v3 = vld [vmem:[#allocation127_spill] sm:$0xff]  ;;  %v12378_v8 = vld [vmem:[#allocation110_spill] sm:$0xff]  ;;  %v5770_v1 = vcombine.low %v12380_v5, %v12379_v15  ;;  %12588 = vst [vmem:[#allocation337_spill] sm:$0xff] (%p2542_p6), %v10717_v39  ;;  %v10722_v40 = vld [vmem:[%s11577_s6 + $0x244] sm:$0xf] (%p2542_p6) }
 0x437   : >> { %6272 = vmatprep.subr.bf16.mxu1 %v5780_v2  ;;  %6252 = vmatprep.subr.bf16.mxu0 %v5763_v22  ;;  %v5762_v33 = vcombine.low %v12374_v19, %v12373_v3  ;;  %v5778_v2 = vcombine.low %v12376_v17, %v12375_v20  ;;  %v5754_v18 = vcombine.low %v12378_v8, %v12377_v21  ;;  %v12384_v22 = vld [vmem:[#allocation156_spill] sm:$0xff]  ;;  %v12389_v37 = vld [vmem:[#allocation123_spill] sm:$0xff]  ;;  %v12394_v8 = vld [vmem:[#allocation106_spill] sm:$0xff] }
 0x438   : >> { %v5777_v44 = vcombine.low %v12384_v22, %v12383_v7  ;;  %v12391_v19 = vld [vmem:[#allocation155_spill] sm:$0xff]  ;;  %v5681_v17 = vcombine.high %v9823_v14, %v9823_v14  ;;  %v12396_v5 = vld [vmem:[#allocation138_spill] sm:$0xff]  ;;  %v12399_v7 = vld [vmem:[#allocation153_spill] sm:$0xff]  ;;  %12589 = vst [vmem:[#allocation338_spill] sm:$0xff] (%p2542_p6), %v10722_v40 }
 0x439   : >> { %6253 = vmatpush3.bf16.msra.mxu0 %v5755_v38  ;;  %v12388_v38 = vld [vmem:[#allocation140_spill] sm:$0xff]  ;;  %v12393_v21 = vld [vmem:[#allocation107_spill] sm:$0xff] }
 0x43a   : >> { %6273 = vmatpush3.bf16.msra.mxu1 %v5772_v4  ;;  %6254 = vmatprep.subr.bf16.mxu0 %v5762_v33  ;;  %v12382_v4 = vld [vmem:[#allocation124_spill] sm:$0xff]  ;;  %v5769_v10 = vcombine.low %v12388_v38, %v12387_v16  ;;  %v12392_v33 = vld [vmem:[#allocation154_spill] sm:$0xff]  ;;  %v12395_v15 = vld [vmem:[#allocation139_spill] sm:$0xff] }
 0x43b   : >> { %6274 = vmatprep.subr.bf16.mxu1 %v5779_v12  ;;  %v5761_v6 = vcombine.low %v12382_v4, %v12381_v9  ;;  %v12386_v12 = vld [vmem:[#allocation108_spill] sm:$0xff]  ;;  %v5776_v20 = vcombine.low %v12392_v33, %v12391_v19  ;;  %v12397_v9 = vld [vmem:[#allocation121_spill] sm:$0xff]  ;;  %v12407_v33 = vld [vmem:[#allocation151_spill] sm:$0xff] }
 0x43c   : >> { %v5753_v13 = vcombine.low %v12386_v12, %v12385_v0  ;;  %v12398_v4 = vld [vmem:[#allocation120_spill] sm:$0xff]  ;;  %v2619_v0 = vshll.u32 %v5681_v17, 16  ;;  %v12401_v12 = vld [vmem:[#allocation105_spill] sm:$0xff]  ;;  %v10742_v39 = vld [vmem:[%s11577_s6 + $0x254] sm:$0xf] (%p2542_p6) }
 0x43d   : >> { %6255 = vmatpush3.bf16.msra.mxu0 %v5754_v18  ;;  %v5752_v18 = vcombine.low %v12394_v8, %v12393_v21  ;;  %v12400_v22 = vld [vmem:[#allocation152_spill] sm:$0xff]  ;;  %v12403_v38 = vld [vmem:[#allocation137_spill] sm:$0xff]  ;;  %12593 = vst [vmem:[#allocation342_spill] sm:$0xff] (%p2542_p6), %v10742_v39  ;;  %v10767_v39 = vld [vmem:[%s11577_s6 + $0x268] sm:$0xf] (%p2542_p6) }
 0x43e   : >> { %6275 = vmatpush3.bf16.msra.mxu1 %v5771_v11  ;;  %6256 = vmatprep.subr.bf16.mxu0 %v5761_v6  ;;  %v12390_v11 = vld [vmem:[#allocation122_spill] sm:$0xff]  ;;  %v5759_v6 = vcombine.low %v12398_v4, %v12397_v9  ;;  %v12411_v4 = vld [vmem:[#allocation135_spill] sm:$0xff]  ;;  %v10747_v40 = vld [vmem:[%s11577_s6 + $0x258] sm:$0xf] (%p2542_p6)  ;;  %12598 = vst [vmem:[#allocation347_spill] sm:$0xff] (%p2542_p6), %v10767_v39 }
 0x43f   : >> { %6276 = vmatprep.subr.bf16.mxu1 %v5778_v2  ;;  %v5760_v3 = vcombine.low %v12390_v11, %v12389_v37  ;;  %v9894_v2 = vld [vmem:[%s9724_s13 + $0x18] sm:$0x77]  ;;  %v12405_v11 = vld [vmem:[#allocation119_spill] sm:$0xff]  ;;  %12594 = vst [vmem:[#allocation343_spill] sm:$0xff] (%p2542_p6), %v10747_v40  ;;  %v10772_v40 = vld [vmem:[%s11577_s6 + $0x26c] sm:$0xf] (%p2542_p6) }
 0x440   : >> { %v5684_v14 = vcombine.low %v9894_v2, %v9894_v2  ;;  %12599 = vst [vmem:[#allocation348_spill] sm:$0xff] (%p2542_p6), %v10772_v40  ;;  %v10792_v39 = vld [vmem:[%s11577_s6 + $0x27c] sm:$0xf] (%p2542_p6)  ;;  %v10797_v40 = vld [vmem:[%s11577_s6 + $0x280] sm:$0xf] (%p2542_p6) }
 0x441   : >> { %6257 = vmatpush3.bf16.msra.mxu0 %v5753_v13  ;;  %v12402_v13 = vld [vmem:[#allocation104_spill] sm:$0xff]  ;;  %12603 = vst [vmem:[#allocation352_spill] sm:$0xff] (%p2542_p6), %v10792_v39  ;;  %12604 = vst [vmem:[#allocation353_spill] sm:$0xff] (%p2542_p6), %v10797_v40  ;;  %v10817_v39 = vld [vmem:[%s11577_s6 + $0x290] sm:$0xf] (%p2542_p6) }
 0x442   : >> { %6277 = vmatpush3.bf16.msra.mxu1 %v5770_v1  ;;  %v5768_v1 = vcombine.low %v12396_v5, %v12395_v15  ;;  %6258 = vmatprep.subr.bf16.mxu0 %v5760_v3  ;;  %v5751_v16 = vcombine.low %v12402_v13, %v12401_v12  ;;  %v12406_v3 = vld [vmem:[#allocation118_spill] sm:$0xff]  ;;  %v2635_v8 = vshll.u32 %v5684_v14, 16  ;;  %v2617_v15 = vshrl.u32 %v5681_v17, 16  ;;  %v12415_v13 = vld [vmem:[#allocation229_spill] sm:$0xff]  ;;  %12608 = vst [vmem:[#allocation357_spill] sm:$0xff] (%p2542_p6), %v10817_v39 }
 0x443   : >> { %6278 = vmatprep.subr.bf16.mxu1 %v5777_v44  ;;  %v5775_v44 = vcombine.low %v12400_v22, %v12399_v7  ;;  %v5758_v19 = vcombine.low %v12406_v3, %v12405_v11  ;;  %v2621_v5 = vrot.slane %v2619_v0, 1  ;;  %v12412_v7 = vld [vmem:[#allocation134_spill] sm:$0xff]  ;;  %v2633_v11 = vshrl.u32 %v5684_v14, 16  ;;  %v12417_v0 = vld [vmem:[#allocation181_spill] sm:$0xff]  ;;  %v10822_v40 = vld [vmem:[%s11577_s6 + $0x294] sm:$0xf] (%p2542_p6) }
 0x444   : >> { %v5766_v22 = vcombine.low %v12412_v7, %v12411_v4  ;;  %v2637_v3 = vrot.slane %v2635_v8, 1  ;;  %v12423_v7 = vld [vmem:[#allocation227_spill] sm:$0xff]  ;;  %12609 = vst [vmem:[#allocation358_spill] sm:$0xff] (%p2542_p6), %v10822_v40  ;;  %v10842_v39 = vld [vmem:[%s11577_s6 + $0x2a4] sm:$0xf] (%p2542_p6) }
 0x445   : >> { %6259 = vmatpush3.bf16.msra.mxu0 %v5752_v18  ;;  %v12409_v18 = vld [vmem:[#allocation103_spill] sm:$0xff]  ;;  %12613 = vst [vmem:[#allocation362_spill] sm:$0xff] (%p2542_p6), %v10842_v39  ;;  %v10847_v40 = vld [vmem:[%s11577_s6 + $0x2a8] sm:$0xf] (%p2542_p6)  ;;  %v10867_v39 = vld [vmem:[%s11577_s6 + $0x2b8] sm:$0xf] (%p2542_p6) }
 0x446   : >> { %6279 = vmatpush3.bf16.msra.mxu1 %v5769_v10  ;;  %v12404_v10 = vld [vmem:[#allocation136_spill] sm:$0xff]  ;;  %6260 = vmatprep.subr.bf16.mxu0 %v5759_v6  ;;  %v12413_v6 = vld [vmem:[#allocation197_spill] sm:$0xff]  ;;  %v12425_v8 = vld [vmem:[#allocation179_spill] sm:$0xff]  ;;  %12614 = vst [vmem:[#allocation363_spill] sm:$0xff] (%p2542_p6), %v10847_v40 }
 0x447   : >> { %6280 = vmatprep.subr.bf16.mxu1 %v5776_v20  ;;  %v5767_v37 = vcombine.low %v12404_v10, %v12403_v38  ;;  %v12408_v20 = vld [vmem:[#allocation150_spill] sm:$0xff]  ;;  %v12416_v38 = vld [vmem:[#allocation228_spill] sm:$0xff]  ;;  %12618 = vst [vmem:[#allocation367_spill] sm:$0xff] (%p2542_p6), %v10867_v39 }
 0x448   : >> { %v5774_v21 = vcombine.low %v12408_v20, %v12407_v33  ;;  %v5813_v10 = vcombine.low %v12416_v38, %v12415_v13  ;;  %v2622_v33 = vor.u32 %v2621_v5, %v2617_v15  ;;  %v12419_v20 = vld [vmem:[#allocation213_spill] sm:$0xff]  ;;  %v2638_v13 = vor.u32 %v2637_v3, %v2633_v11  ;;  %v12426_v15 = vld [vmem:[#allocation178_spill] sm:$0xff]  ;;  %v10872_v40 = vld [vmem:[%s11577_s6 + $0x2bc] sm:$0xf] (%p2542_p6) }
 0x449   : >> { %6261 = vmatpush3.bf16.msra.mxu0 %v5751_v16  ;;  %v12418_v16 = vld [vmem:[#allocation180_spill] sm:$0xff]  ;;  %v2648_v38 = vrot.slane %v5684_v14, 1  ;;  %v5788_v5 = vcombine.low %v12426_v15, %v12425_v8  ;;  %v12435_v3 = vld [vmem:[#allocation209_spill] sm:$0xff]  ;;  %v12443_v15 = vld [vmem:[#allocation207_spill] sm:$0xff]  ;;  %12619 = vst [vmem:[#allocation368_spill] sm:$0xff] (%p2542_p6), %v10872_v40 }
 0x44a   : >> { %6281 = vmatpush3.bf16.msra.mxu1 %v5768_v1  ;;  %v12410_v1 = vld [vmem:[#allocation102_spill] sm:$0xff]  ;;  %6262 = vmatprep.subr.bf16.mxu0 %v5758_v19  ;;  %v12421_v19 = vld [vmem:[#allocation195_spill] sm:$0xff]  ;;  %v12434_v14 = vld [vmem:[#allocation176_spill] sm:$0xff] }
 0x44b   : >> { %6282 = vmatprep.subr.bf16.mxu1 %v5775_v44  ;;  %v5750_v9 = vcombine.low %v12410_v1, %v12409_v18  ;;  %v12414_v44 = vld [vmem:[#allocation196_spill] sm:$0xff]  ;;  %v10892_v39 = vld [vmem:[%s11577_s6 + $0x2cc] sm:$0xf] (%p2542_p6)  ;;  %v10897_v40 = vld [vmem:[%s11577_s6 + $0x2d0] sm:$0xf] (%p2542_p6) }
 0x44c   : >> { %v5797_v12 = vcombine.low %v12414_v44, %v12413_v6  ;;  %v12420_v18 = vld [vmem:[#allocation212_spill] sm:$0xff]  ;;  %v12424_v6 = vld [vmem:[#allocation226_spill] sm:$0xff]  ;;  %12623 = vst [vmem:[#allocation372_spill] sm:$0xff] (%p2542_p6), %v10892_v39  ;;  %12624 = vst [vmem:[#allocation373_spill] sm:$0xff] (%p2542_p6), %v10897_v40 }
 0x44d   : >> { %6263 = vmatpush3.bf16.msra.mxu0 %v5750_v9  ;;  %v5805_v1 = vcombine.low %v12420_v18, %v12419_v20  ;;  %v5812_v44 = vcombine.low %v12424_v6, %v12423_v7  ;;  %v12427_v9 = vld [vmem:[#allocation211_spill] sm:$0xff]  ;;  %v12431_v20 = vld [vmem:[#allocation225_spill] sm:$0xff]  ;;  %v12432_v18 = vld [vmem:[#allocation224_spill] sm:$0xff] }
 0x44e   : >> { %6283 = vmatpush3.bf16.msra.mxu1 %v5767_v37  ;;  %v5789_v37 = vcombine.low %v12418_v16, %v12417_v0  ;;  %6292 = vmatprep.subr.bf16.mxu0 %v5797_v12  ;;  %v12429_v12 = vld [vmem:[#allocation193_spill] sm:$0xff]  ;;  %v12439_v7 = vld [vmem:[#allocation223_spill] sm:$0xff]  ;;  %v12440_v6 = vld [vmem:[#allocation222_spill] sm:$0xff] }
 0x44f   : >> { %6284 = vmatprep.subr.bf16.mxu1 %v5774_v21  ;;  %v12422_v21 = vld [vmem:[#allocation194_spill] sm:$0xff]  ;;  %v10917_v39 = vld [vmem:[%s11577_s6 + $0x2e0] sm:$0xf] (%p2542_p6)  ;;  %v10922_v40 = vld [vmem:[%s11577_s6 + $0x2e4] sm:$0xf] (%p2542_p6) }
 0x450   : >> { %v5796_v4 = vcombine.low %v12422_v21, %v12421_v19  ;;  %3617 = vmatmul.mubr.bf16.vlgmr.msra.gmra.mxu0 %v5681_v17  ;;  %v5811_v19 = vcombine.low %v12432_v18, %v12431_v20  ;;  %v12433_v17 = vld [vmem:[#allocation177_spill] sm:$0xff]  ;;  %v12438_v21 = vld [vmem:[#allocation190_spill] sm:$0xff]  ;;  %12628 = vst [vmem:[#allocation377_spill] sm:$0xff] (%p2542_p6), %v10917_v39  ;;  %12629 = vst [vmem:[#allocation378_spill] sm:$0xff] (%p2542_p6), %v10922_v40 }
 0x451   : >> { %6293 = vmatpush3.bf16.msra.mxu0 %v5789_v37  ;;  %3696 = vmatprep.mubr.bf16.mxu0 %v2638_v13  ;;  %v5787_v11 = vcombine.low %v12434_v14, %v12433_v17  ;;  %v12441_v13 = vld [vmem:[#allocation175_spill] sm:$0xff]  ;;  %v12449_v18 = vld [vmem:[#allocation173_spill] sm:$0xff]  ;;  %v10947_v40 = vld [vmem:[%s11577_s6 + $0x2f8] sm:$0xf] (%p2542_p6) }
 0x452   : >> { %6285 = vmatpush3.bf16.msra.mxu1 %v5766_v22  ;;  %v12428_v22 = vld [vmem:[#allocation210_spill] sm:$0xff]  ;;  %6294 = vmatprep.subr.bf16.mxu0 %v5796_v4  ;;  %v12451_v14 = vld [vmem:[#allocation205_spill] sm:$0xff]  ;;  %v10942_v39 = vld [vmem:[%s11577_s6 + $0x2f4] sm:$0xf] (%p2542_p6)  ;;  %12634 = vst [vmem:[#allocation383_spill] sm:$0xff] (%p2542_p6), %v10947_v40 }
 0x453   : >> { %6314 = vmatprep.subr.bf16.mxu1 %v5813_v10  ;;  %v5804_v0 = vcombine.low %v12428_v22, %v12427_v9  ;;  %v12430_v10 = vld [vmem:[#allocation192_spill] sm:$0xff]  ;;  %v12445_v22 = vld [vmem:[#allocation189_spill] sm:$0xff]  ;;  %12633 = vst [vmem:[#allocation382_spill] sm:$0xff] (%p2542_p6), %v10942_v39  ;;  %v10967_v39 = vld [vmem:[%s11577_s6 + $0x308] sm:$0xf] (%p2542_p6) }
 0x454   : >> { %v5795_v16 = vcombine.low %v12430_v10, %v12429_v12  ;;  %v12447_v10 = vld [vmem:[#allocation221_spill] sm:$0xff]  ;;  %12638 = vst [vmem:[#allocation387_spill] sm:$0xff] (%p2542_p6), %v10967_v39  ;;  %v10972_v40 = vld [vmem:[%s11577_s6 + $0x30c] sm:$0xf] (%p2542_p6)  ;;  %v10992_v39 = vld [vmem:[%s11577_s6 + $0x31c] sm:$0xf] (%p2542_p6) }
 0x455   : >> { %3657 = vmatmul.mubr.bf16.vlgmr.msra.gmra.mxu1 %v2622_v33  ;;  %6295 = vmatpush3.bf16.msra.mxu0 %v5788_v5  ;;  %v12436_v33 = vld [vmem:[#allocation208_spill] sm:$0xff]  ;;  %v12444_v5 = vld [vmem:[#allocation206_spill] sm:$0xff]  ;;  %12639 = vst [vmem:[#allocation388_spill] sm:$0xff] (%p2542_p6), %v10972_v40  ;;  %12643 = vst [vmem:[#allocation392_spill] sm:$0xff] (%p2542_p6), %v10992_v39 }
 0x456   : >> { %6315 = vmatpush3.bf16.msra.mxu1 %v5805_v1  ;;  %3736 = vmatprep.mubr.bf16.mxu1 %v2648_v38  ;;  %v5803_v37 = vcombine.low %v12436_v33, %v12435_v3  ;;  %v12437_v1 = vld [vmem:[#allocation191_spill] sm:$0xff]  ;;  %v12442_v38 = vld [vmem:[#allocation174_spill] sm:$0xff]  ;;  %v5802_v9 = vcombine.low %v12444_v5, %v12443_v15  ;;  %v10997_v40 = vld [vmem:[%s11577_s6 + $0x320] sm:$0xf] (%p2542_p6) }
 0x457   : >> { %6316 = vmatprep.subr.bf16.mxu1 %v5812_v44  ;;  %6296 = vmatprep.subr.bf16.mxu0 %v5795_v16  ;;  %v5794_v4 = vcombine.low %v12438_v21, %v12437_v1  ;;  %v5810_v44 = vcombine.low %v12440_v6, %v12439_v7  ;;  %v5786_v8 = vcombine.low %v12442_v38, %v12441_v13  ;;  %v12448_v16 = vld [vmem:[#allocation220_spill] sm:$0xff]  ;;  %v12453_v33 = vld [vmem:[#allocation187_spill] sm:$0xff]  ;;  %v12458_v13 = vld [vmem:[#allocation170_spill] sm:$0xff] }
 0x458   : >> { %v5809_v20 = vcombine.low %v12448_v16, %v12447_v10  ;;  %v12455_v21 = vld [vmem:[#allocation219_spill] sm:$0xff]  ;;  %v5683_v6 = vcombine.high %v9894_v2, %v9894_v2  ;;  %v12460_v15 = vld [vmem:[#allocation202_spill] sm:$0xff]  ;;  %v12464_v10 = vld [vmem:[#allocation216_spill] sm:$0xff]  ;;  %12644 = vst [vmem:[#allocation393_spill] sm:$0xff] (%p2542_p6), %v10997_v40 }
 0x459   : >> { %6297 = vmatpush3.bf16.msra.mxu0 %v5787_v11  ;;  %v12452_v11 = vld [vmem:[#allocation204_spill] sm:$0xff]  ;;  %v12465_v2 = vld [vmem:[#allocation169_spill] sm:$0xff]  ;;  %v11017_v39 = vld [vmem:[%s11577_s6 + $0x330] sm:$0xf] (%p2542_p6) }
 0x45a   : >> { %6317 = vmatpush3.bf16.msra.mxu1 %v5804_v0  ;;  %6298 = vmatprep.subr.bf16.mxu0 %v5794_v4  ;;  %v12446_v0 = vld [vmem:[#allocation188_spill] sm:$0xff]  ;;  %v5801_v3 = vcombine.low %v12452_v11, %v12451_v14  ;;  %v12456_v4 = vld [vmem:[#allocation218_spill] sm:$0xff]  ;;  %12648 = vst [vmem:[#allocation397_spill] sm:$0xff] (%p2542_p6), %v11017_v39  ;;  %v11022_v40 = vld [vmem:[%s11577_s6 + $0x334] sm:$0xf] (%p2542_p6) }
 0x45b   : >> { %6318 = vmatprep.subr.bf16.mxu1 %v5811_v19  ;;  %v5793_v12 = vcombine.low %v12446_v0, %v12445_v22  ;;  %v12450_v19 = vld [vmem:[#allocation172_spill] sm:$0xff]  ;;  %v5808_v7 = vcombine.low %v12456_v4, %v12455_v21  ;;  %v12472_v21 = vld [vmem:[#allocation214_spill] sm:$0xff]  ;;  %12649 = vst [vmem:[#allocation398_spill] sm:$0xff] (%p2542_p6), %v11022_v40  ;;  %v11042_v39 = vld [vmem:[%s11577_s6 + $0x344] sm:$0xf] (%p2542_p6) }
 0x45c   : >> { %v5785_v17 = vcombine.low %v12450_v19, %v12449_v18  ;;  %v12462_v22 = vld [vmem:[#allocation184_spill] sm:$0xff]  ;;  %12653 = vst [vmem:[#allocation402_spill] sm:$0xff] (%p2542_p6), %v11042_v39  ;;  %v11047_v40 = vld [vmem:[%s11577_s6 + $0x348] sm:$0xf] (%p2542_p6) }
 0x45d   : >> { %6299 = vmatpush3.bf16.msra.mxu0 %v5786_v8  ;;  %v12459_v8 = vld [vmem:[#allocation203_spill] sm:$0xff]  ;;  %v12466_v18 = vld [vmem:[#allocation168_spill] sm:$0xff]  ;;  %12654 = vst [vmem:[#allocation403_spill] sm:$0xff] (%p2542_p6), %v11047_v40 }
 0x45e   : >> { %6319 = vmatpush3.bf16.msra.mxu1 %v5803_v37  ;;  %6300 = vmatprep.subr.bf16.mxu0 %v5793_v12  ;;  %v12454_v37 = vld [vmem:[#allocation186_spill] sm:$0xff]  ;;  %v5800_v5 = vcombine.low %v12460_v15, %v12459_v8  ;;  %v12463_v12 = vld [vmem:[#allocation217_spill] sm:$0xff]  ;;  %v5783_v19 = vcombine.low %v12466_v18, %v12465_v2  ;;  %v12468_v14 = vld [vmem:[#allocation200_spill] sm:$0xff] }
 0x45f   : >> { %6320 = vmatprep.subr.bf16.mxu1 %v5810_v44  ;;  %v5792_v1 = vcombine.low %v12454_v37, %v12453_v33  ;;  %v12457_v44 = vld [vmem:[#allocation171_spill] sm:$0xff]  ;;  %v5807_v16 = vcombine.low %v12464_v10, %v12463_v12  ;;  %v12470_v33 = vld [vmem:[#allocation182_spill] sm:$0xff]  ;;  %v11067_v39 = vld [vmem:[%s11577_s6 + $0x358] sm:$0xf] (%p2542_p6) }
 0x460   : >> { %v5784_v38 = vcombine.low %v12458_v13, %v12457_v44  ;;  %v12473_v13 = vld [vmem:[#allocation167_spill] sm:$0xff]  ;;  %12658 = vst [vmem:[#allocation407_spill] sm:$0xff] (%p2542_p6), %v11067_v39  ;;  %v11072_v40 = vld [vmem:[%s11577_s6 + $0x35c] sm:$0xf] (%p2542_p6)  ;;  %v11092_v39 = vld [vmem:[%s11577_s6 + $0x36c] sm:$0xf] (%p2542_p6) }
 0x461   : >> { %6301 = vmatpush3.bf16.msra.mxu0 %v5785_v17  ;;  %v12467_v17 = vld [vmem:[#allocation201_spill] sm:$0xff]  ;;  %v12475_v15 = vld [vmem:[#allocation199_spill] sm:$0xff]  ;;  %12659 = vst [vmem:[#allocation408_spill] sm:$0xff] (%p2542_p6), %v11072_v40  ;;  %12663 = vst [vmem:[#allocation412_spill] sm:$0xff] (%p2542_p6), %v11092_v39 }
 0x462   : >> { %6321 = vmatpush3.bf16.msra.mxu1 %v5802_v9  ;;  %6302 = vmatprep.subr.bf16.mxu0 %v5792_v1  ;;  %v12461_v9 = vld [vmem:[#allocation185_spill] sm:$0xff]  ;;  %v5799_v11 = vcombine.low %v12468_v14, %v12467_v17  ;;  %v12471_v1 = vld [vmem:[#allocation215_spill] sm:$0xff]  ;;  %v12477_v14 = vld [vmem:[#allocation8_spill] sm:$0xff] }
 0x463   : >> { %6322 = vmatprep.subr.bf16.mxu1 %v5809_v20  ;;  %v5791_v0 = vcombine.low %v12462_v22, %v12461_v9  ;;  %v2643_v20 = vshll.u32 %v5683_v6, 16  ;;  %v5806_v4 = vcombine.low %v12472_v21, %v12471_v1  ;;  %v11097_v40 = vld [vmem:[%s11577_s6 + $0x370] sm:$0xf] (%p2542_p6)  ;;  %v11117_v39 = vld [vmem:[%s11577_s6 + $0x380] sm:$0xf] (%p2542_p6) }
 0x464   : > { %12664 = vst [vmem:[#allocation413_spill] sm:$0xff] (%p2542_p6), %v11097_v40  ;;  %12668 = vst [vmem:[#allocation417_spill] sm:$0xff] (%p2542_p6), %v11117_v39  ;;  %v11122_v40 = vld [vmem:[%s11577_s6 + $0x384] sm:$0xf] (%p2542_p6)  ;;  %v11142_v39 = vld [vmem:[%s11577_s6 + $0x394] sm:$0xf] (%p2542_p6) }
 0x465   : >> { %6303 = vmatpush3.bf16.msra.mxu0 %v5784_v38  ;;  %v2645_v44 = vrot.slane %v2643_v20, 1  ;;  %v12474_v38 = vld [vmem:[#allocation166_spill] sm:$0xff]  ;;  %12669 = vst [vmem:[#allocation418_spill] sm:$0xff] (%p2542_p6), %v11122_v40  ;;  %12673 = vst [vmem:[#allocation422_spill] sm:$0xff] (%p2542_p6), %v11142_v39  ;;  %v11147_v40 = vld [vmem:[%s11577_s6 + $0x398] sm:$0xf] (%p2542_p6) }
 0x466   : >> { %6323 = vmatpush3.bf16.msra.mxu1 %v5801_v3  ;;  %6304 = vmatprep.subr.bf16.mxu0 %v5791_v0  ;;  %v12469_v3 = vld [vmem:[#allocation183_spill] sm:$0xff]  ;;  %v5782_v8 = vcombine.low %v12474_v38, %v12473_v13  ;;  %v6676_v0 = vmov 0.0   ;;  %12674 = vst [vmem:[#allocation423_spill] sm:$0xff] (%p2542_p6), %v11147_v40  ;;  %v11167_v39 = vld [vmem:[%s11577_s6 + $0x3a8] sm:$0xf] (%p2542_p6) }
 0x467   : >> { %6324 = vmatprep.subr.bf16.mxu1 %v5808_v7  ;;  %v5790_v37 = vcombine.low %v12470_v33, %v12469_v3  ;;  %v2641_v7 = vshrl.u32 %v5683_v6, 16  ;;  %12678 = vst [vmem:[#allocation427_spill] sm:$0xff] (%p2542_p6), %v11167_v39  ;;  %v11172_v40 = vld [vmem:[%s11577_s6 + $0x3ac] sm:$0xf] (%p2542_p6)  ;;  %v11192_v39 = vld [vmem:[%s11577_s6 + $0x3bc] sm:$0xf] (%p2542_p6) }
 0x468   : > { %12679 = vst [vmem:[#allocation428_spill] sm:$0xff] (%p2542_p6), %v11172_v40  ;;  %12683 = vst [vmem:[#allocation432_spill] sm:$0xff] (%p2542_p6), %v11192_v39  ;;  %v11197_v40 = vld [vmem:[%s11577_s6 + $0x3c0] sm:$0xf] (%p2542_p6)  ;;  %v11217_v39 = vld [vmem:[%s11577_s6 + $0x3d0] sm:$0xf] (%p2542_p6) }
 0x469   : >> { %6305 = vmatpush3.bf16.msra.mxu0 %v5783_v19  ;;  %v2646_v22 = vor.u32 %v2645_v44, %v2641_v7  ;;  %12684 = vst [vmem:[#allocation433_spill] sm:$0xff] (%p2542_p6), %v11197_v40  ;;  %12688 = vst [vmem:[#allocation437_spill] sm:$0xff] (%p2542_p6), %v11217_v39  ;;  %v11222_v40 = vld [vmem:[%s11577_s6 + $0x3d4] sm:$0xf] (%p2542_p6)  ;;  %v11242_v39 = vld [vmem:[%s11577_s6 + $0x3e4] sm:$0xf] (%p2542_p6) }
 0x46a   : >> { %6325 = vmatpush3.bf16.msra.mxu1 %v5800_v5  ;;  %v12476_v5 = vld [vmem:[#allocation198_spill] sm:$0xff]  ;;  %6306 = vmatprep.subr.bf16.mxu0 %v5790_v37  ;;  %12689 = vst [vmem:[#allocation438_spill] sm:$0xff] (%p2542_p6), %v11222_v40  ;;  %12693 = vst [vmem:[#allocation442_spill] sm:$0xff] (%p2542_p6), %v11242_v39  ;;  %v11267_v39 = vld [vmem:[%s11577_s6 + $0x3f8] sm:$0xf] (%p2542_p6) }
 0x46b   : >> { %6326 = vmatprep.subr.bf16.mxu1 %v5807_v16  ;;  %v5798_v9 = vcombine.low %v12476_v5, %v12475_v15  ;;  %v11247_v40 = vld [vmem:[%s11577_s6 + $0x3e8] sm:$0xf] (%p2542_p6)  ;;  %12698 = vst [vmem:[#allocation447_spill] sm:$0xff] (%p2542_p6), %v11267_v39 }
 0x46c   : > { %12694 = vst [vmem:[#allocation443_spill] sm:$0xff] (%p2542_p6), %v11247_v40  ;;  %v11272_v40 = vld [vmem:[%s11577_s6 + $0x3fc] sm:$0xf] (%p2542_p6) }
 0x46d   : >> { %6307 = vmatpush3.bf16.msra.mxu0 %v5782_v8  ;;  %12699 = vst [vmem:[#allocation448_spill] sm:$0xff] (%p2542_p6), %v11272_v40 }
 0x46e   : >> { %6327 = vmatpush3.bf16.msra.mxu1 %v5799_v11  ;;  %6550 = vmatprep.subr.mxu0 %v6676_v0 }
 0x46f   : >> { %6328 = vmatprep.subr.bf16.mxu1 %v5806_v4 }
 0x470   : >> { %3697 = vmatmul.mubr.bf16.vlgmr.msra.gmra.mxu0 %v5683_v6 }
 0x471   : >> { %6552 = vmatprep.mubr.msk.f32.mxu0 %vm6677_vm0, %v6676_v0 }
 0x472   : >> { %6329 = vmatpush3.bf16.msra.mxu1 %v5798_v9 }
 0x473   : >> { %6555 = vmatprep.subr.mxu1 %v6676_v0 }
 0x475   : >> { %3737 = vmatmul.mubr.bf16.vlgmr.msra.gmra.mxu1 %v2646_v22 }
 0x476   : >> { %6557 = vmatprep.mubr.msk.f32.mxu1 %vm6677_vm0, %v6676_v0 }
 0x4d0   : >> { %v6176_v12 = vpop.f32.mrf.mxu0 }
 0x4d2   : >> { %v6177_v16 = vpop.f32.mrf.mxu0 }
 0x4d3   : >> { %v6178_v2 = vadd.f32 %v6177_v16, %v6176_v12 }
 0x4d4   : >> { %v6179_v19 = vpop.f32.mrf.mxu0 }
 0x4d5   : >> { %v6198_v10 = vpop.f32.mrf.mxu1  ;;  %v3459_v11 = vadd.f32 %v6178_v2, %v12477_v14 }
 0x4d6   : >> { %v6180_v3 = vpop.f32.mrf.mxu0 }
 0x4d7   : >> { %v6199_v20 = vpop.f32.mrf.mxu1 }
 0x4d8   : >> { %v6200_v18 = vadd.f32 %v6199_v20, %v6198_v10 }
 0x4d9   : >> { %v6201_v17 = vpop.f32.mrf.mxu1 }
 0x4da   : >> { %v3499_v6 = vadd.f32 %v6200_v18, %v3459_v11 }
 0x4db   : >> { %v6202_v33 = vpop.f32.mrf.mxu1 }
 0x4f0   : >> { %v6220_v37 = vpop.f32.mrf.mxu0 }
 0x4f2   : >> { %v6221_v21 = vpop.f32.mrf.mxu0 }
 0x4f3   : >> { %v6222_v16 = vadd.f32 %v6221_v21, %v6220_v37  ;;  %v12479_v21 = vld [vmem:[#allocation7_spill] sm:$0xff] }
 0x4f4   : >> { %v6223_v7 = vpop.f32.mrf.mxu0 }
 0x4f5   : >> { %v6242_v1 = vpop.f32.mrf.mxu1  ;;  %v3539_v20 = vadd.f32 %v6222_v16, %v3499_v6 }
 0x4f6   : >> { %v6224_v13 = vpop.f32.mrf.mxu0 }
 0x4f7   : >> { %v6243_v4 = vpop.f32.mrf.mxu1 }
 0x4f8   : >> { %v6244_v2 = vadd.f32 %v6243_v4, %v6242_v1  ;;  %v12478_v1 = vld [vmem:[#allocation6_spill] sm:$0xff]  ;;  %v6678_v4 = vmov 1983009808  }
 0x4f9   : >> { %v6245_v44 = vpop.f32.mrf.mxu1 }
 0x4fa   : >> { %v3579_v19 = vadd.f32 %v6244_v2, %v3539_v20 }
 0x4fb   : >> { %v6246_v38 = vpop.f32.mrf.mxu1 }
 0x510   : >> { %v6264_v8 = vpop.f32.mrf.mxu0 }
 0x512   : >> { %v6265_v5 = vpop.f32.mrf.mxu0 }
 0x513   : >> { %v6266_v18 = vadd.f32 %v6265_v5, %v6264_v8 }
 0x514   : >> { %v6267_v22 = vpop.f32.mrf.mxu0 }
 0x515   : >> { %v6286_v15 = vpop.f32.mrf.mxu1  ;;  %v3619_v17 = vadd.f32 %v6266_v18, %v3579_v19 }
 0x516   : >> { %v6268_v12 = vpop.f32.mrf.mxu0 }
 0x517   : >> { %v6287_v9 = vpop.f32.mrf.mxu1 }
 0x518   : >> { %v6288_v14 = vadd.f32 %v6287_v9, %v6286_v15  ;;  %v12480_v15 = vld [vmem:[#allocation5_spill] sm:$0xff] }
 0x519   : >> { %v6289_v0 = vpop.f32.mrf.mxu1 }
 0x51a   : >> { %v3659_v44 = vadd.f32 %v6288_v14, %v3619_v17 }
 0x51b   : >> { %v6290_v10 = vpop.f32.mrf.mxu1 }
 0x530   : >> { %v6308_v11 = vpop.f32.mrf.mxu0 }
 0x532   : >> { %v6309_v33 = vpop.f32.mrf.mxu0 }
 0x533   : >> { %v6310_v13 = vadd.f32 %v6309_v33, %v6308_v11  ;;  %v5820_v11 = vld [vmem:[%s5448_s15 + $0x4] sm:$0xf] }
 0x534   : >> { %v6311_v38 = vpop.f32.mrf.mxu0 }
 0x535   : >> { %v6330_v3 = vpop.f32.mrf.mxu1  ;;  %v3699_v24 = vadd.f32 %v6310_v13, %v3659_v44  ;;  %v10002_v44 = vld [vmem:[%s11577_s6 + $0x4] sm:$0xf] (%p2542_p6)  ;;  %v10007_v13 = vld [vmem:[%s11577_s6 + $0x8] sm:$0xf] (%p2542_p6)  ;;  %v10012_v38 = vld [vmem:[%s11577_s6 + $0xc] sm:$0xf] (%p2542_p6) }
 0x536   : >> { %v6312_v0 = vpop.f32.mrf.mxu0  ;;  %12482 = vst [vmem:[#allocation231_spill] sm:$0xff] (%p2542_p6), %v10002_v44  ;;  %12483 = vst [vmem:[#allocation232_spill] sm:$0xff] (%p2542_p6), %v10007_v13  ;;  %v10332_v44 = vld [vmem:[%s11577_s6 + $0x10c] sm:$0xf] (%p2542_p6) }
 0x537   : >> { %v6331_v7 = vpop.f32.mrf.mxu1  ;;  %v10197_v0 = vld [vmem:[%s11577_s6 + $0xa0] sm:$0xf] (%p2542_p6)  ;;  %12511 = vst [vmem:[#allocation260_spill] sm:$0xff] (%p2542_p6), %v10332_v44 }
 0x538   : >> { %v6332_v22 = vadd.f32 %v6331_v7, %v6330_v3  ;;  %v9997_v7 = vld [vmem:[%s11577_s6] sm:$0xf] (%p2542_p6)  ;;  %12486 = vst [vmem:[#allocation235_spill] sm:$0xff] (%p2542_p6), %v10197_v0 }
 0x539   : >> { %v6333_v23 = vpop.f32.mrf.mxu1  ;;  %12481 = vst [vmem:[#allocation230_spill] sm:$0xff] (%p2542_p6), %v9997_v7  ;;  %v10327_v7 = vld [vmem:[%s11577_s6 + $0x108] sm:$0xf] (%p2542_p6)  ;;  %v10357_v44 = vld [vmem:[%s11577_s6 + $0x120] sm:$0xf] (%p2542_p6) }
 0x53a   : >> { %v3739_v10 = vadd.f32 %v6332_v22, %v3699_v24  ;;  %v3905_v23 = vunpack.c.l.s4 %v6678_v4  ;;  %v10192_v22 = vld [vmem:[%s11577_s6 + $0x9c] sm:$0xf] (%p2542_p6)  ;;  %12510 = vst [vmem:[#allocation259_spill] sm:$0xff] (%p2542_p6), %v10327_v7  ;;  %12516 = vst [vmem:[#allocation265_spill] sm:$0xff] (%p2542_p6), %v10357_v44  ;;  %v10382_v44 = vld [vmem:[%s11577_s6 + $0x134] sm:$0xf] (%p2542_p6) }
 0x53b   : >> { %v6334_v12 = vpop.f32.mrf.mxu1  ;;  %v10232_v4 = vld [vmem:[%s11577_s6 + $0xbc] sm:$0xf] (%p2542_p6)  ;;  %12521 = vst [vmem:[#allocation270_spill] sm:$0xff] (%p2542_p6), %v10382_v44  ;;  %v10407_v44 = vld [vmem:[%s11577_s6 + $0x148] sm:$0xf] (%p2542_p6) }
 0x53c   : >> { %v3745_v37 = vmul.f32 0.2, %v3739_v10  ;;  %vm3744_vm1 = vcmp.gt.f32.partialorder %v3739_v10, 0.0  ;;  %v3906_v8 = vunpack.c.0.s8 %v3905_v23  ;;  %v10202_v12 = vld [vmem:[%s11577_s6 + $0xa4] sm:$0xf] (%p2542_p6)  ;;  %12492 = vst [vmem:[#allocation241_spill] sm:$0xff] (%p2542_p6), %v10232_v4 }
 0x53d   : > { %12487 = vst [vmem:[#allocation236_spill] sm:$0xff] (%p2542_p6), %v10202_v12  ;;  %v10237_v23 = vld [vmem:[%s11577_s6 + $0xc0] sm:$0xf] (%p2542_p6)  ;;  %v10352_v7 = vld [vmem:[%s11577_s6 + $0x11c] sm:$0xf] (%p2542_p6)  ;;  %12526 = vst [vmem:[#allocation275_spill] sm:$0xff] (%p2542_p6), %v10407_v44 }
 0x53e   : >> { %v3746_v6 = vsel %vm3744_vm1, %v3739_v10, %v3745_v37  ;;  %v3909_v5 = vsub.s32 %v3906_v8, %v12480_v15  ;;  %v10207_v10 = vld [vmem:[%s11577_s6 + $0xa8] sm:$0xf] (%p2542_p6)  ;;  %v10212_v37 = vld [vmem:[%s11577_s6 + $0xac] sm:$0xf] (%p2542_p6)  ;;  %12493 = vst [vmem:[#allocation242_spill] sm:$0xff] (%p2542_p6), %v10237_v23  ;;  %12515 = vst [vmem:[#allocation264_spill] sm:$0xff] (%p2542_p6), %v10352_v7 }
 0x53f   : >> { %6551 = vmatpush3.msk.msra.mxu0 %vm603_vm7, %v3746_v6  ;;  %6556 = vmatpush3.msk.msra.mxu1 %vm603_vm7, %v3746_v6  ;;  %12488 = vst [vmem:[#allocation237_spill] sm:$0xff] (%p2542_p6), %v10207_v10  ;;  %v10217_v6 = vld [vmem:[%s11577_s6 + $0xb0] sm:$0xf] (%p2542_p6)  ;;  %v10242_v8 = vld [vmem:[%s11577_s6 + $0xc4] sm:$0xf] (%p2542_p6) }
 0x540   : >> { %6553 = vmatmul.mubr.msk.f32.vlgmr.msra.gmra.mxu0 %vm3747_vm2, %v12478_v1  ;;  %6558 = vmatmul.mubr.msk.f32.vlgmr.msra.gmra.mxu1 %vm3747_vm2, %v12479_v21  ;;  %12489 = vst [vmem:[#allocation238_spill] sm:$0xff] (%p2542_p6), %v10217_v6  ;;  %v10222_v1 = vld [vmem:[%s11577_s6 + $0xb4] sm:$0xf] (%p2542_p6)  ;;  %v10227_v21 = vld [vmem:[%s11577_s6 + $0xb8] sm:$0xf] (%p2542_p6)  ;;  %12494 = vst [vmem:[#allocation243_spill] sm:$0xff] (%p2542_p6), %v10242_v8 }
 0x541   : > { %12490 = vst [vmem:[#allocation239_spill] sm:$0xff] (%p2542_p6), %v10222_v1  ;;  %12491 = vst [vmem:[#allocation240_spill] sm:$0xff] (%p2542_p6), %v10227_v21  ;;  %v10247_v15 = vld [vmem:[%s11577_s6 + $0xc8] sm:$0xf] (%p2542_p6)  ;;  %v10337_v23 = vld [vmem:[%s11577_s6 + $0x110] sm:$0xf] (%p2542_p6) }
 0x542   : > { %12495 = vst [vmem:[#allocation244_spill] sm:$0xff] (%p2542_p6), %v10247_v15  ;;  %12512 = vst [vmem:[#allocation261_spill] sm:$0xff] (%p2542_p6), %v10337_v23  ;;  %v10362_v23 = vld [vmem:[%s11577_s6 + $0x124] sm:$0xf] (%p2542_p6)  ;;  %v10377_v7 = vld [vmem:[%s11577_s6 + $0x130] sm:$0xf] (%p2542_p6) }
 0x543   : > { %12517 = vst [vmem:[#allocation266_spill] sm:$0xff] (%p2542_p6), %v10362_v23  ;;  %12520 = vst [vmem:[#allocation269_spill] sm:$0xff] (%p2542_p6), %v10377_v7  ;;  %v10387_v23 = vld [vmem:[%s11577_s6 + $0x138] sm:$0xf] (%p2542_p6)  ;;  %v10402_v7 = vld [vmem:[%s11577_s6 + $0x144] sm:$0xf] (%p2542_p6) }
 0x544   : > { %12522 = vst [vmem:[#allocation271_spill] sm:$0xff] (%p2542_p6), %v10387_v23  ;;  %12525 = vst [vmem:[#allocation274_spill] sm:$0xff] (%p2542_p6), %v10402_v7  ;;  %v10412_v23 = vld [vmem:[%s11577_s6 + $0x14c] sm:$0xf] (%p2542_p6)  ;;  %v10427_v7 = vld [vmem:[%s11577_s6 + $0x158] sm:$0xf] (%p2542_p6) }
 0x545   : > { %12527 = vst [vmem:[#allocation276_spill] sm:$0xff] (%p2542_p6), %v10412_v23  ;;  %12530 = vst [vmem:[#allocation279_spill] sm:$0xff] (%p2542_p6), %v10427_v7  ;;  %v10432_v44 = vld [vmem:[%s11577_s6 + $0x15c] sm:$0xf] (%p2542_p6)  ;;  %v10437_v23 = vld [vmem:[%s11577_s6 + $0x160] sm:$0xf] (%p2542_p6) }
 0x546   : > { %12531 = vst [vmem:[#allocation280_spill] sm:$0xff] (%p2542_p6), %v10432_v44  ;;  %12532 = vst [vmem:[#allocation281_spill] sm:$0xff] (%p2542_p6), %v10437_v23  ;;  %v10452_v7 = vld [vmem:[%s11577_s6 + $0x16c] sm:$0xf] (%p2542_p6)  ;;  %v10457_v44 = vld [vmem:[%s11577_s6 + $0x170] sm:$0xf] (%p2542_p6) }
 0x547   : > { %12535 = vst [vmem:[#allocation284_spill] sm:$0xff] (%p2542_p6), %v10452_v7  ;;  %12536 = vst [vmem:[#allocation285_spill] sm:$0xff] (%p2542_p6), %v10457_v44  ;;  %v10462_v23 = vld [vmem:[%s11577_s6 + $0x174] sm:$0xf] (%p2542_p6)  ;;  %v10477_v7 = vld [vmem:[%s11577_s6 + $0x180] sm:$0xf] (%p2542_p6) }
 0x548   : > { %12537 = vst [vmem:[#allocation286_spill] sm:$0xff] (%p2542_p6), %v10462_v23  ;;  %12540 = vst [vmem:[#allocation289_spill] sm:$0xff] (%p2542_p6), %v10477_v7  ;;  %v10482_v44 = vld [vmem:[%s11577_s6 + $0x184] sm:$0xf] (%p2542_p6)  ;;  %v10487_v23 = vld [vmem:[%s11577_s6 + $0x188] sm:$0xf] (%p2542_p6) }
 0x549   : > { %12541 = vst [vmem:[#allocation290_spill] sm:$0xff] (%p2542_p6), %v10482_v44  ;;  %12542 = vst [vmem:[#allocation291_spill] sm:$0xff] (%p2542_p6), %v10487_v23  ;;  %v10502_v7 = vld [vmem:[%s11577_s6 + $0x194] sm:$0xf] (%p2542_p6)  ;;  %v10507_v44 = vld [vmem:[%s11577_s6 + $0x198] sm:$0xf] (%p2542_p6) }
 0x54a   : > { %12545 = vst [vmem:[#allocation294_spill] sm:$0xff] (%p2542_p6), %v10502_v7  ;;  %12546 = vst [vmem:[#allocation295_spill] sm:$0xff] (%p2542_p6), %v10507_v44  ;;  %v10512_v23 = vld [vmem:[%s11577_s6 + $0x19c] sm:$0xf] (%p2542_p6)  ;;  %v10527_v7 = vld [vmem:[%s11577_s6 + $0x1a8] sm:$0xf] (%p2542_p6) }
 0x54b   : > { %12547 = vst [vmem:[#allocation296_spill] sm:$0xff] (%p2542_p6), %v10512_v23  ;;  %12550 = vst [vmem:[#allocation299_spill] sm:$0xff] (%p2542_p6), %v10527_v7  ;;  %v10532_v44 = vld [vmem:[%s11577_s6 + $0x1ac] sm:$0xf] (%p2542_p6)  ;;  %v10537_v23 = vld [vmem:[%s11577_s6 + $0x1b0] sm:$0xf] (%p2542_p6) }
 0x54c   : > { %12551 = vst [vmem:[#allocation300_spill] sm:$0xff] (%p2542_p6), %v10532_v44  ;;  %12552 = vst [vmem:[#allocation301_spill] sm:$0xff] (%p2542_p6), %v10537_v23  ;;  %v10552_v7 = vld [vmem:[%s11577_s6 + $0x1bc] sm:$0xf] (%p2542_p6)  ;;  %v10557_v44 = vld [vmem:[%s11577_s6 + $0x1c0] sm:$0xf] (%p2542_p6) }
 0x54d   : > { %12555 = vst [vmem:[#allocation304_spill] sm:$0xff] (%p2542_p6), %v10552_v7  ;;  %12556 = vst [vmem:[#allocation305_spill] sm:$0xff] (%p2542_p6), %v10557_v44  ;;  %v10562_v23 = vld [vmem:[%s11577_s6 + $0x1c4] sm:$0xf] (%p2542_p6)  ;;  %v10577_v7 = vld [vmem:[%s11577_s6 + $0x1d0] sm:$0xf] (%p2542_p6) }
 0x54e   : > { %12557 = vst [vmem:[#allocation306_spill] sm:$0xff] (%p2542_p6), %v10562_v23  ;;  %12560 = vst [vmem:[#allocation309_spill] sm:$0xff] (%p2542_p6), %v10577_v7  ;;  %v10582_v44 = vld [vmem:[%s11577_s6 + $0x1d4] sm:$0xf] (%p2542_p6)  ;;  %v10587_v23 = vld [vmem:[%s11577_s6 + $0x1d8] sm:$0xf] (%p2542_p6) }
 0x54f   : > { %12561 = vst [vmem:[#allocation310_spill] sm:$0xff] (%p2542_p6), %v10582_v44  ;;  %12562 = vst [vmem:[#allocation311_spill] sm:$0xff] (%p2542_p6), %v10587_v23  ;;  %v10602_v7 = vld [vmem:[%s11577_s6 + $0x1e4] sm:$0xf] (%p2542_p6)  ;;  %v10607_v44 = vld [vmem:[%s11577_s6 + $0x1e8] sm:$0xf] (%p2542_p6) }
 0x550   : > { %12565 = vst [vmem:[#allocation314_spill] sm:$0xff] (%p2542_p6), %v10602_v7  ;;  %12566 = vst [vmem:[#allocation315_spill] sm:$0xff] (%p2542_p6), %v10607_v44  ;;  %v10612_v23 = vld [vmem:[%s11577_s6 + $0x1ec] sm:$0xf] (%p2542_p6)  ;;  %v10627_v7 = vld [vmem:[%s11577_s6 + $0x1f8] sm:$0xf] (%p2542_p6) }
 0x551   : > { %12567 = vst [vmem:[#allocation316_spill] sm:$0xff] (%p2542_p6), %v10612_v23  ;;  %12570 = vst [vmem:[#allocation319_spill] sm:$0xff] (%p2542_p6), %v10627_v7  ;;  %v10632_v44 = vld [vmem:[%s11577_s6 + $0x1fc] sm:$0xf] (%p2542_p6)  ;;  %v10637_v23 = vld [vmem:[%s11577_s6 + $0x200] sm:$0xf] (%p2542_p6) }
 0x552   : > { %12571 = vst [vmem:[#allocation320_spill] sm:$0xff] (%p2542_p6), %v10632_v44  ;;  %12572 = vst [vmem:[#allocation321_spill] sm:$0xff] (%p2542_p6), %v10637_v23  ;;  %v10652_v7 = vld [vmem:[%s11577_s6 + $0x20c] sm:$0xf] (%p2542_p6)  ;;  %v10657_v44 = vld [vmem:[%s11577_s6 + $0x210] sm:$0xf] (%p2542_p6) }
 0x553   : > { %12575 = vst [vmem:[#allocation324_spill] sm:$0xff] (%p2542_p6), %v10652_v7  ;;  %12576 = vst [vmem:[#allocation325_spill] sm:$0xff] (%p2542_p6), %v10657_v44  ;;  %v10662_v23 = vld [vmem:[%s11577_s6 + $0x214] sm:$0xf] (%p2542_p6)  ;;  %v10677_v7 = vld [vmem:[%s11577_s6 + $0x220] sm:$0xf] (%p2542_p6) }
 0x554   : > { %12577 = vst [vmem:[#allocation326_spill] sm:$0xff] (%p2542_p6), %v10662_v23  ;;  %12580 = vst [vmem:[#allocation329_spill] sm:$0xff] (%p2542_p6), %v10677_v7  ;;  %v10682_v44 = vld [vmem:[%s11577_s6 + $0x224] sm:$0xf] (%p2542_p6)  ;;  %v10687_v23 = vld [vmem:[%s11577_s6 + $0x228] sm:$0xf] (%p2542_p6) }
 0x555   : > { %12581 = vst [vmem:[#allocation330_spill] sm:$0xff] (%p2542_p6), %v10682_v44  ;;  %12582 = vst [vmem:[#allocation331_spill] sm:$0xff] (%p2542_p6), %v10687_v23  ;;  %v10702_v7 = vld [vmem:[%s11577_s6 + $0x234] sm:$0xf] (%p2542_p6)  ;;  %v10707_v44 = vld [vmem:[%s11577_s6 + $0x238] sm:$0xf] (%p2542_p6) }
 0x556   : > { %12585 = vst [vmem:[#allocation334_spill] sm:$0xff] (%p2542_p6), %v10702_v7  ;;  %12586 = vst [vmem:[#allocation335_spill] sm:$0xff] (%p2542_p6), %v10707_v44  ;;  %v10712_v23 = vld [vmem:[%s11577_s6 + $0x23c] sm:$0xf] (%p2542_p6)  ;;  %v10727_v7 = vld [vmem:[%s11577_s6 + $0x248] sm:$0xf] (%p2542_p6) }
 0x557   : > { %12587 = vst [vmem:[#allocation336_spill] sm:$0xff] (%p2542_p6), %v10712_v23  ;;  %12590 = vst [vmem:[#allocation339_spill] sm:$0xff] (%p2542_p6), %v10727_v7  ;;  %v10732_v44 = vld [vmem:[%s11577_s6 + $0x24c] sm:$0xf] (%p2542_p6)  ;;  %v10737_v23 = vld [vmem:[%s11577_s6 + $0x250] sm:$0xf] (%p2542_p6) }
 0x558   : > { %12591 = vst [vmem:[#allocation340_spill] sm:$0xff] (%p2542_p6), %v10732_v44  ;;  %12592 = vst [vmem:[#allocation341_spill] sm:$0xff] (%p2542_p6), %v10737_v23  ;;  %v10752_v7 = vld [vmem:[%s11577_s6 + $0x25c] sm:$0xf] (%p2542_p6)  ;;  %v10757_v44 = vld [vmem:[%s11577_s6 + $0x260] sm:$0xf] (%p2542_p6) }
 0x559   : > { %12595 = vst [vmem:[#allocation344_spill] sm:$0xff] (%p2542_p6), %v10752_v7  ;;  %12596 = vst [vmem:[#allocation345_spill] sm:$0xff] (%p2542_p6), %v10757_v44  ;;  %v10762_v23 = vld [vmem:[%s11577_s6 + $0x264] sm:$0xf] (%p2542_p6)  ;;  %v10777_v7 = vld [vmem:[%s11577_s6 + $0x270] sm:$0xf] (%p2542_p6) }
 0x55a   : > { %12597 = vst [vmem:[#allocation346_spill] sm:$0xff] (%p2542_p6), %v10762_v23  ;;  %12600 = vst [vmem:[#allocation349_spill] sm:$0xff] (%p2542_p6), %v10777_v7  ;;  %v10782_v44 = vld [vmem:[%s11577_s6 + $0x274] sm:$0xf] (%p2542_p6)  ;;  %v10787_v23 = vld [vmem:[%s11577_s6 + $0x278] sm:$0xf] (%p2542_p6) }
 0x55b   : > { %12601 = vst [vmem:[#allocation350_spill] sm:$0xff] (%p2542_p6), %v10782_v44  ;;  %12602 = vst [vmem:[#allocation351_spill] sm:$0xff] (%p2542_p6), %v10787_v23  ;;  %v10802_v7 = vld [vmem:[%s11577_s6 + $0x284] sm:$0xf] (%p2542_p6)  ;;  %v10807_v44 = vld [vmem:[%s11577_s6 + $0x288] sm:$0xf] (%p2542_p6) }
 0x55c   : > { %12605 = vst [vmem:[#allocation354_spill] sm:$0xff] (%p2542_p6), %v10802_v7  ;;  %12606 = vst [vmem:[#allocation355_spill] sm:$0xff] (%p2542_p6), %v10807_v44  ;;  %v10812_v23 = vld [vmem:[%s11577_s6 + $0x28c] sm:$0xf] (%p2542_p6)  ;;  %v10827_v7 = vld [vmem:[%s11577_s6 + $0x298] sm:$0xf] (%p2542_p6) }
 0x55d   : > { %12607 = vst [vmem:[#allocation356_spill] sm:$0xff] (%p2542_p6), %v10812_v23  ;;  %12610 = vst [vmem:[#allocation359_spill] sm:$0xff] (%p2542_p6), %v10827_v7  ;;  %v10832_v44 = vld [vmem:[%s11577_s6 + $0x29c] sm:$0xf] (%p2542_p6)  ;;  %v10837_v23 = vld [vmem:[%s11577_s6 + $0x2a0] sm:$0xf] (%p2542_p6) }
 0x55e   : > { %12611 = vst [vmem:[#allocation360_spill] sm:$0xff] (%p2542_p6), %v10832_v44  ;;  %12612 = vst [vmem:[#allocation361_spill] sm:$0xff] (%p2542_p6), %v10837_v23  ;;  %v10852_v7 = vld [vmem:[%s11577_s6 + $0x2ac] sm:$0xf] (%p2542_p6)  ;;  %v10857_v44 = vld [vmem:[%s11577_s6 + $0x2b0] sm:$0xf] (%p2542_p6) }
 0x55f   : > { %12615 = vst [vmem:[#allocation364_spill] sm:$0xff] (%p2542_p6), %v10852_v7  ;;  %12616 = vst [vmem:[#allocation365_spill] sm:$0xff] (%p2542_p6), %v10857_v44  ;;  %v10862_v23 = vld [vmem:[%s11577_s6 + $0x2b4] sm:$0xf] (%p2542_p6)  ;;  %v10877_v7 = vld [vmem:[%s11577_s6 + $0x2c0] sm:$0xf] (%p2542_p6) }
 0x560   : > { %12617 = vst [vmem:[#allocation366_spill] sm:$0xff] (%p2542_p6), %v10862_v23  ;;  %12620 = vst [vmem:[#allocation369_spill] sm:$0xff] (%p2542_p6), %v10877_v7  ;;  %v10882_v44 = vld [vmem:[%s11577_s6 + $0x2c4] sm:$0xf] (%p2542_p6)  ;;  %v10887_v23 = vld [vmem:[%s11577_s6 + $0x2c8] sm:$0xf] (%p2542_p6) }
 0x561   : > { %12621 = vst [vmem:[#allocation370_spill] sm:$0xff] (%p2542_p6), %v10882_v44  ;;  %12622 = vst [vmem:[#allocation371_spill] sm:$0xff] (%p2542_p6), %v10887_v23  ;;  %v10902_v7 = vld [vmem:[%s11577_s6 + $0x2d4] sm:$0xf] (%p2542_p6)  ;;  %v10907_v44 = vld [vmem:[%s11577_s6 + $0x2d8] sm:$0xf] (%p2542_p6) }
 0x562   : > { %12625 = vst [vmem:[#allocation374_spill] sm:$0xff] (%p2542_p6), %v10902_v7  ;;  %12626 = vst [vmem:[#allocation375_spill] sm:$0xff] (%p2542_p6), %v10907_v44  ;;  %v10912_v23 = vld [vmem:[%s11577_s6 + $0x2dc] sm:$0xf] (%p2542_p6)  ;;  %v10927_v7 = vld [vmem:[%s11577_s6 + $0x2e8] sm:$0xf] (%p2542_p6) }
 0x563   : > { %12627 = vst [vmem:[#allocation376_spill] sm:$0xff] (%p2542_p6), %v10912_v23  ;;  %12630 = vst [vmem:[#allocation379_spill] sm:$0xff] (%p2542_p6), %v10927_v7  ;;  %v10932_v44 = vld [vmem:[%s11577_s6 + $0x2ec] sm:$0xf] (%p2542_p6)  ;;  %v10937_v23 = vld [vmem:[%s11577_s6 + $0x2f0] sm:$0xf] (%p2542_p6) }
 0x564   : > { %12631 = vst [vmem:[#allocation380_spill] sm:$0xff] (%p2542_p6), %v10932_v44  ;;  %12632 = vst [vmem:[#allocation381_spill] sm:$0xff] (%p2542_p6), %v10937_v23  ;;  %v10952_v7 = vld [vmem:[%s11577_s6 + $0x2fc] sm:$0xf] (%p2542_p6)  ;;  %v10957_v44 = vld [vmem:[%s11577_s6 + $0x300] sm:$0xf] (%p2542_p6) }
 0x565   : > { %12635 = vst [vmem:[#allocation384_spill] sm:$0xff] (%p2542_p6), %v10952_v7  ;;  %12636 = vst [vmem:[#allocation385_spill] sm:$0xff] (%p2542_p6), %v10957_v44  ;;  %v10962_v23 = vld [vmem:[%s11577_s6 + $0x304] sm:$0xf] (%p2542_p6)  ;;  %v10977_v7 = vld [vmem:[%s11577_s6 + $0x310] sm:$0xf] (%p2542_p6) }
 0x566   : > { %12637 = vst [vmem:[#allocation386_spill] sm:$0xff] (%p2542_p6), %v10962_v23  ;;  %12640 = vst [vmem:[#allocation389_spill] sm:$0xff] (%p2542_p6), %v10977_v7  ;;  %v10982_v44 = vld [vmem:[%s11577_s6 + $0x314] sm:$0xf] (%p2542_p6)  ;;  %v10987_v23 = vld [vmem:[%s11577_s6 + $0x318] sm:$0xf] (%p2542_p6) }
 0x567   : > { %12641 = vst [vmem:[#allocation390_spill] sm:$0xff] (%p2542_p6), %v10982_v44  ;;  %12642 = vst [vmem:[#allocation391_spill] sm:$0xff] (%p2542_p6), %v10987_v23  ;;  %v11002_v7 = vld [vmem:[%s11577_s6 + $0x324] sm:$0xf] (%p2542_p6)  ;;  %v11007_v44 = vld [vmem:[%s11577_s6 + $0x328] sm:$0xf] (%p2542_p6) }
 0x568   : > { %12645 = vst [vmem:[#allocation394_spill] sm:$0xff] (%p2542_p6), %v11002_v7  ;;  %12646 = vst [vmem:[#allocation395_spill] sm:$0xff] (%p2542_p6), %v11007_v44  ;;  %v11012_v23 = vld [vmem:[%s11577_s6 + $0x32c] sm:$0xf] (%p2542_p6)  ;;  %v11027_v7 = vld [vmem:[%s11577_s6 + $0x338] sm:$0xf] (%p2542_p6) }
 0x569   : > { %12647 = vst [vmem:[#allocation396_spill] sm:$0xff] (%p2542_p6), %v11012_v23  ;;  %12650 = vst [vmem:[#allocation399_spill] sm:$0xff] (%p2542_p6), %v11027_v7  ;;  %v11032_v44 = vld [vmem:[%s11577_s6 + $0x33c] sm:$0xf] (%p2542_p6)  ;;  %v11037_v23 = vld [vmem:[%s11577_s6 + $0x340] sm:$0xf] (%p2542_p6) }
 0x56a   : > { %12651 = vst [vmem:[#allocation400_spill] sm:$0xff] (%p2542_p6), %v11032_v44  ;;  %12652 = vst [vmem:[#allocation401_spill] sm:$0xff] (%p2542_p6), %v11037_v23  ;;  %v11052_v7 = vld [vmem:[%s11577_s6 + $0x34c] sm:$0xf] (%p2542_p6)  ;;  %v11057_v44 = vld [vmem:[%s11577_s6 + $0x350] sm:$0xf] (%p2542_p6) }
 0x56b   : > { %12655 = vst [vmem:[#allocation404_spill] sm:$0xff] (%p2542_p6), %v11052_v7  ;;  %12656 = vst [vmem:[#allocation405_spill] sm:$0xff] (%p2542_p6), %v11057_v44  ;;  %v11062_v23 = vld [vmem:[%s11577_s6 + $0x354] sm:$0xf] (%p2542_p6)  ;;  %v11077_v7 = vld [vmem:[%s11577_s6 + $0x360] sm:$0xf] (%p2542_p6) }
 0x56c   : > { %12657 = vst [vmem:[#allocation406_spill] sm:$0xff] (%p2542_p6), %v11062_v23  ;;  %12660 = vst [vmem:[#allocation409_spill] sm:$0xff] (%p2542_p6), %v11077_v7  ;;  %v11082_v44 = vld [vmem:[%s11577_s6 + $0x364] sm:$0xf] (%p2542_p6)  ;;  %v11087_v23 = vld [vmem:[%s11577_s6 + $0x368] sm:$0xf] (%p2542_p6) }
 0x56d   : > { %12661 = vst [vmem:[#allocation410_spill] sm:$0xff] (%p2542_p6), %v11082_v44  ;;  %12662 = vst [vmem:[#allocation411_spill] sm:$0xff] (%p2542_p6), %v11087_v23  ;;  %v11102_v7 = vld [vmem:[%s11577_s6 + $0x374] sm:$0xf] (%p2542_p6)  ;;  %v11107_v44 = vld [vmem:[%s11577_s6 + $0x378] sm:$0xf] (%p2542_p6) }
 0x56e   : > { %12665 = vst [vmem:[#allocation414_spill] sm:$0xff] (%p2542_p6), %v11102_v7  ;;  %12666 = vst [vmem:[#allocation415_spill] sm:$0xff] (%p2542_p6), %v11107_v44  ;;  %v11112_v23 = vld [vmem:[%s11577_s6 + $0x37c] sm:$0xf] (%p2542_p6)  ;;  %v11127_v7 = vld [vmem:[%s11577_s6 + $0x388] sm:$0xf] (%p2542_p6) }
 0x56f   : > { %12667 = vst [vmem:[#allocation416_spill] sm:$0xff] (%p2542_p6), %v11112_v23  ;;  %12670 = vst [vmem:[#allocation419_spill] sm:$0xff] (%p2542_p6), %v11127_v7  ;;  %v11132_v44 = vld [vmem:[%s11577_s6 + $0x38c] sm:$0xf] (%p2542_p6)  ;;  %v11137_v23 = vld [vmem:[%s11577_s6 + $0x390] sm:$0xf] (%p2542_p6) }
 0x570   : > { %12671 = vst [vmem:[#allocation420_spill] sm:$0xff] (%p2542_p6), %v11132_v44  ;;  %12672 = vst [vmem:[#allocation421_spill] sm:$0xff] (%p2542_p6), %v11137_v23  ;;  %v11152_v7 = vld [vmem:[%s11577_s6 + $0x39c] sm:$0xf] (%p2542_p6)  ;;  %v11157_v44 = vld [vmem:[%s11577_s6 + $0x3a0] sm:$0xf] (%p2542_p6) }
 0x571   : > { %12675 = vst [vmem:[#allocation424_spill] sm:$0xff] (%p2542_p6), %v11152_v7  ;;  %12676 = vst [vmem:[#allocation425_spill] sm:$0xff] (%p2542_p6), %v11157_v44  ;;  %v11162_v23 = vld [vmem:[%s11577_s6 + $0x3a4] sm:$0xf] (%p2542_p6)  ;;  %v11177_v7 = vld [vmem:[%s11577_s6 + $0x3b0] sm:$0xf] (%p2542_p6) }
 0x572   : > { %12677 = vst [vmem:[#allocation426_spill] sm:$0xff] (%p2542_p6), %v11162_v23  ;;  %12680 = vst [vmem:[#allocation429_spill] sm:$0xff] (%p2542_p6), %v11177_v7  ;;  %v11182_v44 = vld [vmem:[%s11577_s6 + $0x3b4] sm:$0xf] (%p2542_p6)  ;;  %v11187_v23 = vld [vmem:[%s11577_s6 + $0x3b8] sm:$0xf] (%p2542_p6) }
 0x573   : > { %12681 = vst [vmem:[#allocation430_spill] sm:$0xff] (%p2542_p6), %v11182_v44  ;;  %12682 = vst [vmem:[#allocation431_spill] sm:$0xff] (%p2542_p6), %v11187_v23  ;;  %v11202_v7 = vld [vmem:[%s11577_s6 + $0x3c4] sm:$0xf] (%p2542_p6)  ;;  %v11207_v44 = vld [vmem:[%s11577_s6 + $0x3c8] sm:$0xf] (%p2542_p6) }
 0x574   : > { %12685 = vst [vmem:[#allocation434_spill] sm:$0xff] (%p2542_p6), %v11202_v7  ;;  %12686 = vst [vmem:[#allocation435_spill] sm:$0xff] (%p2542_p6), %v11207_v44  ;;  %v11212_v23 = vld [vmem:[%s11577_s6 + $0x3cc] sm:$0xf] (%p2542_p6)  ;;  %v11227_v7 = vld [vmem:[%s11577_s6 + $0x3d8] sm:$0xf] (%p2542_p6) }
 0x575   : > { %12687 = vst [vmem:[#allocation436_spill] sm:$0xff] (%p2542_p6), %v11212_v23  ;;  %12690 = vst [vmem:[#allocation439_spill] sm:$0xff] (%p2542_p6), %v11227_v7  ;;  %v11232_v44 = vld [vmem:[%s11577_s6 + $0x3dc] sm:$0xf] (%p2542_p6)  ;;  %v11237_v23 = vld [vmem:[%s11577_s6 + $0x3e0] sm:$0xf] (%p2542_p6) }
 0x576   : > { %12691 = vst [vmem:[#allocation440_spill] sm:$0xff] (%p2542_p6), %v11232_v44  ;;  %12692 = vst [vmem:[#allocation441_spill] sm:$0xff] (%p2542_p6), %v11237_v23  ;;  %v11252_v7 = vld [vmem:[%s11577_s6 + $0x3ec] sm:$0xf] (%p2542_p6)  ;;  %v11257_v44 = vld [vmem:[%s11577_s6 + $0x3f0] sm:$0xf] (%p2542_p6) }
 0x577   : > { %12695 = vst [vmem:[#allocation444_spill] sm:$0xff] (%p2542_p6), %v11252_v7  ;;  %12696 = vst [vmem:[#allocation445_spill] sm:$0xff] (%p2542_p6), %v11257_v44  ;;  %v11262_v23 = vld [vmem:[%s11577_s6 + $0x3f4] sm:$0xf] (%p2542_p6) }
 0x578   : > { %12697 = vst [vmem:[#allocation446_spill] sm:$0xff] (%p2542_p6), %v11262_v23 }
 0x600   : >> { %v3821_v9 = vpop.f32.mrf.mxu0  ;;  %v3894_v24 = vpop.f32.mrf.mxu1 }
 0x601   : >> { %v5818_v16 = vpack.c.bf16 %v3894_v24, %v3821_v9  ;;  %v10257_v9 = vld [vmem:[%s11577_s6 + $0xd0] sm:$0xf] (%p2542_p6)  ;;  %v10262_v24 = vld [vmem:[%s11577_s6 + $0xd4] sm:$0xf] (%p2542_p6) }
 0x602   : >> { %v6554_v20 = vpop.f32.mrf.mxu0  ;;  %v6559_v2 = vpop.f32.mrf.mxu1  ;;  %12497 = vst [vmem:[#allocation246_spill] sm:$0xff] (%p2542_p6), %v10257_v9 }
 0x603   : >> { %v3910_v18 = vrot.slane %v5818_v16, %v3909_v5  ;;  %v10252_v5 = vld [vmem:[%s11577_s6 + $0xcc] sm:$0xf] (%p2542_p6)  ;;  %v10267_v16 = vld [vmem:[%s11577_s6 + $0xd8] sm:$0xf] (%p2542_p6)  ;;  %v10272_v20 = vld [vmem:[%s11577_s6 + $0xdc] sm:$0xf] (%p2542_p6) }
 0x604   : > { %12496 = vst [vmem:[#allocation245_spill] sm:$0xff] (%p2542_p6), %v10252_v5  ;;  %12498 = vst [vmem:[#allocation247_spill] sm:$0xff] (%p2542_p6), %v10267_v16  ;;  %v10277_v2 = vld [vmem:[%s11577_s6 + $0xe0] sm:$0xf] (%p2542_p6) }
 0x605   : >> { %v3912_v19 = vshrl.u32 %v3910_v18, 16  ;;  %v3915_v14 = vshll.u32 %v3910_v18, 16  ;;  %12499 = vst [vmem:[#allocation248_spill] sm:$0xff] (%p2542_p6), %v10272_v20  ;;  %12500 = vst [vmem:[#allocation249_spill] sm:$0xff] (%p2542_p6), %v10277_v2  ;;  %v10282_v18 = vld [vmem:[%s11577_s6 + $0xe4] sm:$0xf] (%p2542_p6) }
 0x606   : > { %12501 = vst [vmem:[#allocation250_spill] sm:$0xff] (%p2542_p6), %v10282_v18 }
 0x607   : >> { %v3914_v17 = vrot.slane %v3912_v19, 7  ;;  %v10287_v19 = vld [vmem:[%s11577_s6 + $0xe8] sm:$0xf] (%p2542_p6) }
 0x608   : > { %2544 = sbr.rel (!%p2542_p6) target bundleno = 1004 (0x3ec), region = 136  ;;  %12502 = vst [vmem:[#allocation251_spill] sm:$0xff] (%p2542_p6), %v10287_v19 }
 0x609   : >> { %v3917_v3 = vor.u32 %v3915_v14, %v3914_v17  ;;  %v10292_v17 = vld [vmem:[%s11577_s6 + $0xec] sm:$0xf] (%p2542_p6)  ;;  %v10297_v14 = vld [vmem:[%s11577_s6 + $0xf0] sm:$0xf] (%p2542_p6) }
 0x60a   : > { %12503 = vst [vmem:[#allocation252_spill] sm:$0xff] (%p2542_p6), %v10292_v17  ;;  %12504 = vst [vmem:[#allocation253_spill] sm:$0xff] (%p2542_p6), %v10297_v14 }
 0x60b   : >> { %v3930_v33 = vsel %vm3928_vm10, %v3917_v3, %v5820_v11  ;;  %v10302_v11 = vld [vmem:[%s11577_s6 + $0xf4] sm:$0xf] (%p2542_p6)  ;;  %v10307_v3 = vld [vmem:[%s11577_s6 + $0xf8] sm:$0xf] (%p2542_p6) }
 0x60c   : >> { %5821 = vst [vmem:[%s5448_s15 + $0x4] sm:$0xf] %v3930_v33  ;;  %12505 = vst [vmem:[#allocation254_spill] sm:$0xff] (%p2542_p6), %v10302_v11  ;;  %v10312_v33 = vld [vmem:[%s11577_s6 + $0xfc] sm:$0xf] (%p2542_p6) }
 0x60d   : > { %12506 = vst [vmem:[#allocation255_spill] sm:$0xff] %v10307_v3  ;;  %12507 = vst [vmem:[#allocation256_spill] sm:$0xff] %v10312_v33 }
 0x60e LB: >> { %v5844_v7 = vcombine.low %v10147_v35, %v10152_v36  ;;  %v5836_v23 = vcombine.low %v10067_v55, %v10072_v56  ;;  %v12702_v4 = vld [vmem:[#allocation241_spill] sm:$0xff]  ;;  %v12703_v21 = vld [vmem:[#allocation240_spill] sm:$0xff]  ;;  %v5843_v40 = vcombine.low %v10137_v30, %v10142_v34  ;;  %s5969_s27 = sshll.u32 %s6668_s26, 3  ;;  %v12706_v1 = vld [vmem:[#allocation239_spill] sm:$0xff]  ;;  %s5822_s29 = sshll.u32 %s6668_s26, 1  ;;  %s6668_s26 = sphi %s11274_s26, %s4193_s26  }
 0x60f   : >> { %v5852_v39 = vcombine.low %v12703_v21, %v12702_v4  ;;  %v12707_v6 = vld [vmem:[#allocation238_spill] sm:$0xff]  ;;  %v5842_v4 = vcombine.low %v10127_v28, %v10132_v29  ;;  %v12709_v19 = vld [vmem:[#allocation251_spill] sm:$0xff]  ;;  %s11300_s28 = scalar_lea.vmem [#allocation4], %s5969_s27  ;;  %v12710_v10 = vld [vmem:[#allocation237_spill] sm:$0xff]  ;;  %s5402_s30 = scalar_lea.vmem %s6778_s23, %s5822_s29 }
 0x610   : >> { %6340 = vmatprep.subr.bf16.mxu0 %v5844_v7  ;;  %v12711_v18 = vld [vmem:[#allocation250_spill] sm:$0xff]  ;;  %v12712_v2 = vld [vmem:[#allocation249_spill] sm:$0xff]  ;;  %v12713_v12 = vld [vmem:[#allocation236_spill] sm:$0xff]  ;;  %s4193_s26 = sadd.s32 1, %s6668_s26  }
 0x611   : >> { %v12705_v14 = vld [vmem:[#allocation253_spill] sm:$0xff]  ;;  %6341 = vmatpush3.bf16.msra.mxu0 %v5836_v23  ;;  %v12708_v17 = vld [vmem:[#allocation252_spill] sm:$0xff]  ;;  %v5857_v23 = vcombine.low %v12712_v2, %v12711_v18  ;;  %v12714_v0 = vld [vmem:[#allocation235_spill] sm:$0xff]  ;;  %p4190_p7 = scmp.ge.s32.totalorder %s4193_s26, 2  }
 0x612   : >> { %6342 = vmatprep.subr.bf16.mxu0 %v5843_v40  ;;  %v5858_v21 = vcombine.low %v12709_v19, %v12708_v17  ;;  %v5841_v40 = vcombine.low %v10117_v26, %v10122_v27  ;;  %v12715_v20 = vld [vmem:[#allocation248_spill] sm:$0xff]  ;;  %v12716_v16 = vld [vmem:[#allocation247_spill] sm:$0xff]  ;;  %v12717_v9 = vld [vmem:[#allocation246_spill] sm:$0xff] }
 0x613   : >> { %v12704_v11 = vld [vmem:[#allocation254_spill] sm:$0xff]  ;;  %v5825_v7 = vld.sshfl [vmem:[%s11300_s28] sm:$0x33 pattern:$0x76325410]  ;;  %v12719_v15 = vld [vmem:[#allocation244_spill] sm:$0xff] }
 0x614   : >> { %v12700_v33 = vld [vmem:[#allocation256_spill] sm:$0xff]  ;;  %v12701_v3 = vld [vmem:[#allocation255_spill] sm:$0xff]  ;;  %v5859_v8 = vcombine.low %v12705_v14, %v12704_v11  ;;  %v12718_v5 = vld [vmem:[#allocation245_spill] sm:$0xff] }
 0x615   : >> { %v5860_v44 = vcombine.low %v12701_v3, %v12700_v33  ;;  %v5835_v3 = vcombine.low %v10057_v53, %v10062_v54  ;;  %v5851_v33 = vcombine.low %v12707_v6, %v12706_v1  ;;  %v4215_v1 = vshll.u32 %v5825_v7, 16  ;;  %v12720_v13 = vld [vmem:[#allocation232_spill] sm:$0xff]  ;;  %v12734_v18 = vld [vmem:[#allocation303_spill] sm:$0xff] }
 0x616   : >> { %v4228_v6 = vrot.slane %v5825_v7, 1 }
 0x617   : >> { %6362 = vmatprep.subr.bf16.mxu1 %v5860_v44  ;;  %6343 = vmatpush3.bf16.msra.mxu0 %v5835_v3  ;;  %v5834_v44 = vcombine.low %v10047_v51, %v10052_v52  ;;  %v4217_v11 = vrot.slane %v4215_v1, 1  ;;  %v5833_v3 = vcombine.low %v10037_v49, %v10042_v50  ;;  %v5832_v1 = vcombine.low %v10027_v47, %v10032_v48 }
 0x618   : >> { %6363 = vmatpush3.bf16.msra.mxu1 %v5852_v39  ;;  %v5850_v39 = vcombine.low %v12710_v10, %v10212_v37  ;;  %6344 = vmatprep.subr.bf16.mxu0 %v5842_v4  ;;  %v5856_v4 = vcombine.low %v12716_v16, %v12715_v20  ;;  %v12725_v10 = vld [vmem:[#allocation234_spill] sm:$0xff]  ;;  %v12730_v16 = vld [vmem:[#allocation319_spill] sm:$0xff] }
 0x619   : >> { %6364 = vmatprep.subr.bf16.mxu1 %v5859_v8  ;;  %v4213_v8 = vshrl.u32 %v5825_v7, 16  ;;  %5154 = vmatprep.mubr.bf16.mxu1 %v4228_v6  ;;  %v5831_v6 = vcombine.low %v10017_v43, %v10022_v46 }
 0x61b   : >> { %6345 = vmatpush3.bf16.msra.mxu0 %v5834_v44  ;;  %v4218_v2 = vor.u32 %v4217_v11, %v4213_v8  ;;  %v5848_v44 = vcombine.low %v10187_v31, %v10192_v22  ;;  %v4210_v11 = vcombine.high %v5825_v7, %v5825_v7  ;;  %v5854_v8 = vcombine.low %v12719_v15, %v12718_v5  ;;  %v12729_v15 = vld [vmem:[#allocation320_spill] sm:$0xff] }
 0x61c   : >> { %6365 = vmatpush3.bf16.msra.mxu1 %v5851_v33  ;;  %v5849_v33 = vcombine.low %v12714_v0, %v12713_v12  ;;  %6346 = vmatprep.subr.bf16.mxu0 %v5841_v40  ;;  %v5855_v40 = vcombine.low %v12717_v9, %v10262_v24  ;;  %v5830_v7 = vcombine.low %v12720_v13, %v10012_v38  ;;  %v12726_v12 = vld [vmem:[#allocation233_spill] sm:$0xff] }
 0x61d   : >> { %6366 = vmatprep.subr.bf16.mxu1 %v5858_v21  ;;  %v5840_v21 = vcombine.low %v10107_v63, %v10112_v25  ;;  %5114 = vmatprep.mubr.bf16.mxu0 %v4218_v2  ;;  %v5847_v2 = vcombine.low %v10177_v45, %v10182_v32  ;;  %v4221_v0 = vshrl.u32 %v4210_v11, 16  ;;  %v5845_v13 = vcombine.low %v12726_v12, %v12725_v10  ;;  %v12735_v10 = vld [vmem:[#allocation286_spill] sm:$0xff] }
 0x61f   : >> { %6347 = vmatpush3.bf16.msra.mxu0 %v5833_v3  ;;  %v4223_v3 = vshll.u32 %v4210_v11, 16 }
 0x620   : >> { %6367 = vmatpush3.bf16.msra.mxu1 %v5850_v39  ;;  %6348 = vmatprep.subr.bf16.mxu0 %v5840_v21  ;;  %v5839_v39 = vcombine.low %v10097_v61, %v10102_v62  ;;  %v5846_v21 = vcombine.low %v10167_v41, %v10172_v42 }
 0x621   : >> { %6368 = vmatprep.subr.bf16.mxu1 %v5857_v23  ;;  %v5838_v23 = vcombine.low %v10087_v59, %v10092_v60  ;;  %v4225_v5 = vrot.slane %v4223_v3, 1 }
 0x623   : >> { %6349 = vmatpush3.bf16.msra.mxu0 %v5832_v1  ;;  %v12721_v1 = vld [vmem:[#allocation243_spill] sm:$0xff]  ;;  %v4226_v3 = vor.u32 %v4225_v5, %v4221_v0  ;;  %v12740_v0 = vld [vmem:[#allocation269_spill] sm:$0xff] }
 0x624   : >> { %6369 = vmatpush3.bf16.msra.mxu1 %v5849_v33  ;;  %6350 = vmatprep.subr.bf16.mxu0 %v5839_v39  ;;  %v11336_v33 = vld.sshfl [vmem:[%s11300_s28 + $0x4] sm:$0x33 pattern:$0x76325410] }
 0x625   : >> { %6370 = vmatprep.subr.bf16.mxu1 %v5856_v4  ;;  %v5837_v4 = vcombine.low %v10077_v57, %v10082_v58 }
 0x627   : >> { %6351 = vmatpush3.bf16.msra.mxu0 %v5831_v6  ;;  %v12723_v6 = vld [vmem:[#allocation231_spill] sm:$0xff] }
 0x628   : >> { %6371 = vmatpush3.bf16.msra.mxu1 %v5848_v44  ;;  %6352 = vmatprep.subr.bf16.mxu0 %v5838_v23  ;;  %v12722_v44 = vld [vmem:[#allocation242_spill] sm:$0xff]  ;;  %v12727_v23 = vld [vmem:[#allocation288_spill] sm:$0xff] }
 0x629   : >> { %6372 = vmatprep.subr.bf16.mxu1 %v5855_v40  ;;  %v5853_v39 = vcombine.low %v12722_v44, %v12721_v1  ;;  %v4243_v40 = vshll.u32 %v11336_v33, 16  ;;  %v5892_v1 = vcombine.low %v12730_v16, %v12729_v15  ;;  %v4241_v44 = vshrl.u32 %v11336_v33, 16 }
 0x62b   : >> { %6353 = vmatpush3.bf16.msra.mxu0 %v5830_v7  ;;  %v4245_v17 = vrot.slane %v4243_v40, 1  ;;  %v12731_v7 = vld [vmem:[#allocation272_spill] sm:$0xff]  ;;  %v4256_v40 = vrot.slane %v11336_v33, 1 }
 0x62c   : >> { %6373 = vmatpush3.bf16.msra.mxu1 %v5847_v2  ;;  %v12724_v2 = vld [vmem:[#allocation230_spill] sm:$0xff]  ;;  %6354 = vmatprep.subr.bf16.mxu0 %v5837_v4  ;;  %v12736_v4 = vld [vmem:[#allocation285_spill] sm:$0xff] }
 0x62d   : >> { %6374 = vmatprep.subr.bf16.mxu1 %v5854_v8  ;;  %v5829_v9 = vcombine.low %v12724_v2, %v12723_v6  ;;  %v12728_v8 = vld [vmem:[#allocation287_spill] sm:$0xff]  ;;  %v12733_v2 = vld [vmem:[#allocation304_spill] sm:$0xff]  ;;  %v4246_v16 = vor.u32 %v4245_v17, %v4241_v44 }
 0x62e   : >> { %v5876_v14 = vcombine.low %v12728_v8, %v12727_v23  ;;  %v5884_v12 = vcombine.low %v12734_v18, %v12733_v2  ;;  %v12737_v23 = vld [vmem:[#allocation318_spill] sm:$0xff]  ;;  %v12738_v8 = vld [vmem:[#allocation317_spill] sm:$0xff]  ;;  %v12745_v2 = vld [vmem:[#allocation316_spill] sm:$0xff] }
 0x62f   : >> { %6355 = vmatpush3.bf16.msra.mxu0 %v5829_v9  ;;  %v5891_v15 = vcombine.low %v12738_v8, %v12737_v23  ;;  %v12741_v9 = vld [vmem:[#allocation302_spill] sm:$0xff]  ;;  %v12742_v18 = vld [vmem:[#allocation301_spill] sm:$0xff]  ;;  %v12748_v44 = vld [vmem:[#allocation267_spill] sm:$0xff] }
 0x630   : >> { %6375 = vmatpush3.bf16.msra.mxu1 %v5846_v21  ;;  %v12732_v21 = vld [vmem:[#allocation271_spill] sm:$0xff]  ;;  %6384 = vmatprep.subr.bf16.mxu0 %v5876_v14  ;;  %v5883_v14 = vcombine.low %v12742_v18, %v12741_v9  ;;  %v12752_v23 = vld [vmem:[#allocation281_spill] sm:$0xff]  ;;  %v12757_v9 = vld [vmem:[#allocation298_spill] sm:$0xff] }
 0x631   : >> { %6376 = vmatprep.subr.bf16.mxu1 %v5853_v39  ;;  %v5868_v6 = vcombine.low %v12732_v21, %v12731_v7  ;;  %v5875_v39 = vcombine.low %v12736_v4, %v12735_v10  ;;  %v12744_v7 = vld [vmem:[#allocation283_spill] sm:$0xff]  ;;  %v12758_v18 = vld [vmem:[#allocation297_spill] sm:$0xff] }
 0x632   : >> { %5115 = vmatmul.mubr.bf16.vlgmr.msra.gmra.mxu0 %v4210_v11  ;;  %v12746_v10 = vld [vmem:[#allocation315_spill] sm:$0xff]  ;;  %v12747_v11 = vld [vmem:[#allocation268_spill] sm:$0xff] }
 0x633   : >> { %6385 = vmatpush3.bf16.msra.mxu0 %v5868_v6  ;;  %v5890_v17 = vcombine.low %v12746_v10, %v12745_v2  ;;  %5194 = vmatprep.mubr.bf16.mxu0 %v4246_v16  ;;  %v12749_v6 = vld [vmem:[#allocation300_spill] sm:$0xff]  ;;  %v12755_v16 = vld [vmem:[#allocation266_spill] sm:$0xff]  ;;  %v12762_v10 = vld [vmem:[#allocation311_spill] sm:$0xff] }
 0x634   : >> { %6377 = vmatpush3.bf16.msra.mxu1 %v5845_v13  ;;  %v12739_v13 = vld [vmem:[#allocation270_spill] sm:$0xff]  ;;  %6386 = vmatprep.subr.bf16.mxu0 %v5875_v39  ;;  %v12761_v2 = vld [vmem:[#allocation312_spill] sm:$0xff] }
 0x635   : >> { %6406 = vmatprep.subr.bf16.mxu1 %v5892_v1  ;;  %v5867_v5 = vcombine.low %v12740_v0, %v12739_v13  ;;  %v12743_v1 = vld [vmem:[#allocation284_spill] sm:$0xff]  ;;  %v12751_v39 = vld [vmem:[#allocation282_spill] sm:$0xff]  ;;  %v12754_v13 = vld [vmem:[#allocation313_spill] sm:$0xff] }
 0x636   : >> { %v5874_v21 = vcombine.low %v12744_v7, %v12743_v1  ;;  %v5873_v8 = vcombine.low %v12752_v23, %v12751_v39  ;;  %v12759_v1 = vld [vmem:[#allocation280_spill] sm:$0xff]  ;;  %v12760_v7 = vld [vmem:[#allocation279_spill] sm:$0xff]  ;;  %v12767_v39 = vld [vmem:[#allocation278_spill] sm:$0xff] }
 0x637   : >> { %5155 = vmatmul.mubr.bf16.vlgmr.msra.gmra.mxu1 %v4226_v3  ;;  %6387 = vmatpush3.bf16.msra.mxu0 %v5867_v5  ;;  %v5866_v3 = vcombine.low %v12748_v44, %v12747_v11  ;;  %v12763_v11 = vld [vmem:[#allocation264_spill] sm:$0xff]  ;;  %v12764_v44 = vld [vmem:[#allocation263_spill] sm:$0xff]  ;;  %v12768_v23 = vld [vmem:[#allocation277_spill] sm:$0xff] }
 0x638   : >> { %6407 = vmatpush3.bf16.msra.mxu1 %v5884_v12  ;;  %5234 = vmatprep.mubr.bf16.mxu1 %v4256_v40  ;;  %v12750_v12 = vld [vmem:[#allocation299_spill] sm:$0xff]  ;;  %v12756_v40 = vld [vmem:[#allocation265_spill] sm:$0xff] }
 0x639   : >> { %6408 = vmatprep.subr.bf16.mxu1 %v5891_v15  ;;  %v5882_v4 = vcombine.low %v12750_v12, %v12749_v6  ;;  %6388 = vmatprep.subr.bf16.mxu0 %v5874_v21  ;;  %v12753_v15 = vld [vmem:[#allocation314_spill] sm:$0xff]  ;;  %v5865_v5 = vcombine.low %v12756_v40, %v12755_v16  ;;  %v5872_v21 = vcombine.low %v12760_v7, %v12759_v1  ;;  %v12765_v6 = vld [vmem:[#allocation296_spill] sm:$0xff]  ;;  %v12766_v12 = vld [vmem:[#allocation295_spill] sm:$0xff] }
 0x63a   : >> { %v5889_v0 = vcombine.low %v12754_v13, %v12753_v15  ;;  %v12769_v15 = vld [vmem:[#allocation310_spill] sm:$0xff]  ;;  %v12770_v13 = vld [vmem:[#allocation309_spill] sm:$0xff]  ;;  %v4238_v16 = vcombine.high %v11336_v33, %v11336_v33  ;;  %v12775_v7 = vld [vmem:[#allocation276_spill] sm:$0xff] }
 0x63b   : >> { %6389 = vmatpush3.bf16.msra.mxu0 %v5866_v3  ;;  %v5864_v3 = vcombine.low %v12764_v44, %v12763_v11  ;;  %v12771_v40 = vld [vmem:[#allocation262_spill] sm:$0xff]  ;;  %v12779_v33 = vld [vmem:[#allocation260_spill] sm:$0xff] }
 0x63c   : >> { %6409 = vmatpush3.bf16.msra.mxu1 %v5883_v14  ;;  %v5881_v14 = vcombine.low %v12758_v18, %v12757_v9  ;;  %6390 = vmatprep.subr.bf16.mxu0 %v5873_v8  ;;  %v5871_v8 = vcombine.low %v12768_v23, %v12767_v39  ;;  %v12773_v18 = vld [vmem:[#allocation294_spill] sm:$0xff]  ;;  %v4251_v44 = vshll.u32 %v4238_v16, 16  ;;  %v12782_v39 = vld [vmem:[#allocation291_spill] sm:$0xff] }
 0x63d   : >> { %6410 = vmatprep.subr.bf16.mxu1 %v5890_v17  ;;  %v5888_v17 = vcombine.low %v12762_v10, %v12761_v2  ;;  %v12777_v10 = vld [vmem:[#allocation308_spill] sm:$0xff] }
 0x63f   : >> { %6391 = vmatpush3.bf16.msra.mxu0 %v5865_v5  ;;  %v12772_v5 = vld [vmem:[#allocation261_spill] sm:$0xff] }
 0x640   : >> { %6411 = vmatpush3.bf16.msra.mxu1 %v5882_v4  ;;  %v5880_v4 = vcombine.low %v12766_v12, %v12765_v6  ;;  %6392 = vmatprep.subr.bf16.mxu0 %v5872_v21  ;;  %v5863_v9 = vcombine.low %v12772_v5, %v12771_v40  ;;  %v12776_v21 = vld [vmem:[#allocation275_spill] sm:$0xff]  ;;  %v11408_v6 = vld.sshfl [vmem:[%s11300_s28 + $0x8] sm:$0x33 pattern:$0x76325410]  ;;  %v12786_v40 = vld [vmem:[#allocation305_spill] sm:$0xff] }
 0x641   : >> { %6412 = vmatprep.subr.bf16.mxu1 %v5889_v0  ;;  %v5887_v0 = vcombine.low %v12770_v13, %v12769_v15  ;;  %v5870_v2 = vcombine.low %v12776_v21, %v12775_v7  ;;  %v12784_v15 = vld [vmem:[#allocation273_spill] sm:$0xff]  ;;  %v4253_v7 = vrot.slane %v4251_v44, 1 }
 0x643   : >> { %6393 = vmatpush3.bf16.msra.mxu0 %v5864_v3  ;;  %v12780_v3 = vld [vmem:[#allocation259_spill] sm:$0xff] }
 0x644   : >> { %6413 = vmatpush3.bf16.msra.mxu1 %v5881_v14  ;;  %v12774_v14 = vld [vmem:[#allocation293_spill] sm:$0xff]  ;;  %6394 = vmatprep.subr.bf16.mxu0 %v5871_v8  ;;  %v5862_v12 = vcombine.low %v12780_v3, %v12779_v33  ;;  %v12783_v8 = vld [vmem:[#allocation274_spill] sm:$0xff] }
 0x645   : >> { %6414 = vmatprep.subr.bf16.mxu1 %v5888_v17  ;;  %v5879_v1 = vcombine.low %v12774_v14, %v12773_v18  ;;  %v12778_v17 = vld [vmem:[#allocation307_spill] sm:$0xff]  ;;  %v5869_v13 = vcombine.low %v12784_v15, %v12783_v8  ;;  %v4271_v18 = vshll.u32 %v11408_v6, 16  ;;  %v4249_v14 = vshrl.u32 %v4238_v16, 16 }
 0x646   : >> { %v5886_v11 = vcombine.low %v12778_v17, %v12777_v10  ;;  %v12789_v10 = vld [vmem:[#allocation290_spill] sm:$0xff]  ;;  %v12790_v17 = vld [vmem:[#allocation289_spill] sm:$0xff]  ;;  %v4269_v15 = vshrl.u32 %v11408_v6, 16 }
 0x647   : >> { %6395 = vmatpush3.bf16.msra.mxu0 %v5863_v9  ;;  %v12787_v9 = vld [vmem:[#allocation258_spill] sm:$0xff]  ;;  %v5877_v33 = vcombine.low %v12790_v17, %v12789_v10  ;;  %v4254_v44 = vor.u32 %v4253_v7, %v4249_v14  ;;  %v12804_v7 = vld [vmem:[#allocation333_spill] sm:$0xff] }
 0x648   : >> { %6415 = vmatpush3.bf16.msra.mxu1 %v5880_v4  ;;  %v12781_v4 = vld [vmem:[#allocation292_spill] sm:$0xff]  ;;  %6396 = vmatprep.subr.bf16.mxu0 %v5870_v2  ;;  %v12803_v14 = vld [vmem:[#allocation334_spill] sm:$0xff] }
 0x649   : >> { %6416 = vmatprep.subr.bf16.mxu1 %v5887_v0  ;;  %v5878_v23 = vcombine.low %v12782_v39, %v12781_v4  ;;  %v12785_v0 = vld [vmem:[#allocation306_spill] sm:$0xff]  ;;  %v12791_v2 = vld [vmem:[#allocation352_spill] sm:$0xff]  ;;  %v12794_v39 = vld [vmem:[#allocation383_spill] sm:$0xff] }
 0x64a   : >> { %v5885_v5 = vcombine.low %v12786_v40, %v12785_v0  ;;  %v12793_v4 = vld [vmem:[#allocation384_spill] sm:$0xff]  ;;  %v4273_v0 = vrot.slane %v4271_v18, 1  ;;  %v4284_v18 = vrot.slane %v11408_v6, 1 }
 0x64b   : >> { %6397 = vmatpush3.bf16.msra.mxu0 %v5862_v12  ;;  %v5924_v8 = vcombine.low %v12794_v39, %v12793_v4  ;;  %v12795_v12 = vld [vmem:[#allocation336_spill] sm:$0xff] }
 0x64c   : >> { %6417 = vmatpush3.bf16.msra.mxu1 %v5879_v1  ;;  %v12788_v1 = vld [vmem:[#allocation257_spill] sm:$0xff]  ;;  %6398 = vmatprep.subr.bf16.mxu0 %v5869_v13  ;;  %v12799_v13 = vld [vmem:[#allocation350_spill] sm:$0xff]  ;;  %v4274_v39 = vor.u32 %v4273_v0, %v4269_v15  ;;  %v12812_v0 = vld [vmem:[#allocation331_spill] sm:$0xff] }
 0x64d   : >> { %6418 = vmatprep.subr.bf16.mxu1 %v5886_v11  ;;  %v5861_v21 = vcombine.low %v12788_v1, %v12787_v9  ;;  %v12792_v11 = vld [vmem:[#allocation351_spill] sm:$0xff]  ;;  %v12797_v9 = vld [vmem:[#allocation368_spill] sm:$0xff] }
 0x64e   : >> { %v5908_v3 = vcombine.low %v12792_v11, %v12791_v2  ;;  %v12798_v1 = vld [vmem:[#allocation367_spill] sm:$0xff]  ;;  %v12801_v2 = vld [vmem:[#allocation382_spill] sm:$0xff]  ;;  %v12802_v11 = vld [vmem:[#allocation381_spill] sm:$0xff] }
 0x64f   : >> { %6399 = vmatpush3.bf16.msra.mxu0 %v5861_v21  ;;  %v5916_v10 = vcombine.low %v12798_v1, %v12797_v9  ;;  %v5923_v4 = vcombine.low %v12802_v11, %v12801_v2  ;;  %v5899_v21 = vcombine.low %v12804_v7, %v12803_v14  ;;  %v12809_v1 = vld [vmem:[#allocation380_spill] sm:$0xff]  ;;  %v12816_v2 = vld [vmem:[#allocation345_spill] sm:$0xff] }
 0x650   : >> { %6419 = vmatpush3.bf16.msra.mxu1 %v5878_v23  ;;  %v12796_v23 = vld [vmem:[#allocation335_spill] sm:$0xff]  ;;  %6428 = vmatprep.subr.bf16.mxu0 %v5908_v3  ;;  %v12818_v14 = vld [vmem:[#allocation377_spill] sm:$0xff] }
 0x651   : >> { %6420 = vmatprep.subr.bf16.mxu1 %v5885_v5  ;;  %v5900_v40 = vcombine.low %v12796_v23, %v12795_v12  ;;  %v12800_v5 = vld [vmem:[#allocation349_spill] sm:$0xff]  ;;  %v12808_v23 = vld [vmem:[#allocation347_spill] sm:$0xff] }
 0x652   : >> { %v5907_v17 = vcombine.low %v12800_v5, %v12799_v13  ;;  %5195 = vmatmul.mubr.bf16.vlgmr.msra.gmra.mxu0 %v4238_v16  ;;  %v12806_v12 = vld [vmem:[#allocation365_spill] sm:$0xff]  ;;  %v12810_v13 = vld [vmem:[#allocation379_spill] sm:$0xff]  ;;  %v12811_v16 = vld [vmem:[#allocation332_spill] sm:$0xff] }
 0x653   : >> { %6429 = vmatpush3.bf16.msra.mxu0 %v5900_v40  ;;  %v5922_v15 = vcombine.low %v12810_v13, %v12809_v1  ;;  %5274 = vmatprep.mubr.bf16.mxu0 %v4274_v39  ;;  %v12813_v40 = vld [vmem:[#allocation364_spill] sm:$0xff]  ;;  %v12819_v39 = vld [vmem:[#allocation330_spill] sm:$0xff]  ;;  %v12826_v13 = vld [vmem:[#allocation375_spill] sm:$0xff] }
 0x654   : >> { %6421 = vmatpush3.bf16.msra.mxu1 %v5877_v33  ;;  %v12805_v33 = vld [vmem:[#allocation366_spill] sm:$0xff]  ;;  %6430 = vmatprep.subr.bf16.mxu0 %v5907_v17  ;;  %v12825_v1 = vld [vmem:[#allocation376_spill] sm:$0xff] }
 0x655   : >> { %6450 = vmatprep.subr.bf16.mxu1 %v5924_v8  ;;  %v5915_v3 = vcombine.low %v12806_v12, %v12805_v33  ;;  %v12807_v8 = vld [vmem:[#allocation348_spill] sm:$0xff]  ;;  %v12815_v17 = vld [vmem:[#allocation346_spill] sm:$0xff]  ;;  %v12822_v12 = vld [vmem:[#allocation361_spill] sm:$0xff] }
 0x656   : >> { %v5906_v9 = vcombine.low %v12808_v23, %v12807_v8  ;;  %v5905_v11 = vcombine.low %v12816_v2, %v12815_v17  ;;  %v12821_v33 = vld [vmem:[#allocation362_spill] sm:$0xff]  ;;  %v12823_v8 = vld [vmem:[#allocation344_spill] sm:$0xff]  ;;  %v12824_v23 = vld [vmem:[#allocation343_spill] sm:$0xff] }
 0x657   : >> { %5235 = vmatmul.mubr.bf16.vlgmr.msra.gmra.mxu1 %v4254_v44  ;;  %6431 = vmatpush3.bf16.msra.mxu0 %v5899_v21  ;;  %v5898_v44 = vcombine.low %v12812_v0, %v12811_v16  ;;  %v12827_v16 = vld [vmem:[#allocation328_spill] sm:$0xff]  ;;  %v12828_v0 = vld [vmem:[#allocation327_spill] sm:$0xff]  ;;  %v12831_v17 = vld [vmem:[#allocation342_spill] sm:$0xff] }
 0x658   : >> { %6451 = vmatpush3.bf16.msra.mxu1 %v5916_v10  ;;  %5314 = vmatprep.mubr.bf16.mxu1 %v4284_v18  ;;  %v12814_v10 = vld [vmem:[#allocation363_spill] sm:$0xff]  ;;  %v12820_v18 = vld [vmem:[#allocation329_spill] sm:$0xff] }
 0x659   : >> { %6452 = vmatprep.subr.bf16.mxu1 %v5923_v4  ;;  %v5914_v5 = vcombine.low %v12814_v10, %v12813_v40  ;;  %6432 = vmatprep.subr.bf16.mxu0 %v5906_v9  ;;  %v12817_v4 = vld [vmem:[#allocation378_spill] sm:$0xff]  ;;  %v5897_v21 = vcombine.low %v12820_v18, %v12819_v39  ;;  %v5904_v9 = vcombine.low %v12824_v23, %v12823_v8  ;;  %v12829_v40 = vld [vmem:[#allocation360_spill] sm:$0xff]  ;;  %v12830_v10 = vld [vmem:[#allocation359_spill] sm:$0xff] }
 0x65a   : >> { %v5921_v7 = vcombine.low %v12818_v14, %v12817_v4  ;;  %v12832_v2 = vld [vmem:[#allocation341_spill] sm:$0xff]  ;;  %v12833_v4 = vld [vmem:[#allocation374_spill] sm:$0xff]  ;;  %v4266_v39 = vcombine.high %v11408_v6, %v11408_v6  ;;  %v12839_v23 = vld [vmem:[#allocation340_spill] sm:$0xff] }
 0x65b   : >> { %6433 = vmatpush3.bf16.msra.mxu0 %v5898_v44  ;;  %v5896_v44 = vcombine.low %v12828_v0, %v12827_v16  ;;  %v12834_v14 = vld [vmem:[#allocation373_spill] sm:$0xff]  ;;  %v12835_v18 = vld [vmem:[#allocation326_spill] sm:$0xff]  ;;  %v12843_v6 = vld [vmem:[#allocation324_spill] sm:$0xff] }
 0x65c   : >> { %6453 = vmatpush3.bf16.msra.mxu1 %v5915_v3  ;;  %v5913_v3 = vcombine.low %v12822_v12, %v12821_v33  ;;  %6434 = vmatprep.subr.bf16.mxu0 %v5905_v11  ;;  %v5903_v11 = vcombine.low %v12832_v2, %v12831_v17  ;;  %v12837_v12 = vld [vmem:[#allocation358_spill] sm:$0xff]  ;;  %v4279_v0 = vshll.u32 %v4266_v39, 16  ;;  %v12846_v17 = vld [vmem:[#allocation355_spill] sm:$0xff] }
 0x65d   : >> { %6454 = vmatprep.subr.bf16.mxu1 %v5922_v15  ;;  %v5920_v15 = vcombine.low %v12826_v13, %v12825_v1  ;;  %v12841_v13 = vld [vmem:[#allocation372_spill] sm:$0xff] }
 0x65f   : >> { %6435 = vmatpush3.bf16.msra.mxu0 %v5897_v21  ;;  %v12836_v21 = vld [vmem:[#allocation325_spill] sm:$0xff] }
 0x660   : >> { %6455 = vmatpush3.bf16.msra.mxu1 %v5914_v5  ;;  %v5912_v5 = vcombine.low %v12830_v10, %v12829_v40  ;;  %6436 = vmatprep.subr.bf16.mxu0 %v5904_v9  ;;  %v5895_v33 = vcombine.low %v12836_v21, %v12835_v18  ;;  %v12840_v9 = vld [vmem:[#allocation339_spill] sm:$0xff]  ;;  %v11480_v40 = vld.sshfl [vmem:[%s11300_s28 + $0xc] sm:$0x33 pattern:$0x76325410]  ;;  %v12850_v18 = vld [vmem:[#allocation369_spill] sm:$0xff] }
 0x661   : >> { %6456 = vmatprep.subr.bf16.mxu1 %v5921_v7  ;;  %v5919_v7 = vcombine.low %v12834_v14, %v12833_v4  ;;  %v5902_v1 = vcombine.low %v12840_v9, %v12839_v23  ;;  %v12848_v4 = vld [vmem:[#allocation337_spill] sm:$0xff]  ;;  %v4281_v23 = vrot.slane %v4279_v0, 1 }
 0x663   : >> { %6437 = vmatpush3.bf16.msra.mxu0 %v5896_v44  ;;  %v12844_v44 = vld [vmem:[#allocation323_spill] sm:$0xff] }
 0x664   : >> { %6457 = vmatpush3.bf16.msra.mxu1 %v5913_v3  ;;  %v12838_v3 = vld [vmem:[#allocation357_spill] sm:$0xff]  ;;  %6438 = vmatprep.subr.bf16.mxu0 %v5903_v11  ;;  %v5894_v10 = vcombine.low %v12844_v44, %v12843_v6  ;;  %v12847_v11 = vld [vmem:[#allocation338_spill] sm:$0xff] }
 0x665   : >> { %6458 = vmatprep.subr.bf16.mxu1 %v5920_v15  ;;  %v5911_v8 = vcombine.low %v12838_v3, %v12837_v12  ;;  %v12842_v15 = vld [vmem:[#allocation371_spill] sm:$0xff]  ;;  %v5901_v14 = vcombine.low %v12848_v4, %v12847_v11  ;;  %v4299_v12 = vshll.u32 %v11480_v40, 16  ;;  %v4277_v3 = vshrl.u32 %v4266_v39, 16 }
 0x666   : >> { %v5918_v16 = vcombine.low %v12842_v15, %v12841_v13  ;;  %v12853_v13 = vld [vmem:[#allocation354_spill] sm:$0xff]  ;;  %v12854_v15 = vld [vmem:[#allocation353_spill] sm:$0xff]  ;;  %v4297_v4 = vshrl.u32 %v11480_v40, 16 }
 0x667   : >> { %6439 = vmatpush3.bf16.msra.mxu0 %v5895_v33  ;;  %v12851_v33 = vld [vmem:[#allocation322_spill] sm:$0xff]  ;;  %v5909_v6 = vcombine.low %v12854_v15, %v12853_v13  ;;  %v4282_v0 = vor.u32 %v4281_v23, %v4277_v3  ;;  %v12868_v23 = vld [vmem:[#allocation397_spill] sm:$0xff] }
 0x668   : >> { %6459 = vmatpush3.bf16.msra.mxu1 %v5912_v5  ;;  %v12845_v5 = vld [vmem:[#allocation356_spill] sm:$0xff]  ;;  %6440 = vmatprep.subr.bf16.mxu0 %v5902_v1  ;;  %v12867_v3 = vld [vmem:[#allocation398_spill] sm:$0xff] }
 0x669   : >> { %6460 = vmatprep.subr.bf16.mxu1 %v5919_v7  ;;  %v5910_v2 = vcombine.low %v12846_v17, %v12845_v5  ;;  %v12849_v7 = vld [vmem:[#allocation370_spill] sm:$0xff]  ;;  %v12855_v1 = vld [vmem:[#allocation416_spill] sm:$0xff]  ;;  %v12858_v17 = vld [vmem:[#allocation447_spill] sm:$0xff] }
 0x66a   : >> { %v5917_v21 = vcombine.low %v12850_v18, %v12849_v7  ;;  %v12857_v5 = vld [vmem:[#allocation448_spill] sm:$0xff]  ;;  %v4301_v7 = vrot.slane %v4299_v12, 1  ;;  %v4312_v12 = vrot.slane %v11480_v40, 1 }
 0x66b   : >> { %6441 = vmatpush3.bf16.msra.mxu0 %v5894_v10  ;;  %v5956_v11 = vcombine.low %v12858_v17, %v12857_v5  ;;  %v12859_v10 = vld [vmem:[#allocation400_spill] sm:$0xff] }
 0x66c   : >> { %6461 = vmatpush3.bf16.msra.mxu1 %v5911_v8  ;;  %v12852_v8 = vld [vmem:[#allocation321_spill] sm:$0xff]  ;;  %6442 = vmatprep.subr.bf16.mxu0 %v5901_v14  ;;  %v12863_v14 = vld [vmem:[#allocation414_spill] sm:$0xff]  ;;  %v4302_v17 = vor.u32 %v4301_v7, %v4297_v4  ;;  %v12876_v7 = vld [vmem:[#allocation395_spill] sm:$0xff] }
 0x66d   : >> { %6462 = vmatprep.subr.bf16.mxu1 %v5918_v16  ;;  %v5893_v9 = vcombine.low %v12852_v8, %v12851_v33  ;;  %v12856_v16 = vld [vmem:[#allocation415_spill] sm:$0xff]  ;;  %v12861_v33 = vld [vmem:[#allocation432_spill] sm:$0xff] }
 0x66e   : >> { %v5940_v44 = vcombine.low %v12856_v16, %v12855_v1  ;;  %v12862_v8 = vld [vmem:[#allocation431_spill] sm:$0xff]  ;;  %v12865_v1 = vld [vmem:[#allocation446_spill] sm:$0xff]  ;;  %v12866_v16 = vld [vmem:[#allocation445_spill] sm:$0xff] }
 0x66f   : >> { %6443 = vmatpush3.bf16.msra.mxu0 %v5893_v9  ;;  %v5948_v13 = vcombine.low %v12862_v8, %v12861_v33  ;;  %v5955_v5 = vcombine.low %v12866_v16, %v12865_v1  ;;  %v5931_v9 = vcombine.low %v12868_v23, %v12867_v3  ;;  %v12873_v8 = vld [vmem:[#allocation444_spill] sm:$0xff]  ;;  %v12880_v1 = vld [vmem:[#allocation409_spill] sm:$0xff] }
 0x670   : >> { %6463 = vmatpush3.bf16.msra.mxu1 %v5910_v2  ;;  %v12860_v2 = vld [vmem:[#allocation399_spill] sm:$0xff]  ;;  %6472 = vmatprep.subr.bf16.mxu0 %v5940_v44  ;;  %v12882_v3 = vld [vmem:[#allocation441_spill] sm:$0xff] }
 0x671   : >> { %6464 = vmatprep.subr.bf16.mxu1 %v5917_v21  ;;  %v5932_v18 = vcombine.low %v12860_v2, %v12859_v10  ;;  %v12864_v21 = vld [vmem:[#allocation413_spill] sm:$0xff]  ;;  %v12872_v2 = vld [vmem:[#allocation411_spill] sm:$0xff] }
 0x672   : >> { %v5939_v15 = vcombine.low %v12864_v21, %v12863_v14  ;;  %5275 = vmatmul.mubr.bf16.vlgmr.msra.gmra.mxu0 %v4266_v39  ;;  %v12870_v10 = vld [vmem:[#allocation429_spill] sm:$0xff]  ;;  %v12874_v14 = vld [vmem:[#allocation443_spill] sm:$0xff]  ;;  %v12875_v39 = vld [vmem:[#allocation396_spill] sm:$0xff] }
 0x673   : >> { %6473 = vmatpush3.bf16.msra.mxu0 %v5932_v18  ;;  %v5954_v4 = vcombine.low %v12874_v14, %v12873_v8  ;;  %5354 = vmatprep.mubr.bf16.mxu0 %v4302_v17  ;;  %v12877_v18 = vld [vmem:[#allocation428_spill] sm:$0xff]  ;;  %v12883_v17 = vld [vmem:[#allocation394_spill] sm:$0xff]  ;;  %v12890_v14 = vld [vmem:[#allocation439_spill] sm:$0xff] }
 0x674   : >> { %6465 = vmatpush3.bf16.msra.mxu1 %v5909_v6  ;;  %v12869_v6 = vld [vmem:[#allocation430_spill] sm:$0xff]  ;;  %6474 = vmatprep.subr.bf16.mxu0 %v5939_v15  ;;  %v12889_v8 = vld [vmem:[#allocation440_spill] sm:$0xff] }
 0x675   : >> { %6494 = vmatprep.subr.bf16.mxu1 %v5956_v11  ;;  %v5947_v44 = vcombine.low %v12870_v10, %v12869_v6  ;;  %v12871_v11 = vld [vmem:[#allocation412_spill] sm:$0xff]  ;;  %v12879_v15 = vld [vmem:[#allocation410_spill] sm:$0xff]  ;;  %v12886_v10 = vld [vmem:[#allocation425_spill] sm:$0xff] }
 0x676   : >> { %v5938_v33 = vcombine.low %v12872_v2, %v12871_v11  ;;  %v5937_v16 = vcombine.low %v12880_v1, %v12879_v15  ;;  %v12885_v6 = vld [vmem:[#allocation426_spill] sm:$0xff]  ;;  %v12887_v11 = vld [vmem:[#allocation408_spill] sm:$0xff]  ;;  %v12888_v2 = vld [vmem:[#allocation407_spill] sm:$0xff] }
 0x677   : >> { %5315 = vmatmul.mubr.bf16.vlgmr.msra.gmra.mxu1 %v4282_v0  ;;  %6475 = vmatpush3.bf16.msra.mxu0 %v5931_v9  ;;  %v5930_v0 = vcombine.low %v12876_v7, %v12875_v39  ;;  %v12891_v39 = vld [vmem:[#allocation392_spill] sm:$0xff]  ;;  %v12892_v7 = vld [vmem:[#allocation391_spill] sm:$0xff]  ;;  %v12895_v15 = vld [vmem:[#allocation406_spill] sm:$0xff] }
 0x678   : >> { %6495 = vmatpush3.bf16.msra.mxu1 %v5948_v13  ;;  %5394 = vmatprep.mubr.bf16.mxu1 %v4312_v12  ;;  %v12878_v13 = vld [vmem:[#allocation427_spill] sm:$0xff]  ;;  %v12884_v12 = vld [vmem:[#allocation393_spill] sm:$0xff] }
 0x679   : >> { %6496 = vmatprep.subr.bf16.mxu1 %v5955_v5  ;;  %v5946_v21 = vcombine.low %v12878_v13, %v12877_v18  ;;  %6476 = vmatprep.subr.bf16.mxu0 %v5938_v33  ;;  %v12881_v5 = vld [vmem:[#allocation442_spill] sm:$0xff]  ;;  %v5929_v9 = vcombine.low %v12884_v12, %v12883_v17  ;;  %v5936_v33 = vcombine.low %v12888_v2, %v12887_v11  ;;  %v12893_v18 = vld [vmem:[#allocation424_spill] sm:$0xff]  ;;  %v12894_v13 = vld [vmem:[#allocation423_spill] sm:$0xff] }
 0x67a   : >> { %v5953_v23 = vcombine.low %v12882_v3, %v12881_v5  ;;  %v12896_v1 = vld [vmem:[#allocation405_spill] sm:$0xff]  ;;  %v12897_v5 = vld [vmem:[#allocation438_spill] sm:$0xff]  ;;  %v4294_v17 = vcombine.high %v11480_v40, %v11480_v40  ;;  %v12903_v2 = vld [vmem:[#allocation404_spill] sm:$0xff] }
 0x67b   : >> { %6477 = vmatpush3.bf16.msra.mxu0 %v5930_v0  ;;  %v5928_v0 = vcombine.low %v12892_v7, %v12891_v39  ;;  %v12898_v3 = vld [vmem:[#allocation437_spill] sm:$0xff]  ;;  %v12899_v12 = vld [vmem:[#allocation390_spill] sm:$0xff]  ;;  %v12907_v40 = vld [vmem:[#allocation388_spill] sm:$0xff] }
 0x67c   : >> { %6497 = vmatpush3.bf16.msra.mxu1 %v5947_v44  ;;  %v5945_v44 = vcombine.low %v12886_v10, %v12885_v6  ;;  %6478 = vmatprep.subr.bf16.mxu0 %v5937_v16  ;;  %v5935_v16 = vcombine.low %v12896_v1, %v12895_v15  ;;  %v12901_v10 = vld [vmem:[#allocation422_spill] sm:$0xff]  ;;  %v4307_v7 = vshll.u32 %v4294_v17, 16 }
 0x67d   : >> { %6498 = vmatprep.subr.bf16.mxu1 %v5954_v4  ;;  %v5952_v4 = vcombine.low %v12890_v14, %v12889_v8  ;;  %v12905_v14 = vld [vmem:[#allocation436_spill] sm:$0xff]  ;;  %v12911_v1 = vld [vmem:[#allocation402_spill] sm:$0xff] }
 0x67f   : >> { %6479 = vmatpush3.bf16.msra.mxu0 %v5929_v9  ;;  %v12900_v9 = vld [vmem:[#allocation389_spill] sm:$0xff] }
 0x680   : >> { %6499 = vmatpush3.bf16.msra.mxu1 %v5946_v21  ;;  %v5944_v21 = vcombine.low %v12894_v13, %v12893_v18  ;;  %6480 = vmatprep.subr.bf16.mxu0 %v5936_v33  ;;  %v5927_v6 = vcombine.low %v12900_v9, %v12899_v12  ;;  %v12904_v33 = vld [vmem:[#allocation403_spill] sm:$0xff]  ;;  %v12909_v13 = vld [vmem:[#allocation420_spill] sm:$0xff]  ;;  %v4305_v9 = vshrl.u32 %v4294_v17, 16 }
 0x681   : >> { %6500 = vmatprep.subr.bf16.mxu1 %v5953_v23  ;;  %v5951_v23 = vcombine.low %v12898_v3, %v12897_v5  ;;  %v5934_v8 = vcombine.low %v12904_v33, %v12903_v2  ;;  %v12913_v3 = vld [vmem:[#allocation434_spill] sm:$0xff]  ;;  %v12918_v33 = vld [vmem:[#allocation417_spill] sm:$0xff] }
 0x682   : >> { %v12917_v2 = vld [vmem:[#allocation418_spill] sm:$0xff] }
 0x683   : >> { %6481 = vmatpush3.bf16.msra.mxu0 %v5928_v0  ;;  %v12908_v0 = vld [vmem:[#allocation387_spill] sm:$0xff] }
 0x684   : >> { %6501 = vmatpush3.bf16.msra.mxu1 %v5945_v44  ;;  %v12902_v44 = vld [vmem:[#allocation421_spill] sm:$0xff]  ;;  %6482 = vmatprep.subr.bf16.mxu0 %v5935_v16  ;;  %v5926_v18 = vcombine.low %v12908_v0, %v12907_v40 }
 0x685   : >> { %6502 = vmatprep.subr.bf16.mxu1 %v5952_v4  ;;  %v5943_v11 = vcombine.low %v12902_v44, %v12901_v10  ;;  %v12906_v4 = vld [vmem:[#allocation435_spill] sm:$0xff]  ;;  %v12912_v16 = vld [vmem:[#allocation401_spill] sm:$0xff]  ;;  %v4309_v10 = vrot.slane %v4307_v7, 1 }
 0x686   : >> { %v5950_v39 = vcombine.low %v12906_v4, %v12905_v14  ;;  %v5933_v5 = vcombine.low %v12912_v16, %v12911_v1  ;;  %v12916_v44 = vld [vmem:[#allocation385_spill] sm:$0xff]  ;;  %v5941_v14 = vcombine.low %v12918_v33, %v12917_v2 }
 0x687   : >> { %6483 = vmatpush3.bf16.msra.mxu0 %v5927_v6  ;;  %v12915_v6 = vld [vmem:[#allocation386_spill] sm:$0xff] }
 0x688   : >> { %6503 = vmatpush3.bf16.msra.mxu1 %v5944_v21  ;;  %v12910_v21 = vld [vmem:[#allocation419_spill] sm:$0xff]  ;;  %6484 = vmatprep.subr.bf16.mxu0 %v5934_v8  ;;  %v4310_v8 = vor.u32 %v4309_v10, %v4305_v9 }
 0x689   : >> { %6504 = vmatprep.subr.bf16.mxu1 %v5951_v23  ;;  %v5942_v15 = vcombine.low %v12910_v21, %v12909_v13  ;;  %v12914_v23 = vld [vmem:[#allocation433_spill] sm:$0xff] }
 0x68a   : >> { %v5949_v12 = vcombine.low %v12914_v23, %v12913_v3 }
 0x68b   : >> { %6485 = vmatpush3.bf16.msra.mxu0 %v5926_v18 }
 0x68c   : >> { %6505 = vmatpush3.bf16.msra.mxu1 %v5943_v11  ;;  %v5925_v11 = vcombine.low %v12916_v44, %v12915_v6  ;;  %6486 = vmatprep.subr.bf16.mxu0 %v5933_v5 }
 0x68d   : >> { %6506 = vmatprep.subr.bf16.mxu1 %v5950_v39 }
 0x68f   : >> { %6487 = vmatpush3.bf16.msra.mxu0 %v5925_v11 }
 0x690   : >> { %6507 = vmatpush3.bf16.msra.mxu1 %v5942_v15 }
 0x691   : >> { %6508 = vmatprep.subr.bf16.mxu1 %v5949_v12 }
 0x692   : >> { %5355 = vmatmul.mubr.bf16.vlgmr.msra.gmra.mxu0 %v4294_v17 }
 0x694   : >> { %6509 = vmatpush3.bf16.msra.mxu1 %v5941_v14 }
 0x697   : >> { %5395 = vmatmul.mubr.bf16.vlgmr.msra.gmra.mxu1 %v4310_v8 }
 0x6f2   : >> { %v6356_v4 = vpop.f32.mrf.mxu0 }
 0x6f4   : >> { %v6357_v40 = vpop.f32.mrf.mxu0 }
 0x6f5   : >> { %v6358_v7 = vadd.f32 %v6357_v40, %v6356_v4 }
 0x6f6   : >> { %v6359_v13 = vpop.f32.mrf.mxu0 }
 0x6f7   : >> { %v6378_v39 = vpop.f32.mrf.mxu1 }
 0x6f8   : >> { %v6360_v1 = vpop.f32.mrf.mxu0 }
 0x6f9   : >> { %v6379_v0 = vpop.f32.mrf.mxu1 }
 0x6fa   : >> { %v6380_v18 = vadd.f32 %v6379_v0, %v6378_v39 }
 0x6fb   : >> { %v6381_v21 = vpop.f32.mrf.mxu1 }
 0x6fc   : >> { %v5157_v15 = vadd.f32 %v6380_v18, %v6358_v7 }
 0x6fd   : >> { %v6382_v16 = vpop.f32.mrf.mxu1 }
 0x712   : >> { %v6400_v3 = vpop.f32.mrf.mxu0 }
 0x714   : >> { %v6401_v5 = vpop.f32.mrf.mxu0 }
 0x715   : >> { %v6402_v40 = vadd.f32 %v6401_v5, %v6400_v3 }
 0x716   : >> { %v6403_v9 = vpop.f32.mrf.mxu0 }
 0x717   : >> { %v6422_v23 = vpop.f32.mrf.mxu1  ;;  %v5197_v0 = vadd.f32 %v6402_v40, %v5157_v15 }
 0x718   : >> { %v6404_v6 = vpop.f32.mrf.mxu0 }
 0x719   : >> { %v6423_v12 = vpop.f32.mrf.mxu1 }
 0x71a   : >> { %v6424_v7 = vadd.f32 %v6423_v12, %v6422_v23 }
 0x71b   : >> { %v6425_v10 = vpop.f32.mrf.mxu1 }
 0x71c   : >> { %v5237_v13 = vadd.f32 %v6424_v7, %v5197_v0 }
 0x71d   : >> { %v6426_v17 = vpop.f32.mrf.mxu1 }
 0x732   : >> { %v6444_v44 = vpop.f32.mrf.mxu0 }
 0x734   : >> { %v6445_v2 = vpop.f32.mrf.mxu0 }
 0x735   : >> { %v6446_v18 = vadd.f32 %v6445_v2, %v6444_v44 }
 0x736   : >> { %v6447_v14 = vpop.f32.mrf.mxu0 }
 0x737   : >> { %v6466_v11 = vpop.f32.mrf.mxu1  ;;  %v5277_v21 = vadd.f32 %v6446_v18, %v5237_v13 }
 0x738   : >> { %v6448_v4 = vpop.f32.mrf.mxu0 }
 0x739   : >> { %v6467_v33 = vpop.f32.mrf.mxu1 }
 0x73a   : >> { %v6468_v1 = vadd.f32 %v6467_v33, %v6466_v11 }
 0x73b   : >> { %v6469_v8 = vpop.f32.mrf.mxu1 }
 0x73c   : >> { %v5317_v17 = vadd.f32 %v6468_v1, %v5277_v21 }
 0x73d   : >> { %v6470_v39 = vpop.f32.mrf.mxu1 }
 0x752   : >> { %v6488_v16 = vpop.f32.mrf.mxu0 }
 0x754   : >> { %v6489_v10 = vpop.f32.mrf.mxu0 }
 0x755   : >> { %v6490_v19 = vadd.f32 %v6489_v10, %v6488_v16 }
 0x756   : >> { %v6491_v14 = vpop.f32.mrf.mxu0 }
 0x757   : >> { %v6510_v9 = vpop.f32.mrf.mxu1  ;;  %v5357_v20 = vadd.f32 %v6490_v19, %v5317_v17 }
 0x758   : >> { %v6492_v3 = vpop.f32.mrf.mxu0 }
 0x759   : >> { %v6511_v6 = vpop.f32.mrf.mxu1 }
 0x75a   : >> { %v6512_v4 = vadd.f32 %v6511_v6, %v6510_v9  ;;  %4192 = sbr.rel (!%p4190_p7) target bundleno = 1550 (0x60e), region = 147 }
 0x75b   : >> { %v6513_v8 = vpop.f32.mrf.mxu1 }
 0x75c   : >> { %v5397_v23 = vadd.f32 %v6512_v4, %v5357_v20 }
 0x75d   : >> { %v6514_v15 = vpop.f32.mrf.mxu1 }
 0x75e   : >> { %5403 = vst [vmem:[%s5402_s30] sm:$0x3] %v5397_v23 }
 0x75f PF: > { %s17_s24 = sadd.s32 1, %s6652_s24  }
 0x760   : > { %p14_p8 = scmp.ge.s32.totalorder %s17_s24, 4  }
 0x762   :  { %16 = sbr.rel (!%p14_p8) target bundleno = 1 (0x1), region = 158 }

</bundles_post_ra>
